<compile_context>
chip_gen: v5e
topology: v5e:2x2
jax: 0.10.0
libtpu: 0.0.40
codegen_flags: <defaults>
</compile_context>

<pallas_src>
import functools

import jax
import jax.numpy as jnp
from jax.experimental import pallas as pl
from jax.experimental.pallas import tpu as pltpu

HIDDEN = 256


def _round_up(x, m):
    return (x + m - 1) // m * m


def actor_kernel(x_ref, w1_ref, w2_ref, w3_ref, b_ref, out_ref):
    """One batch tile of tanh(relu(relu(x@W1+b1)@W2+b2)@W3+b3).

    x_ref:  (TB, S)      f32 or bf16
    w*_ref: full weights bf16 (VMEM-resident across all grid steps)
    b_ref:  (3, HIDDEN)  f32, rows = [b1, b2, b3 (zero-padded to HIDDEN)]
    out_ref:(TB, A)      f32
    """
    A = out_ref.shape[-1]

    # MXU operands in bf16, accumulation and all elementwise math in f32.
    x = x_ref[...].astype(jnp.bfloat16)  # no-op if the producer already emits bf16

    h = jnp.dot(x, w1_ref[...], preferred_element_type=jnp.float32)
    h = jnp.maximum(h + b_ref[0:1, :], 0.0)

    h = jnp.dot(h.astype(jnp.bfloat16), w2_ref[...],
                preferred_element_type=jnp.float32)
    h = jnp.maximum(h + b_ref[1:2, :], 0.0)

    h = jnp.dot(h.astype(jnp.bfloat16), w3_ref[...],
                preferred_element_type=jnp.float32)
    out_ref[...] = jnp.tanh(h + b_ref[2:3, 0:A]).astype(out_ref.dtype)


@functools.partial(jax.jit, static_argnames=("block_b", "core_parallel"))
def actor_forward(state, params, *, block_b=1024, core_parallel=False):
    """Batched Actor forward. state: (B, state_dim) -> (B, action_dim) f32.

    core_parallel=True targets v7x (2 TensorCores): the batch grid axis gets
    CORE_PARALLEL semantics and the tile is shrunk so the grid has >=2 steps.
    """
    w1, w2, w3, biases = params
    B, S = state.shape
    A = w3.shape[1]

    # Batch tile: multiple of 8 (f32 sublane), capped at block_b.
    TB = min(block_b, _round_up(B, 8))
    if core_parallel and B > 8:
        # Keep at least 2 tiles so both v7x TensorCores get work.
        TB = min(TB, _round_up(pl.cdiv(B, 2), 8))
    B_pad = _round_up(B, TB)
    if B_pad != B:
        state = jnp.pad(state, ((0, B_pad - B), (0, 0)))
    grid = (B_pad // TB,)

    flops = 2 * B_pad * (S * HIDDEN + HIDDEN * HIDDEN + HIDDEN * A)
    bytes_accessed = (state.size * state.dtype.itemsize            # x stream
                      + (w1.size + w2.size + w3.size) * 2          # bf16 weights
                      + biases.size * 4                            # packed biases
                      + B_pad * A * 4)                             # f32 output

    semantics = (pltpu.CORE_PARALLEL,) if core_parallel else ("parallel",)

    out = pl.pallas_call(
        actor_kernel,
        out_shape=jax.ShapeDtypeStruct((B_pad, A), jnp.float32),
        grid=grid,
        in_specs=[
            pl.BlockSpec((TB, S), lambda i: (i, 0)),        # x: tiled on batch
            pl.BlockSpec(w1.shape, lambda i: (0, 0)),       # weights: constant
            pl.BlockSpec(w2.shape, lambda i: (0, 0)),       #   block index ->
            pl.BlockSpec(w3.shape, lambda i: (0, 0)),       #   VMEM-resident
            pl.BlockSpec(biases.shape, lambda i: (0, 0)),   # packed biases
        ],
        out_specs=pl.BlockSpec((TB, A), lambda i: (i, 0)),
        compiler_params=pltpu.CompilerParams(
            dimension_semantics=semantics,
            vmem_limit_bytes=32 * 1024 * 1024),              # safe on v5e/v6e/v7x
        cost_estimate=pl.CostEstimate(
            flops=flops,
            transcendentals=B_pad * A,                       # tanh
            bytes_accessed=bytes_accessed),
    )(state, w1, w2, w3, biases)

    return out[:B] if B_pad != B else out


def init_actor_params(key, state_dim, action_dim, hidden=HIDDEN):
    """Deterministic init mirroring nn.Linear's U(-1/sqrt(fan_in), 1/sqrt(fan_in)).

    Returns (w1_bf16, w2_bf16, w3_bf16, packed_biases_f32[(3, hidden)]).
    Weights are stored bf16 (intentional fidelity tradeoff vs. the f32 PyTorch
    module; matmuls accumulate in f32).
    """
    ks = jax.random.split(key, 6)

    def linear(kw, kb, fan_in, fan_out):
        bound = 1.0 / jnp.sqrt(jnp.float32(fan_in))
        w = jax.random.uniform(kw, (fan_in, fan_out), jnp.float32, -bound, bound)
        b = jax.random.uniform(kb, (fan_out,), jnp.float32, -bound, bound)
        return w, b

    w1, b1 = linear(ks[0], ks[1], state_dim, hidden)
    w2, b2 = linear(ks[2], ks[3], hidden, hidden)
    w3, b3 = linear(ks[4], ks[5], hidden, action_dim)

    biases = jnp.zeros((3, hidden), jnp.float32)
    biases = biases.at[0, :].set(b1)
    biases = biases.at[1, :].set(b2)
    biases = biases.at[2, :action_dim].set(b3)

    return (w1.astype(jnp.bfloat16),
            w2.astype(jnp.bfloat16),
            w3.astype(jnp.bfloat16),
            biases)


def actor_reference(state, params):
    """Pure-JAX reference with the same bf16-weight / f32-accum precision."""
    w1, w2, w3, biases = params
    A = w3.shape[1]
    h = jnp.dot(state.astype(jnp.bfloat16), w1,
                preferred_element_type=jnp.float32) + biases[0:1, :]
    h = jnp.maximum(h, 0.0)
    h = jnp.dot(h.astype(jnp.bfloat16), w2,
                preferred_element_type=jnp.float32) + biases[1:2, :]
    h = jnp.maximum(h, 0.0)
    h = jnp.dot(h.astype(jnp.bfloat16), w3,
                preferred_element_type=jnp.float32) + biases[2:3, :A]
    return jnp.tanh(h)


if __name__ == "__main__":
    key = jax.random.PRNGKey(0)
    k_params, k_state = jax.random.split(key)

    state_dim, action_dim = 32, 8
    max_action = 1.0  # stored on the PyTorch module but unused in forward()

    params = init_actor_params(k_params, state_dim, action_dim)

    # Batched case: 2048 states -> 2 grid tiles of 1024 rows; weights DMA'd once.
    batch = 2048
    state = jax.random.normal(k_state, (batch, state_dim), jnp.float32)
    out = jax.block_until_ready(actor_forward(state, params))
    ref = actor_reference(state, params)
    assert out.shape == (batch, action_dim)
    assert bool(jnp.all(jnp.abs(out) <= 1.0 + 1e-6))
    assert jnp.allclose(out, ref, atol=2e-2, rtol=2e-2)

    # Tiny / ragged batch still works (padded to the 8-row f32 sublane internally).
    small_state = jax.random.normal(jax.random.PRNGKey(1), (6, state_dim),
                                    jnp.float32)
    out_small = jax.block_until_ready(actor_forward(small_state, params))
    assert out_small.shape == (6, action_dim)
    assert jnp.allclose(out_small, actor_reference(small_state, params),
                        atol=2e-2, rtol=2e-2)

    print("KERNEL_OK")
</pallas_src>

<mosaic_0001>
module attributes {stable_mosaic.version = 11 : i64} {
  func.func @actor_kernel(%arg0: i32, %arg1: memref<1024x32xf32, #tpu.memory_space<vmem>>, %arg2: memref<32x256xbf16, #tpu.memory_space<vmem>>, %arg3: memref<256x256xbf16, #tpu.memory_space<vmem>>, %arg4: memref<256x8xbf16, #tpu.memory_space<vmem>>, %arg5: memref<3x256xf32, #tpu.memory_space<vmem>>, %arg6: memref<1024x8xf32, #tpu.memory_space<vmem>>) attributes {dimension_semantics = [#tpu.dimension_semantics<parallel>], iteration_bounds = array<i64: 2>, scalar_prefetch = 0 : i64, scratch_operands = 0 : i64, tpu.core_type = #tpu.core_type<tc>, window_params = [{transform_indices = @transform_0, window_bounds = array<i64: 1024, 32>}, {pipeline_mode = #tpu.pipeline_mode<synchronous>, transform_indices = @transform_1, window_bounds = array<i64: 32, 256>}, {pipeline_mode = #tpu.pipeline_mode<synchronous>, transform_indices = @transform_2, window_bounds = array<i64: 256, 256>}, {pipeline_mode = #tpu.pipeline_mode<synchronous>, transform_indices = @transform_3, window_bounds = array<i64: 256, 8>}, {pipeline_mode = #tpu.pipeline_mode<synchronous>, transform_indices = @transform_4, window_bounds = array<i64: 3, 256>}, {transform_indices = @transform_5, window_bounds = array<i64: 1024, 8>}]} {
    %c0 = arith.constant 0 : index
    %c0_0 = arith.constant 0 : index
    %0 = vector.load %arg1[%c0, %c0_0] : memref<1024x32xf32, #tpu.memory_space<vmem>>, vector<1024x32xf32>
    %1 = arith.truncf %0 : vector<1024x32xf32> to vector<1024x32xbf16>
    %c0_1 = arith.constant 0 : index
    %c0_2 = arith.constant 0 : index
    %2 = vector.load %arg2[%c0_1, %c0_2] : memref<32x256xbf16, #tpu.memory_space<vmem>>, vector<32x256xbf16>
    %cst = arith.constant dense<0.000000e+00> : vector<1024x256xf32>
    %3 = tpu.matmul %1, %2, %cst {dimension_numbers = #tpu.dot_dimension_numbers<[1], [0], [0], [1], [0, 0, 1, 1], [], []>} : vector<1024x32xbf16>, vector<32x256xbf16>, vector<1024x256xf32> -> vector<1024x256xf32>
    %c0_3 = arith.constant 0 : index
    %c0_4 = arith.constant 0 : index
    %4 = vector.load %arg5[%c0_3, %c0_4] : memref<3x256xf32, #tpu.memory_space<vmem>>, vector<1x256xf32>
    %5 = vector.broadcast %4 : vector<1x256xf32> to vector<1024x256xf32>
    %6 = arith.addf %3, %5 : vector<1024x256xf32>
    %cst_5 = arith.constant 0.000000e+00 : f32
    %7 = vector.broadcast %cst_5 : f32 to vector<1024x256xf32>
    %8 = arith.maximumf %6, %7 : vector<1024x256xf32>
    %9 = arith.truncf %8 : vector<1024x256xf32> to vector<1024x256xbf16>
    %c0_6 = arith.constant 0 : index
    %c0_7 = arith.constant 0 : index
    %10 = vector.load %arg3[%c0_6, %c0_7] : memref<256x256xbf16, #tpu.memory_space<vmem>>, vector<256x256xbf16>
    %cst_8 = arith.constant dense<0.000000e+00> : vector<1024x256xf32>
    %11 = tpu.matmul %9, %10, %cst_8 {dimension_numbers = #tpu.dot_dimension_numbers<[1], [0], [0], [1], [0, 0, 1, 1], [], []>} : vector<1024x256xbf16>, vector<256x256xbf16>, vector<1024x256xf32> -> vector<1024x256xf32>
    %c1 = arith.constant 1 : index
    %c0_9 = arith.constant 0 : index
    %12 = vector.load %arg5[%c1, %c0_9] : memref<3x256xf32, #tpu.memory_space<vmem>>, vector<1x256xf32>
    %13 = vector.broadcast %12 : vector<1x256xf32> to vector<1024x256xf32>
    %14 = arith.addf %11, %13 : vector<1024x256xf32>
    %cst_10 = arith.constant 0.000000e+00 : f32
    %15 = vector.broadcast %cst_10 : f32 to vector<1024x256xf32>
    %16 = arith.maximumf %14, %15 : vector<1024x256xf32>
    %17 = arith.truncf %16 : vector<1024x256xf32> to vector<1024x256xbf16>
    %c0_11 = arith.constant 0 : index
    %c0_12 = arith.constant 0 : index
    %18 = vector.load %arg4[%c0_11, %c0_12] : memref<256x8xbf16, #tpu.memory_space<vmem>>, vector<256x8xbf16>
    %cst_13 = arith.constant dense<0.000000e+00> : vector<1024x8xf32>
    %19 = tpu.matmul %17, %18, %cst_13 {dimension_numbers = #tpu.dot_dimension_numbers<[1], [0], [0], [1], [0, 0, 1, 1], [], []>} : vector<1024x256xbf16>, vector<256x8xbf16>, vector<1024x8xf32> -> vector<1024x8xf32>
    %c2 = arith.constant 2 : index
    %c0_14 = arith.constant 0 : index
    %20 = vector.load %arg5[%c2, %c0_14] : memref<3x256xf32, #tpu.memory_space<vmem>>, vector<1x8xf32>
    %21 = vector.broadcast %20 : vector<1x8xf32> to vector<1024x8xf32>
    %22 = arith.addf %19, %21 : vector<1024x8xf32>
    %23 = math.tanh %22 : vector<1024x8xf32>
    %c0_15 = arith.constant 0 : index
    %c0_16 = arith.constant 0 : index
    %24 = vector.load %arg6[%c0_15, %c0_16] : memref<1024x8xf32, #tpu.memory_space<vmem>>, vector<1024x8xf32>
    tpu.vector_store %arg6[%c0_15, %c0_16], %23 {strides = array<i32>} : memref<1024x8xf32, #tpu.memory_space<vmem>>, vector<1024x8xf32>,
    return
  }
  func.func @transform_0(%arg0: i32) -> (i32, i32) {
    %c0_i32 = arith.constant 0 : i32
    %c0_i32_0 = arith.constant 0 : i32
    return %arg0, %c0_i32 : i32, i32
  }
  func.func @transform_1(%arg0: i32) -> (i32, i32) {
    %c0_i32 = arith.constant 0 : i32
    %c0_i32_0 = arith.constant 0 : i32
    %c0_i32_1 = arith.constant 0 : i32
    return %c0_i32, %c0_i32_0 : i32, i32
  }
  func.func @transform_2(%arg0: i32) -> (i32, i32) {
    %c0_i32 = arith.constant 0 : i32
    %c0_i32_0 = arith.constant 0 : i32
    %c0_i32_1 = arith.constant 0 : i32
    return %c0_i32, %c0_i32_0 : i32, i32
  }
  func.func @transform_3(%arg0: i32) -> (i32, i32) {
    %c0_i32 = arith.constant 0 : i32
    %c0_i32_0 = arith.constant 0 : i32
    %c0_i32_1 = arith.constant 0 : i32
    return %c0_i32, %c0_i32_0 : i32, i32
  }
  func.func @transform_4(%arg0: i32) -> (i32, i32) {
    %c0_i32 = arith.constant 0 : i32
    %c0_i32_0 = arith.constant 0 : i32
    %c0_i32_1 = arith.constant 0 : i32
    return %c0_i32, %c0_i32_0 : i32, i32
  }
  func.func @transform_5(%arg0: i32) -> (i32, i32) {
    %c0_i32 = arith.constant 0 : i32
    %c0_i32_0 = arith.constant 0 : i32
    return %arg0, %c0_i32 : i32, i32
  }
}

</mosaic_0001>

<bundles_post_ra>
// kernel: actor_forward.1
= control target key start
LH: loop header
LB: loop body
LE: loop exit
PB: predicated region body
PF: predicated region fallthrough
CT: control target
= control target key end

     0   :  { %s5393_s18 = smov 0   ;;  %s7578_s0 = inlined_call_operand.vmem [shape: f32[2048,32], index: 0, kind: input, shape index: {}]   ;;  %s7579_s1 = inlined_call_operand.vmem [shape: bf16[32,256], index: 1, kind: input, shape index: {}]   ;;  %s7580_s2 = inlined_call_operand.vmem [shape: bf16[256,256], index: 2, kind: input, shape index: {}]   ;;  %s7581_s3 = inlined_call_operand.vmem [shape: bf16[256,8], index: 3, kind: input, shape index: {}]   ;;  %s7582_s4 = inlined_call_operand.vmem [shape: f32[3,256], index: 4, kind: input, shape index: {}]   ;;  %s7583_s5 = inlined_call_operand.vmem [shape: f32[2048,8], index: 5, kind: output, shape index: {}]  }
   0x1 LB: > { %s4686_s19 = sadd.s32 4294967295, %s5361_s18   ;;  %p4690_p0 = scmp.ge.s32.totalorder %s5361_s18, 1  ;;  %s5361_s18 = sphi %s5393_s18, %s15_s18  }
   0x2   : > { %p188_p1 = scmp.lt.s32.totalorder %s5361_s18, 3 }
   0x4   : > { %p189_p2 = pnand %p4690_p0, %p188_p1 }
   0x6   : > { %192 = sbr.rel (%p189_p2) target bundleno = 2347 (0x92b), region = 40 }
   0xb   : > { %v4705_v0 = vld [vmem:[%s7579_s1 + $0x10] sm:$0xf]  ;;  %v5037_v1 = vld [vmem:[%s7579_s1 + $0x14] sm:$0xf0]  ;;  %v5036_v2 = vld [vmem:[%s7579_s1 + $0x14] sm:$0xf] }
   0xc   : > { %v4706_v3 = vor.u32 %v5037_v1, %v4705_v0  ;;  %v4707_v4 = vld [vmem:[%s7579_s1 + $0x18] sm:$0xf0]  ;;  %v4697_v5 = vld [vmem:[%s7579_s1] sm:$0xf]  ;;  %v5035_v6 = vld [vmem:[%s7579_s1 + $0x4] sm:$0xf0] }
   0xd   : > { %v4710_v7 = vor.u32 %v5036_v2, %v4707_v4  ;;  %v5034_v8 = vld [vmem:[%s7579_s1 + $0x4] sm:$0xf]  ;;  %v4699_v9 = vld [vmem:[%s7579_s1 + $0x8] sm:$0xf0]  ;;  %s4691_s11 = sshll.u32 %s4686_s19, 7  ;;  %v4698_v10 = vor.u32 %v5035_v6, %v4697_v5  ;;  %vm451_vm0 = vcmask 261120  }
   0xe   : > { %650 = vmatpush.bf16.msra.mxu0 %v4706_v3  ;;  %p217_p3 = scmp.lt.s32.totalorder %s4691_s11, 255  ;;  %v5052_v11 = vld [vmem:[%s7580_s2 + $0x74] sm:$0xf]  ;;  %v4900_v12 = vld [vmem:[%s7580_s2 + $0x78] sm:$0xf0]  ;;  %v4702_v13 = vor.u32 %v5034_v8, %v4699_v9  ;;  %vm4501_vm1 = vcmask 64512  }
   0xf   : > { %979 = vmatpush.bf16.msra.mxu1 %v4710_v7  ;;  %v4903_v14 = vor.u32 %v5052_v11, %v4900_v12  ;;  %v5068_v15 = vld [vmem:[%s7580_s2 + $0xf4] sm:$0xf]  ;;  %v4964_v16 = vld [vmem:[%s7580_s2 + $0xf8] sm:$0xf0]  ;;  %v4898_v33 = vld [vmem:[%s7580_s2 + $0x70] sm:$0xf] }
  0x10   : > { %s7920_s11 = smov (!%p217_p3, %s4691_s11), 255  ;;  %v4967_v17 = vor.u32 %v5068_v15, %v4964_v16  ;;  %v5053_v34 = vld [vmem:[%s7580_s2 + $0x74] sm:$0xf0]  ;;  %v4962_v35 = vld [vmem:[%s7580_s2 + $0xf0] sm:$0xf] }
  0x11   : > { %s4692_s21 = sshll.u32 %s7920_s11, 3  ;;  %v4899_v36 = vor.u32 %v5053_v34, %v4898_v33  ;;  %v5069_v37 = vld [vmem:[%s7580_s2 + $0xf4] sm:$0xf0]  ;;  %v4890_v42 = vld [vmem:[%s7580_s2 + $0x60] sm:$0xf] }
  0x12   : > { %651 = vmatpush.bf16.msra.mxu0 %v4698_v10  ;;  %s5445_s24 = scalar_lea.vmem %s7578_s0, %s4692_s21  ;;  %v4963_v38 = vor.u32 %v5069_v37, %v4962_v35  ;;  %v5051_v43 = vld [vmem:[%s7580_s2 + $0x64] sm:$0xf0]  ;;  %v4954_v44 = vld [vmem:[%s7580_s2 + $0xe0] sm:$0xf]  ;;  %v4882_v48 = vld [vmem:[%s7580_s2 + $0x50] sm:$0xf]  ;;  %s6920_s15 = scalar_lea.vmem %s7583_s5, %s4692_s21 }
  0x13   : > { %980 = vmatpush.bf16.msra.mxu1 %v4702_v13  ;;  %v229_v18 = vld [vmem:[%s5445_s24] sm:$0xff]  ;;  %v230_v19 = vld [vmem:[%s5445_s24 + $0x8] sm:$0xff]  ;;  %v231_v21 = vld [vmem:[%s5445_s24 + $0x10] sm:$0xff]  ;;  %1885 = vmatpush.bf16.msra.mxu2 %v4899_v36  ;;  %v4891_v45 = vor.u32 %v5051_v43, %v4890_v42 }
  0x14   : > { %v357_v20 = vpack.c.bf16 %v230_v19, %v229_v18  ;;  %v232_v22 = vld [vmem:[%s5445_s24 + $0x18] sm:$0xff]  ;;  %v233_v24 = vld [vmem:[%s5445_s24 + $0x20] sm:$0xff]  ;;  %v234_v25 = vld [vmem:[%s5445_s24 + $0x28] sm:$0xff]  ;;  %2214 = vmatpush.bf16.msra.mxu3 %v4963_v38 }
  0x15   : > { %v358_v23 = vpack.c.bf16 %v232_v22, %v231_v21  ;;  %v359_v26 = vpack.c.bf16 %v234_v25, %v233_v24  ;;  %v235_v27 = vld [vmem:[%s5445_s24 + $0x30] sm:$0xff]  ;;  %v236_v28 = vld [vmem:[%s5445_s24 + $0x38] sm:$0xff]  ;;  %v237_v30 = vld [vmem:[%s5445_s24 + $0x40] sm:$0xff] }
  0x16   : > { %2543 = vmatpush.bf16.msrb.mxu0 %v4903_v14  ;;  %4775 = vmatmul.msk.bf16.vlgmr.msra.gmra.mxu1 %vm451_vm0, %v357_v20  ;;  %v360_v29 = vpack.c.bf16 %v236_v28, %v235_v27  ;;  %v238_v31 = vld [vmem:[%s5445_s24 + $0x48] sm:$0xff]  ;;  %v239_v39 = vld [vmem:[%s5445_s24 + $0x50] sm:$0xff]  ;;  %v240_v40 = vld [vmem:[%s5445_s24 + $0x58] sm:$0xff] }
  0x17   : > { %2872 = vmatpush.bf16.msrb.mxu1 %v4967_v17  ;;  %4711 = vmatmul.msk.bf16.vlgmr.msra.gmra.mxu0 %vm451_vm0, %v357_v20  ;;  %v361_v32 = vpack.c.bf16 %v238_v31, %v237_v30  ;;  %v362_v41 = vpack.c.bf16 %v240_v40, %v239_v39  ;;  %v5067_v46 = vld [vmem:[%s7580_s2 + $0xe4] sm:$0xf0]  ;;  %v5049_v49 = vld [vmem:[%s7580_s2 + $0x54] sm:$0xf0]  ;;  %v4946_v50 = vld [vmem:[%s7580_s2 + $0xd0] sm:$0xf] }
  0x18   : > { %v4955_v47 = vor.u32 %v5067_v46, %v4954_v44  ;;  %1886 = vmatpush.bf16.msra.mxu2 %v4891_v45  ;;  %v4883_v51 = vor.u32 %v5049_v49, %v4882_v48  ;;  %v5065_v52 = vld [vmem:[%s7580_s2 + $0xd4] sm:$0xf0]  ;;  %v4874_v54 = vld [vmem:[%s7580_s2 + $0x40] sm:$0xf]  ;;  %v5047_v55 = vld [vmem:[%s7580_s2 + $0x44] sm:$0xf0] }
  0x19   : > { %v4947_v53 = vor.u32 %v5065_v52, %v4946_v50  ;;  %v4938_v56 = vld [vmem:[%s7580_s2 + $0xc0] sm:$0xf]  ;;  %v5063_v57 = vld [vmem:[%s7580_s2 + $0xc4] sm:$0xf0]  ;;  %v4875_v58 = vor.u32 %v5047_v55, %v4874_v54  ;;  %v4866_v62 = vld [vmem:[%s7580_s2 + $0x30] sm:$0xf] }
  0x1a   : > { %2215 = vmatpush.bf16.msra.mxu3 %v4955_v47  ;;  %v4939_v59 = vor.u32 %v5063_v57, %v4938_v56  ;;  %v241_v60 = vld [vmem:[%s5445_s24 + $0x60] sm:$0xff]  ;;  %v242_v61 = vld [vmem:[%s5445_s24 + $0x68] sm:$0xff]  ;;  %v5045_v63 = vld [vmem:[%s7580_s2 + $0x34] sm:$0xf0] }
  0x1b   : > { %v4930_v0 = vld [vmem:[%s7580_s2 + $0xb0] sm:$0xf]  ;;  %v4867_v1 = vor.u32 %v5045_v63, %v4866_v62  ;;  %v5061_v2 = vld [vmem:[%s7580_s2 + $0xb4] sm:$0xf0]  ;;  %v363_v3 = vpack.c.bf16 %v242_v61, %v241_v60  ;;  %v4858_v5 = vld [vmem:[%s7580_s2 + $0x20] sm:$0xf] }
  0x1c   : > { %1887 = vmatpush.bf16.msra.mxu2 %v4883_v51  ;;  %v4931_v4 = vor.u32 %v5061_v2, %v4930_v0  ;;  %v5043_v6 = vld [vmem:[%s7580_s2 + $0x24] sm:$0xf0]  ;;  %v4922_v8 = vld [vmem:[%s7580_s2 + $0xa0] sm:$0xf]  ;;  %v5050_v10 = vld [vmem:[%s7580_s2 + $0x64] sm:$0xf] }
  0x1d   : > { %v4859_v7 = vor.u32 %v5043_v6, %v4858_v5  ;;  %v5059_v9 = vld [vmem:[%s7580_s2 + $0xa4] sm:$0xf0]  ;;  %v4892_v11 = vld [vmem:[%s7580_s2 + $0x68] sm:$0xf0]  ;;  %v5066_v13 = vld [vmem:[%s7580_s2 + $0xe4] sm:$0xf] }
  0x1e   : > { %2216 = vmatpush.bf16.msra.mxu3 %v4947_v53  ;;  %v4923_v12 = vor.u32 %v5059_v9, %v4922_v8  ;;  %v4895_v14 = vor.u32 %v5050_v10, %v4892_v11  ;;  %v4956_v15 = vld [vmem:[%s7580_s2 + $0xe8] sm:$0xf0]  ;;  %v4850_v17 = vld [vmem:[%s7580_s2 + $0x10] sm:$0xf]  ;;  %v5041_v18 = vld [vmem:[%s7580_s2 + $0x14] sm:$0xf0] }
  0x1f   : > { %v4959_v16 = vor.u32 %v5066_v13, %v4956_v15  ;;  %v4914_v19 = vld [vmem:[%s7580_s2 + $0x90] sm:$0xf]  ;;  %v4851_v20 = vor.u32 %v5041_v18, %v4850_v17  ;;  %v5057_v21 = vld [vmem:[%s7580_s2 + $0x94] sm:$0xf0]  ;;  %v5039_v24 = vld [vmem:[%s7580_s2 + $0x4] sm:$0xf0] }
  0x20   : > { %1888 = vmatpush.bf16.msra.mxu2 %v4875_v58  ;;  %2544 = vmatpush.bf16.msrb.mxu0 %v4895_v14  ;;  %v4915_v22 = vor.u32 %v5057_v21, %v4914_v19  ;;  %v4906_v25 = vld [vmem:[%s7580_s2 + $0x80] sm:$0xf]  ;;  %v5055_v27 = vld [vmem:[%s7580_s2 + $0x84] sm:$0xf0]  ;;  %v244_v30 = vld [vmem:[%s5445_s24 + $0x78] sm:$0xff] }
  0x21   : > { %2873 = vmatpush.bf16.msrb.mxu1 %v4959_v16  ;;  %v4907_v28 = vor.u32 %v5055_v27, %v4906_v25  ;;  %v5085_v33 = vld [vmem:[%s7581_s3 + $0x78] sm:$0xff]  ;;  %v245_v34 = vld [vmem:[%s5445_s24 + $0x80] sm:$0xff]  ;;  %v246_v35 = vld [vmem:[%s5445_s24 + $0x88] sm:$0xff] }
  0x22   : > { %2217 = vmatpush.bf16.msra.mxu3 %v4939_v59  ;;  %v365_v36 = vpack.c.bf16 %v246_v35, %v245_v34  ;;  %v425_v37 = vld [vmem:[%s7582_s4] ss:$4 sm:$0x3]  ;;  %v247_v52 = vld [vmem:[%s5445_s24 + $0x90] sm:$0xff]  ;;  %v248_v53 = vld [vmem:[%s5445_s24 + $0x98] sm:$0xff] }
  0x23   : > { %v5598_v40 = vperm.slane %v425_v37, 0  ;;  %v366_v56 = vpack.c.bf16 %v248_v53, %v247_v52  ;;  %v249_v5 = vld [vmem:[%s5445_s24 + $0xa0] sm:$0xff]  ;;  %v250_v6 = vld [vmem:[%s5445_s24 + $0xa8] sm:$0xff] }
  0x24   : > { %1889 = vmatpush.bf16.msra.mxu2 %v4867_v1  ;;  %v367_v9 = vpack.c.bf16 %v250_v6, %v249_v5 }
  0x26   : > { %4776 = vmatmul.msk.bf16.gmra.mxu1 %vm451_vm0, %v358_v23  ;;  %2218 = vmatpush.bf16.msra.mxu3 %v4931_v4 }
  0x27   : > { %4712 = vmatmul.msk.bf16.gmra.mxu0 %vm451_vm0, %v358_v23  ;;  %v4842_v23 = vld [vmem:[%s7580_s2] sm:$0xf] }
  0x28   : > { %1890 = vmatpush.bf16.msra.mxu2 %v4859_v7 }
  0x2a   : > { %2219 = vmatpush.bf16.msra.mxu3 %v4923_v12 }
  0x2c   : > { %1891 = vmatpush.bf16.msra.mxu2 %v4851_v20 }
  0x2e   : > { %2220 = vmatpush.bf16.msra.mxu3 %v4915_v22  ;;  %v251_v22 = vld [vmem:[%s5445_s24 + $0xb0] sm:$0xff] }
  0x32   : > { %2221 = vmatpush.bf16.msra.mxu3 %v4907_v28 }
  0x36   : > { %4777 = vmatmul.msk.bf16.gmra.mxu1 %vm451_vm0, %v359_v26  ;;  %4044 = vmatpush.bf16.msrb.mxu3 %v5085_v33 }
  0x37   : > { %4713 = vmatmul.msk.bf16.gmra.mxu0 %vm451_vm0, %v359_v26  ;;  %v4843_v26 = vor.u32 %v5039_v24, %v4842_v23  ;;  %v252_v23 = vld [vmem:[%s5445_s24 + $0xb8] sm:$0xff] }
  0x39   : > { %1892 = vmatpush.bf16.msra.mxu2 %v4843_v26  ;;  %v368_v26 = vpack.c.bf16 %v252_v23, %v251_v22  ;;  %v5048_v22 = vld [vmem:[%s7580_s2 + $0x54] sm:$0xf]  ;;  %v4884_v23 = vld [vmem:[%s7580_s2 + $0x58] sm:$0xf0] }
  0x46   : > { %4778 = vmatmul.msk.bf16.gmra.mxu1 %vm451_vm0, %v360_v29 }
  0x47   : > { %4714 = vmatmul.msk.bf16.gmra.mxu0 %vm451_vm0, %v360_v29  ;;  %v243_v29 = vld [vmem:[%s5445_s24 + $0x70] sm:$0xff] }
  0x48   : > { %v364_v31 = vpack.c.bf16 %v244_v30, %v243_v29 }
  0x56   : > { %4779 = vmatmul.msk.bf16.gmra.mxu1 %vm451_vm0, %v361_v32 }
  0x57   : > { %4715 = vmatmul.msk.bf16.gmra.mxu0 %vm451_vm0, %v361_v32  ;;  %v5077_v32 = vld [vmem:[%s7581_s3 + $0x38] sm:$0xff] }
  0x58   : > { %3715 = vmatpush.bf16.msrb.mxu2 %v5077_v32 }
  0x66   : > { %4780 = vmatmul.msk.bf16.gmra.mxu1 %vm451_vm0, %v362_v41 }
  0x67   : > { %4716 = vmatmul.msk.bf16.gmra.mxu0 %vm451_vm0, %v362_v41  ;;  %v5600_v41 = vperm.slane %v425_v37, 1 }
  0x76   : > { %4781 = vmatmul.msk.bf16.gmra.mxu1 %vm451_vm0, %v363_v3 }
  0x77   : > { %4717 = vmatmul.msk.bf16.gmra.mxu0 %vm451_vm0, %v363_v3 }
  0x86   : > { %4782 = vmatmul.msk.bf16.gmra.mxu1 %vm451_vm0, %v364_v31 }
  0x87   : > { %4718 = vmatmul.msk.bf16.gmra.mxu0 %vm451_vm0, %v364_v31 }
  0x93   : > { %v982_v39 = vpop.f32.mrf.mxu1 }
  0x94   : > { %v653_v38 = vpop.f32.mrf.mxu0  ;;  %v983_v43 = vadd.f32 %v982_v39, %v5600_v41  ;;  %v253_v39 = vld [vmem:[%s5445_s24 + $0xc0] sm:$0xff] }
  0x95   : > { %v654_v42 = vadd.f32 %v653_v38, %v5598_v40 }
  0x96   : > { %4783 = vmatmul.msk.bf16.gmra.mxu1 %vm451_vm0, %v365_v36  ;;  %v1303_v49 = vmax.f32 %v983_v43, 0.0 }
  0x97   : > { %4719 = vmatmul.msk.bf16.gmra.mxu0 %vm451_vm0, %v365_v36  ;;  %v1302_v48 = vmax.f32 %v654_v42, 0.0  ;;  %v254_v42 = vld [vmem:[%s5445_s24 + $0xc8] sm:$0xff] }
  0x9b   : > { %v984_v45 = vpop.f32.mrf.mxu1 }
  0x9c   : > { %v655_v44 = vpop.f32.mrf.mxu0  ;;  %v985_v47 = vadd.f32 %v984_v45, %v5600_v41  ;;  %v369_v45 = vpack.c.bf16 %v254_v42, %v253_v39  ;;  %v259_v42 = vld [vmem:[%s5445_s24 + $0xf0] sm:$0xff] }
  0x9d   : > { %v656_v46 = vadd.f32 %v655_v44, %v5598_v40 }
  0x9e   : > { %v1305_v51 = vmax.f32 %v985_v47, 0.0 }
  0x9f   : > { %v1304_v50 = vmax.f32 %v656_v46, 0.0 }
  0xa0   : > { %v5612_v55 = vpack.c.bf16 %v1305_v51, %v1303_v49 }
  0xa1   : > { %v5610_v54 = vpack.c.bf16 %v1304_v50, %v1302_v48 }
  0xa2   : > { %2222 = vmatmul.bf16.vlgmr.msra.gmra.mxu3 %v5612_v55 }
  0xa3   : > { %1893 = vmatmul.bf16.vlgmr.msra.gmra.mxu2 %v5610_v54  ;;  %v987_v58 = vpop.f32.mrf.mxu1 }
  0xa4   : > { %v658_v57 = vpop.f32.mrf.mxu0  ;;  %v988_v60 = vadd.f32 %v987_v58, %v5600_v41 }
  0xa5   : > { %v659_v59 = vadd.f32 %v658_v57, %v5598_v40 }
  0xa6   : > { %4784 = vmatmul.msk.bf16.gmra.mxu1 %vm451_vm0, %v366_v56  ;;  %v1307_v2 = vmax.f32 %v988_v60, 0.0  ;;  %v255_v60 = vld [vmem:[%s5445_s24 + $0xd0] sm:$0xff] }
  0xa7   : > { %4720 = vmatmul.msk.bf16.gmra.mxu0 %vm451_vm0, %v366_v56  ;;  %v1306_v1 = vmax.f32 %v659_v59, 0.0 }
  0xab   : > { %v989_v62 = vpop.f32.mrf.mxu1 }
  0xac   : > { %v660_v61 = vpop.f32.mrf.mxu0  ;;  %v990_v0 = vadd.f32 %v989_v62, %v5600_v41 }
  0xad   : > { %v661_v63 = vadd.f32 %v660_v61, %v5598_v40  ;;  %v256_v61 = vld [vmem:[%s5445_s24 + $0xd8] sm:$0xff] }
  0xae   : > { %v1309_v4 = vmax.f32 %v990_v0, 0.0  ;;  %v370_v0 = vpack.c.bf16 %v256_v61, %v255_v60 }
  0xaf   : > { %v1308_v3 = vmax.f32 %v661_v63, 0.0 }
  0xb0   : > { %v5626_v8 = vpack.c.bf16 %v1309_v4, %v1307_v2 }
  0xb1   : > { %v5624_v7 = vpack.c.bf16 %v1308_v3, %v1306_v1 }
  0xb2   : > { %2227 = vmatmul.bf16.gmra.mxu3 %v5626_v8 }
  0xb3   : > { %1898 = vmatmul.bf16.gmra.mxu2 %v5624_v7  ;;  %v992_v11 = vpop.f32.mrf.mxu1 }
  0xb4   : > { %v663_v10 = vpop.f32.mrf.mxu0  ;;  %v993_v13 = vadd.f32 %v992_v11, %v5600_v41 }
  0xb5   : > { %v664_v12 = vadd.f32 %v663_v10, %v5598_v40 }
  0xb6   : > { %4785 = vmatmul.msk.bf16.gmra.mxu1 %vm451_vm0, %v367_v9  ;;  %v1311_v19 = vmax.f32 %v993_v13, 0.0 }
  0xb7   : > { %4721 = vmatmul.msk.bf16.gmra.mxu0 %vm451_vm0, %v367_v9  ;;  %v1310_v18 = vmax.f32 %v664_v12, 0.0 }
  0xbb   : > { %v994_v15 = vpop.f32.mrf.mxu1 }
  0xbc   : > { %v665_v14 = vpop.f32.mrf.mxu0  ;;  %v995_v17 = vadd.f32 %v994_v15, %v5600_v41  ;;  %v257_v15 = vld [vmem:[%s5445_s24 + $0xe0] sm:$0xff] }
  0xbd   : > { %v666_v16 = vadd.f32 %v665_v14, %v5598_v40 }
  0xbe   : > { %v1313_v21 = vmax.f32 %v995_v17, 0.0 }
  0xbf   : > { %v1312_v20 = vmax.f32 %v666_v16, 0.0  ;;  %v258_v16 = vld [vmem:[%s5445_s24 + $0xe8] sm:$0xff] }
  0xc0   : > { %v5640_v25 = vpack.c.bf16 %v1313_v21, %v1311_v19  ;;  %v371_v19 = vpack.c.bf16 %v258_v16, %v257_v15 }
  0xc1   : > { %v5638_v24 = vpack.c.bf16 %v1312_v20, %v1310_v18 }
  0xc2   : > { %2232 = vmatmul.bf16.gmra.mxu3 %v5640_v25 }
  0xc3   : > { %1903 = vmatmul.bf16.gmra.mxu2 %v5638_v24  ;;  %v997_v28 = vpop.f32.mrf.mxu1 }
  0xc4   : > { %v668_v27 = vpop.f32.mrf.mxu0  ;;  %v998_v30 = vadd.f32 %v997_v28, %v5600_v41  ;;  %v4948_v28 = vld [vmem:[%s7580_s2 + $0xd8] sm:$0xf0] }
  0xc5   : > { %v669_v29 = vadd.f32 %v668_v27, %v5598_v40  ;;  %v5064_v27 = vld [vmem:[%s7580_s2 + $0xd4] sm:$0xf] }
  0xc6   : > { %4786 = vmatmul.msk.bf16.gmra.mxu1 %vm451_vm0, %v368_v26  ;;  %v1315_v36 = vmax.f32 %v998_v30, 0.0 }
  0xc7   : > { %4722 = vmatmul.msk.bf16.gmra.mxu0 %vm451_vm0, %v368_v26  ;;  %v1314_v35 = vmax.f32 %v669_v29, 0.0  ;;  %v4887_v26 = vor.u32 %v5048_v22, %v4884_v23  ;;  %v4951_v29 = vor.u32 %v5064_v27, %v4948_v28  ;;  %v263_v27 = vld [vmem:[%s5445_s24 + $0x110] sm:$0xff]  ;;  %v264_v28 = vld [vmem:[%s5445_s24 + $0x118] sm:$0xff] }
  0xc9   : > { %2545 = vmatpush.bf16.msrb.mxu0 %v4887_v26  ;;  %2874 = vmatpush.bf16.msrb.mxu1 %v4951_v29  ;;  %v4839_v26 = vld [vmem:[%s7582_s4 + $0x1] ss:$4 sm:$0x3] }
  0xcb   : > { %v999_v32 = vpop.f32.mrf.mxu1 }
  0xcc   : > { %v670_v31 = vpop.f32.mrf.mxu0  ;;  %v1000_v34 = vadd.f32 %v999_v32, %v5600_v41 }
  0xcd   : > { %v671_v33 = vadd.f32 %v670_v31, %v5598_v40 }
  0xce   : > { %v1317_v38 = vmax.f32 %v1000_v34, 0.0 }
  0xcf   : > { %v1316_v37 = vmax.f32 %v671_v33, 0.0 }
  0xd0   : > { %v5654_v44 = vpack.c.bf16 %v1317_v38, %v1315_v36 }
  0xd1   : > { %v5652_v43 = vpack.c.bf16 %v1316_v37, %v1314_v35 }
  0xd2   : > { %2237 = vmatmul.bf16.gmra.mxu3 %v5654_v44 }
  0xd3   : > { %1908 = vmatmul.bf16.gmra.mxu2 %v5652_v43  ;;  %v1002_v47 = vpop.f32.mrf.mxu1 }
  0xd4   : > { %v673_v46 = vpop.f32.mrf.mxu0  ;;  %v1003_v49 = vadd.f32 %v1002_v47, %v5600_v41 }
  0xd5   : > { %v674_v48 = vadd.f32 %v673_v46, %v5598_v40 }
  0xd6   : > { %4787 = vmatmul.msk.bf16.gmra.mxu1 %vm451_vm0, %v369_v45  ;;  %v1319_v57 = vmax.f32 %v1003_v49, 0.0  ;;  %v5076_v49 = vld [vmem:[%s7581_s3 + $0x30] sm:$0xff] }
  0xd7   : > { %4723 = vmatmul.msk.bf16.gmra.mxu0 %vm451_vm0, %v369_v45  ;;  %v1318_v56 = vmax.f32 %v674_v48, 0.0  ;;  %v260_v45 = vld [vmem:[%s5445_s24 + $0xf8] sm:$0xff]  ;;  %3716 = vmatpush.bf16.msrb.mxu2 %v5076_v49 }
  0xd8   : > { %v372_v48 = vpack.c.bf16 %v260_v45, %v259_v42 }
  0xdb   : > { %v1004_v51 = vpop.f32.mrf.mxu1 }
  0xdc   : > { %v675_v50 = vpop.f32.mrf.mxu0  ;;  %v1005_v53 = vadd.f32 %v1004_v51, %v5600_v41 }
  0xdd   : > { %v676_v52 = vadd.f32 %v675_v50, %v5598_v40 }
  0xde   : > { %v1321_v59 = vmax.f32 %v1005_v53, 0.0 }
  0xdf   : > { %v1320_v58 = vmax.f32 %v676_v52, 0.0  ;;  %v5084_v52 = vld [vmem:[%s7581_s3 + $0x70] sm:$0xff] }
  0xe0   : > { %v5668_v63 = vpack.c.bf16 %v1321_v59, %v1319_v57  ;;  %4045 = vmatpush.bf16.msrb.mxu3 %v5084_v52 }
  0xe1   : > { %v5666_v62 = vpack.c.bf16 %v1320_v58, %v1318_v56 }
  0xe2   : > { %2242 = vmatmul.bf16.gmra.mxu3 %v5668_v63 }
  0xe3   : > { %1913 = vmatmul.bf16.gmra.mxu2 %v5666_v62  ;;  %v1007_v2 = vpop.f32.mrf.mxu1 }
  0xe4   : > { %v678_v1 = vpop.f32.mrf.mxu0  ;;  %v1008_v4 = vadd.f32 %v1007_v2, %v5600_v41 }
  0xe5   : > { %v679_v3 = vadd.f32 %v678_v1, %v5598_v40 }
  0xe6   : > { %4788 = vmatmul.msk.bf16.gmra.mxu1 %vm451_vm0, %v370_v0  ;;  %v1323_v12 = vmax.f32 %v1008_v4, 0.0  ;;  %v262_v4 = vld [vmem:[%s5445_s24 + $0x108] sm:$0xff] }
  0xe7   : > { %4724 = vmatmul.msk.bf16.gmra.mxu0 %vm451_vm0, %v370_v0  ;;  %v1322_v11 = vmax.f32 %v679_v3, 0.0  ;;  %v261_v3 = vld [vmem:[%s5445_s24 + $0x100] sm:$0xff] }
  0xeb   : > { %v1009_v6 = vpop.f32.mrf.mxu1 }
  0xec   : > { %v680_v5 = vpop.f32.mrf.mxu0  ;;  %v1010_v10 = vadd.f32 %v1009_v6, %v5600_v41 }
  0xed   : > { %v681_v9 = vadd.f32 %v680_v5, %v5598_v40 }
  0xee   : > { %v1325_v14 = vmax.f32 %v1010_v10, 0.0 }
  0xef   : > { %v1324_v13 = vmax.f32 %v681_v9, 0.0  ;;  %v373_v9 = vpack.c.bf16 %v262_v4, %v261_v3 }
  0xf0   : > { %v5682_v18 = vpack.c.bf16 %v1325_v14, %v1323_v12 }
  0xf1   : > { %v5680_v17 = vpack.c.bf16 %v1324_v13, %v1322_v11 }
  0xf2   : > { %2247 = vmatmul.bf16.gmra.mxu3 %v5682_v18 }
  0xf3   : > { %1918 = vmatmul.bf16.gmra.mxu2 %v5680_v17  ;;  %v1012_v21 = vpop.f32.mrf.mxu1 }
  0xf4   : > { %v683_v20 = vpop.f32.mrf.mxu0  ;;  %v1013_v31 = vadd.f32 %v1012_v21, %v5600_v41 }
  0xf5   : > { %v684_v30 = vadd.f32 %v683_v20, %v5598_v40 }
  0xf6   : > { %4789 = vmatmul.msk.bf16.gmra.mxu1 %vm451_vm0, %v371_v19  ;;  %v1327_v37 = vmax.f32 %v1013_v31, 0.0  ;;  %v5749_v31 = vperm.slane %v4839_v26, 0 }
  0xf7   : > { %4725 = vmatmul.msk.bf16.gmra.mxu0 %vm451_vm0, %v371_v19  ;;  %v1326_v36 = vmax.f32 %v684_v30, 0.0 }
  0xfb   : > { %v1014_v33 = vpop.f32.mrf.mxu1 }
  0xfc   : > { %v685_v32 = vpop.f32.mrf.mxu0  ;;  %v1015_v35 = vadd.f32 %v1014_v33, %v5600_v41 }
  0xfd   : > { %v686_v34 = vadd.f32 %v685_v32, %v5598_v40  ;;  %v374_v32 = vpack.c.bf16 %v264_v28, %v263_v27 }
  0xfe   : > { %v1329_v39 = vmax.f32 %v1015_v35, 0.0 }
  0xff   : > { %v1328_v38 = vmax.f32 %v686_v34, 0.0 }
 0x100   : > { %v5708_v47 = vpack.c.bf16 %v1329_v39, %v1327_v37 }
 0x101   : > { %v5706_v46 = vpack.c.bf16 %v1328_v38, %v1326_v36 }
 0x102   : > { %2252 = vmatmul.bf16.gmra.mxu3 %v5708_v47 }
 0x103   : > { %1923 = vmatmul.bf16.gmra.mxu2 %v5706_v46  ;;  %v1017_v51 = vpop.f32.mrf.mxu1 }
 0x104   : > { %v688_v50 = vpop.f32.mrf.mxu0  ;;  %v1018_v56 = vadd.f32 %v1017_v51, %v5600_v41 }
 0x105   : > { %v689_v53 = vadd.f32 %v688_v50, %v5598_v40 }
 0x106   : > { %4790 = vmatmul.msk.bf16.gmra.mxu1 %vm451_vm0, %v372_v48  ;;  %v1331_v0 = vmax.f32 %v1018_v56, 0.0 }
 0x107   : > { %4726 = vmatmul.msk.bf16.gmra.mxu0 %vm451_vm0, %v372_v48  ;;  %v1330_v61 = vmax.f32 %v689_v53, 0.0 }
 0x10b   : > { %v1019_v58 = vpop.f32.mrf.mxu1 }
 0x10c   : > { %v690_v57 = vpop.f32.mrf.mxu0  ;;  %v1020_v60 = vadd.f32 %v1019_v58, %v5600_v41 }
 0x10d   : > { %v691_v59 = vadd.f32 %v690_v57, %v5598_v40 }
 0x10e   : > { %v1333_v2 = vmax.f32 %v1020_v60, 0.0  ;;  %v265_v60 = vld [vmem:[%s5445_s24 + $0x120] sm:$0xff] }
 0x10f   : > { %v1332_v1 = vmax.f32 %v691_v59, 0.0 }
 0x110   : > { %v5728_v6 = vpack.c.bf16 %v1333_v2, %v1331_v0 }
 0x111   : > { %v5726_v5 = vpack.c.bf16 %v1332_v1, %v1330_v61  ;;  %v266_v61 = vld [vmem:[%s5445_s24 + $0x128] sm:$0xff] }
 0x112   : > { %2257 = vmatmul.bf16.gmra.mxu3 %v5728_v6 }
 0x113   : > { %1928 = vmatmul.bf16.gmra.mxu2 %v5726_v5  ;;  %v1022_v11 = vpop.f32.mrf.mxu1 }
 0x114   : > { %v693_v10 = vpop.f32.mrf.mxu0  ;;  %v1023_v13 = vadd.f32 %v1022_v11, %v5600_v41 }
 0x115   : > { %v694_v12 = vadd.f32 %v693_v10, %v5598_v40 }
 0x116   : > { %4791 = vmatmul.msk.bf16.gmra.mxu1 %vm451_vm0, %v373_v9  ;;  %v1335_v21 = vmax.f32 %v1023_v13, 0.0 }
 0x117   : > { %4727 = vmatmul.msk.bf16.gmra.mxu0 %vm451_vm0, %v373_v9  ;;  %v1334_v20 = vmax.f32 %v694_v12, 0.0  ;;  %v375_v9 = vpack.c.bf16 %v266_v61, %v265_v60 }
 0x11b   : > { %v1024_v15 = vpop.f32.mrf.mxu1 }
 0x11c   : > { %v695_v14 = vpop.f32.mrf.mxu0  ;;  %v1025_v19 = vadd.f32 %v1024_v15, %v5600_v41 }
 0x11d   : > { %v696_v16 = vadd.f32 %v695_v14, %v5598_v40 }
 0x11e   : > { %v1337_v23 = vmax.f32 %v1025_v19, 0.0 }
 0x11f   : > { %v1336_v22 = vmax.f32 %v696_v16, 0.0 }
 0x120   : > { %v5745_v30 = vpack.c.bf16 %v1337_v23, %v1335_v21 }
 0x121   : > { %v5743_v29 = vpack.c.bf16 %v1336_v22, %v1334_v20 }
 0x122   : > { %2262 = vmatmul.bf16.gmra.mxu3 %v5745_v30 }
 0x123   : > { %1933 = vmatmul.bf16.gmra.mxu2 %v5743_v29  ;;  %v1027_v34 = vpop.f32.mrf.mxu1 }
 0x124   : > { %v698_v33 = vpop.f32.mrf.mxu0  ;;  %v1028_v42 = vadd.f32 %v1027_v34, %v5600_v41 }
 0x125   : > { %v2223_v36 = vpop.f32.mrf.mxu3  ;;  %v699_v39 = vadd.f32 %v698_v33, %v5598_v40 }
 0x126   : > { %v1894_v35 = vpop.f32.mrf.mxu2  ;;  %4792 = vmatmul.msk.bf16.gmra.mxu1 %vm451_vm0, %v374_v32  ;;  %v1339_v56 = vmax.f32 %v1028_v42, 0.0 }
 0x127   : > { %v1895_v37 = vadd.f32 %v1894_v35, %v5749_v31  ;;  %4728 = vmatmul.msk.bf16.gmra.mxu0 %vm451_vm0, %v374_v32  ;;  %v1338_v51 = vmax.f32 %v699_v39, 0.0 }
 0x129   : > { %v2224_v38 = vadd.f32 %v2223_v36, %v1895_v37  ;;  %v267_v37 = vld [vmem:[%s5445_s24 + $0x130] sm:$0xff] }
 0x12b   : > { %v1029_v48 = vpop.f32.mrf.mxu1  ;;  %v3201_v3 = vmax.f32 %v2224_v38, 0.0  ;;  %v268_v38 = vld [vmem:[%s5445_s24 + $0x138] sm:$0xff] }
 0x12c   : > { %v700_v45 = vpop.f32.mrf.mxu0  ;;  %v1030_v50 = vadd.f32 %v1029_v48, %v5600_v41 }
 0x12d   : > { %v701_v49 = vadd.f32 %v700_v45, %v5598_v40  ;;  %v2225_v53 = vpop.f32.mrf.mxu3 }
 0x12e   : > { %v1896_v52 = vpop.f32.mrf.mxu2  ;;  %v1341_v58 = vmax.f32 %v1030_v50, 0.0  ;;  %v376_v50 = vpack.c.bf16 %v268_v38, %v267_v37 }
 0x12f   : > { %v1340_v57 = vmax.f32 %v701_v49, 0.0  ;;  %v1897_v59 = vadd.f32 %v1896_v52, %v5749_v31 }
 0x130   : > { %v5763_v2 = vpack.c.bf16 %v1341_v58, %v1339_v56 }
 0x131   : > { %v2226_v0 = vadd.f32 %v2225_v53, %v1897_v59  ;;  %v5761_v1 = vpack.c.bf16 %v1340_v57, %v1338_v51 }
 0x132   : > { %2267 = vmatmul.bf16.gmra.mxu3 %v5763_v2 }
 0x133   : > { %v3203_v4 = vmax.f32 %v2226_v0, 0.0  ;;  %1938 = vmatmul.bf16.gmra.mxu2 %v5761_v1  ;;  %v1032_v11 = vpop.f32.mrf.mxu1 }
 0x134   : > { %v703_v10 = vpop.f32.mrf.mxu0  ;;  %v1033_v20 = vadd.f32 %v1032_v11, %v5600_v41 }
 0x135   : > { %v5767_v12 = vpack.c.bf16 %v3203_v4, %v3201_v3  ;;  %v2228_v14 = vpop.f32.mrf.mxu3  ;;  %v704_v19 = vadd.f32 %v703_v10, %v5598_v40 }
 0x136   : > { %v1899_v13 = vpop.f32.mrf.mxu2  ;;  %4793 = vmatmul.msk.bf16.gmra.mxu1 %vm451_vm0, %v375_v9  ;;  %v1343_v33 = vmax.f32 %v1033_v20, 0.0  ;;  %v269_v20 = vld [vmem:[%s5445_s24 + $0x140] sm:$0xff] }
 0x137   : > { %v1900_v15 = vadd.f32 %v1899_v13, %v5749_v31  ;;  %4729 = vmatmul.msk.bf16.gmra.mxu0 %vm451_vm0, %v375_v9  ;;  %v1342_v27 = vmax.f32 %v704_v19, 0.0 }
 0x139   : > { %v2229_v16 = vadd.f32 %v2228_v14, %v1900_v15 }
 0x13b   : > { %v1034_v22 = vpop.f32.mrf.mxu1  ;;  %v3205_v48 = vmax.f32 %v2229_v16, 0.0 }
 0x13c   : > { %v705_v21 = vpop.f32.mrf.mxu0  ;;  %v1035_v26 = vadd.f32 %v1034_v22, %v5600_v41 }
 0x13d   : > { %v706_v23 = vadd.f32 %v705_v21, %v5598_v40  ;;  %v2230_v32 = vpop.f32.mrf.mxu3  ;;  %v270_v21 = vld [vmem:[%s5445_s24 + $0x148] sm:$0xff] }
 0x13e   : > { %v1901_v28 = vpop.f32.mrf.mxu2  ;;  %v1345_v35 = vmax.f32 %v1035_v26, 0.0 }
 0x13f   : > { %v1344_v34 = vmax.f32 %v706_v23, 0.0  ;;  %v1902_v36 = vadd.f32 %v1901_v28, %v5749_v31 }
 0x140   : > { %v5781_v45 = vpack.c.bf16 %v1345_v35, %v1343_v33 }
 0x141   : > { %v2231_v39 = vadd.f32 %v2230_v32, %v1902_v36  ;;  %v5779_v42 = vpack.c.bf16 %v1344_v34, %v1342_v27  ;;  %v377_v32 = vpack.c.bf16 %v270_v21, %v269_v20 }
 0x142   : > { %2272 = vmatmul.bf16.gmra.mxu3 %v5781_v45 }
 0x143   : > { %v3207_v49 = vmax.f32 %v2231_v39, 0.0  ;;  %1943 = vmatmul.bf16.gmra.mxu2 %v5779_v42  ;;  %v1037_v52 = vpop.f32.mrf.mxu1 }
 0x144   : > { %v708_v51 = vpop.f32.mrf.mxu0  ;;  %v1038_v61 = vadd.f32 %v1037_v52, %v5600_v41 }
 0x145   : > { %v5785_v53 = vpack.c.bf16 %v3207_v49, %v3205_v48  ;;  %v2233_v57 = vpop.f32.mrf.mxu3  ;;  %v709_v60 = vadd.f32 %v708_v51, %v5598_v40 }
 0x146   : > { %v1904_v56 = vpop.f32.mrf.mxu2  ;;  %4794 = vmatmul.msk.bf16.gmra.mxu1 %vm451_vm0, %v376_v50  ;;  %v1347_v14 = vmax.f32 %v1038_v61, 0.0 }
 0x147   : > { %v1905_v58 = vadd.f32 %v1904_v56, %v5749_v31  ;;  %4730 = vmatmul.msk.bf16.gmra.mxu0 %vm451_vm0, %v376_v50  ;;  %v1346_v10 = vmax.f32 %v709_v60, 0.0 }
 0x149   : > { %v2234_v59 = vadd.f32 %v2233_v57, %v1905_v58 }
 0x14b   : > { %v1039_v3 = vpop.f32.mrf.mxu1  ;;  %v3209_v27 = vmax.f32 %v2234_v59, 0.0 }
 0x14c   : > { %v710_v0 = vpop.f32.mrf.mxu0  ;;  %v1040_v9 = vadd.f32 %v1039_v3, %v5600_v41 }
 0x14d   : > { %v711_v4 = vadd.f32 %v710_v0, %v5598_v40  ;;  %v2235_v13 = vpop.f32.mrf.mxu3 }
 0x14e   : > { %v1906_v11 = vpop.f32.mrf.mxu2  ;;  %v1349_v16 = vmax.f32 %v1040_v9, 0.0  ;;  %v272_v9 = vld [vmem:[%s5445_s24 + $0x158] sm:$0xff] }
 0x14f   : > { %v1348_v15 = vmax.f32 %v711_v4, 0.0  ;;  %v1907_v19 = vadd.f32 %v1906_v11, %v5749_v31  ;;  %v271_v4 = vld [vmem:[%s5445_s24 + $0x150] sm:$0xff] }
 0x150   : > { %v5799_v26 = vpack.c.bf16 %v1349_v16, %v1347_v14  ;;  %v378_v16 = vpack.c.bf16 %v272_v9, %v271_v4 }
 0x151   : > { %v2236_v22 = vadd.f32 %v2235_v13, %v1907_v19  ;;  %v5797_v23 = vpack.c.bf16 %v1348_v15, %v1346_v10 }
 0x152   : > { %2277 = vmatmul.bf16.gmra.mxu3 %v5799_v26 }
 0x153   : > { %v3211_v28 = vmax.f32 %v2236_v22, 0.0  ;;  %1948 = vmatmul.bf16.gmra.mxu2 %v5797_v23  ;;  %v1042_v34 = vpop.f32.mrf.mxu1 }
 0x154   : > { %v713_v33 = vpop.f32.mrf.mxu0  ;;  %v1043_v49 = vadd.f32 %v1042_v34, %v5600_v41 }
 0x155   : > { %v5803_v35 = vpack.c.bf16 %v3211_v28, %v3209_v27  ;;  %v2238_v37 = vpop.f32.mrf.mxu3  ;;  %v714_v48 = vadd.f32 %v713_v33, %v5598_v40 }
 0x156   : > { %v1909_v36 = vpop.f32.mrf.mxu2  ;;  %4795 = vmatmul.msk.bf16.gmra.mxu1 %vm451_vm0, %v377_v32  ;;  %v1351_v60 = vmax.f32 %v1043_v49, 0.0 }
 0x157   : > { %v1910_v38 = vadd.f32 %v1909_v36, %v5749_v31  ;;  %4731 = vmatmul.msk.bf16.gmra.mxu0 %vm451_vm0, %v377_v32  ;;  %v1350_v57 = vmax.f32 %v714_v48, 0.0 }
 0x159   : > { %v2239_v39 = vadd.f32 %v2238_v37, %v1910_v38 }
 0x15b   : > { %v1044_v51 = vpop.f32.mrf.mxu1  ;;  %v3213_v14 = vmax.f32 %v2239_v39, 0.0 }
 0x15c   : > { %v715_v50 = vpop.f32.mrf.mxu0  ;;  %v1045_v56 = vadd.f32 %v1044_v51, %v5600_v41 }
 0x15d   : > { %v716_v52 = vadd.f32 %v715_v50, %v5598_v40  ;;  %v2240_v59 = vpop.f32.mrf.mxu3 }
 0x15e   : > { %v1911_v58 = vpop.f32.mrf.mxu2  ;;  %v1353_v0 = vmax.f32 %v1045_v56, 0.0 }
 0x15f   : > { %v1352_v61 = vmax.f32 %v716_v52, 0.0  ;;  %v1912_v3 = vadd.f32 %v1911_v58, %v5749_v31  ;;  %v273_v58 = vld [vmem:[%s5445_s24 + $0x160] sm:$0xff] }
 0x160   : > { %v5817_v13 = vpack.c.bf16 %v1353_v0, %v1351_v60 }
 0x161   : > { %v2241_v10 = vadd.f32 %v2240_v59, %v1912_v3  ;;  %v5815_v11 = vpack.c.bf16 %v1352_v61, %v1350_v57  ;;  %v274_v59 = vld [vmem:[%s5445_s24 + $0x168] sm:$0xff] }
 0x162   : > { %2282 = vmatmul.bf16.gmra.mxu3 %v5817_v13  ;;  %v379_v9 = vpack.c.bf16 %v274_v59, %v273_v58 }
 0x163   : > { %v3215_v15 = vmax.f32 %v2241_v10, 0.0  ;;  %1953 = vmatmul.bf16.gmra.mxu2 %v5815_v11  ;;  %v1047_v20 = vpop.f32.mrf.mxu1 }
 0x164   : > { %v718_v19 = vpop.f32.mrf.mxu0  ;;  %v1048_v34 = vadd.f32 %v1047_v20, %v5600_v41 }
 0x165   : > { %v5821_v21 = vpack.c.bf16 %v3215_v15, %v3213_v14  ;;  %v2243_v27 = vpop.f32.mrf.mxu3  ;;  %v719_v33 = vadd.f32 %v718_v19, %v5598_v40 }
 0x166   : > { %v1914_v22 = vpop.f32.mrf.mxu2  ;;  %4796 = vmatmul.msk.bf16.gmra.mxu1 %vm451_vm0, %v378_v16  ;;  %v1355_v51 = vmax.f32 %v1048_v34, 0.0 }
 0x167   : > { %v1915_v28 = vadd.f32 %v1914_v22, %v5749_v31  ;;  %4732 = vmatmul.msk.bf16.gmra.mxu0 %vm451_vm0, %v378_v16  ;;  %v1354_v48 = vmax.f32 %v719_v33, 0.0  ;;  %v4876_v33 = vld [vmem:[%s7580_s2 + $0x48] sm:$0xf0] }
 0x169   : > { %v2244_v32 = vadd.f32 %v2243_v27, %v1915_v28 }
 0x16b   : > { %v1049_v37 = vpop.f32.mrf.mxu1  ;;  %v3217_v3 = vmax.f32 %v2244_v32, 0.0  ;;  %v5046_v32 = vld [vmem:[%s7580_s2 + $0x44] sm:$0xf] }
 0x16c   : > { %v720_v36 = vpop.f32.mrf.mxu0  ;;  %v1050_v39 = vadd.f32 %v1049_v37, %v5600_v41  ;;  %v4879_v37 = vor.u32 %v5046_v32, %v4876_v33 }
 0x16d   : > { %v721_v38 = vadd.f32 %v720_v36, %v5598_v40  ;;  %v2245_v50 = vpop.f32.mrf.mxu3 }
 0x16e   : > { %v1916_v49 = vpop.f32.mrf.mxu2  ;;  %v1357_v56 = vmax.f32 %v1050_v39, 0.0  ;;  %v4940_v39 = vld [vmem:[%s7580_s2 + $0xc8] sm:$0xf0]  ;;  %2546 = vmatpush.bf16.msrb.mxu0 %v4879_v37 }
 0x16f   : > { %v1356_v52 = vmax.f32 %v721_v38, 0.0  ;;  %v1917_v57 = vadd.f32 %v1916_v49, %v5749_v31  ;;  %v5062_v38 = vld [vmem:[%s7580_s2 + $0xc4] sm:$0xf] }
 0x170   : > { %v5835_v0 = vpack.c.bf16 %v1357_v56, %v1355_v51 }
 0x171   : > { %v2246_v60 = vadd.f32 %v2245_v50, %v1917_v57  ;;  %v5833_v61 = vpack.c.bf16 %v1356_v52, %v1354_v48  ;;  %v4943_v50 = vor.u32 %v5062_v38, %v4940_v39 }
 0x172   : > { %2287 = vmatmul.bf16.gmra.mxu3 %v5835_v0 }
 0x173   : > { %v3219_v4 = vmax.f32 %v2246_v60, 0.0  ;;  %1958 = vmatmul.bf16.gmra.mxu2 %v5833_v61  ;;  %v1052_v14 = vpop.f32.mrf.mxu1  ;;  %2875 = vmatpush.bf16.msrb.mxu1 %v4943_v50 }
 0x174   : > { %v723_v10 = vpop.f32.mrf.mxu0  ;;  %v1053_v28 = vadd.f32 %v1052_v14, %v5600_v41 }
 0x175   : > { %v5839_v15 = vpack.c.bf16 %v3219_v4, %v3217_v3  ;;  %v2248_v19 = vpop.f32.mrf.mxu3  ;;  %v724_v27 = vadd.f32 %v723_v10, %v5598_v40  ;;  %v275_v3 = vld [vmem:[%s5445_s24 + $0x170] sm:$0xff]  ;;  %v276_v4 = vld [vmem:[%s5445_s24 + $0x178] sm:$0xff] }
 0x176   : > { %v1919_v16 = vpop.f32.mrf.mxu2  ;;  %4797 = vmatmul.msk.bf16.gmra.mxu1 %vm451_vm0, %v379_v9  ;;  %v1359_v57 = vmax.f32 %v1053_v28, 0.0 }
 0x177   : > { %v1920_v20 = vadd.f32 %v1919_v16, %v5749_v31  ;;  %4733 = vmatmul.msk.bf16.gmra.mxu0 %vm451_vm0, %v379_v9  ;;  %v1358_v51 = vmax.f32 %v724_v27, 0.0  ;;  %v5075_v27 = vld [vmem:[%s7581_s3 + $0x28] sm:$0xff] }
 0x178   : > { %3717 = vmatpush.bf16.msrb.mxu2 %v5075_v27 }
 0x179   : > { %v2249_v22 = vadd.f32 %v2248_v19, %v1920_v20  ;;  %v380_v20 = vpack.c.bf16 %v276_v4, %v275_v3 }
 0x17b   : > { %v1054_v36 = vpop.f32.mrf.mxu1  ;;  %v3221_v16 = vmax.f32 %v2249_v22, 0.0  ;;  %v5083_v22 = vld [vmem:[%s7581_s3 + $0x68] sm:$0xff] }
 0x17c   : > { %v725_v34 = vpop.f32.mrf.mxu0  ;;  %v1055_v49 = vadd.f32 %v1054_v36, %v5600_v41  ;;  %4046 = vmatpush.bf16.msrb.mxu3 %v5083_v22 }
 0x17d   : > { %v726_v48 = vadd.f32 %v725_v34, %v5598_v40  ;;  %v2250_v56 = vpop.f32.mrf.mxu3 }
 0x17e   : > { %v1921_v52 = vpop.f32.mrf.mxu2  ;;  %v1361_v59 = vmax.f32 %v1055_v49, 0.0 }
 0x17f   : > { %v1360_v58 = vmax.f32 %v726_v48, 0.0  ;;  %v1922_v60 = vadd.f32 %v1921_v52, %v5749_v31 }
 0x180   : > { %v5865_v14 = vpack.c.bf16 %v1361_v59, %v1359_v57 }
 0x181   : > { %v2251_v9 = vadd.f32 %v2250_v56, %v1922_v60  ;;  %v5863_v10 = vpack.c.bf16 %v1360_v58, %v1358_v51 }
 0x182   : > { %2292 = vmatmul.bf16.gmra.mxu3 %v5865_v14 }
 0x183   : > { %v3223_v19 = vmax.f32 %v2251_v9, 0.0  ;;  %1963 = vmatmul.bf16.gmra.mxu2 %v5863_v10  ;;  %v1057_v32 = vpop.f32.mrf.mxu1  ;;  %v277_v9 = vld [vmem:[%s5445_s24 + $0x180] sm:$0xff] }
 0x184   : > { %v728_v28 = vpop.f32.mrf.mxu0  ;;  %v1058_v48 = vadd.f32 %v1057_v32, %v5600_v41 }
 0x185   : > { %v5872_v33 = vpack.c.bf16 %v3223_v19, %v3221_v16  ;;  %v2253_v36 = vpop.f32.mrf.mxu3  ;;  %v729_v39 = vadd.f32 %v728_v28, %v5598_v40  ;;  %v278_v16 = vld [vmem:[%s5445_s24 + $0x188] sm:$0xff] }
 0x186   : > { %v1924_v34 = vpop.f32.mrf.mxu2  ;;  %4798 = vmatmul.msk.bf16.gmra.mxu1 %vm451_vm0, %v380_v20  ;;  %v1363_v59 = vmax.f32 %v1058_v48, 0.0 }
 0x187   : > { %v1925_v37 = vadd.f32 %v1924_v34, %v5749_v31  ;;  %4734 = vmatmul.msk.bf16.gmra.mxu0 %vm451_vm0, %v380_v20  ;;  %v1362_v56 = vmax.f32 %v729_v39, 0.0  ;;  %v381_v34 = vpack.c.bf16 %v278_v16, %v277_v9 }
 0x189   : > { %v2254_v38 = vadd.f32 %v2253_v36, %v1925_v37 }
 0x18b   : > { %v1059_v50 = vpop.f32.mrf.mxu1  ;;  %v3225_v28 = vmax.f32 %v2254_v38, 0.0 }
 0x18c   : > { %v730_v49 = vpop.f32.mrf.mxu0  ;;  %v1060_v52 = vadd.f32 %v1059_v50, %v5600_v41 }
 0x18d   : > { %v731_v51 = vadd.f32 %v730_v49, %v5598_v40  ;;  %v2255_v58 = vpop.f32.mrf.mxu3 }
 0x18e   : > { %v1926_v57 = vpop.f32.mrf.mxu2  ;;  %v1365_v3 = vmax.f32 %v1060_v52, 0.0 }
 0x18f   : > { %v1364_v60 = vmax.f32 %v731_v51, 0.0  ;;  %v1927_v4 = vadd.f32 %v1926_v57, %v5749_v31 }
 0x190   : > { %v5889_v27 = vpack.c.bf16 %v1365_v3, %v1363_v59 }
 0x191   : > { %v2256_v19 = vadd.f32 %v2255_v58, %v1927_v4  ;;  %v5887_v20 = vpack.c.bf16 %v1364_v60, %v1362_v56 }
 0x192   : > { %7671 = vst [vmem:[#allocation2_spill] sm:$0xff] %v5889_v27  ;;  %2297 = vmatmul.bf16.gmra.mxu3 %v5889_v27 }
 0x193   : > { %v3227_v32 = vmax.f32 %v2256_v19, 0.0  ;;  %1968 = vmatmul.bf16.gmra.mxu2 %v5887_v20  ;;  %v1062_v37 = vpop.f32.mrf.mxu1 }
 0x194   : > { %v733_v36 = vpop.f32.mrf.mxu0  ;;  %v1063_v51 = vadd.f32 %v1062_v37, %v5600_v41 }
 0x195   : > { %v5893_v22 = vpack.c.bf16 %v3227_v32, %v3225_v28  ;;  %v2258_v48 = vpop.f32.mrf.mxu3  ;;  %v734_v50 = vadd.f32 %v733_v36, %v5598_v40  ;;  %v279_v28 = vld [vmem:[%s5445_s24 + $0x190] sm:$0xff]  ;;  %v280_v32 = vld [vmem:[%s5445_s24 + $0x198] sm:$0xff] }
 0x196   : > { %v1929_v39 = vpop.f32.mrf.mxu2  ;;  %4799 = vmatmul.msk.bf16.gmra.mxu1 %vm451_vm0, %v381_v34  ;;  %v1367_v4 = vmax.f32 %v1063_v51, 0.0 }
 0x197   : > { %v1930_v49 = vadd.f32 %v1929_v39, %v5749_v31  ;;  %4735 = vmatmul.msk.bf16.gmra.mxu0 %vm451_vm0, %v381_v34  ;;  %v1366_v59 = vmax.f32 %v734_v50, 0.0 }
 0x199   : > { %v2259_v38 = vadd.f32 %v2258_v48, %v1930_v49  ;;  %v382_v49 = vpack.c.bf16 %v280_v32, %v279_v28 }
 0x19b   : > { %v1064_v56 = vpop.f32.mrf.mxu1  ;;  %v3229_v39 = vmax.f32 %v2259_v38, 0.0 }
 0x19c   : > { %v735_v52 = vpop.f32.mrf.mxu0  ;;  %v1065_v58 = vadd.f32 %v1064_v56, %v5600_v41 }
 0x19d   : > { %v736_v57 = vadd.f32 %v735_v52, %v5598_v40  ;;  %v2260_v3 = vpop.f32.mrf.mxu3 }
 0x19e   : > { %v1931_v60 = vpop.f32.mrf.mxu2  ;;  %v1369_v16 = vmax.f32 %v1065_v58, 0.0 }
 0x19f   : > { %v1368_v9 = vmax.f32 %v736_v57, 0.0  ;;  %v1932_v19 = vadd.f32 %v1931_v60, %v5749_v31 }
 0x1a0   : > { %v5907_v37 = vpack.c.bf16 %v1369_v16, %v1367_v4 }
 0x1a1   : > { %v2261_v34 = vadd.f32 %v2260_v3, %v1932_v19  ;;  %v5905_v36 = vpack.c.bf16 %v1368_v9, %v1366_v59 }
 0x1a2   : > { %7673 = vst [vmem:[#allocation4_spill] sm:$0xff] %v5907_v37  ;;  %2302 = vmatmul.bf16.gmra.mxu3 %v5907_v37 }
 0x1a3   : > { %7672 = vst [vmem:[#allocation3_spill] sm:$0xff] %v5905_v36  ;;  %v3231_v48 = vmax.f32 %v2261_v34, 0.0  ;;  %1973 = vmatmul.bf16.gmra.mxu2 %v5905_v36  ;;  %v1067_v51 = vpop.f32.mrf.mxu1 }
 0x1a4   : > { %v738_v50 = vpop.f32.mrf.mxu0  ;;  %v1068_v60 = vadd.f32 %v1067_v51, %v5600_v41 }
 0x1a5   : > { %v5911_v52 = vpack.c.bf16 %v3231_v48, %v3229_v39  ;;  %v2263_v57 = vpop.f32.mrf.mxu3  ;;  %v739_v59 = vadd.f32 %v738_v50, %v5598_v40 }
 0x1a6   : > { %v1934_v56 = vpop.f32.mrf.mxu2  ;;  %4800 = vmatmul.msk.bf16.gmra.mxu1 %vm451_vm0, %v382_v49  ;;  %v1371_v34 = vmax.f32 %v1068_v60, 0.0 }
 0x1a7   : > { %7674 = vst [vmem:[#allocation5_spill] sm:$0xff] %v5911_v52  ;;  %v1935_v58 = vadd.f32 %v1934_v56, %v5749_v31  ;;  %4736 = vmatmul.msk.bf16.gmra.mxu0 %vm451_vm0, %v382_v49  ;;  %v1370_v19 = vmax.f32 %v739_v59, 0.0  ;;  %v281_v56 = vld [vmem:[%s5445_s24 + $0x1a0] sm:$0xff] }
 0x1a9   : > { %v2264_v38 = vadd.f32 %v2263_v57, %v1935_v58  ;;  %v282_v57 = vld [vmem:[%s5445_s24 + $0x1a8] sm:$0xff] }
 0x1aa   : > { %v383_v59 = vpack.c.bf16 %v282_v57, %v281_v56 }
 0x1ab   : > { %v1069_v4 = vpop.f32.mrf.mxu1  ;;  %v3233_v37 = vmax.f32 %v2264_v38, 0.0 }
 0x1ac   : > { %v740_v3 = vpop.f32.mrf.mxu0  ;;  %v1070_v16 = vadd.f32 %v1069_v4, %v5600_v41 }
 0x1ad   : > { %v741_v9 = vadd.f32 %v740_v3, %v5598_v40  ;;  %v2265_v32 = vpop.f32.mrf.mxu3 }
 0x1ae   : > { %v1936_v28 = vpop.f32.mrf.mxu2  ;;  %v1373_v48 = vmax.f32 %v1070_v16, 0.0 }
 0x1af   : > { %v1372_v39 = vmax.f32 %v741_v9, 0.0  ;;  %v1937_v49 = vadd.f32 %v1936_v28, %v5749_v31 }
 0x1b0   : > { %v5925_v51 = vpack.c.bf16 %v1373_v48, %v1371_v34 }
 0x1b1   : > { %v2266_v58 = vadd.f32 %v2265_v32, %v1937_v49  ;;  %v5923_v50 = vpack.c.bf16 %v1372_v39, %v1370_v19 }
 0x1b2   : > { %7676 = vst [vmem:[#allocation7_spill] sm:$0xff] %v5925_v51  ;;  %2307 = vmatmul.bf16.gmra.mxu3 %v5925_v51  ;;  %v283_v51 = vld [vmem:[%s5445_s24 + $0x1b0] sm:$0xff] }
 0x1b3   : > { %7675 = vst [vmem:[#allocation6_spill] sm:$0xff] %v5923_v50  ;;  %v3235_v36 = vmax.f32 %v2266_v58, 0.0  ;;  %1978 = vmatmul.bf16.gmra.mxu2 %v5923_v50  ;;  %v1072_v60 = vpop.f32.mrf.mxu1 }
 0x1b4   : > { %v743_v3 = vpop.f32.mrf.mxu0  ;;  %v1073_v32 = vadd.f32 %v1072_v60, %v5600_v41 }
 0x1b5   : > { %v5929_v4 = vpack.c.bf16 %v3235_v36, %v3233_v37  ;;  %v2268_v16 = vpop.f32.mrf.mxu3  ;;  %v744_v19 = vadd.f32 %v743_v3, %v5598_v40 }
 0x1b6   : > { %v1939_v9 = vpop.f32.mrf.mxu2  ;;  %4801 = vmatmul.msk.bf16.gmra.mxu1 %vm451_vm0, %v383_v59  ;;  %v1375_v57 = vmax.f32 %v1073_v32, 0.0 }
 0x1b7   : > { %7677 = vst [vmem:[#allocation8_spill] sm:$0xff] %v5929_v4  ;;  %v1940_v28 = vadd.f32 %v1939_v9, %v5749_v31  ;;  %4737 = vmatmul.msk.bf16.gmra.mxu0 %vm451_vm0, %v383_v59  ;;  %v1374_v48 = vmax.f32 %v744_v19, 0.0 }
 0x1b9   : > { %v2269_v38 = vadd.f32 %v2268_v16, %v1940_v28  ;;  %v284_v16 = vld [vmem:[%s5445_s24 + $0x1b8] sm:$0xff] }
 0x1ba   : > { %v384_v19 = vpack.c.bf16 %v284_v16, %v283_v51 }
 0x1bb   : > { %v1074_v39 = vpop.f32.mrf.mxu1  ;;  %v3237_v50 = vmax.f32 %v2269_v38, 0.0 }
 0x1bc   : > { %v745_v34 = vpop.f32.mrf.mxu0  ;;  %v1075_v37 = vadd.f32 %v1074_v39, %v5600_v41 }
 0x1bd   : > { %v746_v36 = vadd.f32 %v745_v34, %v5598_v40  ;;  %v2270_v56 = vpop.f32.mrf.mxu3 }
 0x1be   : > { %v1941_v49 = vpop.f32.mrf.mxu2  ;;  %v1377_v9 = vmax.f32 %v1075_v37, 0.0 }
 0x1bf   : > { %v1376_v58 = vmax.f32 %v746_v36, 0.0  ;;  %v1942_v59 = vadd.f32 %v1941_v49, %v5749_v31 }
 0x1c0   : > { %v5943_v60 = vpack.c.bf16 %v1377_v9, %v1375_v57 }
 0x1c1   : > { %v2271_v28 = vadd.f32 %v2270_v56, %v1942_v59  ;;  %v5941_v3 = vpack.c.bf16 %v1376_v58, %v1374_v48 }
 0x1c2   : > { %7679 = vst [vmem:[#allocation10_spill] sm:$0xff] %v5943_v60  ;;  %2312 = vmatmul.bf16.gmra.mxu3 %v5943_v60  ;;  %v285_v60 = vld [vmem:[%s5445_s24 + $0x1c0] sm:$0xff] }
 0x1c3   : > { %7678 = vst [vmem:[#allocation9_spill] sm:$0xff] %v5941_v3  ;;  %v3239_v4 = vmax.f32 %v2271_v28, 0.0  ;;  %1983 = vmatmul.bf16.gmra.mxu2 %v5941_v3  ;;  %v1077_v32 = vpop.f32.mrf.mxu1 }
 0x1c4   : > { %v748_v34 = vpop.f32.mrf.mxu0  ;;  %v1078_v56 = vadd.f32 %v1077_v32, %v5600_v41 }
 0x1c5   : > { %v5947_v39 = vpack.c.bf16 %v3239_v4, %v3237_v50  ;;  %v2273_v37 = vpop.f32.mrf.mxu3  ;;  %v749_v48 = vadd.f32 %v748_v34, %v5598_v40 }
 0x1c6   : > { %v1944_v36 = vpop.f32.mrf.mxu2  ;;  %4802 = vmatmul.msk.bf16.gmra.mxu1 %vm451_vm0, %v384_v19  ;;  %v1379_v16 = vmax.f32 %v1078_v56, 0.0 }
 0x1c7   : > { %7680 = vst [vmem:[#allocation11_spill] sm:$0xff] %v5947_v39  ;;  %v1945_v49 = vadd.f32 %v1944_v36, %v5749_v31  ;;  %4738 = vmatmul.msk.bf16.gmra.mxu0 %vm451_vm0, %v384_v19  ;;  %v1378_v58 = vmax.f32 %v749_v48, 0.0 }
 0x1c9   : > { %v2274_v38 = vadd.f32 %v2273_v37, %v1945_v49  ;;  %v286_v37 = vld [vmem:[%s5445_s24 + $0x1c8] sm:$0xff] }
 0x1ca   : > { %v385_v48 = vpack.c.bf16 %v286_v37, %v285_v60 }
 0x1cb   : > { %v1079_v57 = vpop.f32.mrf.mxu1  ;;  %v3241_v3 = vmax.f32 %v2274_v38, 0.0 }
 0x1cc   : > { %v750_v51 = vpop.f32.mrf.mxu0  ;;  %v1080_v4 = vadd.f32 %v1079_v57, %v5600_v41 }
 0x1cd   : > { %v751_v50 = vadd.f32 %v750_v51, %v5598_v40  ;;  %v2275_v59 = vpop.f32.mrf.mxu3 }
 0x1ce   : > { %v1946_v9 = vpop.f32.mrf.mxu2  ;;  %v1381_v36 = vmax.f32 %v1080_v4, 0.0 }
 0x1cf   : > { %v1380_v28 = vmax.f32 %v751_v50, 0.0  ;;  %v1947_v19 = vadd.f32 %v1946_v9, %v5749_v31 }
 0x1d0   : > { %v5961_v32 = vpack.c.bf16 %v1381_v36, %v1379_v16 }
 0x1d1   : > { %v2276_v49 = vadd.f32 %v2275_v59, %v1947_v19  ;;  %v5959_v34 = vpack.c.bf16 %v1380_v28, %v1378_v58 }
 0x1d2   : > { %7682 = vst [vmem:[#allocation13_spill] sm:$0xff] %v5961_v32  ;;  %2317 = vmatmul.bf16.gmra.mxu3 %v5961_v32  ;;  %v287_v32 = vld [vmem:[%s5445_s24 + $0x1d0] sm:$0xff] }
 0x1d3   : > { %7681 = vst [vmem:[#allocation12_spill] sm:$0xff] %v5959_v34  ;;  %v3243_v39 = vmax.f32 %v2276_v49, 0.0  ;;  %1988 = vmatmul.bf16.gmra.mxu2 %v5959_v34  ;;  %v1082_v56 = vpop.f32.mrf.mxu1 }
 0x1d4   : > { %v753_v51 = vpop.f32.mrf.mxu0  ;;  %v1083_v59 = vadd.f32 %v1082_v56, %v5600_v41 }
 0x1d5   : > { %v5965_v57 = vpack.c.bf16 %v3243_v39, %v3241_v3  ;;  %v2278_v4 = vpop.f32.mrf.mxu3  ;;  %v754_v58 = vadd.f32 %v753_v51, %v5598_v40 }
 0x1d6   : > { %v1949_v50 = vpop.f32.mrf.mxu2  ;;  %4803 = vmatmul.msk.bf16.gmra.mxu1 %vm451_vm0, %v385_v48  ;;  %v1383_v37 = vmax.f32 %v1083_v59, 0.0 }
 0x1d7   : > { %7683 = vst [vmem:[#allocation14_spill] sm:$0xff] %v5965_v57  ;;  %v1950_v9 = vadd.f32 %v1949_v50, %v5749_v31  ;;  %4739 = vmatmul.msk.bf16.gmra.mxu0 %vm451_vm0, %v385_v48  ;;  %v1382_v28 = vmax.f32 %v754_v58, 0.0 }
 0x1d9   : > { %v2279_v38 = vadd.f32 %v2278_v4, %v1950_v9  ;;  %v288_v4 = vld [vmem:[%s5445_s24 + $0x1d8] sm:$0xff] }
 0x1da   : > { %v386_v58 = vpack.c.bf16 %v288_v4, %v287_v32 }
 0x1db   : > { %v1084_v16 = vpop.f32.mrf.mxu1  ;;  %v3245_v34 = vmax.f32 %v2279_v38, 0.0 }
 0x1dc   : > { %v755_v60 = vpop.f32.mrf.mxu0  ;;  %v1085_v39 = vadd.f32 %v1084_v16, %v5600_v41 }
 0x1dd   : > { %v756_v3 = vadd.f32 %v755_v60, %v5598_v40  ;;  %v2280_v19 = vpop.f32.mrf.mxu3 }
 0x1de   : > { %v1951_v36 = vpop.f32.mrf.mxu2  ;;  %v1385_v50 = vmax.f32 %v1085_v39, 0.0 }
 0x1df   : > { %v1384_v49 = vmax.f32 %v756_v3, 0.0  ;;  %v1952_v48 = vadd.f32 %v1951_v36, %v5749_v31 }
 0x1e0   : > { %v5979_v56 = vpack.c.bf16 %v1385_v50, %v1383_v37 }
 0x1e1   : > { %v2281_v9 = vadd.f32 %v2280_v19, %v1952_v48  ;;  %v5977_v51 = vpack.c.bf16 %v1384_v49, %v1382_v28 }
 0x1e2   : > { %7685 = vst [vmem:[#allocation16_spill] sm:$0xff] %v5979_v56  ;;  %2322 = vmatmul.bf16.gmra.mxu3 %v5979_v56  ;;  %v289_v56 = vld [vmem:[%s5445_s24 + $0x1e0] sm:$0xff] }
 0x1e3   : > { %7684 = vst [vmem:[#allocation15_spill] sm:$0xff] %v5977_v51  ;;  %v3247_v57 = vmax.f32 %v2281_v9, 0.0  ;;  %1993 = vmatmul.bf16.gmra.mxu2 %v5977_v51  ;;  %v1087_v59 = vpop.f32.mrf.mxu1 }
 0x1e4   : > { %v758_v60 = vpop.f32.mrf.mxu0  ;;  %v1088_v19 = vadd.f32 %v1087_v59, %v5600_v41 }
 0x1e5   : > { %v5983_v16 = vpack.c.bf16 %v3247_v57, %v3245_v34  ;;  %v2283_v39 = vpop.f32.mrf.mxu3  ;;  %v759_v28 = vadd.f32 %v758_v60, %v5598_v40 }
 0x1e6   : > { %v1954_v3 = vpop.f32.mrf.mxu2  ;;  %4804 = vmatmul.msk.bf16.gmra.mxu1 %vm451_vm0, %v386_v58  ;;  %v1387_v4 = vmax.f32 %v1088_v19, 0.0 }
 0x1e7   : > { %7686 = vst [vmem:[#allocation17_spill] sm:$0xff] %v5983_v16  ;;  %v1955_v36 = vadd.f32 %v1954_v3, %v5749_v31  ;;  %4740 = vmatmul.msk.bf16.gmra.mxu0 %vm451_vm0, %v386_v58  ;;  %v1386_v49 = vmax.f32 %v759_v28, 0.0 }
 0x1e9   : > { %v2284_v38 = vadd.f32 %v2283_v39, %v1955_v36  ;;  %v290_v39 = vld [vmem:[%s5445_s24 + $0x1e8] sm:$0xff] }
 0x1ea   : > { %v387_v28 = vpack.c.bf16 %v290_v39, %v289_v56  ;;  %v5044_v56 = vld [vmem:[%s7580_s2 + $0x34] sm:$0xf] }
 0x1eb   : > { %v1089_v37 = vpop.f32.mrf.mxu1  ;;  %v3249_v51 = vmax.f32 %v2284_v38, 0.0 }
 0x1ec   : > { %v760_v32 = vpop.f32.mrf.mxu0  ;;  %v1090_v57 = vadd.f32 %v1089_v37, %v5600_v41 }
 0x1ed   : > { %v761_v34 = vadd.f32 %v760_v32, %v5598_v40  ;;  %v2285_v48 = vpop.f32.mrf.mxu3 }
 0x1ee   : > { %v1956_v50 = vpop.f32.mrf.mxu2  ;;  %v1389_v3 = vmax.f32 %v1090_v57, 0.0 }
 0x1ef   : > { %v1388_v9 = vmax.f32 %v761_v34, 0.0  ;;  %v1957_v58 = vadd.f32 %v1956_v50, %v5749_v31 }
 0x1f0   : > { %v5997_v59 = vpack.c.bf16 %v1389_v3, %v1387_v4  ;;  %v5060_v3 = vld [vmem:[%s7580_s2 + $0xb4] sm:$0xf] }
 0x1f1   : > { %v2286_v36 = vadd.f32 %v2285_v48, %v1957_v58  ;;  %v5995_v60 = vpack.c.bf16 %v1388_v9, %v1386_v49  ;;  %v4932_v58 = vld [vmem:[%s7580_s2 + $0xb8] sm:$0xf0] }
 0x1f2   : > { %7688 = vst [vmem:[#allocation19_spill] sm:$0xff] %v5997_v59  ;;  %2327 = vmatmul.bf16.gmra.mxu3 %v5997_v59  ;;  %v291_v59 = vld [vmem:[%s5445_s24 + $0x1f0] sm:$0xff] }
 0x1f3   : > { %7687 = vst [vmem:[#allocation18_spill] sm:$0xff] %v5995_v60  ;;  %v3251_v16 = vmax.f32 %v2286_v36, 0.0  ;;  %1998 = vmatmul.bf16.gmra.mxu2 %v5995_v60  ;;  %v1092_v19 = vpop.f32.mrf.mxu1  ;;  %v292_v60 = vld [vmem:[%s5445_s24 + $0x1f8] sm:$0xff] }
 0x1f4   : > { %v763_v32 = vpop.f32.mrf.mxu0  ;;  %v1093_v48 = vadd.f32 %v1092_v19, %v5600_v41 }
 0x1f5   : > { %v6001_v37 = vpack.c.bf16 %v3251_v16, %v3249_v51  ;;  %v2288_v57 = vpop.f32.mrf.mxu3  ;;  %v764_v38 = vadd.f32 %v763_v32, %v5598_v40  ;;  %v4868_v51 = vld [vmem:[%s7580_s2 + $0x38] sm:$0xf0] }
 0x1f6   : > { %v1959_v34 = vpop.f32.mrf.mxu2  ;;  %4805 = vmatmul.msk.bf16.gmra.mxu1 %vm451_vm0, %v387_v28  ;;  %v4871_v9 = vor.u32 %v5044_v56, %v4868_v51 }
 0x1f7   : > { %7689 = vst [vmem:[#allocation20_spill] sm:$0xff] %v6001_v37  ;;  %v1960_v50 = vadd.f32 %v1959_v34, %v5749_v31  ;;  %4741 = vmatmul.msk.bf16.gmra.mxu0 %vm451_vm0, %v387_v28  ;;  %v4935_v28 = vor.u32 %v5060_v3, %v4932_v58  ;;  %v1390_v32 = vmax.f32 %v764_v38, 0.0  ;;  %v388_v38 = vpack.c.bf16 %v292_v60, %v291_v59  ;;  %v5082_v60 = vld [vmem:[%s7581_s3 + $0x60] sm:$0xff] }
 0x1f8   : > { %2547 = vmatpush.bf16.msrb.mxu0 %v4871_v9  ;;  %4047 = vmatpush.bf16.msrb.mxu3 %v5082_v60 }
 0x1f9   : > { %v2289_v49 = vadd.f32 %v2288_v57, %v1960_v50  ;;  %v1391_v57 = vmax.f32 %v1093_v48, 0.0  ;;  %2876 = vmatpush.bf16.msrb.mxu1 %v4935_v28  ;;  %v5074_v48 = vld [vmem:[%s7581_s3 + $0x20] sm:$0xff] }
 0x1fa   : > { %3718 = vmatpush.bf16.msrb.mxu2 %v5074_v48 }
 0x1fb   : > { %v1094_v4 = vpop.f32.mrf.mxu1 }
 0x1fc   : > { %v765_v16 = vpop.f32.mrf.mxu0  ;;  %v1095_v36 = vadd.f32 %v1094_v4, %v5600_v41 }
 0x1fd   : > { %v766_v39 = vadd.f32 %v765_v16, %v5598_v40  ;;  %v2290_v34 = vpop.f32.mrf.mxu3  ;;  %v3253_v16 = vmax.f32 %v2289_v49, 0.0 }
 0x1fe   : > { %v1961_v19 = vpop.f32.mrf.mxu2  ;;  %v1393_v56 = vmax.f32 %v1095_v36, 0.0 }
 0x1ff   : > { %v1392_v50 = vmax.f32 %v766_v39, 0.0  ;;  %v1962_v51 = vadd.f32 %v1961_v19, %v5749_v31 }
 0x200   : > { %v6027_v27 = vpack.c.bf16 %v1393_v56, %v1391_v57 }
 0x201   : > { %v2291_v37 = vadd.f32 %v2290_v34, %v1962_v51  ;;  %v6025_v52 = vpack.c.bf16 %v1392_v50, %v1390_v32 }
 0x202   : > { %7691 = vst [vmem:[#allocation22_spill] sm:$0xff] %v6027_v27  ;;  %2332 = vmatmul.bf16.gmra.mxu3 %v6027_v27 }
 0x203   : > { %7690 = vst [vmem:[#allocation21_spill] sm:$0xff] %v6025_v52  ;;  %v3255_v4 = vmax.f32 %v2291_v37, 0.0  ;;  %2003 = vmatmul.bf16.gmra.mxu2 %v6025_v52  ;;  %v1097_v3 = vpop.f32.mrf.mxu1 }
 0x204   : > { %v768_v9 = vpop.f32.mrf.mxu0  ;;  %v1098_v49 = vadd.f32 %v1097_v3, %v5600_v41 }
 0x205   : > { %v6034_v58 = vpack.c.bf16 %v3255_v4, %v3253_v16  ;;  %v2293_v36 = vpop.f32.mrf.mxu3  ;;  %v769_v37 = vadd.f32 %v768_v9, %v5598_v40 }
 0x206   : > { %v1964_v39 = vpop.f32.mrf.mxu2  ;;  %4806 = vmatmul.msk.bf16.gmra.mxu1 %vm451_vm0, %v388_v38  ;;  %v1395_v16 = vmax.f32 %v1098_v49, 0.0 }
 0x207   : > { %7692 = vst [vmem:[#allocation23_spill] sm:$0xff] %v6034_v58  ;;  %v1965_v28 = vadd.f32 %v1964_v39, %v5749_v31  ;;  %4742 = vmatmul.msk.bf16.gmra.mxu0 %vm451_vm0, %v388_v38  ;;  %v1394_v50 = vmax.f32 %v769_v37, 0.0  ;;  %v293_v39 = vld [vmem:[%s5445_s24 + $0x200] sm:$0xff] }
 0x209   : > { %v2294_v59 = vadd.f32 %v2293_v36, %v1965_v28  ;;  %v294_v36 = vld [vmem:[%s5445_s24 + $0x208] sm:$0xff] }
 0x20a   : > { %v389_v37 = vpack.c.bf16 %v294_v36, %v293_v39 }
 0x20b   : > { %v1099_v19 = vpop.f32.mrf.mxu1  ;;  %v3257_v60 = vmax.f32 %v2294_v59, 0.0 }
 0x20c   : > { %v770_v32 = vpop.f32.mrf.mxu0  ;;  %v1100_v57 = vadd.f32 %v1099_v19, %v5600_v41 }
 0x20d   : > { %v771_v34 = vadd.f32 %v770_v32, %v5598_v40  ;;  %v2295_v51 = vpop.f32.mrf.mxu3 }
 0x20e   : > { %v1966_v56 = vpop.f32.mrf.mxu2  ;;  %v1397_v38 = vmax.f32 %v1100_v57, 0.0 }
 0x20f   : > { %v1396_v4 = vmax.f32 %v771_v34, 0.0  ;;  %v1967_v48 = vadd.f32 %v1966_v56, %v5749_v31 }
 0x210   : > { %v6051_v3 = vpack.c.bf16 %v1397_v38, %v1395_v16 }
 0x211   : > { %v2296_v28 = vadd.f32 %v2295_v51, %v1967_v48  ;;  %v6049_v9 = vpack.c.bf16 %v1396_v4, %v1394_v50 }
 0x212   : > { %7694 = vst [vmem:[#allocation25_spill] sm:$0xff] %v6051_v3  ;;  %2337 = vmatmul.bf16.gmra.mxu3 %v6051_v3  ;;  %v295_v3 = vld [vmem:[%s5445_s24 + $0x210] sm:$0xff] }
 0x213   : > { %7693 = vst [vmem:[#allocation24_spill] sm:$0xff] %v6049_v9  ;;  %v3259_v27 = vmax.f32 %v2296_v28, 0.0  ;;  %2008 = vmatmul.bf16.gmra.mxu2 %v6049_v9  ;;  %v1102_v49 = vpop.f32.mrf.mxu1 }
 0x214   : > { %v773_v32 = vpop.f32.mrf.mxu0  ;;  %v1103_v51 = vadd.f32 %v1102_v49, %v5600_v41 }
 0x215   : > { %v6055_v19 = vpack.c.bf16 %v3259_v27, %v3257_v60  ;;  %v2298_v57 = vpop.f32.mrf.mxu3  ;;  %v774_v50 = vadd.f32 %v773_v32, %v5598_v40 }
 0x216   : > { %v1969_v34 = vpop.f32.mrf.mxu2  ;;  %4807 = vmatmul.msk.bf16.gmra.mxu1 %vm451_vm0, %v389_v37  ;;  %v1399_v28 = vmax.f32 %v1103_v51, 0.0 }
 0x217   : > { %7695 = vst [vmem:[#allocation26_spill] sm:$0xff] %v6055_v19  ;;  %v1970_v56 = vadd.f32 %v1969_v34, %v5749_v31  ;;  %4743 = vmatmul.msk.bf16.gmra.mxu0 %vm451_vm0, %v389_v37  ;;  %v1398_v48 = vmax.f32 %v774_v50, 0.0 }
 0x219   : > { %v2299_v59 = vadd.f32 %v2298_v57, %v1970_v56  ;;  %v296_v57 = vld [vmem:[%s5445_s24 + $0x218] sm:$0xff] }
 0x21a   : > { %v390_v50 = vpack.c.bf16 %v296_v57, %v295_v3 }
 0x21b   : > { %v1104_v4 = vpop.f32.mrf.mxu1  ;;  %v3261_v9 = vmax.f32 %v2299_v59, 0.0 }
 0x21c   : > { %v775_v16 = vpop.f32.mrf.mxu0  ;;  %v1105_v38 = vadd.f32 %v1104_v4, %v5600_v41 }
 0x21d   : > { %v776_v27 = vadd.f32 %v775_v16, %v5598_v40  ;;  %v2300_v36 = vpop.f32.mrf.mxu3 }
 0x21e   : > { %v1971_v39 = vpop.f32.mrf.mxu2  ;;  %v1401_v34 = vmax.f32 %v1105_v38, 0.0 }
 0x21f   : > { %v1400_v60 = vmax.f32 %v776_v27, 0.0  ;;  %v1972_v37 = vadd.f32 %v1971_v39, %v5749_v31 }
 0x220   : > { %v6069_v49 = vpack.c.bf16 %v1401_v34, %v1399_v28 }
 0x221   : > { %v2301_v56 = vadd.f32 %v2300_v36, %v1972_v37  ;;  %v6067_v32 = vpack.c.bf16 %v1400_v60, %v1398_v48 }
 0x222   : > { %7697 = vst [vmem:[#allocation28_spill] sm:$0xff] %v6069_v49  ;;  %2342 = vmatmul.bf16.gmra.mxu3 %v6069_v49  ;;  %v297_v49 = vld [vmem:[%s5445_s24 + $0x220] sm:$0xff] }
 0x223   : > { %7696 = vst [vmem:[#allocation27_spill] sm:$0xff] %v6067_v32  ;;  %v3263_v19 = vmax.f32 %v2301_v56, 0.0  ;;  %2013 = vmatmul.bf16.gmra.mxu2 %v6067_v32  ;;  %v1107_v51 = vpop.f32.mrf.mxu1 }
 0x224   : > { %v778_v16 = vpop.f32.mrf.mxu0  ;;  %v1108_v36 = vadd.f32 %v1107_v51, %v5600_v41 }
 0x225   : > { %v6073_v4 = vpack.c.bf16 %v3263_v19, %v3261_v9  ;;  %v2303_v38 = vpop.f32.mrf.mxu3  ;;  %v779_v48 = vadd.f32 %v778_v16, %v5598_v40 }
 0x226   : > { %v1974_v27 = vpop.f32.mrf.mxu2  ;;  %4808 = vmatmul.msk.bf16.gmra.mxu1 %vm451_vm0, %v390_v50  ;;  %v1403_v57 = vmax.f32 %v1108_v36, 0.0 }
 0x227   : > { %7698 = vst [vmem:[#allocation29_spill] sm:$0xff] %v6073_v4  ;;  %v1975_v39 = vadd.f32 %v1974_v27, %v5749_v31  ;;  %4744 = vmatmul.msk.bf16.gmra.mxu0 %vm451_vm0, %v390_v50  ;;  %v1402_v60 = vmax.f32 %v779_v48, 0.0 }
 0x229   : > { %v2304_v59 = vadd.f32 %v2303_v38, %v1975_v39  ;;  %v298_v38 = vld [vmem:[%s5445_s24 + $0x228] sm:$0xff] }
 0x22a   : > { %v391_v48 = vpack.c.bf16 %v298_v38, %v297_v49 }
 0x22b   : > { %v1109_v28 = vpop.f32.mrf.mxu1  ;;  %v3265_v32 = vmax.f32 %v2304_v59, 0.0 }
 0x22c   : > { %v780_v3 = vpop.f32.mrf.mxu0  ;;  %v1110_v19 = vadd.f32 %v1109_v28, %v5600_v41 }
 0x22d   : > { %v781_v9 = vadd.f32 %v780_v3, %v5598_v40  ;;  %v2305_v37 = vpop.f32.mrf.mxu3 }
 0x22e   : > { %v1976_v34 = vpop.f32.mrf.mxu2  ;;  %v1405_v27 = vmax.f32 %v1110_v19, 0.0 }
 0x22f   : > { %v1404_v56 = vmax.f32 %v781_v9, 0.0  ;;  %v1977_v50 = vadd.f32 %v1976_v34, %v5749_v31 }
 0x230   : > { %v6087_v51 = vpack.c.bf16 %v1405_v27, %v1403_v57 }
 0x231   : > { %v2306_v39 = vadd.f32 %v2305_v37, %v1977_v50  ;;  %v6085_v16 = vpack.c.bf16 %v1404_v56, %v1402_v60 }
 0x232   : > { %7700 = vst [vmem:[#allocation31_spill] sm:$0xff] %v6087_v51  ;;  %2347 = vmatmul.bf16.gmra.mxu3 %v6087_v51  ;;  %v299_v51 = vld [vmem:[%s5445_s24 + $0x230] sm:$0xff] }
 0x233   : > { %7699 = vst [vmem:[#allocation30_spill] sm:$0xff] %v6085_v16  ;;  %v3267_v4 = vmax.f32 %v2306_v39, 0.0  ;;  %2018 = vmatmul.bf16.gmra.mxu2 %v6085_v16  ;;  %v1112_v36 = vpop.f32.mrf.mxu1 }
 0x234   : > { %v783_v3 = vpop.f32.mrf.mxu0  ;;  %v1113_v37 = vadd.f32 %v1112_v36, %v5600_v41 }
 0x235   : > { %v6091_v28 = vpack.c.bf16 %v3267_v4, %v3265_v32  ;;  %v2308_v19 = vpop.f32.mrf.mxu3  ;;  %v784_v60 = vadd.f32 %v783_v3, %v5598_v40 }
 0x236   : > { %v1979_v9 = vpop.f32.mrf.mxu2  ;;  %4809 = vmatmul.msk.bf16.gmra.mxu1 %vm451_vm0, %v391_v48  ;;  %v1407_v38 = vmax.f32 %v1113_v37, 0.0 }
 0x237   : > { %7701 = vst [vmem:[#allocation32_spill] sm:$0xff] %v6091_v28  ;;  %v1980_v34 = vadd.f32 %v1979_v9, %v5749_v31  ;;  %4745 = vmatmul.msk.bf16.gmra.mxu0 %vm451_vm0, %v391_v48  ;;  %v1406_v56 = vmax.f32 %v784_v60, 0.0 }
 0x239   : > { %v2309_v59 = vadd.f32 %v2308_v19, %v1980_v34  ;;  %v300_v19 = vld [vmem:[%s5445_s24 + $0x238] sm:$0xff] }
 0x23a   : > { %v392_v60 = vpack.c.bf16 %v300_v19, %v299_v51 }
 0x23b   : > { %v1114_v57 = vpop.f32.mrf.mxu1  ;;  %v3269_v16 = vmax.f32 %v2309_v59, 0.0 }
 0x23c   : > { %v785_v49 = vpop.f32.mrf.mxu0  ;;  %v1115_v4 = vadd.f32 %v1114_v57, %v5600_v41 }
 0x23d   : > { %v786_v32 = vadd.f32 %v785_v49, %v5598_v40  ;;  %v2310_v50 = vpop.f32.mrf.mxu3 }
 0x23e   : > { %v1981_v27 = vpop.f32.mrf.mxu2  ;;  %v1409_v9 = vmax.f32 %v1115_v4, 0.0 }
 0x23f   : > { %v1408_v39 = vmax.f32 %v786_v32, 0.0  ;;  %v1982_v48 = vadd.f32 %v1981_v27, %v5749_v31 }
 0x240   : > { %v6105_v36 = vpack.c.bf16 %v1409_v9, %v1407_v38 }
 0x241   : > { %v2311_v34 = vadd.f32 %v2310_v50, %v1982_v48  ;;  %v6103_v3 = vpack.c.bf16 %v1408_v39, %v1406_v56 }
 0x242   : > { %7703 = vst [vmem:[#allocation34_spill] sm:$0xff] %v6105_v36  ;;  %2352 = vmatmul.bf16.gmra.mxu3 %v6105_v36  ;;  %v301_v36 = vld [vmem:[%s5445_s24 + $0x240] sm:$0xff] }
 0x243   : > { %7702 = vst [vmem:[#allocation33_spill] sm:$0xff] %v6103_v3  ;;  %v3271_v28 = vmax.f32 %v2311_v34, 0.0  ;;  %2023 = vmatmul.bf16.gmra.mxu2 %v6103_v3  ;;  %v1117_v37 = vpop.f32.mrf.mxu1 }
 0x244   : > { %v788_v49 = vpop.f32.mrf.mxu0  ;;  %v1118_v50 = vadd.f32 %v1117_v37, %v5600_v41 }
 0x245   : > { %v6109_v57 = vpack.c.bf16 %v3271_v28, %v3269_v16  ;;  %v2313_v4 = vpop.f32.mrf.mxu3  ;;  %v789_v56 = vadd.f32 %v788_v49, %v5598_v40 }
 0x246   : > { %v1984_v32 = vpop.f32.mrf.mxu2  ;;  %4810 = vmatmul.msk.bf16.gmra.mxu1 %vm451_vm0, %v392_v60  ;;  %v1411_v19 = vmax.f32 %v1118_v50, 0.0 }
 0x247   : > { %7704 = vst [vmem:[#allocation35_spill] sm:$0xff] %v6109_v57  ;;  %v1985_v27 = vadd.f32 %v1984_v32, %v5749_v31  ;;  %4746 = vmatmul.msk.bf16.gmra.mxu0 %vm451_vm0, %v392_v60  ;;  %v1410_v39 = vmax.f32 %v789_v56, 0.0 }
 0x249   : > { %v2314_v59 = vadd.f32 %v2313_v4, %v1985_v27  ;;  %v302_v4 = vld [vmem:[%s5445_s24 + $0x248] sm:$0xff] }
 0x24a   : > { %v393_v56 = vpack.c.bf16 %v302_v4, %v301_v36 }
 0x24b   : > { %v1119_v38 = vpop.f32.mrf.mxu1  ;;  %v3273_v3 = vmax.f32 %v2314_v59, 0.0 }
 0x24c   : > { %v790_v51 = vpop.f32.mrf.mxu0  ;;  %v1120_v28 = vadd.f32 %v1119_v38, %v5600_v41 }
 0x24d   : > { %v791_v16 = vadd.f32 %v790_v51, %v5598_v40  ;;  %v2315_v48 = vpop.f32.mrf.mxu3 }
 0x24e   : > { %v1986_v9 = vpop.f32.mrf.mxu2  ;;  %v1413_v32 = vmax.f32 %v1120_v28, 0.0 }
 0x24f   : > { %v1412_v34 = vmax.f32 %v791_v16, 0.0  ;;  %v1987_v60 = vadd.f32 %v1986_v9, %v5749_v31 }
 0x250   : > { %v6123_v37 = vpack.c.bf16 %v1413_v32, %v1411_v19 }
 0x251   : > { %v2316_v27 = vadd.f32 %v2315_v48, %v1987_v60  ;;  %v6121_v49 = vpack.c.bf16 %v1412_v34, %v1410_v39 }
 0x252   : > { %7706 = vst [vmem:[#allocation37_spill] sm:$0xff] %v6123_v37  ;;  %2357 = vmatmul.bf16.gmra.mxu3 %v6123_v37  ;;  %v303_v37 = vld [vmem:[%s5445_s24 + $0x250] sm:$0xff] }
 0x253   : > { %7705 = vst [vmem:[#allocation36_spill] sm:$0xff] %v6121_v49  ;;  %v3275_v57 = vmax.f32 %v2316_v27, 0.0  ;;  %2028 = vmatmul.bf16.gmra.mxu2 %v6121_v49  ;;  %v1122_v50 = vpop.f32.mrf.mxu1 }
 0x254   : > { %v793_v51 = vpop.f32.mrf.mxu0  ;;  %v1123_v48 = vadd.f32 %v1122_v50, %v5600_v41 }
 0x255   : > { %v6127_v38 = vpack.c.bf16 %v3275_v57, %v3273_v3  ;;  %v2318_v28 = vpop.f32.mrf.mxu3  ;;  %v794_v39 = vadd.f32 %v793_v51, %v5598_v40 }
 0x256   : > { %v1989_v16 = vpop.f32.mrf.mxu2  ;;  %4811 = vmatmul.msk.bf16.gmra.mxu1 %vm451_vm0, %v393_v56  ;;  %v1415_v4 = vmax.f32 %v1123_v48, 0.0 }
 0x257   : > { %7707 = vst [vmem:[#allocation38_spill] sm:$0xff] %v6127_v38  ;;  %v1990_v9 = vadd.f32 %v1989_v16, %v5749_v31  ;;  %4747 = vmatmul.msk.bf16.gmra.mxu0 %vm451_vm0, %v393_v56  ;;  %v1414_v34 = vmax.f32 %v794_v39, 0.0 }
 0x259   : > { %v2319_v59 = vadd.f32 %v2318_v28, %v1990_v9  ;;  %v304_v28 = vld [vmem:[%s5445_s24 + $0x258] sm:$0xff] }
 0x25a   : > { %v394_v39 = vpack.c.bf16 %v304_v28, %v303_v37 }
 0x25b   : > { %v1124_v19 = vpop.f32.mrf.mxu1  ;;  %v3277_v49 = vmax.f32 %v2319_v59, 0.0 }
 0x25c   : > { %v795_v36 = vpop.f32.mrf.mxu0  ;;  %v1125_v57 = vadd.f32 %v1124_v19, %v5600_v41 }
 0x25d   : > { %v796_v3 = vadd.f32 %v795_v36, %v5598_v40  ;;  %v2320_v60 = vpop.f32.mrf.mxu3 }
 0x25e   : > { %v1991_v32 = vpop.f32.mrf.mxu2  ;;  %v1417_v16 = vmax.f32 %v1125_v57, 0.0 }
 0x25f   : > { %v1416_v27 = vmax.f32 %v796_v3, 0.0  ;;  %v1992_v56 = vadd.f32 %v1991_v32, %v5749_v31 }
 0x260   : > { %v6141_v50 = vpack.c.bf16 %v1417_v16, %v1415_v4 }
 0x261   : > { %v2321_v9 = vadd.f32 %v2320_v60, %v1992_v56  ;;  %v6139_v51 = vpack.c.bf16 %v1416_v27, %v1414_v34 }
 0x262   : > { %7709 = vst [vmem:[#allocation40_spill] sm:$0xff] %v6141_v50  ;;  %2362 = vmatmul.bf16.gmra.mxu3 %v6141_v50  ;;  %v305_v50 = vld [vmem:[%s5445_s24 + $0x260] sm:$0xff] }
 0x263   : > { %7708 = vst [vmem:[#allocation39_spill] sm:$0xff] %v6139_v51  ;;  %v3279_v38 = vmax.f32 %v2321_v9, 0.0  ;;  %2033 = vmatmul.bf16.gmra.mxu2 %v6139_v51  ;;  %v1127_v48 = vpop.f32.mrf.mxu1 }
 0x264   : > { %v798_v36 = vpop.f32.mrf.mxu0  ;;  %v1128_v60 = vadd.f32 %v1127_v48, %v5600_v41 }
 0x265   : > { %v6145_v19 = vpack.c.bf16 %v3279_v38, %v3277_v49  ;;  %v2323_v57 = vpop.f32.mrf.mxu3  ;;  %v799_v34 = vadd.f32 %v798_v36, %v5598_v40 }
 0x266   : > { %v1994_v3 = vpop.f32.mrf.mxu2  ;;  %4812 = vmatmul.msk.bf16.gmra.mxu1 %vm451_vm0, %v394_v39  ;;  %v1419_v28 = vmax.f32 %v1128_v60, 0.0 }
 0x267   : > { %7710 = vst [vmem:[#allocation41_spill] sm:$0xff] %v6145_v19  ;;  %v1995_v32 = vadd.f32 %v1994_v3, %v5749_v31  ;;  %4748 = vmatmul.msk.bf16.gmra.mxu0 %vm451_vm0, %v394_v39  ;;  %v1418_v27 = vmax.f32 %v799_v34, 0.0 }
 0x269   : > { %v2324_v59 = vadd.f32 %v2323_v57, %v1995_v32  ;;  %v306_v57 = vld [vmem:[%s5445_s24 + $0x268] sm:$0xff] }
 0x26a   : > { %v395_v34 = vpack.c.bf16 %v306_v57, %v305_v50  ;;  %v5042_v50 = vld [vmem:[%s7580_s2 + $0x24] sm:$0xf] }
 0x26b   : > { %v1129_v4 = vpop.f32.mrf.mxu1  ;;  %v3281_v51 = vmax.f32 %v2324_v59, 0.0 }
 0x26c   : > { %v800_v37 = vpop.f32.mrf.mxu0  ;;  %v1130_v38 = vadd.f32 %v1129_v4, %v5600_v41 }
 0x26d   : > { %v801_v49 = vadd.f32 %v800_v37, %v5598_v40  ;;  %v2325_v56 = vpop.f32.mrf.mxu3 }
 0x26e   : > { %v1996_v16 = vpop.f32.mrf.mxu2  ;;  %v1421_v3 = vmax.f32 %v1130_v38, 0.0 }
 0x26f   : > { %v1420_v9 = vmax.f32 %v801_v49, 0.0  ;;  %v1997_v39 = vadd.f32 %v1996_v16, %v5749_v31 }
 0x270   : > { %v6159_v48 = vpack.c.bf16 %v1421_v3, %v1419_v28  ;;  %v5058_v3 = vld [vmem:[%s7580_s2 + $0xa4] sm:$0xf] }
 0x271   : > { %v2326_v32 = vadd.f32 %v2325_v56, %v1997_v39  ;;  %v6157_v36 = vpack.c.bf16 %v1420_v9, %v1418_v27  ;;  %v4924_v39 = vld [vmem:[%s7580_s2 + $0xa8] sm:$0xf0] }
 0x272   : > { %7712 = vst [vmem:[#allocation43_spill] sm:$0xff] %v6159_v48  ;;  %2367 = vmatmul.bf16.gmra.mxu3 %v6159_v48  ;;  %v307_v48 = vld [vmem:[%s5445_s24 + $0x270] sm:$0xff] }
 0x273   : > { %7711 = vst [vmem:[#allocation42_spill] sm:$0xff] %v6157_v36  ;;  %v3283_v19 = vmax.f32 %v2326_v32, 0.0  ;;  %2038 = vmatmul.bf16.gmra.mxu2 %v6157_v36  ;;  %v1132_v60 = vpop.f32.mrf.mxu1  ;;  %v308_v36 = vld [vmem:[%s5445_s24 + $0x278] sm:$0xff] }
 0x274   : > { %v803_v37 = vpop.f32.mrf.mxu0  ;;  %v1133_v56 = vadd.f32 %v1132_v60, %v5600_v41 }
 0x275   : > { %v6163_v4 = vpack.c.bf16 %v3283_v19, %v3281_v51  ;;  %v2328_v38 = vpop.f32.mrf.mxu3  ;;  %v804_v59 = vadd.f32 %v803_v37, %v5598_v40  ;;  %v4860_v51 = vld [vmem:[%s7580_s2 + $0x28] sm:$0xf0] }
 0x276   : > { %v1999_v49 = vpop.f32.mrf.mxu2  ;;  %4813 = vmatmul.msk.bf16.gmra.mxu1 %vm451_vm0, %v395_v34  ;;  %v4863_v9 = vor.u32 %v5042_v50, %v4860_v51 }
 0x277   : > { %7713 = vst [vmem:[#allocation44_spill] sm:$0xff] %v6163_v4  ;;  %v2000_v16 = vadd.f32 %v1999_v49, %v5749_v31  ;;  %4749 = vmatmul.msk.bf16.gmra.mxu0 %vm451_vm0, %v395_v34  ;;  %v4927_v34 = vor.u32 %v5058_v3, %v4924_v39  ;;  %v1422_v37 = vmax.f32 %v804_v59, 0.0  ;;  %v396_v59 = vpack.c.bf16 %v308_v36, %v307_v48  ;;  %v5081_v36 = vld [vmem:[%s7581_s3 + $0x58] sm:$0xff] }
 0x278   : > { %2548 = vmatpush.bf16.msrb.mxu0 %v4863_v9  ;;  %4048 = vmatpush.bf16.msrb.mxu3 %v5081_v36 }
 0x279   : > { %v2329_v27 = vadd.f32 %v2328_v38, %v2000_v16  ;;  %v1423_v38 = vmax.f32 %v1133_v56, 0.0  ;;  %2877 = vmatpush.bf16.msrb.mxu1 %v4927_v34  ;;  %v5073_v56 = vld [vmem:[%s7581_s3 + $0x18] sm:$0xff] }
 0x27a   : > { %3719 = vmatpush.bf16.msrb.mxu2 %v5073_v56 }
 0x27b   : > { %v1134_v28 = vpop.f32.mrf.mxu1 }
 0x27c   : > { %v805_v19 = vpop.f32.mrf.mxu0  ;;  %v1135_v32 = vadd.f32 %v1134_v28, %v5600_v41 }
 0x27d   : > { %v806_v57 = vadd.f32 %v805_v19, %v5598_v40  ;;  %v2330_v49 = vpop.f32.mrf.mxu3  ;;  %v3285_v19 = vmax.f32 %v2329_v27, 0.0 }
 0x27e   : > { %v2001_v60 = vpop.f32.mrf.mxu2  ;;  %v1425_v50 = vmax.f32 %v1135_v32, 0.0 }
 0x27f   : > { %v1424_v16 = vmax.f32 %v806_v57, 0.0  ;;  %v2002_v51 = vadd.f32 %v2001_v60, %v5749_v31 }
 0x280   : > { %v6189_v58 = vpack.c.bf16 %v1425_v50, %v1423_v38 }
 0x281   : > { %v2331_v4 = vadd.f32 %v2330_v49, %v2002_v51  ;;  %v6187_v52 = vpack.c.bf16 %v1424_v16, %v1422_v37 }
 0x282   : > { %7715 = vst [vmem:[#allocation46_spill] sm:$0xff] %v6189_v58  ;;  %2372 = vmatmul.bf16.gmra.mxu3 %v6189_v58 }
 0x283   : > { %7714 = vst [vmem:[#allocation45_spill] sm:$0xff] %v6187_v52  ;;  %v3287_v28 = vmax.f32 %v2331_v4, 0.0  ;;  %2043 = vmatmul.bf16.gmra.mxu2 %v6187_v52  ;;  %v1137_v3 = vpop.f32.mrf.mxu1 }
 0x284   : > { %v808_v9 = vpop.f32.mrf.mxu0  ;;  %v1138_v27 = vadd.f32 %v1137_v3, %v5600_v41 }
 0x285   : > { %v6196_v39 = vpack.c.bf16 %v3287_v28, %v3285_v19  ;;  %v2333_v32 = vpop.f32.mrf.mxu3  ;;  %v809_v4 = vadd.f32 %v808_v9, %v5598_v40 }
 0x286   : > { %v2004_v57 = vpop.f32.mrf.mxu2  ;;  %4814 = vmatmul.msk.bf16.gmra.mxu1 %vm451_vm0, %v396_v59  ;;  %v1427_v19 = vmax.f32 %v1138_v27, 0.0 }
 0x287   : > { %7716 = vst [vmem:[#allocation47_spill] sm:$0xff] %v6196_v39  ;;  %v2005_v34 = vadd.f32 %v2004_v57, %v5749_v31  ;;  %4750 = vmatmul.msk.bf16.gmra.mxu0 %vm451_vm0, %v396_v59  ;;  %v1426_v16 = vmax.f32 %v809_v4, 0.0  ;;  %v309_v57 = vld [vmem:[%s5445_s24 + $0x280] sm:$0xff] }
 0x289   : > { %v2334_v48 = vadd.f32 %v2333_v32, %v2005_v34  ;;  %v310_v32 = vld [vmem:[%s5445_s24 + $0x288] sm:$0xff] }
 0x28a   : > { %v397_v4 = vpack.c.bf16 %v310_v32, %v309_v57 }
 0x28b   : > { %v1139_v60 = vpop.f32.mrf.mxu1  ;;  %v3289_v36 = vmax.f32 %v2334_v48, 0.0 }
 0x28c   : > { %v810_v37 = vpop.f32.mrf.mxu0  ;;  %v1140_v38 = vadd.f32 %v1139_v60, %v5600_v41 }
 0x28d   : > { %v811_v49 = vadd.f32 %v810_v37, %v5598_v40  ;;  %v2335_v51 = vpop.f32.mrf.mxu3 }
 0x28e   : > { %v2006_v50 = vpop.f32.mrf.mxu2  ;;  %v1429_v59 = vmax.f32 %v1140_v38, 0.0 }
 0x28f   : > { %v1428_v28 = vmax.f32 %v811_v49, 0.0  ;;  %v2007_v56 = vadd.f32 %v2006_v50, %v5749_v31 }
 0x290   : > { %v6213_v3 = vpack.c.bf16 %v1429_v59, %v1427_v19 }
 0x291   : > { %v2336_v34 = vadd.f32 %v2335_v51, %v2007_v56  ;;  %v6211_v9 = vpack.c.bf16 %v1428_v28, %v1426_v16 }
 0x292   : > { %7718 = vst [vmem:[#allocation49_spill] sm:$0xff] %v6213_v3  ;;  %2377 = vmatmul.bf16.gmra.mxu3 %v6213_v3  ;;  %v311_v3 = vld [vmem:[%s5445_s24 + $0x290] sm:$0xff] }
 0x293   : > { %7717 = vst [vmem:[#allocation48_spill] sm:$0xff] %v6211_v9  ;;  %v3291_v58 = vmax.f32 %v2336_v34, 0.0  ;;  %2048 = vmatmul.bf16.gmra.mxu2 %v6211_v9  ;;  %v1142_v27 = vpop.f32.mrf.mxu1 }
 0x294   : > { %v813_v37 = vpop.f32.mrf.mxu0  ;;  %v1143_v51 = vadd.f32 %v1142_v27, %v5600_v41 }
 0x295   : > { %v6217_v60 = vpack.c.bf16 %v3291_v58, %v3289_v36  ;;  %v2338_v38 = vpop.f32.mrf.mxu3  ;;  %v814_v16 = vadd.f32 %v813_v37, %v5598_v40 }
 0x296   : > { %v2009_v49 = vpop.f32.mrf.mxu2  ;;  %4815 = vmatmul.msk.bf16.gmra.mxu1 %vm451_vm0, %v397_v4  ;;  %v1431_v34 = vmax.f32 %v1143_v51, 0.0 }
 0x297   : > { %7719 = vst [vmem:[#allocation50_spill] sm:$0xff] %v6217_v60  ;;  %v2010_v50 = vadd.f32 %v2009_v49, %v5749_v31  ;;  %4751 = vmatmul.msk.bf16.gmra.mxu0 %vm451_vm0, %v397_v4  ;;  %v1430_v56 = vmax.f32 %v814_v16, 0.0 }
 0x299   : > { %v2339_v48 = vadd.f32 %v2338_v38, %v2010_v50  ;;  %v312_v38 = vld [vmem:[%s5445_s24 + $0x298] sm:$0xff] }
 0x29a   : > { %v398_v16 = vpack.c.bf16 %v312_v38, %v311_v3 }
 0x29b   : > { %v1144_v28 = vpop.f32.mrf.mxu1  ;;  %v3293_v9 = vmax.f32 %v2339_v48, 0.0 }
 0x29c   : > { %v815_v19 = vpop.f32.mrf.mxu0  ;;  %v1145_v59 = vadd.f32 %v1144_v28, %v5600_v41 }
 0x29d   : > { %v816_v58 = vadd.f32 %v815_v19, %v5598_v40  ;;  %v2340_v32 = vpop.f32.mrf.mxu3 }
 0x29e   : > { %v2011_v57 = vpop.f32.mrf.mxu2  ;;  %v1433_v49 = vmax.f32 %v1145_v59, 0.0 }
 0x29f   : > { %v1432_v36 = vmax.f32 %v816_v58, 0.0  ;;  %v2012_v4 = vadd.f32 %v2011_v57, %v5749_v31 }
 0x2a0   : > { %v6231_v27 = vpack.c.bf16 %v1433_v49, %v1431_v34 }
 0x2a1   : > { %v2341_v50 = vadd.f32 %v2340_v32, %v2012_v4  ;;  %v6229_v37 = vpack.c.bf16 %v1432_v36, %v1430_v56 }
 0x2a2   : > { %7721 = vst [vmem:[#allocation52_spill] sm:$0xff] %v6231_v27  ;;  %2382 = vmatmul.bf16.gmra.mxu3 %v6231_v27  ;;  %v313_v27 = vld [vmem:[%s5445_s24 + $0x2a0] sm:$0xff] }
 0x2a3   : > { %7720 = vst [vmem:[#allocation51_spill] sm:$0xff] %v6229_v37  ;;  %v3295_v60 = vmax.f32 %v2341_v50, 0.0  ;;  %2053 = vmatmul.bf16.gmra.mxu2 %v6229_v37  ;;  %v1147_v51 = vpop.f32.mrf.mxu1 }
 0x2a4   : > { %v818_v19 = vpop.f32.mrf.mxu0  ;;  %v1148_v32 = vadd.f32 %v1147_v51, %v5600_v41 }
 0x2a5   : > { %v6235_v28 = vpack.c.bf16 %v3295_v60, %v3293_v9  ;;  %v2343_v59 = vpop.f32.mrf.mxu3  ;;  %v819_v56 = vadd.f32 %v818_v19, %v5598_v40 }
 0x2a6   : > { %v2014_v58 = vpop.f32.mrf.mxu2  ;;  %4816 = vmatmul.msk.bf16.gmra.mxu1 %vm451_vm0, %v398_v16  ;;  %v1435_v38 = vmax.f32 %v1148_v32, 0.0 }
 0x2a7   : > { %7722 = vst [vmem:[#allocation53_spill] sm:$0xff] %v6235_v28  ;;  %v2015_v57 = vadd.f32 %v2014_v58, %v5749_v31  ;;  %4752 = vmatmul.msk.bf16.gmra.mxu0 %vm451_vm0, %v398_v16  ;;  %v1434_v36 = vmax.f32 %v819_v56, 0.0 }
 0x2a9   : > { %v2344_v48 = vadd.f32 %v2343_v59, %v2015_v57  ;;  %v314_v59 = vld [vmem:[%s5445_s24 + $0x2a8] sm:$0xff] }
 0x2aa   : > { %v399_v56 = vpack.c.bf16 %v314_v59, %v313_v27 }
 0x2ab   : > { %v1149_v34 = vpop.f32.mrf.mxu1  ;;  %v3297_v37 = vmax.f32 %v2344_v48, 0.0 }
 0x2ac   : > { %v820_v3 = vpop.f32.mrf.mxu0  ;;  %v1150_v60 = vadd.f32 %v1149_v34, %v5600_v41 }
 0x2ad   : > { %v821_v9 = vadd.f32 %v820_v3, %v5598_v40  ;;  %v2345_v4 = vpop.f32.mrf.mxu3 }
 0x2ae   : > { %v2016_v49 = vpop.f32.mrf.mxu2  ;;  %v1437_v58 = vmax.f32 %v1150_v60, 0.0 }
 0x2af   : > { %v1436_v50 = vmax.f32 %v821_v9, 0.0  ;;  %v2017_v16 = vadd.f32 %v2016_v49, %v5749_v31 }
 0x2b0   : > { %v6249_v51 = vpack.c.bf16 %v1437_v58, %v1435_v38 }
 0x2b1   : > { %v2346_v57 = vadd.f32 %v2345_v4, %v2017_v16  ;;  %v6247_v19 = vpack.c.bf16 %v1436_v50, %v1434_v36 }
 0x2b2   : > { %7724 = vst [vmem:[#allocation55_spill] sm:$0xff] %v6249_v51  ;;  %2387 = vmatmul.bf16.gmra.mxu3 %v6249_v51  ;;  %v315_v51 = vld [vmem:[%s5445_s24 + $0x2b0] sm:$0xff] }
 0x2b3   : > { %7723 = vst [vmem:[#allocation54_spill] sm:$0xff] %v6247_v19  ;;  %v3299_v28 = vmax.f32 %v2346_v57, 0.0  ;;  %2058 = vmatmul.bf16.gmra.mxu2 %v6247_v19  ;;  %v1152_v32 = vpop.f32.mrf.mxu1 }
 0x2b4   : > { %v823_v3 = vpop.f32.mrf.mxu0  ;;  %v1153_v4 = vadd.f32 %v1152_v32, %v5600_v41 }
 0x2b5   : > { %v6253_v34 = vpack.c.bf16 %v3299_v28, %v3297_v37  ;;  %v2348_v60 = vpop.f32.mrf.mxu3  ;;  %v824_v36 = vadd.f32 %v823_v3, %v5598_v40 }
 0x2b6   : > { %v2019_v9 = vpop.f32.mrf.mxu2  ;;  %4817 = vmatmul.msk.bf16.gmra.mxu1 %vm451_vm0, %v399_v56  ;;  %v1439_v59 = vmax.f32 %v1153_v4, 0.0 }
 0x2b7   : > { %7725 = vst [vmem:[#allocation56_spill] sm:$0xff] %v6253_v34  ;;  %v2020_v49 = vadd.f32 %v2019_v9, %v5749_v31  ;;  %4753 = vmatmul.msk.bf16.gmra.mxu0 %vm451_vm0, %v399_v56  ;;  %v1438_v50 = vmax.f32 %v824_v36, 0.0 }
 0x2b9   : > { %v2349_v48 = vadd.f32 %v2348_v60, %v2020_v49  ;;  %v316_v60 = vld [vmem:[%s5445_s24 + $0x2b8] sm:$0xff] }
 0x2ba   : > { %v400_v36 = vpack.c.bf16 %v316_v60, %v315_v51 }
 0x2bb   : > { %v1154_v38 = vpop.f32.mrf.mxu1  ;;  %v3301_v19 = vmax.f32 %v2349_v48, 0.0 }
 0x2bc   : > { %v825_v27 = vpop.f32.mrf.mxu0  ;;  %v1155_v28 = vadd.f32 %v1154_v38, %v5600_v41 }
 0x2bd   : > { %v826_v37 = vadd.f32 %v825_v27, %v5598_v40  ;;  %v2350_v16 = vpop.f32.mrf.mxu3 }
 0x2be   : > { %v2021_v58 = vpop.f32.mrf.mxu2  ;;  %v1441_v9 = vmax.f32 %v1155_v28, 0.0 }
 0x2bf   : > { %v1440_v57 = vmax.f32 %v826_v37, 0.0  ;;  %v2022_v56 = vadd.f32 %v2021_v58, %v5749_v31 }
 0x2c0   : > { %v6267_v32 = vpack.c.bf16 %v1441_v9, %v1439_v59 }
 0x2c1   : > { %v2351_v49 = vadd.f32 %v2350_v16, %v2022_v56  ;;  %v6265_v3 = vpack.c.bf16 %v1440_v57, %v1438_v50 }
 0x2c2   : > { %7727 = vst [vmem:[#allocation58_spill] sm:$0xff] %v6267_v32  ;;  %2392 = vmatmul.bf16.gmra.mxu3 %v6267_v32  ;;  %v317_v32 = vld [vmem:[%s5445_s24 + $0x2c0] sm:$0xff] }
 0x2c3   : > { %7726 = vst [vmem:[#allocation57_spill] sm:$0xff] %v6265_v3  ;;  %v3303_v34 = vmax.f32 %v2351_v49, 0.0  ;;  %2063 = vmatmul.bf16.gmra.mxu2 %v6265_v3  ;;  %v1157_v4 = vpop.f32.mrf.mxu1 }
 0x2c4   : > { %v828_v27 = vpop.f32.mrf.mxu0  ;;  %v1158_v16 = vadd.f32 %v1157_v4, %v5600_v41 }
 0x2c5   : > { %v6271_v38 = vpack.c.bf16 %v3303_v34, %v3301_v19  ;;  %v2353_v28 = vpop.f32.mrf.mxu3  ;;  %v829_v50 = vadd.f32 %v828_v27, %v5598_v40 }
 0x2c6   : > { %v2024_v37 = vpop.f32.mrf.mxu2  ;;  %4818 = vmatmul.msk.bf16.gmra.mxu1 %vm451_vm0, %v400_v36  ;;  %v1443_v60 = vmax.f32 %v1158_v16, 0.0 }
 0x2c7   : > { %7728 = vst [vmem:[#allocation59_spill] sm:$0xff] %v6271_v38  ;;  %v2025_v58 = vadd.f32 %v2024_v37, %v5749_v31  ;;  %4754 = vmatmul.msk.bf16.gmra.mxu0 %vm451_vm0, %v400_v36  ;;  %v1442_v57 = vmax.f32 %v829_v50, 0.0 }
 0x2c9   : > { %v2354_v48 = vadd.f32 %v2353_v28, %v2025_v58  ;;  %v318_v28 = vld [vmem:[%s5445_s24 + $0x2c8] sm:$0xff] }
 0x2ca   : > { %v401_v50 = vpack.c.bf16 %v318_v28, %v317_v32 }
 0x2cb   : > { %v1159_v59 = vpop.f32.mrf.mxu1  ;;  %v3305_v3 = vmax.f32 %v2354_v48, 0.0 }
 0x2cc   : > { %v830_v51 = vpop.f32.mrf.mxu0  ;;  %v1160_v34 = vadd.f32 %v1159_v59, %v5600_v41 }
 0x2cd   : > { %v831_v19 = vadd.f32 %v830_v51, %v5598_v40  ;;  %v2355_v56 = vpop.f32.mrf.mxu3 }
 0x2ce   : > { %v2026_v9 = vpop.f32.mrf.mxu2  ;;  %v1445_v37 = vmax.f32 %v1160_v34, 0.0 }
 0x2cf   : > { %v1444_v49 = vmax.f32 %v831_v19, 0.0  ;;  %v2027_v36 = vadd.f32 %v2026_v9, %v5749_v31 }
 0x2d0   : > { %v6285_v4 = vpack.c.bf16 %v1445_v37, %v1443_v60 }
 0x2d1   : > { %v2356_v58 = vadd.f32 %v2355_v56, %v2027_v36  ;;  %v6283_v27 = vpack.c.bf16 %v1444_v49, %v1442_v57 }
 0x2d2   : > { %7730 = vst [vmem:[#allocation61_spill] sm:$0xff] %v6285_v4  ;;  %2397 = vmatmul.bf16.gmra.mxu3 %v6285_v4  ;;  %v319_v4 = vld [vmem:[%s5445_s24 + $0x2d0] sm:$0xff] }
 0x2d3   : > { %7729 = vst [vmem:[#allocation60_spill] sm:$0xff] %v6283_v27  ;;  %v3307_v38 = vmax.f32 %v2356_v58, 0.0  ;;  %2068 = vmatmul.bf16.gmra.mxu2 %v6283_v27  ;;  %v1162_v16 = vpop.f32.mrf.mxu1 }
 0x2d4   : > { %v833_v51 = vpop.f32.mrf.mxu0  ;;  %v1163_v56 = vadd.f32 %v1162_v16, %v5600_v41 }
 0x2d5   : > { %v6289_v59 = vpack.c.bf16 %v3307_v38, %v3305_v3  ;;  %v2358_v34 = vpop.f32.mrf.mxu3  ;;  %v834_v57 = vadd.f32 %v833_v51, %v5598_v40 }
 0x2d6   : > { %v2029_v19 = vpop.f32.mrf.mxu2  ;;  %4819 = vmatmul.msk.bf16.gmra.mxu1 %vm451_vm0, %v401_v50  ;;  %v1447_v28 = vmax.f32 %v1163_v56, 0.0 }
 0x2d7   : > { %7731 = vst [vmem:[#allocation62_spill] sm:$0xff] %v6289_v59  ;;  %v2030_v9 = vadd.f32 %v2029_v19, %v5749_v31  ;;  %4755 = vmatmul.msk.bf16.gmra.mxu0 %vm451_vm0, %v401_v50  ;;  %v1446_v49 = vmax.f32 %v834_v57, 0.0 }
 0x2d9   : > { %v2359_v48 = vadd.f32 %v2358_v34, %v2030_v9  ;;  %v320_v34 = vld [vmem:[%s5445_s24 + $0x2d8] sm:$0xff] }
 0x2da   : > { %v402_v57 = vpack.c.bf16 %v320_v34, %v319_v4 }
 0x2db   : > { %v1164_v60 = vpop.f32.mrf.mxu1  ;;  %v3309_v27 = vmax.f32 %v2359_v48, 0.0 }
 0x2dc   : > { %v835_v32 = vpop.f32.mrf.mxu0  ;;  %v1165_v38 = vadd.f32 %v1164_v60, %v5600_v41 }
 0x2dd   : > { %v836_v3 = vadd.f32 %v835_v32, %v5598_v40  ;;  %v2360_v36 = vpop.f32.mrf.mxu3 }
 0x2de   : > { %v2031_v37 = vpop.f32.mrf.mxu2  ;;  %v1449_v19 = vmax.f32 %v1165_v38, 0.0 }
 0x2df   : > { %v1448_v58 = vmax.f32 %v836_v3, 0.0  ;;  %v2032_v50 = vadd.f32 %v2031_v37, %v5749_v31 }
 0x2e0   : > { %v6303_v16 = vpack.c.bf16 %v1449_v19, %v1447_v28 }
 0x2e1   : > { %v2361_v9 = vadd.f32 %v2360_v36, %v2032_v50  ;;  %v6301_v51 = vpack.c.bf16 %v1448_v58, %v1446_v49 }
 0x2e2   : > { %7733 = vst [vmem:[#allocation64_spill] sm:$0xff] %v6303_v16  ;;  %2402 = vmatmul.bf16.gmra.mxu3 %v6303_v16  ;;  %v321_v16 = vld [vmem:[%s5445_s24 + $0x2e0] sm:$0xff] }
 0x2e3   : > { %7732 = vst [vmem:[#allocation63_spill] sm:$0xff] %v6301_v51  ;;  %v3311_v59 = vmax.f32 %v2361_v9, 0.0  ;;  %2073 = vmatmul.bf16.gmra.mxu2 %v6301_v51  ;;  %v1167_v56 = vpop.f32.mrf.mxu1 }
 0x2e4   : > { %v838_v32 = vpop.f32.mrf.mxu0  ;;  %v1168_v36 = vadd.f32 %v1167_v56, %v5600_v41 }
 0x2e5   : > { %v6307_v60 = vpack.c.bf16 %v3311_v59, %v3309_v27  ;;  %v2363_v38 = vpop.f32.mrf.mxu3  ;;  %v839_v49 = vadd.f32 %v838_v32, %v5598_v40 }
 0x2e6   : > { %v2034_v3 = vpop.f32.mrf.mxu2  ;;  %4820 = vmatmul.msk.bf16.gmra.mxu1 %vm451_vm0, %v402_v57  ;;  %v1451_v34 = vmax.f32 %v1168_v36, 0.0 }
 0x2e7   : > { %7734 = vst [vmem:[#allocation65_spill] sm:$0xff] %v6307_v60  ;;  %v2035_v37 = vadd.f32 %v2034_v3, %v5749_v31  ;;  %4756 = vmatmul.msk.bf16.gmra.mxu0 %vm451_vm0, %v402_v57  ;;  %v1450_v58 = vmax.f32 %v839_v49, 0.0 }
 0x2e9   : > { %v2364_v48 = vadd.f32 %v2363_v38, %v2035_v37  ;;  %v322_v38 = vld [vmem:[%s5445_s24 + $0x2e8] sm:$0xff] }
 0x2ea   : > { %v403_v49 = vpack.c.bf16 %v322_v38, %v321_v16  ;;  %v5040_v16 = vld [vmem:[%s7580_s2 + $0x14] sm:$0xf] }
 0x2eb   : > { %v1169_v28 = vpop.f32.mrf.mxu1  ;;  %v3313_v51 = vmax.f32 %v2364_v48, 0.0 }
 0x2ec   : > { %v840_v4 = vpop.f32.mrf.mxu0  ;;  %v1170_v59 = vadd.f32 %v1169_v28, %v5600_v41 }
 0x2ed   : > { %v841_v27 = vadd.f32 %v840_v4, %v5598_v40  ;;  %v2365_v50 = vpop.f32.mrf.mxu3 }
 0x2ee   : > { %v2036_v19 = vpop.f32.mrf.mxu2  ;;  %v1453_v3 = vmax.f32 %v1170_v59, 0.0 }
 0x2ef   : > { %v1452_v9 = vmax.f32 %v841_v27, 0.0  ;;  %v2037_v57 = vadd.f32 %v2036_v19, %v5749_v31 }
 0x2f0   : > { %v6321_v56 = vpack.c.bf16 %v1453_v3, %v1451_v34  ;;  %v5056_v3 = vld [vmem:[%s7580_s2 + $0x94] sm:$0xf] }
 0x2f1   : > { %v2366_v37 = vadd.f32 %v2365_v50, %v2037_v57  ;;  %v6319_v32 = vpack.c.bf16 %v1452_v9, %v1450_v58  ;;  %v4916_v57 = vld [vmem:[%s7580_s2 + $0x98] sm:$0xf0] }
 0x2f2   : > { %7736 = vst [vmem:[#allocation67_spill] sm:$0xff] %v6321_v56  ;;  %2407 = vmatmul.bf16.gmra.mxu3 %v6321_v56  ;;  %v323_v56 = vld [vmem:[%s5445_s24 + $0x2f0] sm:$0xff] }
 0x2f3   : > { %7735 = vst [vmem:[#allocation66_spill] sm:$0xff] %v6319_v32  ;;  %v3315_v60 = vmax.f32 %v2366_v37, 0.0  ;;  %2078 = vmatmul.bf16.gmra.mxu2 %v6319_v32  ;;  %v1172_v36 = vpop.f32.mrf.mxu1  ;;  %v324_v32 = vld [vmem:[%s5445_s24 + $0x2f8] sm:$0xff] }
 0x2f4   : > { %v843_v4 = vpop.f32.mrf.mxu0  ;;  %v1173_v50 = vadd.f32 %v1172_v36, %v5600_v41 }
 0x2f5   : > { %v6325_v28 = vpack.c.bf16 %v3315_v60, %v3313_v51  ;;  %v2368_v59 = vpop.f32.mrf.mxu3  ;;  %v844_v48 = vadd.f32 %v843_v4, %v5598_v40  ;;  %v4852_v51 = vld [vmem:[%s7580_s2 + $0x18] sm:$0xf0] }
 0x2f6   : > { %v2039_v27 = vpop.f32.mrf.mxu2  ;;  %4821 = vmatmul.msk.bf16.gmra.mxu1 %vm451_vm0, %v403_v49  ;;  %v4855_v9 = vor.u32 %v5040_v16, %v4852_v51 }
 0x2f7   : > { %7737 = vst [vmem:[#allocation68_spill] sm:$0xff] %v6325_v28  ;;  %v2040_v19 = vadd.f32 %v2039_v27, %v5749_v31  ;;  %4757 = vmatmul.msk.bf16.gmra.mxu0 %vm451_vm0, %v403_v49  ;;  %v4919_v49 = vor.u32 %v5056_v3, %v4916_v57  ;;  %v1454_v4 = vmax.f32 %v844_v48, 0.0  ;;  %v404_v48 = vpack.c.bf16 %v324_v32, %v323_v56  ;;  %v5080_v32 = vld [vmem:[%s7581_s3 + $0x50] sm:$0xff] }
 0x2f8   : > { %2549 = vmatpush.bf16.msrb.mxu0 %v4855_v9  ;;  %4049 = vmatpush.bf16.msrb.mxu3 %v5080_v32 }
 0x2f9   : > { %v2369_v58 = vadd.f32 %v2368_v59, %v2040_v19  ;;  %v1455_v59 = vmax.f32 %v1173_v50, 0.0  ;;  %2878 = vmatpush.bf16.msrb.mxu1 %v4919_v49  ;;  %v5072_v50 = vld [vmem:[%s7581_s3 + $0x10] sm:$0xff] }
 0x2fa   : > { %3720 = vmatpush.bf16.msrb.mxu2 %v5072_v50 }
 0x2fb   : > { %v1174_v34 = vpop.f32.mrf.mxu1 }
 0x2fc   : > { %v845_v60 = vpop.f32.mrf.mxu0  ;;  %v1175_v37 = vadd.f32 %v1174_v34, %v5600_v41 }
 0x2fd   : > { %v846_v38 = vadd.f32 %v845_v60, %v5598_v40  ;;  %v2370_v27 = vpop.f32.mrf.mxu3  ;;  %v3317_v60 = vmax.f32 %v2369_v58, 0.0 }
 0x2fe   : > { %v2041_v36 = vpop.f32.mrf.mxu2  ;;  %v1457_v16 = vmax.f32 %v1175_v37, 0.0 }
 0x2ff   : > { %v1456_v19 = vmax.f32 %v846_v38, 0.0  ;;  %v2042_v51 = vadd.f32 %v2041_v36, %v5749_v31 }
 0x300   : > { %v6351_v39 = vpack.c.bf16 %v1457_v16, %v1455_v59 }
 0x301   : > { %v2371_v28 = vadd.f32 %v2370_v27, %v2042_v51  ;;  %v6349_v52 = vpack.c.bf16 %v1456_v19, %v1454_v4 }
 0x302   : > { %7739 = vst [vmem:[#allocation70_spill] sm:$0xff] %v6351_v39  ;;  %2412 = vmatmul.bf16.gmra.mxu3 %v6351_v39 }
 0x303   : > { %7738 = vst [vmem:[#allocation69_spill] sm:$0xff] %v6349_v52  ;;  %v3319_v34 = vmax.f32 %v2371_v28, 0.0  ;;  %2083 = vmatmul.bf16.gmra.mxu2 %v6349_v52  ;;  %v1177_v3 = vpop.f32.mrf.mxu1 }
 0x304   : > { %v848_v9 = vpop.f32.mrf.mxu0  ;;  %v1178_v58 = vadd.f32 %v1177_v3, %v5600_v41 }
 0x305   : > { %v6358_v57 = vpack.c.bf16 %v3319_v34, %v3317_v60  ;;  %v2373_v37 = vpop.f32.mrf.mxu3  ;;  %v849_v28 = vadd.f32 %v848_v9, %v5598_v40 }
 0x306   : > { %v2044_v38 = vpop.f32.mrf.mxu2  ;;  %4822 = vmatmul.msk.bf16.gmra.mxu1 %vm451_vm0, %v404_v48  ;;  %v1459_v60 = vmax.f32 %v1178_v58, 0.0 }
 0x307   : > { %7740 = vst [vmem:[#allocation71_spill] sm:$0xff] %v6358_v57  ;;  %v2045_v49 = vadd.f32 %v2044_v38, %v5749_v31  ;;  %4758 = vmatmul.msk.bf16.gmra.mxu0 %vm451_vm0, %v404_v48  ;;  %v1458_v19 = vmax.f32 %v849_v28, 0.0  ;;  %v325_v38 = vld [vmem:[%s5445_s24 + $0x300] sm:$0xff] }
 0x309   : > { %v2374_v56 = vadd.f32 %v2373_v37, %v2045_v49  ;;  %v326_v37 = vld [vmem:[%s5445_s24 + $0x308] sm:$0xff] }
 0x30a   : > { %v405_v28 = vpack.c.bf16 %v326_v37, %v325_v38 }
 0x30b   : > { %v1179_v36 = vpop.f32.mrf.mxu1  ;;  %v3321_v32 = vmax.f32 %v2374_v56, 0.0 }
 0x30c   : > { %v850_v4 = vpop.f32.mrf.mxu0  ;;  %v1180_v59 = vadd.f32 %v1179_v36, %v5600_v41 }
 0x30d   : > { %v851_v27 = vadd.f32 %v850_v4, %v5598_v40  ;;  %v2375_v51 = vpop.f32.mrf.mxu3 }
 0x30e   : > { %v2046_v16 = vpop.f32.mrf.mxu2  ;;  %v1461_v48 = vmax.f32 %v1180_v59, 0.0 }
 0x30f   : > { %v1460_v34 = vmax.f32 %v851_v27, 0.0  ;;  %v2047_v50 = vadd.f32 %v2046_v16, %v5749_v31 }
 0x310   : > { %v6375_v3 = vpack.c.bf16 %v1461_v48, %v1459_v60 }
 0x311   : > { %v2376_v49 = vadd.f32 %v2375_v51, %v2047_v50  ;;  %v6373_v9 = vpack.c.bf16 %v1460_v34, %v1458_v19 }
 0x312   : > { %7742 = vst [vmem:[#allocation73_spill] sm:$0xff] %v6375_v3  ;;  %2417 = vmatmul.bf16.gmra.mxu3 %v6375_v3  ;;  %v327_v3 = vld [vmem:[%s5445_s24 + $0x310] sm:$0xff] }
 0x313   : > { %7741 = vst [vmem:[#allocation72_spill] sm:$0xff] %v6373_v9  ;;  %v3323_v39 = vmax.f32 %v2376_v49, 0.0  ;;  %2088 = vmatmul.bf16.gmra.mxu2 %v6373_v9  ;;  %v1182_v58 = vpop.f32.mrf.mxu1 }
 0x314   : > { %v853_v4 = vpop.f32.mrf.mxu0  ;;  %v1183_v51 = vadd.f32 %v1182_v58, %v5600_v41 }
 0x315   : > { %v6379_v36 = vpack.c.bf16 %v3323_v39, %v3321_v32  ;;  %v2378_v59 = vpop.f32.mrf.mxu3  ;;  %v854_v19 = vadd.f32 %v853_v4, %v5598_v40 }
 0x316   : > { %v2049_v27 = vpop.f32.mrf.mxu2  ;;  %4823 = vmatmul.msk.bf16.gmra.mxu1 %vm451_vm0, %v405_v28  ;;  %v1463_v49 = vmax.f32 %v1183_v51, 0.0 }
 0x317   : > { %7743 = vst [vmem:[#allocation74_spill] sm:$0xff] %v6379_v36  ;;  %v2050_v16 = vadd.f32 %v2049_v27, %v5749_v31  ;;  %4759 = vmatmul.msk.bf16.gmra.mxu0 %vm451_vm0, %v405_v28  ;;  %v1462_v50 = vmax.f32 %v854_v19, 0.0 }
 0x319   : > { %v2379_v56 = vadd.f32 %v2378_v59, %v2050_v16  ;;  %v328_v59 = vld [vmem:[%s5445_s24 + $0x318] sm:$0xff] }
 0x31a   : > { %v406_v19 = vpack.c.bf16 %v328_v59, %v327_v3 }
 0x31b   : > { %v1184_v34 = vpop.f32.mrf.mxu1  ;;  %v3325_v9 = vmax.f32 %v2379_v56, 0.0 }
 0x31c   : > { %v855_v60 = vpop.f32.mrf.mxu0  ;;  %v1185_v48 = vadd.f32 %v1184_v34, %v5600_v41 }
 0x31d   : > { %v856_v39 = vadd.f32 %v855_v60, %v5598_v40  ;;  %v2380_v37 = vpop.f32.mrf.mxu3 }
 0x31e   : > { %v2051_v38 = vpop.f32.mrf.mxu2  ;;  %v1465_v27 = vmax.f32 %v1185_v48, 0.0 }
 0x31f   : > { %v1464_v32 = vmax.f32 %v856_v39, 0.0  ;;  %v2052_v28 = vadd.f32 %v2051_v38, %v5749_v31 }
 0x320   : > { %v6393_v58 = vpack.c.bf16 %v1465_v27, %v1463_v49 }
 0x321   : > { %v2381_v16 = vadd.f32 %v2380_v37, %v2052_v28  ;;  %v6391_v4 = vpack.c.bf16 %v1464_v32, %v1462_v50 }
 0x322   : > { %7745 = vst [vmem:[#allocation76_spill] sm:$0xff] %v6393_v58  ;;  %2422 = vmatmul.bf16.gmra.mxu3 %v6393_v58  ;;  %v329_v58 = vld [vmem:[%s5445_s24 + $0x320] sm:$0xff] }
 0x323   : > { %7744 = vst [vmem:[#allocation75_spill] sm:$0xff] %v6391_v4  ;;  %v3327_v36 = vmax.f32 %v2381_v16, 0.0  ;;  %2093 = vmatmul.bf16.gmra.mxu2 %v6391_v4  ;;  %v1187_v51 = vpop.f32.mrf.mxu1 }
 0x324   : > { %v858_v60 = vpop.f32.mrf.mxu0  ;;  %v1188_v37 = vadd.f32 %v1187_v51, %v5600_v41 }
 0x325   : > { %v6397_v34 = vpack.c.bf16 %v3327_v36, %v3325_v9  ;;  %v2383_v48 = vpop.f32.mrf.mxu3  ;;  %v859_v50 = vadd.f32 %v858_v60, %v5598_v40 }
 0x326   : > { %v2054_v39 = vpop.f32.mrf.mxu2  ;;  %4824 = vmatmul.msk.bf16.gmra.mxu1 %vm451_vm0, %v406_v19  ;;  %v1467_v59 = vmax.f32 %v1188_v37, 0.0 }
 0x327   : > { %7746 = vst [vmem:[#allocation77_spill] sm:$0xff] %v6397_v34  ;;  %v2055_v38 = vadd.f32 %v2054_v39, %v5749_v31  ;;  %4760 = vmatmul.msk.bf16.gmra.mxu0 %vm451_vm0, %v406_v19  ;;  %v1466_v32 = vmax.f32 %v859_v50, 0.0 }
 0x329   : > { %v2384_v56 = vadd.f32 %v2383_v48, %v2055_v38  ;;  %v330_v48 = vld [vmem:[%s5445_s24 + $0x328] sm:$0xff] }
 0x32a   : > { %v407_v50 = vpack.c.bf16 %v330_v48, %v329_v58 }
 0x32b   : > { %v1189_v49 = vpop.f32.mrf.mxu1  ;;  %v3329_v4 = vmax.f32 %v2384_v56, 0.0 }
 0x32c   : > { %v860_v3 = vpop.f32.mrf.mxu0  ;;  %v1190_v36 = vadd.f32 %v1189_v49, %v5600_v41 }
 0x32d   : > { %v861_v9 = vadd.f32 %v860_v3, %v5598_v40  ;;  %v2385_v28 = vpop.f32.mrf.mxu3 }
 0x32e   : > { %v2056_v27 = vpop.f32.mrf.mxu2  ;;  %v1469_v39 = vmax.f32 %v1190_v36, 0.0 }
 0x32f   : > { %v1468_v16 = vmax.f32 %v861_v9, 0.0  ;;  %v2057_v19 = vadd.f32 %v2056_v27, %v5749_v31 }
 0x330   : > { %v6411_v51 = vpack.c.bf16 %v1469_v39, %v1467_v59 }
 0x331   : > { %v2386_v38 = vadd.f32 %v2385_v28, %v2057_v19  ;;  %v6409_v60 = vpack.c.bf16 %v1468_v16, %v1466_v32 }
 0x332   : > { %7748 = vst [vmem:[#allocation79_spill] sm:$0xff] %v6411_v51  ;;  %2427 = vmatmul.bf16.gmra.mxu3 %v6411_v51  ;;  %v331_v51 = vld [vmem:[%s5445_s24 + $0x330] sm:$0xff] }
 0x333   : > { %7747 = vst [vmem:[#allocation78_spill] sm:$0xff] %v6409_v60  ;;  %v3331_v34 = vmax.f32 %v2386_v38, 0.0  ;;  %2098 = vmatmul.bf16.gmra.mxu2 %v6409_v60  ;;  %v1192_v37 = vpop.f32.mrf.mxu1 }
 0x334   : > { %v863_v3 = vpop.f32.mrf.mxu0  ;;  %v1193_v28 = vadd.f32 %v1192_v37, %v5600_v41 }
 0x335   : > { %v6415_v49 = vpack.c.bf16 %v3331_v34, %v3329_v4  ;;  %v2388_v36 = vpop.f32.mrf.mxu3  ;;  %v864_v32 = vadd.f32 %v863_v3, %v5598_v40 }
 0x336   : > { %v2059_v9 = vpop.f32.mrf.mxu2  ;;  %4825 = vmatmul.msk.bf16.gmra.mxu1 %vm451_vm0, %v407_v50  ;;  %v1471_v48 = vmax.f32 %v1193_v28, 0.0 }
 0x337   : > { %7749 = vst [vmem:[#allocation80_spill] sm:$0xff] %v6415_v49  ;;  %v2060_v27 = vadd.f32 %v2059_v9, %v5749_v31  ;;  %4761 = vmatmul.msk.bf16.gmra.mxu0 %vm451_vm0, %v407_v50  ;;  %v1470_v16 = vmax.f32 %v864_v32, 0.0 }
 0x339   : > { %v2389_v56 = vadd.f32 %v2388_v36, %v2060_v27  ;;  %v332_v36 = vld [vmem:[%s5445_s24 + $0x338] sm:$0xff] }
 0x33a   : > { %v408_v32 = vpack.c.bf16 %v332_v36, %v331_v51 }
 0x33b   : > { %v1194_v59 = vpop.f32.mrf.mxu1  ;;  %v3333_v60 = vmax.f32 %v2389_v56, 0.0 }
 0x33c   : > { %v865_v58 = vpop.f32.mrf.mxu0  ;;  %v1195_v34 = vadd.f32 %v1194_v59, %v5600_v41 }
 0x33d   : > { %v866_v4 = vadd.f32 %v865_v58, %v5598_v40  ;;  %v2390_v19 = vpop.f32.mrf.mxu3 }
 0x33e   : > { %v2061_v39 = vpop.f32.mrf.mxu2  ;;  %v1473_v9 = vmax.f32 %v1195_v34, 0.0 }
 0x33f   : > { %v1472_v38 = vmax.f32 %v866_v4, 0.0  ;;  %v2062_v50 = vadd.f32 %v2061_v39, %v5749_v31 }
 0x340   : > { %v6429_v37 = vpack.c.bf16 %v1473_v9, %v1471_v48 }
 0x341   : > { %v2391_v27 = vadd.f32 %v2390_v19, %v2062_v50  ;;  %v6427_v3 = vpack.c.bf16 %v1472_v38, %v1470_v16 }
 0x342   : > { %7751 = vst [vmem:[#allocation82_spill] sm:$0xff] %v6429_v37  ;;  %2432 = vmatmul.bf16.gmra.mxu3 %v6429_v37  ;;  %v333_v37 = vld [vmem:[%s5445_s24 + $0x340] sm:$0xff] }
 0x343   : > { %7750 = vst [vmem:[#allocation81_spill] sm:$0xff] %v6427_v3  ;;  %v3335_v49 = vmax.f32 %v2391_v27, 0.0  ;;  %2103 = vmatmul.bf16.gmra.mxu2 %v6427_v3  ;;  %v1197_v28 = vpop.f32.mrf.mxu1 }
 0x344   : > { %v868_v58 = vpop.f32.mrf.mxu0  ;;  %v1198_v19 = vadd.f32 %v1197_v28, %v5600_v41 }
 0x345   : > { %v6433_v59 = vpack.c.bf16 %v3335_v49, %v3333_v60  ;;  %v2393_v34 = vpop.f32.mrf.mxu3  ;;  %v869_v16 = vadd.f32 %v868_v58, %v5598_v40 }
 0x346   : > { %v2064_v4 = vpop.f32.mrf.mxu2  ;;  %4826 = vmatmul.msk.bf16.gmra.mxu1 %vm451_vm0, %v408_v32  ;;  %v1475_v36 = vmax.f32 %v1198_v19, 0.0 }
 0x347   : > { %7752 = vst [vmem:[#allocation83_spill] sm:$0xff] %v6433_v59  ;;  %v2065_v39 = vadd.f32 %v2064_v4, %v5749_v31  ;;  %4762 = vmatmul.msk.bf16.gmra.mxu0 %vm451_vm0, %v408_v32  ;;  %v1474_v38 = vmax.f32 %v869_v16, 0.0 }
 0x349   : > { %v2394_v56 = vadd.f32 %v2393_v34, %v2065_v39  ;;  %v334_v34 = vld [vmem:[%s5445_s24 + $0x348] sm:$0xff] }
 0x34a   : > { %v409_v16 = vpack.c.bf16 %v334_v34, %v333_v37 }
 0x34b   : > { %v1199_v48 = vpop.f32.mrf.mxu1  ;;  %v3337_v3 = vmax.f32 %v2394_v56, 0.0 }
 0x34c   : > { %v870_v51 = vpop.f32.mrf.mxu0  ;;  %v1200_v49 = vadd.f32 %v1199_v48, %v5600_v41 }
 0x34d   : > { %v871_v60 = vadd.f32 %v870_v51, %v5598_v40  ;;  %v2395_v50 = vpop.f32.mrf.mxu3 }
 0x34e   : > { %v2066_v9 = vpop.f32.mrf.mxu2  ;;  %v1477_v4 = vmax.f32 %v1200_v49, 0.0 }
 0x34f   : > { %v1476_v27 = vmax.f32 %v871_v60, 0.0  ;;  %v2067_v32 = vadd.f32 %v2066_v9, %v5749_v31 }
 0x350   : > { %v6447_v28 = vpack.c.bf16 %v1477_v4, %v1475_v36 }
 0x351   : > { %v2396_v39 = vadd.f32 %v2395_v50, %v2067_v32  ;;  %v6445_v58 = vpack.c.bf16 %v1476_v27, %v1474_v38 }
 0x352   : > { %7754 = vst [vmem:[#allocation85_spill] sm:$0xff] %v6447_v28  ;;  %2437 = vmatmul.bf16.gmra.mxu3 %v6447_v28  ;;  %v335_v28 = vld [vmem:[%s5445_s24 + $0x350] sm:$0xff] }
 0x353   : > { %7753 = vst [vmem:[#allocation84_spill] sm:$0xff] %v6445_v58  ;;  %v3339_v59 = vmax.f32 %v2396_v39, 0.0  ;;  %2108 = vmatmul.bf16.gmra.mxu2 %v6445_v58  ;;  %v1202_v19 = vpop.f32.mrf.mxu1 }
 0x354   : > { %v873_v51 = vpop.f32.mrf.mxu0  ;;  %v1203_v50 = vadd.f32 %v1202_v19, %v5600_v41 }
 0x355   : > { %v6451_v48 = vpack.c.bf16 %v3339_v59, %v3337_v3  ;;  %v2398_v49 = vpop.f32.mrf.mxu3  ;;  %v874_v38 = vadd.f32 %v873_v51, %v5598_v40 }
 0x356   : > { %v2069_v60 = vpop.f32.mrf.mxu2  ;;  %4827 = vmatmul.msk.bf16.gmra.mxu1 %vm451_vm0, %v409_v16  ;;  %v1479_v34 = vmax.f32 %v1203_v50, 0.0 }
 0x357   : > { %7755 = vst [vmem:[#allocation86_spill] sm:$0xff] %v6451_v48  ;;  %v2070_v9 = vadd.f32 %v2069_v60, %v5749_v31  ;;  %4763 = vmatmul.msk.bf16.gmra.mxu0 %vm451_vm0, %v409_v16  ;;  %v1478_v27 = vmax.f32 %v874_v38, 0.0 }
 0x359   : > { %v2399_v56 = vadd.f32 %v2398_v49, %v2070_v9  ;;  %v336_v49 = vld [vmem:[%s5445_s24 + $0x358] sm:$0xff] }
 0x35a   : > { %v410_v38 = vpack.c.bf16 %v336_v49, %v335_v28 }
 0x35b   : > { %v1204_v36 = vpop.f32.mrf.mxu1  ;;  %v3341_v58 = vmax.f32 %v2399_v56, 0.0 }
 0x35c   : > { %v875_v37 = vpop.f32.mrf.mxu0  ;;  %v1205_v59 = vadd.f32 %v1204_v36, %v5600_v41 }
 0x35d   : > { %v876_v3 = vadd.f32 %v875_v37, %v5598_v40  ;;  %v2400_v32 = vpop.f32.mrf.mxu3 }
 0x35e   : > { %v2071_v4 = vpop.f32.mrf.mxu2  ;;  %v1481_v60 = vmax.f32 %v1205_v59, 0.0 }
 0x35f   : > { %v1480_v39 = vmax.f32 %v876_v3, 0.0  ;;  %v2072_v16 = vadd.f32 %v2071_v4, %v5749_v31 }
 0x360   : > { %v6465_v19 = vpack.c.bf16 %v1481_v60, %v1479_v34 }
 0x361   : > { %v2401_v9 = vadd.f32 %v2400_v32, %v2072_v16  ;;  %v6463_v51 = vpack.c.bf16 %v1480_v39, %v1478_v27 }
 0x362   : > { %7757 = vst [vmem:[#allocation88_spill] sm:$0xff] %v6465_v19  ;;  %2442 = vmatmul.bf16.gmra.mxu3 %v6465_v19  ;;  %v337_v19 = vld [vmem:[%s5445_s24 + $0x360] sm:$0xff] }
 0x363   : > { %7756 = vst [vmem:[#allocation87_spill] sm:$0xff] %v6463_v51  ;;  %v3343_v48 = vmax.f32 %v2401_v9, 0.0  ;;  %2113 = vmatmul.bf16.gmra.mxu2 %v6463_v51  ;;  %v1207_v50 = vpop.f32.mrf.mxu1 }
 0x364   : > { %v878_v37 = vpop.f32.mrf.mxu0  ;;  %v1208_v32 = vadd.f32 %v1207_v50, %v5600_v41 }
 0x365   : > { %v6469_v36 = vpack.c.bf16 %v3343_v48, %v3341_v58  ;;  %v2403_v59 = vpop.f32.mrf.mxu3  ;;  %v879_v27 = vadd.f32 %v878_v37, %v5598_v40 }
 0x366   : > { %v2074_v3 = vpop.f32.mrf.mxu2  ;;  %4828 = vmatmul.msk.bf16.gmra.mxu1 %vm451_vm0, %v410_v38  ;;  %v1483_v49 = vmax.f32 %v1208_v32, 0.0 }
 0x367   : > { %7758 = vst [vmem:[#allocation89_spill] sm:$0xff] %v6469_v36  ;;  %v2075_v4 = vadd.f32 %v2074_v3, %v5749_v31  ;;  %4764 = vmatmul.msk.bf16.gmra.mxu0 %vm451_vm0, %v410_v38  ;;  %v1482_v39 = vmax.f32 %v879_v27, 0.0 }
 0x369   : > { %v2404_v56 = vadd.f32 %v2403_v59, %v2075_v4  ;;  %v338_v59 = vld [vmem:[%s5445_s24 + $0x368] sm:$0xff] }
 0x36a   : > { %v411_v27 = vpack.c.bf16 %v338_v59, %v337_v19  ;;  %v5038_v19 = vld [vmem:[%s7580_s2 + $0x4] sm:$0xf] }
 0x36b   : > { %v1209_v34 = vpop.f32.mrf.mxu1  ;;  %v3345_v51 = vmax.f32 %v2404_v56, 0.0 }
 0x36c   : > { %v880_v28 = vpop.f32.mrf.mxu0  ;;  %v1210_v48 = vadd.f32 %v1209_v34, %v5600_v41 }
 0x36d   : > { %v881_v58 = vadd.f32 %v880_v28, %v5598_v40  ;;  %v2405_v16 = vpop.f32.mrf.mxu3 }
 0x36e   : > { %v2076_v60 = vpop.f32.mrf.mxu2  ;;  %v1485_v3 = vmax.f32 %v1210_v48, 0.0 }
 0x36f   : > { %v1484_v9 = vmax.f32 %v881_v58, 0.0  ;;  %v2077_v38 = vadd.f32 %v2076_v60, %v5749_v31 }
 0x370   : > { %v6483_v50 = vpack.c.bf16 %v1485_v3, %v1483_v49  ;;  %v5054_v3 = vld [vmem:[%s7580_s2 + $0x84] sm:$0xf] }
 0x371   : > { %v2406_v4 = vadd.f32 %v2405_v16, %v2077_v38  ;;  %v6481_v37 = vpack.c.bf16 %v1484_v9, %v1482_v39  ;;  %v4908_v38 = vld [vmem:[%s7580_s2 + $0x88] sm:$0xf0] }
 0x372   : > { %7760 = vst [vmem:[#allocation91_spill] sm:$0xff] %v6483_v50  ;;  %2447 = vmatmul.bf16.gmra.mxu3 %v6483_v50  ;;  %v339_v50 = vld [vmem:[%s5445_s24 + $0x370] sm:$0xff] }
 0x373   : > { %7759 = vst [vmem:[#allocation90_spill] sm:$0xff] %v6481_v37  ;;  %v3347_v36 = vmax.f32 %v2406_v4, 0.0  ;;  %2118 = vmatmul.bf16.gmra.mxu2 %v6481_v37  ;;  %v1212_v32 = vpop.f32.mrf.mxu1  ;;  %v340_v37 = vld [vmem:[%s5445_s24 + $0x378] sm:$0xff] }
 0x374   : > { %v883_v28 = vpop.f32.mrf.mxu0  ;;  %v1213_v16 = vadd.f32 %v1212_v32, %v5600_v41 }
 0x375   : > { %v6487_v34 = vpack.c.bf16 %v3347_v36, %v3345_v51  ;;  %v2408_v48 = vpop.f32.mrf.mxu3  ;;  %v884_v56 = vadd.f32 %v883_v28, %v5598_v40  ;;  %v4844_v51 = vld [vmem:[%s7580_s2 + $0x8] sm:$0xf0] }
 0x376   : > { %v2079_v58 = vpop.f32.mrf.mxu2  ;;  %4829 = vmatmul.msk.bf16.gmra.mxu1 %vm451_vm0, %v411_v27  ;;  %v4847_v9 = vor.u32 %v5038_v19, %v4844_v51 }
 0x377   : > { %7761 = vst [vmem:[#allocation92_spill] sm:$0xff] %v6487_v34  ;;  %v2080_v60 = vadd.f32 %v2079_v58, %v5749_v31  ;;  %4765 = vmatmul.msk.bf16.gmra.mxu0 %vm451_vm0, %v411_v27  ;;  %v4911_v27 = vor.u32 %v5054_v3, %v4908_v38  ;;  %v1486_v28 = vmax.f32 %v884_v56, 0.0  ;;  %v412_v56 = vpack.c.bf16 %v340_v37, %v339_v50  ;;  %v5079_v37 = vld [vmem:[%s7581_s3 + $0x48] sm:$0xff] }
 0x378   : > { %2550 = vmatpush.bf16.msrb.mxu0 %v4847_v9  ;;  %4050 = vmatpush.bf16.msrb.mxu3 %v5079_v37 }
 0x379   : > { %v2409_v39 = vadd.f32 %v2408_v48, %v2080_v60  ;;  %v1487_v48 = vmax.f32 %v1213_v16, 0.0  ;;  %2879 = vmatpush.bf16.msrb.mxu1 %v4911_v27  ;;  %v5071_v16 = vld [vmem:[%s7581_s3 + $0x8] sm:$0xff] }
 0x37a   : > { %3721 = vmatpush.bf16.msrb.mxu2 %v5071_v16 }
 0x37b   : > { %v1214_v49 = vpop.f32.mrf.mxu1 }
 0x37c   : > { %v885_v36 = vpop.f32.mrf.mxu0  ;;  %v1215_v4 = vadd.f32 %v1214_v49, %v5600_v41 }
 0x37d   : > { %v886_v59 = vadd.f32 %v885_v36, %v5598_v40  ;;  %v2410_v58 = vpop.f32.mrf.mxu3  ;;  %v3349_v36 = vmax.f32 %v2409_v39, 0.0 }
 0x37e   : > { %v2081_v32 = vpop.f32.mrf.mxu2  ;;  %v1489_v19 = vmax.f32 %v1215_v4, 0.0 }
 0x37f   : > { %v1488_v60 = vmax.f32 %v886_v59, 0.0  ;;  %v2082_v51 = vadd.f32 %v2081_v32, %v5749_v31 }
 0x380   : > { %v6513_v57 = vpack.c.bf16 %v1489_v19, %v1487_v48 }
 0x381   : > { %v2411_v34 = vadd.f32 %v2410_v58, %v2082_v51  ;;  %v6511_v52 = vpack.c.bf16 %v1488_v60, %v1486_v28 }
 0x382   : > { %7762 = vst [vmem:[#allocation93_spill] sm:$0xff] %v6513_v57  ;;  %2452 = vmatmul.bf16.gmra.mxu3 %v6513_v57 }
 0x383   : > { %v3351_v49 = vmax.f32 %v2411_v34, 0.0  ;;  %2123 = vmatmul.bf16.gmra.mxu2 %v6511_v52  ;;  %v1217_v3 = vpop.f32.mrf.mxu1 }
 0x384   : > { %v888_v9 = vpop.f32.mrf.mxu0  ;;  %v1218_v39 = vadd.f32 %v1217_v3, %v5600_v41 }
 0x385   : > { %v6520_v38 = vpack.c.bf16 %v3351_v49, %v3349_v36  ;;  %v2413_v4 = vpop.f32.mrf.mxu3  ;;  %v889_v34 = vadd.f32 %v888_v9, %v5598_v40 }
 0x386   : > { %v2084_v59 = vpop.f32.mrf.mxu2  ;;  %4830 = vmatmul.msk.bf16.gmra.mxu1 %vm451_vm0, %v412_v56  ;;  %v1491_v36 = vmax.f32 %v1218_v39, 0.0 }
 0x387   : > { %v2085_v27 = vadd.f32 %v2084_v59, %v5749_v31  ;;  %4766 = vmatmul.msk.bf16.gmra.mxu0 %vm451_vm0, %v412_v56  ;;  %v1490_v60 = vmax.f32 %v889_v34, 0.0  ;;  %v341_v59 = vld [vmem:[%s5445_s24 + $0x380] sm:$0xff] }
 0x389   : > { %v2414_v50 = vadd.f32 %v2413_v4, %v2085_v27  ;;  %v342_v4 = vld [vmem:[%s5445_s24 + $0x388] sm:$0xff] }
 0x38a   : > { %v413_v34 = vpack.c.bf16 %v342_v4, %v341_v59 }
 0x38b   : > { %v1219_v32 = vpop.f32.mrf.mxu1  ;;  %v3353_v37 = vmax.f32 %v2414_v50, 0.0 }
 0x38c   : > { %v890_v28 = vpop.f32.mrf.mxu0  ;;  %v1220_v48 = vadd.f32 %v1219_v32, %v5600_v41 }
 0x38d   : > { %v891_v58 = vadd.f32 %v890_v28, %v5598_v40  ;;  %v2415_v51 = vpop.f32.mrf.mxu3 }
 0x38e   : > { %v2086_v19 = vpop.f32.mrf.mxu2  ;;  %v1493_v56 = vmax.f32 %v1220_v48, 0.0 }
 0x38f   : > { %v1492_v49 = vmax.f32 %v891_v58, 0.0  ;;  %v2087_v16 = vadd.f32 %v2086_v19, %v5749_v31 }
 0x390   : > { %v6537_v3 = vpack.c.bf16 %v1493_v56, %v1491_v36 }
 0x391   : > { %v2416_v27 = vadd.f32 %v2415_v51, %v2087_v16  ;;  %v6535_v9 = vpack.c.bf16 %v1492_v49, %v1490_v60 }
 0x392   : > { %7764 = vst [vmem:[#allocation95_spill] sm:$0xff] %v6537_v3  ;;  %2457 = vmatmul.bf16.gmra.mxu3 %v6537_v3  ;;  %v343_v3 = vld [vmem:[%s5445_s24 + $0x390] sm:$0xff] }
 0x393   : > { %7763 = vst [vmem:[#allocation94_spill] sm:$0xff] %v6535_v9  ;;  %v3355_v57 = vmax.f32 %v2416_v27, 0.0  ;;  %2128 = vmatmul.bf16.gmra.mxu2 %v6535_v9  ;;  %v1222_v39 = vpop.f32.mrf.mxu1 }
 0x394   : > { %v893_v28 = vpop.f32.mrf.mxu0  ;;  %v1223_v51 = vadd.f32 %v1222_v39, %v5600_v41 }
 0x395   : > { %v6541_v32 = vpack.c.bf16 %v3355_v57, %v3353_v37  ;;  %v2418_v48 = vpop.f32.mrf.mxu3  ;;  %v894_v60 = vadd.f32 %v893_v28, %v5598_v40 }
 0x396   : > { %v2089_v58 = vpop.f32.mrf.mxu2  ;;  %4831 = vmatmul.msk.bf16.gmra.mxu1 %vm451_vm0, %v413_v34  ;;  %v1495_v27 = vmax.f32 %v1223_v51, 0.0 }
 0x397   : > { %7765 = vst [vmem:[#allocation96_spill] sm:$0xff] %v6541_v32  ;;  %v2090_v19 = vadd.f32 %v2089_v58, %v5749_v31  ;;  %4767 = vmatmul.msk.bf16.gmra.mxu0 %vm451_vm0, %v413_v34  ;;  %v1494_v16 = vmax.f32 %v894_v60, 0.0 }
 0x399   : > { %v2419_v50 = vadd.f32 %v2418_v48, %v2090_v19  ;;  %v344_v48 = vld [vmem:[%s5445_s24 + $0x398] sm:$0xff] }
 0x39a   : > { %v414_v60 = vpack.c.bf16 %v344_v48, %v343_v3 }
 0x39b   : > { %v1224_v49 = vpop.f32.mrf.mxu1  ;;  %v3357_v9 = vmax.f32 %v2419_v50, 0.0 }
 0x39c   : > { %v895_v36 = vpop.f32.mrf.mxu0  ;;  %v1225_v56 = vadd.f32 %v1224_v49, %v5600_v41 }
 0x39d   : > { %v896_v57 = vadd.f32 %v895_v36, %v5598_v40  ;;  %v2420_v4 = vpop.f32.mrf.mxu3 }
 0x39e   : > { %v2091_v59 = vpop.f32.mrf.mxu2  ;;  %v1497_v58 = vmax.f32 %v1225_v56, 0.0 }
 0x39f   : > { %v1496_v37 = vmax.f32 %v896_v57, 0.0  ;;  %v2092_v34 = vadd.f32 %v2091_v59, %v5749_v31 }
 0x3a0   : > { %v6555_v39 = vpack.c.bf16 %v1497_v58, %v1495_v27 }
 0x3a1   : > { %v2421_v19 = vadd.f32 %v2420_v4, %v2092_v34  ;;  %v6553_v28 = vpack.c.bf16 %v1496_v37, %v1494_v16 }
 0x3a2   : > { %7767 = vst [vmem:[#allocation98_spill] sm:$0xff] %v6555_v39  ;;  %2462 = vmatmul.bf16.gmra.mxu3 %v6555_v39  ;;  %v345_v39 = vld [vmem:[%s5445_s24 + $0x3a0] sm:$0xff] }
 0x3a3   : > { %7766 = vst [vmem:[#allocation97_spill] sm:$0xff] %v6553_v28  ;;  %v3359_v32 = vmax.f32 %v2421_v19, 0.0  ;;  %2133 = vmatmul.bf16.gmra.mxu2 %v6553_v28  ;;  %v1227_v51 = vpop.f32.mrf.mxu1 }
 0x3a4   : > { %v898_v36 = vpop.f32.mrf.mxu0  ;;  %v1228_v4 = vadd.f32 %v1227_v51, %v5600_v41 }
 0x3a5   : > { %v6559_v49 = vpack.c.bf16 %v3359_v32, %v3357_v9  ;;  %v2423_v56 = vpop.f32.mrf.mxu3  ;;  %v899_v16 = vadd.f32 %v898_v36, %v5598_v40 }
 0x3a6   : > { %v2094_v57 = vpop.f32.mrf.mxu2  ;;  %4832 = vmatmul.msk.bf16.gmra.mxu1 %vm451_vm0, %v414_v60  ;;  %v1499_v48 = vmax.f32 %v1228_v4, 0.0 }
 0x3a7   : > { %7768 = vst [vmem:[#allocation99_spill] sm:$0xff] %v6559_v49  ;;  %v2095_v59 = vadd.f32 %v2094_v57, %v5749_v31  ;;  %4768 = vmatmul.msk.bf16.gmra.mxu0 %vm451_vm0, %v414_v60  ;;  %v1498_v37 = vmax.f32 %v899_v16, 0.0 }
 0x3a9   : > { %v2424_v50 = vadd.f32 %v2423_v56, %v2095_v59  ;;  %v346_v56 = vld [vmem:[%s5445_s24 + $0x3a8] sm:$0xff] }
 0x3aa   : > { %v415_v16 = vpack.c.bf16 %v346_v56, %v345_v39 }
 0x3ab   : > { %v1229_v27 = vpop.f32.mrf.mxu1  ;;  %v3361_v28 = vmax.f32 %v2424_v50, 0.0 }
 0x3ac   : > { %v900_v3 = vpop.f32.mrf.mxu0  ;;  %v1230_v32 = vadd.f32 %v1229_v27, %v5600_v41 }
 0x3ad   : > { %v901_v9 = vadd.f32 %v900_v3, %v5598_v40  ;;  %v2425_v34 = vpop.f32.mrf.mxu3 }
 0x3ae   : > { %v2096_v58 = vpop.f32.mrf.mxu2  ;;  %v1501_v57 = vmax.f32 %v1230_v32, 0.0 }
 0x3af   : > { %v1500_v19 = vmax.f32 %v901_v9, 0.0  ;;  %v2097_v60 = vadd.f32 %v2096_v58, %v5749_v31 }
 0x3b0   : > { %v6573_v51 = vpack.c.bf16 %v1501_v57, %v1499_v48 }
 0x3b1   : > { %v2426_v59 = vadd.f32 %v2425_v34, %v2097_v60  ;;  %v6571_v36 = vpack.c.bf16 %v1500_v19, %v1498_v37 }
 0x3b2   : > { %7770 = vst [vmem:[#allocation101_spill] sm:$0xff] %v6573_v51  ;;  %2467 = vmatmul.bf16.gmra.mxu3 %v6573_v51  ;;  %v347_v51 = vld [vmem:[%s5445_s24 + $0x3b0] sm:$0xff] }
 0x3b3   : > { %7769 = vst [vmem:[#allocation100_spill] sm:$0xff] %v6571_v36  ;;  %v3363_v49 = vmax.f32 %v2426_v59, 0.0  ;;  %2138 = vmatmul.bf16.gmra.mxu2 %v6571_v36  ;;  %v1232_v4 = vpop.f32.mrf.mxu1 }
 0x3b4   : > { %v903_v3 = vpop.f32.mrf.mxu0  ;;  %v1233_v34 = vadd.f32 %v1232_v4, %v5600_v41 }
 0x3b5   : > { %v6577_v27 = vpack.c.bf16 %v3363_v49, %v3361_v28  ;;  %v2428_v32 = vpop.f32.mrf.mxu3  ;;  %v904_v37 = vadd.f32 %v903_v3, %v5598_v40 }
 0x3b6   : > { %v2099_v9 = vpop.f32.mrf.mxu2  ;;  %4833 = vmatmul.msk.bf16.gmra.mxu1 %vm451_vm0, %v415_v16  ;;  %v1503_v56 = vmax.f32 %v1233_v34, 0.0 }
 0x3b7   : > { %7771 = vst [vmem:[#allocation102_spill] sm:$0xff] %v6577_v27  ;;  %v2100_v58 = vadd.f32 %v2099_v9, %v5749_v31  ;;  %4769 = vmatmul.msk.bf16.gmra.mxu0 %vm451_vm0, %v415_v16  ;;  %v1502_v19 = vmax.f32 %v904_v37, 0.0 }
 0x3b9   : > { %v2429_v50 = vadd.f32 %v2428_v32, %v2100_v58  ;;  %v348_v32 = vld [vmem:[%s5445_s24 + $0x3b8] sm:$0xff] }
 0x3ba   : > { %v416_v37 = vpack.c.bf16 %v348_v32, %v347_v51 }
 0x3bb   : > { %v1234_v48 = vpop.f32.mrf.mxu1  ;;  %v3365_v36 = vmax.f32 %v2429_v50, 0.0 }
 0x3bc   : > { %v905_v39 = vpop.f32.mrf.mxu0  ;;  %v1235_v49 = vadd.f32 %v1234_v48, %v5600_v41 }
 0x3bd   : > { %v906_v28 = vadd.f32 %v905_v39, %v5598_v40  ;;  %v2430_v60 = vpop.f32.mrf.mxu3 }
 0x3be   : > { %v2101_v57 = vpop.f32.mrf.mxu2  ;;  %v1505_v9 = vmax.f32 %v1235_v49, 0.0 }
 0x3bf   : > { %v1504_v59 = vmax.f32 %v906_v28, 0.0  ;;  %v2102_v16 = vadd.f32 %v2101_v57, %v5749_v31 }
 0x3c0   : > { %v6591_v4 = vpack.c.bf16 %v1505_v9, %v1503_v56 }
 0x3c1   : > { %v2431_v58 = vadd.f32 %v2430_v60, %v2102_v16  ;;  %v6589_v3 = vpack.c.bf16 %v1504_v59, %v1502_v19 }
 0x3c2   : > { %7773 = vst [vmem:[#allocation104_spill] sm:$0xff] %v6591_v4  ;;  %2472 = vmatmul.bf16.gmra.mxu3 %v6591_v4  ;;  %v349_v4 = vld [vmem:[%s5445_s24 + $0x3c0] sm:$0xff] }
 0x3c3   : > { %7772 = vst [vmem:[#allocation103_spill] sm:$0xff] %v6589_v3  ;;  %v3367_v27 = vmax.f32 %v2431_v58, 0.0  ;;  %2143 = vmatmul.bf16.gmra.mxu2 %v6589_v3  ;;  %v1237_v34 = vpop.f32.mrf.mxu1 }
 0x3c4   : > { %v908_v39 = vpop.f32.mrf.mxu0  ;;  %v1238_v60 = vadd.f32 %v1237_v34, %v5600_v41 }
 0x3c5   : > { %v6595_v48 = vpack.c.bf16 %v3367_v27, %v3365_v36  ;;  %v2433_v49 = vpop.f32.mrf.mxu3  ;;  %v909_v19 = vadd.f32 %v908_v39, %v5598_v40 }
 0x3c6   : > { %v2104_v28 = vpop.f32.mrf.mxu2  ;;  %4834 = vmatmul.msk.bf16.gmra.mxu1 %vm451_vm0, %v416_v37  ;;  %v1507_v32 = vmax.f32 %v1238_v60, 0.0 }
 0x3c7   : > { %7774 = vst [vmem:[#allocation105_spill] sm:$0xff] %v6595_v48  ;;  %v2105_v57 = vadd.f32 %v2104_v28, %v5749_v31  ;;  %4770 = vmatmul.msk.bf16.gmra.mxu0 %vm451_vm0, %v416_v37  ;;  %v1506_v59 = vmax.f32 %v909_v19, 0.0 }
 0x3c9   : > { %v2434_v50 = vadd.f32 %v2433_v49, %v2105_v57  ;;  %v350_v49 = vld [vmem:[%s5445_s24 + $0x3c8] sm:$0xff] }
 0x3ca   : > { %v417_v19 = vpack.c.bf16 %v350_v49, %v349_v4 }
 0x3cb   : > { %v1239_v56 = vpop.f32.mrf.mxu1  ;;  %v3369_v3 = vmax.f32 %v2434_v50, 0.0 }
 0x3cc   : > { %v910_v51 = vpop.f32.mrf.mxu0  ;;  %v1240_v27 = vadd.f32 %v1239_v56, %v5600_v41 }
 0x3cd   : > { %v911_v36 = vadd.f32 %v910_v51, %v5598_v40  ;;  %v2435_v16 = vpop.f32.mrf.mxu3 }
 0x3ce   : > { %v2106_v9 = vpop.f32.mrf.mxu2  ;;  %v1509_v28 = vmax.f32 %v1240_v27, 0.0 }
 0x3cf   : > { %v1508_v58 = vmax.f32 %v911_v36, 0.0  ;;  %v2107_v37 = vadd.f32 %v2106_v9, %v5749_v31 }
 0x3d0   : > { %v6609_v34 = vpack.c.bf16 %v1509_v28, %v1507_v32 }
 0x3d1   : > { %v2436_v57 = vadd.f32 %v2435_v16, %v2107_v37  ;;  %v6607_v39 = vpack.c.bf16 %v1508_v58, %v1506_v59 }
 0x3d2   : > { %7776 = vst [vmem:[#allocation107_spill] sm:$0xff] %v6609_v34  ;;  %2477 = vmatmul.bf16.gmra.mxu3 %v6609_v34  ;;  %v351_v34 = vld [vmem:[%s5445_s24 + $0x3d0] sm:$0xff] }
 0x3d3   : > { %7775 = vst [vmem:[#allocation106_spill] sm:$0xff] %v6607_v39  ;;  %v3371_v48 = vmax.f32 %v2436_v57, 0.0  ;;  %2148 = vmatmul.bf16.gmra.mxu2 %v6607_v39  ;;  %v1242_v60 = vpop.f32.mrf.mxu1 }
 0x3d4   : > { %v913_v51 = vpop.f32.mrf.mxu0  ;;  %v1243_v16 = vadd.f32 %v1242_v60, %v5600_v41 }
 0x3d5   : > { %v6613_v56 = vpack.c.bf16 %v3371_v48, %v3369_v3  ;;  %v2438_v27 = vpop.f32.mrf.mxu3  ;;  %v914_v59 = vadd.f32 %v913_v51, %v5598_v40 }
 0x3d6   : > { %v2109_v36 = vpop.f32.mrf.mxu2  ;;  %4835 = vmatmul.msk.bf16.gmra.mxu1 %vm451_vm0, %v417_v19  ;;  %v1511_v49 = vmax.f32 %v1243_v16, 0.0 }
 0x3d7   : > { %7777 = vst [vmem:[#allocation108_spill] sm:$0xff] %v6613_v56  ;;  %v2110_v9 = vadd.f32 %v2109_v36, %v5749_v31  ;;  %4771 = vmatmul.msk.bf16.gmra.mxu0 %vm451_vm0, %v417_v19  ;;  %v1510_v58 = vmax.f32 %v914_v59, 0.0 }
 0x3d9   : > { %v2439_v50 = vadd.f32 %v2438_v27, %v2110_v9  ;;  %v352_v27 = vld [vmem:[%s5445_s24 + $0x3d8] sm:$0xff] }
 0x3da   : > { %v418_v59 = vpack.c.bf16 %v352_v27, %v351_v34 }
 0x3db   : > { %v1244_v32 = vpop.f32.mrf.mxu1  ;;  %v3373_v39 = vmax.f32 %v2439_v50, 0.0 }
 0x3dc   : > { %v915_v4 = vpop.f32.mrf.mxu0  ;;  %v1245_v48 = vadd.f32 %v1244_v32, %v5600_v41 }
 0x3dd   : > { %v916_v3 = vadd.f32 %v915_v4, %v5598_v40  ;;  %v2440_v37 = vpop.f32.mrf.mxu3 }
 0x3de   : > { %v2111_v28 = vpop.f32.mrf.mxu2  ;;  %v1513_v36 = vmax.f32 %v1245_v48, 0.0 }
 0x3df   : > { %v1512_v57 = vmax.f32 %v916_v3, 0.0  ;;  %v2112_v19 = vadd.f32 %v2111_v28, %v5749_v31 }
 0x3e0   : > { %v6627_v60 = vpack.c.bf16 %v1513_v36, %v1511_v49 }
 0x3e1   : > { %v2441_v9 = vadd.f32 %v2440_v37, %v2112_v19  ;;  %v6625_v51 = vpack.c.bf16 %v1512_v57, %v1510_v58 }
 0x3e2   : > { %7779 = vst [vmem:[#allocation110_spill] sm:$0xff] %v6627_v60  ;;  %2482 = vmatmul.bf16.gmra.mxu3 %v6627_v60  ;;  %v353_v60 = vld [vmem:[%s5445_s24 + $0x3e0] sm:$0xff] }
 0x3e3   : > { %7778 = vst [vmem:[#allocation109_spill] sm:$0xff] %v6625_v51  ;;  %v3375_v56 = vmax.f32 %v2441_v9, 0.0  ;;  %2153 = vmatmul.bf16.gmra.mxu2 %v6625_v51  ;;  %v1247_v16 = vpop.f32.mrf.mxu1 }
 0x3e4   : > { %v918_v4 = vpop.f32.mrf.mxu0  ;;  %v1248_v37 = vadd.f32 %v1247_v16, %v5600_v41 }
 0x3e5   : > { %v6631_v32 = vpack.c.bf16 %v3375_v56, %v3373_v39  ;;  %v2443_v48 = vpop.f32.mrf.mxu3  ;;  %v919_v58 = vadd.f32 %v918_v4, %v5598_v40 }
 0x3e6   : > { %v2114_v3 = vpop.f32.mrf.mxu2  ;;  %4836 = vmatmul.msk.bf16.gmra.mxu1 %vm451_vm0, %v418_v59  ;;  %v1515_v27 = vmax.f32 %v1248_v37, 0.0 }
 0x3e7   : > { %7780 = vst [vmem:[#allocation111_spill] sm:$0xff] %v6631_v32  ;;  %v2115_v28 = vadd.f32 %v2114_v3, %v5749_v31  ;;  %4772 = vmatmul.msk.bf16.gmra.mxu0 %vm451_vm0, %v418_v59  ;;  %v1514_v57 = vmax.f32 %v919_v58, 0.0 }
 0x3e9   : > { %v2444_v50 = vadd.f32 %v2443_v48, %v2115_v28  ;;  %v354_v48 = vld [vmem:[%s5445_s24 + $0x3e8] sm:$0xff] }
 0x3ea   : > { %v419_v58 = vpack.c.bf16 %v354_v48, %v353_v60 }
 0x3eb   : > { %v1249_v49 = vpop.f32.mrf.mxu1  ;;  %v3377_v51 = vmax.f32 %v2444_v50, 0.0 }
 0x3ec   : > { %v920_v34 = vpop.f32.mrf.mxu0  ;;  %v1250_v56 = vadd.f32 %v1249_v49, %v5600_v41 }
 0x3ed   : > { %v921_v39 = vadd.f32 %v920_v34, %v5598_v40  ;;  %v2445_v19 = vpop.f32.mrf.mxu3 }
 0x3ee   : > { %v2116_v36 = vpop.f32.mrf.mxu2  ;;  %v1517_v3 = vmax.f32 %v1250_v56, 0.0 }
 0x3ef   : > { %v1516_v9 = vmax.f32 %v921_v39, 0.0  ;;  %v2117_v59 = vadd.f32 %v2116_v36, %v5749_v31 }
 0x3f0   : > { %v6645_v16 = vpack.c.bf16 %v1517_v3, %v1515_v27 }
 0x3f1   : > { %v2446_v28 = vadd.f32 %v2445_v19, %v2117_v59  ;;  %v6643_v4 = vpack.c.bf16 %v1516_v9, %v1514_v57 }
 0x3f2   : > { %7782 = vst [vmem:[#allocation113_spill] sm:$0xff] %v6645_v16  ;;  %2487 = vmatmul.bf16.gmra.mxu3 %v6645_v16  ;;  %v355_v16 = vld [vmem:[%s5445_s24 + $0x3f0] sm:$0xff] }
 0x3f3   : > { %7781 = vst [vmem:[#allocation112_spill] sm:$0xff] %v6643_v4  ;;  %v3379_v32 = vmax.f32 %v2446_v28, 0.0  ;;  %2158 = vmatmul.bf16.gmra.mxu2 %v6643_v4  ;;  %v1252_v37 = vpop.f32.mrf.mxu1 }
 0x3f4   : > { %v923_v34 = vpop.f32.mrf.mxu0  ;;  %v1253_v19 = vadd.f32 %v1252_v37, %v5600_v41 }
 0x3f5   : > { %v6649_v49 = vpack.c.bf16 %v3379_v32, %v3377_v51  ;;  %v2448_v56 = vpop.f32.mrf.mxu3  ;;  %v924_v57 = vadd.f32 %v923_v34, %v5598_v40 }
 0x3f6   : > { %v2119_v39 = vpop.f32.mrf.mxu2  ;;  %4837 = vmatmul.msk.bf16.gmra.mxu1 %vm451_vm0, %v419_v58  ;;  %v1519_v48 = vmax.f32 %v1253_v19, 0.0  ;;  %v5070_v19 = vld [vmem:[%s7581_s3] sm:$0xff] }
 0x3f7   : > { %7783 = vst [vmem:[#allocation114_spill] sm:$0xff] %v6649_v49  ;;  %v2120_v36 = vadd.f32 %v2119_v39, %v5749_v31  ;;  %4773 = vmatmul.msk.bf16.gmra.mxu0 %vm451_vm0, %v419_v58  ;;  %v1518_v9 = vmax.f32 %v924_v57, 0.0  ;;  %3722 = vmatpush.bf16.msrb.mxu2 %v5070_v19 }
 0x3f9   : > { %v2449_v50 = vadd.f32 %v2448_v56, %v2120_v36  ;;  %v356_v56 = vld [vmem:[%s5445_s24 + $0x3f8] sm:$0xff] }
 0x3fa   : > { %v420_v57 = vpack.c.bf16 %v356_v56, %v355_v16  ;;  %v5078_v16 = vld [vmem:[%s7581_s3 + $0x40] sm:$0xff] }
 0x3fb   : > { %v1254_v27 = vpop.f32.mrf.mxu1  ;;  %v3381_v4 = vmax.f32 %v2449_v50, 0.0  ;;  %4051 = vmatpush.bf16.msrb.mxu3 %v5078_v16 }
 0x3fc   : > { %v925_v60 = vpop.f32.mrf.mxu0  ;;  %v1255_v32 = vadd.f32 %v1254_v27, %v5600_v41 }
 0x3fd   : > { %v926_v51 = vadd.f32 %v925_v60, %v5598_v40  ;;  %v2450_v59 = vpop.f32.mrf.mxu3 }
 0x3fe   : > { %v2121_v3 = vpop.f32.mrf.mxu2  ;;  %v1521_v39 = vmax.f32 %v1255_v32, 0.0 }
 0x3ff   : > { %v1520_v28 = vmax.f32 %v926_v51, 0.0  ;;  %v2122_v58 = vadd.f32 %v2121_v3, %v5749_v31 }
 0x400   : > { %v6663_v37 = vpack.c.bf16 %v1521_v39, %v1519_v48 }
 0x401   : > { %v2451_v36 = vadd.f32 %v2450_v59, %v2122_v58  ;;  %v6661_v34 = vpack.c.bf16 %v1520_v28, %v1518_v9 }
 0x402   : > { %7784 = vst [vmem:[#allocation115_spill] sm:$0xff] %v6663_v37  ;;  %2492 = vmatmul.bf16.gmra.mxu3 %v6663_v37 }
 0x403   : > { %v3383_v49 = vmax.f32 %v2451_v36, 0.0  ;;  %2163 = vmatmul.bf16.gmra.mxu2 %v6661_v34  ;;  %v1257_v27 = vpop.f32.mrf.mxu1 }
 0x404   : > { %v928_v60 = vpop.f32.mrf.mxu0  ;;  %v1258_v48 = vadd.f32 %v1257_v27, %v5600_v41 }
 0x405   : > { %v6670_v51 = vpack.c.bf16 %v3383_v49, %v3381_v4  ;;  %v2453_v9 = vpop.f32.mrf.mxu3  ;;  %v929_v59 = vadd.f32 %v928_v60, %v5598_v40 }
 0x406   : > { %v2124_v32 = vpop.f32.mrf.mxu2  ;;  %4838 = vmatmul.msk.bf16.gmra.mxu1 %vm451_vm0, %v420_v57 }
 0x407   : > { %v2125_v3 = vadd.f32 %v2124_v32, %v5749_v31  ;;  %4774 = vmatmul.msk.bf16.gmra.mxu0 %vm451_vm0, %v420_v57  ;;  %v1522_v58 = vmax.f32 %v929_v59, 0.0  ;;  %v1523_v57 = vmax.f32 %v1258_v48, 0.0 }
 0x409   : > { %v2454_v50 = vadd.f32 %v2453_v9, %v2125_v3 }
 0x40b   : > { %v1259_v49 = vpop.f32.mrf.mxu1  ;;  %v3385_v27 = vmax.f32 %v2454_v50, 0.0 }
 0x40c   : > { %v930_v4 = vpop.f32.mrf.mxu0  ;;  %v1260_v39 = vadd.f32 %v1259_v49, %v5600_v41 }
 0x40d   : > { %v931_v28 = vadd.f32 %v930_v4, %v5598_v40  ;;  %v2455_v36 = vpop.f32.mrf.mxu3 }
 0x40e   : > { %v2126_v56 = vpop.f32.mrf.mxu2  ;;  %v1525_v32 = vmax.f32 %v1260_v39, 0.0 }
 0x40f   : > { %v1524_v19 = vmax.f32 %v931_v28, 0.0  ;;  %v2127_v37 = vadd.f32 %v2126_v56, %v5749_v31 }
 0x410   : > { %v6685_v60 = vpack.c.bf16 %v1525_v32, %v1523_v57 }
 0x411   : > { %v2456_v9 = vadd.f32 %v2455_v36, %v2127_v37  ;;  %v6683_v3 = vpack.c.bf16 %v1524_v19, %v1522_v58 }
 0x412   : > { %7785 = vst [vmem:[#allocation116_spill] sm:$0xff] %v6685_v60  ;;  %2497 = vmatmul.bf16.gmra.mxu3 %v6685_v60 }
 0x413   : > { %v3387_v16 = vmax.f32 %v2456_v9, 0.0  ;;  %2168 = vmatmul.bf16.gmra.mxu2 %v6683_v3  ;;  %v1262_v59 = vpop.f32.mrf.mxu1 }
 0x414   : > { %v933_v4 = vpop.f32.mrf.mxu0  ;;  %v1263_v58 = vadd.f32 %v1262_v59, %v5600_v41 }
 0x415   : > { %v6689_v49 = vpack.c.bf16 %v3387_v16, %v3385_v27  ;;  %v2458_v28 = vpop.f32.mrf.mxu3  ;;  %v934_v50 = vadd.f32 %v933_v4, %v5598_v40 }
 0x416   : > { %v2129_v48 = vpop.f32.mrf.mxu2  ;;  %2880 = vmatmul.bf16.vlgmr.msrb.gmra.mxu1 %v5612_v55  ;;  %v1527_v16 = vmax.f32 %v1263_v58, 0.0 }
 0x417   : > { %v2130_v39 = vadd.f32 %v2129_v48, %v5749_v31  ;;  %2551 = vmatmul.bf16.vlgmr.msrb.gmra.mxu0 %v5610_v54  ;;  %v1526_v32 = vmax.f32 %v934_v50, 0.0 }
 0x419   : > { %v2459_v37 = vadd.f32 %v2458_v28, %v2130_v39 }
 0x41b   : > { %v1264_v36 = vpop.f32.mrf.mxu1  ;;  %v3389_v59 = vmax.f32 %v2459_v37, 0.0 }
 0x41c   : > { %v935_v56 = vpop.f32.mrf.mxu0  ;;  %v1265_v19 = vadd.f32 %v1264_v36, %v5600_v41 }
 0x41d   : > { %v936_v57 = vadd.f32 %v935_v56, %v5598_v40  ;;  %v2460_v27 = vpop.f32.mrf.mxu3 }
 0x41e   : > { %v2131_v9 = vpop.f32.mrf.mxu2  ;;  %v1529_v60 = vmax.f32 %v1265_v19, 0.0 }
 0x41f   : > { %v1528_v48 = vmax.f32 %v936_v57, 0.0  ;;  %v2132_v54 = vadd.f32 %v2131_v9, %v5749_v31 }
 0x420   : > { %v6701_v4 = vpack.c.bf16 %v1529_v60, %v1527_v16 }
 0x421   : > { %v2461_v55 = vadd.f32 %v2460_v27, %v2132_v54  ;;  %v6699_v28 = vpack.c.bf16 %v1528_v48, %v1526_v32 }
 0x422   : > { %7786 = vst [vmem:[#allocation117_spill] sm:$0xff] %v6701_v4  ;;  %2502 = vmatmul.bf16.gmra.mxu3 %v6701_v4 }
 0x423   : > { %v3391_v39 = vmax.f32 %v2461_v55, 0.0  ;;  %2173 = vmatmul.bf16.gmra.mxu2 %v6699_v28  ;;  %v1267_v50 = vpop.f32.mrf.mxu1 }
 0x424   : > { %v938_v56 = vpop.f32.mrf.mxu0  ;;  %v1268_v32 = vadd.f32 %v1267_v50, %v5600_v41 }
 0x425   : > { %v6705_v36 = vpack.c.bf16 %v3391_v39, %v3389_v59  ;;  %v2463_v57 = vpop.f32.mrf.mxu3  ;;  %v939_v37 = vadd.f32 %v938_v56, %v5598_v40 }
 0x426   : > { %v2134_v58 = vpop.f32.mrf.mxu2  ;;  %2885 = vmatmul.bf16.gmra.mxu1 %v5626_v8  ;;  %v1531_v39 = vmax.f32 %v1268_v32, 0.0 }
 0x427   : > { %v2135_v19 = vadd.f32 %v2134_v58, %v5749_v31  ;;  %2556 = vmatmul.bf16.gmra.mxu0 %v5624_v7  ;;  %v1530_v54 = vmax.f32 %v939_v37, 0.0 }
 0x429   : > { %v2464_v60 = vadd.f32 %v2463_v57, %v2135_v19 }
 0x42b   : > { %v1269_v27 = vpop.f32.mrf.mxu1  ;;  %v3393_v50 = vmax.f32 %v2464_v60, 0.0 }
 0x42c   : > { %v940_v9 = vpop.f32.mrf.mxu0  ;;  %v1270_v48 = vadd.f32 %v1269_v27, %v5600_v41 }
 0x42d   : > { %v941_v16 = vadd.f32 %v940_v9, %v5598_v40  ;;  %v2465_v59 = vpop.f32.mrf.mxu3 }
 0x42e   : > { %v2136_v55 = vpop.f32.mrf.mxu2  ;;  %v1533_v4 = vmax.f32 %v1270_v48, 0.0 }
 0x42f   : > { %v1532_v58 = vmax.f32 %v941_v16, 0.0  ;;  %v2137_v7 = vadd.f32 %v2136_v55, %v5749_v31 }
 0x430   : > { %v6717_v56 = vpack.c.bf16 %v1533_v4, %v1531_v39 }
 0x431   : > { %v2466_v8 = vadd.f32 %v2465_v59, %v2137_v7  ;;  %v6715_v57 = vpack.c.bf16 %v1532_v58, %v1530_v54 }
 0x432   : > { %7787 = vst [vmem:[#allocation118_spill] sm:$0xff] %v6717_v56  ;;  %2507 = vmatmul.bf16.gmra.mxu3 %v6717_v56 }
 0x433   : > { %v3395_v19 = vmax.f32 %v2466_v8, 0.0  ;;  %2178 = vmatmul.bf16.gmra.mxu2 %v6715_v57  ;;  %v1272_v37 = vpop.f32.mrf.mxu1 }
 0x434   : > { %v943_v9 = vpop.f32.mrf.mxu0  ;;  %v1273_v54 = vadd.f32 %v1272_v37, %v5600_v41 }
 0x435   : > { %v6721_v27 = vpack.c.bf16 %v3395_v19, %v3393_v50  ;;  %v2468_v16 = vpop.f32.mrf.mxu3  ;;  %v944_v60 = vadd.f32 %v943_v9, %v5598_v40 }
 0x436   : > { %v2139_v32 = vpop.f32.mrf.mxu2  ;;  %2890 = vmatmul.bf16.gmra.mxu1 %v5640_v25  ;;  %v1535_v19 = vmax.f32 %v1273_v54, 0.0 }
 0x437   : > { %v2140_v48 = vadd.f32 %v2139_v32, %v5749_v31  ;;  %2561 = vmatmul.bf16.gmra.mxu0 %v5638_v24  ;;  %v1534_v7 = vmax.f32 %v944_v60, 0.0 }
 0x439   : > { %v2469_v4 = vadd.f32 %v2468_v16, %v2140_v48 }
 0x43b   : > { %v1274_v59 = vpop.f32.mrf.mxu1  ;;  %v3397_v37 = vmax.f32 %v2469_v4, 0.0 }
 0x43c   : > { %v945_v55 = vpop.f32.mrf.mxu0  ;;  %v1275_v58 = vadd.f32 %v1274_v59, %v5600_v41 }
 0x43d   : > { %v946_v39 = vadd.f32 %v945_v55, %v5598_v40  ;;  %v2470_v50 = vpop.f32.mrf.mxu3 }
 0x43e   : > { %v2141_v8 = vpop.f32.mrf.mxu2  ;;  %v1537_v56 = vmax.f32 %v1275_v58, 0.0 }
 0x43f   : > { %v1536_v32 = vmax.f32 %v946_v39, 0.0  ;;  %v2142_v24 = vadd.f32 %v2141_v8, %v5749_v31 }
 0x440   : > { %v6733_v9 = vpack.c.bf16 %v1537_v56, %v1535_v19 }
 0x441   : > { %v2471_v25 = vadd.f32 %v2470_v50, %v2142_v24  ;;  %v6731_v16 = vpack.c.bf16 %v1536_v32, %v1534_v7 }
 0x442   : > { %7788 = vst [vmem:[#allocation119_spill] sm:$0xff] %v6733_v9  ;;  %2512 = vmatmul.bf16.gmra.mxu3 %v6733_v9 }
 0x443   : > { %v3399_v48 = vmax.f32 %v2471_v25, 0.0  ;;  %2183 = vmatmul.bf16.gmra.mxu2 %v6731_v16  ;;  %v1277_v60 = vpop.f32.mrf.mxu1 }
 0x444   : > { %v948_v55 = vpop.f32.mrf.mxu0  ;;  %v1278_v7 = vadd.f32 %v1277_v60, %v5600_v41 }
 0x445   : > { %v6737_v59 = vpack.c.bf16 %v3399_v48, %v3397_v37  ;;  %v2473_v39 = vpop.f32.mrf.mxu3  ;;  %v949_v4 = vadd.f32 %v948_v55, %v5598_v40 }
 0x446   : > { %v2144_v54 = vpop.f32.mrf.mxu2  ;;  %2895 = vmatmul.bf16.gmra.mxu1 %v5654_v44  ;;  %v1539_v48 = vmax.f32 %v1278_v7, 0.0 }
 0x447   : > { %v2145_v58 = vadd.f32 %v2144_v54, %v5749_v31  ;;  %2566 = vmatmul.bf16.gmra.mxu0 %v5652_v43  ;;  %v1538_v24 = vmax.f32 %v949_v4, 0.0 }
 0x449   : > { %v2474_v56 = vadd.f32 %v2473_v39, %v2145_v58 }
 0x44b   : > { %v1279_v50 = vpop.f32.mrf.mxu1  ;;  %v3401_v60 = vmax.f32 %v2474_v56, 0.0 }
 0x44c   : > { %v950_v8 = vpop.f32.mrf.mxu0  ;;  %v1280_v32 = vadd.f32 %v1279_v50, %v5600_v41 }
 0x44d   : > { %v951_v19 = vadd.f32 %v950_v8, %v5598_v40  ;;  %v2475_v37 = vpop.f32.mrf.mxu3 }
 0x44e   : > { %v2146_v25 = vpop.f32.mrf.mxu2  ;;  %v1541_v9 = vmax.f32 %v1280_v32, 0.0 }
 0x44f   : > { %v1540_v54 = vmax.f32 %v951_v19, 0.0  ;;  %v2147_v43 = vadd.f32 %v2146_v25, %v5749_v31 }
 0x450   : > { %v6749_v55 = vpack.c.bf16 %v1541_v9, %v1539_v48 }
 0x451   : > { %v2476_v44 = vadd.f32 %v2475_v37, %v2147_v43  ;;  %v6747_v39 = vpack.c.bf16 %v1540_v54, %v1538_v24 }
 0x452   : > { %7789 = vst [vmem:[#allocation120_spill] sm:$0xff] %v6749_v55  ;;  %2517 = vmatmul.bf16.gmra.mxu3 %v6749_v55 }
 0x453   : > { %v3403_v58 = vmax.f32 %v2476_v44, 0.0  ;;  %2188 = vmatmul.bf16.gmra.mxu2 %v6747_v39  ;;  %v1282_v4 = vpop.f32.mrf.mxu1 }
 0x454   : > { %v953_v8 = vpop.f32.mrf.mxu0  ;;  %v1283_v24 = vadd.f32 %v1282_v4, %v5600_v41 }
 0x455   : > { %v6753_v50 = vpack.c.bf16 %v3403_v58, %v3401_v60  ;;  %v2478_v19 = vpop.f32.mrf.mxu3  ;;  %v954_v56 = vadd.f32 %v953_v8, %v5598_v40 }
 0x456   : > { %v2149_v7 = vpop.f32.mrf.mxu2  ;;  %2900 = vmatmul.bf16.gmra.mxu1 %v5668_v63  ;;  %v1543_v58 = vmax.f32 %v1283_v24, 0.0 }
 0x457   : > { %v2150_v32 = vadd.f32 %v2149_v7, %v5749_v31  ;;  %2571 = vmatmul.bf16.gmra.mxu0 %v5666_v62  ;;  %v1542_v43 = vmax.f32 %v954_v56, 0.0 }
 0x459   : > { %v2479_v9 = vadd.f32 %v2478_v19, %v2150_v32 }
 0x45b   : > { %v1284_v37 = vpop.f32.mrf.mxu1  ;;  %v3405_v4 = vmax.f32 %v2479_v9, 0.0 }
 0x45c   : > { %v955_v25 = vpop.f32.mrf.mxu0  ;;  %v1285_v54 = vadd.f32 %v1284_v37, %v5600_v41 }
 0x45d   : > { %v956_v48 = vadd.f32 %v955_v25, %v5598_v40  ;;  %v2480_v60 = vpop.f32.mrf.mxu3 }
 0x45e   : > { %v2151_v44 = vpop.f32.mrf.mxu2  ;;  %v1545_v55 = vmax.f32 %v1285_v54, 0.0 }
 0x45f   : > { %v1544_v7 = vmax.f32 %v956_v48, 0.0  ;;  %v2152_v62 = vadd.f32 %v2151_v44, %v5749_v31 }
 0x460   : > { %v6765_v8 = vpack.c.bf16 %v1545_v55, %v1543_v58 }
 0x461   : > { %v2481_v63 = vadd.f32 %v2480_v60, %v2152_v62  ;;  %v6763_v19 = vpack.c.bf16 %v1544_v7, %v1542_v43 }
 0x462   : > { %7790 = vst [vmem:[#allocation121_spill] sm:$0xff] %v6765_v8  ;;  %2522 = vmatmul.bf16.gmra.mxu3 %v6765_v8 }
 0x463   : > { %v3407_v32 = vmax.f32 %v2481_v63, 0.0  ;;  %2193 = vmatmul.bf16.gmra.mxu2 %v6763_v19  ;;  %v1287_v56 = vpop.f32.mrf.mxu1 }
 0x464   : > { %v958_v25 = vpop.f32.mrf.mxu0  ;;  %v1288_v43 = vadd.f32 %v1287_v56, %v5600_v41 }
 0x465   : > { %v6769_v37 = vpack.c.bf16 %v3407_v32, %v3405_v4  ;;  %v2483_v48 = vpop.f32.mrf.mxu3  ;;  %v959_v9 = vadd.f32 %v958_v25, %v5598_v40 }
 0x466   : > { %v2154_v24 = vpop.f32.mrf.mxu2  ;;  %2905 = vmatmul.bf16.gmra.mxu1 %v5682_v18  ;;  %v1547_v32 = vmax.f32 %v1288_v43, 0.0 }
 0x467   : > { %v2155_v54 = vadd.f32 %v2154_v24, %v5749_v31  ;;  %2576 = vmatmul.bf16.gmra.mxu0 %v5680_v17  ;;  %v1546_v62 = vmax.f32 %v959_v9, 0.0 }
 0x469   : > { %v2484_v55 = vadd.f32 %v2483_v48, %v2155_v54 }
 0x46b   : > { %v1289_v60 = vpop.f32.mrf.mxu1  ;;  %v3409_v56 = vmax.f32 %v2484_v55, 0.0 }
 0x46c   : > { %v960_v44 = vpop.f32.mrf.mxu0  ;;  %v1290_v7 = vadd.f32 %v1289_v60, %v5600_v41 }
 0x46d   : > { %v961_v58 = vadd.f32 %v960_v44, %v5598_v40  ;;  %v2485_v4 = vpop.f32.mrf.mxu3 }
 0x46e   : > { %v2156_v63 = vpop.f32.mrf.mxu2  ;;  %v1549_v8 = vmax.f32 %v1290_v7, 0.0 }
 0x46f   : > { %v1548_v24 = vmax.f32 %v961_v58, 0.0  ;;  %v2157_v17 = vadd.f32 %v2156_v63, %v5749_v31 }
 0x470   : > { %v6781_v25 = vpack.c.bf16 %v1549_v8, %v1547_v32 }
 0x471   : > { %v2486_v18 = vadd.f32 %v2485_v4, %v2157_v17  ;;  %v6779_v48 = vpack.c.bf16 %v1548_v24, %v1546_v62 }
 0x472   : > { %7791 = vst [vmem:[#allocation122_spill] sm:$0xff] %v6781_v25  ;;  %2527 = vmatmul.bf16.gmra.mxu3 %v6781_v25 }
 0x473   : > { %v3411_v54 = vmax.f32 %v2486_v18, 0.0  ;;  %2198 = vmatmul.bf16.gmra.mxu2 %v6779_v48  ;;  %v1292_v9 = vpop.f32.mrf.mxu1 }
 0x474   : > { %v963_v44 = vpop.f32.mrf.mxu0  ;;  %v1293_v62 = vadd.f32 %v1292_v9, %v5600_v41 }
 0x475   : > { %v6785_v60 = vpack.c.bf16 %v3411_v54, %v3409_v56  ;;  %v2488_v58 = vpop.f32.mrf.mxu3  ;;  %v964_v55 = vadd.f32 %v963_v44, %v5598_v40 }
 0x476   : > { %v2159_v43 = vpop.f32.mrf.mxu2  ;;  %2910 = vmatmul.bf16.gmra.mxu1 %v5708_v47  ;;  %v1551_v54 = vmax.f32 %v1293_v62, 0.0 }
 0x477   : > { %v2160_v7 = vadd.f32 %v2159_v43, %v5749_v31  ;;  %2581 = vmatmul.bf16.gmra.mxu0 %v5706_v46  ;;  %v1550_v17 = vmax.f32 %v964_v55, 0.0 }
 0x479   : > { %v2489_v8 = vadd.f32 %v2488_v58, %v2160_v7 }
 0x47b   : > { %v1294_v4 = vpop.f32.mrf.mxu1  ;;  %v3413_v9 = vmax.f32 %v2489_v8, 0.0 }
 0x47c   : > { %v965_v63 = vpop.f32.mrf.mxu0  ;;  %v1295_v24 = vadd.f32 %v1294_v4, %v5600_v41 }
 0x47d   : > { %v966_v32 = vadd.f32 %v965_v63, %v5598_v40  ;;  %v2490_v56 = vpop.f32.mrf.mxu3 }
 0x47e   : > { %v2161_v18 = vpop.f32.mrf.mxu2  ;;  %v1553_v25 = vmax.f32 %v1295_v24, 0.0 }
 0x47f   : > { %v1552_v43 = vmax.f32 %v966_v32, 0.0  ;;  %v2162_v46 = vadd.f32 %v2161_v18, %v5749_v31 }
 0x480   : > { %v6797_v44 = vpack.c.bf16 %v1553_v25, %v1551_v54 }
 0x481   : > { %v2491_v47 = vadd.f32 %v2490_v56, %v2162_v46  ;;  %v6795_v58 = vpack.c.bf16 %v1552_v43, %v1550_v17 }
 0x482   : > { %7792 = vst [vmem:[#allocation123_spill] sm:$0xff] %v6797_v44  ;;  %2532 = vmatmul.bf16.gmra.mxu3 %v6797_v44 }
 0x483   : > { %v3415_v7 = vmax.f32 %v2491_v47, 0.0  ;;  %2203 = vmatmul.bf16.gmra.mxu2 %v6795_v58  ;;  %v1297_v55 = vpop.f32.mrf.mxu1 }
 0x484   : > { %v968_v63 = vpop.f32.mrf.mxu0  ;;  %v1298_v17 = vadd.f32 %v1297_v55, %v5600_v41 }
 0x485   : > { %v6801_v4 = vpack.c.bf16 %v3415_v7, %v3413_v9  ;;  %v2493_v32 = vpop.f32.mrf.mxu3  ;;  %v969_v8 = vadd.f32 %v968_v63, %v5598_v40 }
 0x486   : > { %v2164_v62 = vpop.f32.mrf.mxu2  ;;  %2915 = vmatmul.bf16.gmra.mxu1 %v5728_v6  ;;  %v1555_v7 = vmax.f32 %v1298_v17, 0.0 }
 0x487   : > { %v2165_v24 = vadd.f32 %v2164_v62, %v5749_v31  ;;  %2586 = vmatmul.bf16.gmra.mxu0 %v5726_v5  ;;  %v1554_v46 = vmax.f32 %v969_v8, 0.0  ;;  %v5351_v8 = vld [vmem:[%s7582_s4 + $0x1] ss:$4 sm:$0x3] }
 0x488   : > { %v6820_v17 = vperm.slane %v5351_v8, 1 }
 0x489   : > { %v2494_v25 = vadd.f32 %v2493_v32, %v2165_v24 }
 0x48b   : > { %v1299_v56 = vpop.f32.mrf.mxu1  ;;  %v3417_v55 = vmax.f32 %v2494_v25, 0.0 }
 0x48c   : > { %v970_v18 = vpop.f32.mrf.mxu0  ;;  %v1300_v43 = vadd.f32 %v1299_v56, %v5600_v41 }
 0x48d   : > { %v971_v54 = vadd.f32 %v970_v18, %v5598_v40  ;;  %v2495_v9 = vpop.f32.mrf.mxu3 }
 0x48e   : > { %v2166_v47 = vpop.f32.mrf.mxu2  ;;  %v1557_v44 = vmax.f32 %v1300_v43, 0.0 }
 0x48f   : > { %v1556_v62 = vmax.f32 %v971_v54, 0.0  ;;  %v2167_v5 = vadd.f32 %v2166_v47, %v5749_v31 }
 0x490   : > { %v6813_v63 = vpack.c.bf16 %v1557_v44, %v1555_v7 }
 0x491   : > { %v2496_v6 = vadd.f32 %v2495_v9, %v2167_v5  ;;  %v6811_v32 = vpack.c.bf16 %v1556_v62, %v1554_v46 }
 0x492   : > { %7794 = vst [vmem:[#allocation125_spill] sm:$0xff] %v6813_v63  ;;  %2537 = vmatmul.bf16.gmra.mxu3 %v6813_v63 }
 0x493   : > { %7793 = vst [vmem:[#allocation124_spill] sm:$0xff] %v6811_v32  ;;  %v3419_v24 = vmax.f32 %v2496_v6, 0.0  ;;  %2208 = vmatmul.bf16.gmra.mxu2 %v6811_v32  ;;  %v2881_v41 = vpop.f32.mrf.mxu1 }
 0x494   : > { %v2552_v40 = vpop.f32.mrf.mxu0 }
 0x495   : > { %v6822_v18 = vpack.c.bf16 %v3419_v24, %v3417_v55  ;;  %v2498_v54 = vpop.f32.mrf.mxu3  ;;  %v2553_v25 = vadd.f32 %v2552_v40, %v6820_v17 }
 0x496   : > { %v2169_v56 = vpop.f32.mrf.mxu2  ;;  %2920 = vmatmul.bf16.gmra.mxu1 %v5745_v30 }
 0x497   : > { %v2170_v44 = vadd.f32 %v2169_v56, %v5749_v31  ;;  %2591 = vmatmul.bf16.gmra.mxu0 %v5743_v29  ;;  %v2882_v9 = vadd.f32 %v2881_v41, %v2553_v25 }
 0x499   : > { %v2499_v43 = vadd.f32 %v2498_v54, %v2170_v44  ;;  %v3202_v24 = vmax.f32 %v2882_v9, 0.0 }
 0x49b   : > { %v2883_v47 = vpop.f32.mrf.mxu1  ;;  %v3421_v63 = vmax.f32 %v2499_v43, 0.0 }
 0x49c   : > { %v2554_v46 = vpop.f32.mrf.mxu0 }
 0x49d   : > { %v2555_v7 = vadd.f32 %v2554_v46, %v6820_v17  ;;  %v2500_v5 = vpop.f32.mrf.mxu3 }
 0x49e   : > { %v2171_v62 = vpop.f32.mrf.mxu2 }
 0x49f   : > { %v2884_v6 = vadd.f32 %v2883_v47, %v2555_v7  ;;  %v2172_v55 = vadd.f32 %v2171_v62, %v5749_v31 }
 0x4a1   : > { %v3204_v8 = vmax.f32 %v2884_v6, 0.0  ;;  %v2501_v56 = vadd.f32 %v2500_v5, %v2172_v55 }
 0x4a3   : > { %v3458_v29 = vpack.c.bf16 %v3204_v8, %v3202_v24  ;;  %v3423_v32 = vmax.f32 %v2501_v56, 0.0  ;;  %3723 = vmatmul.bf16.vlgmr.msrb.gmra.mxu2 %v5767_v12  ;;  %v2886_v40 = vpop.f32.mrf.mxu1 }
 0x4a4   : > { %v2557_v30 = vpop.f32.mrf.mxu0 }
 0x4a5   : > { %4052 = vmatmul.bf16.vlgmr.msrb.gmra.mxu3 %v3458_v29  ;;  %v6831_v54 = vpack.c.bf16 %v3423_v32, %v3421_v63  ;;  %v2503_v44 = vpop.f32.mrf.mxu3  ;;  %v2558_v46 = vadd.f32 %v2557_v30, %v6820_v17 }
 0x4a6   : > { %v2174_v41 = vpop.f32.mrf.mxu2  ;;  %2925 = vmatmul.bf16.gmra.mxu1 %v5763_v2 }
 0x4a7   : > { %v2175_v25 = vadd.f32 %v2174_v41, %v5749_v31  ;;  %2596 = vmatmul.bf16.gmra.mxu0 %v5761_v1  ;;  %v2887_v7 = vadd.f32 %v2886_v40, %v2558_v46 }
 0x4a9   : > { %v2504_v43 = vadd.f32 %v2503_v44, %v2175_v25  ;;  %v3206_v6 = vmax.f32 %v2887_v7, 0.0 }
 0x4ab   : > { %v2888_v9 = vpop.f32.mrf.mxu1  ;;  %v3425_v8 = vmax.f32 %v2504_v43, 0.0 }
 0x4ac   : > { %v2559_v47 = vpop.f32.mrf.mxu0 }
 0x4ad   : > { %v2560_v12 = vadd.f32 %v2559_v47, %v6820_v17  ;;  %v2505_v5 = vpop.f32.mrf.mxu3 }
 0x4ae   : > { %v2176_v62 = vpop.f32.mrf.mxu2 }
 0x4af   : > { %v2889_v32 = vadd.f32 %v2888_v9, %v2560_v12  ;;  %v2177_v63 = vadd.f32 %v2176_v62, %v5749_v31 }
 0x4b1   : > { %v3208_v55 = vmax.f32 %v2889_v32, 0.0  ;;  %v2506_v24 = vadd.f32 %v2505_v5, %v2177_v63 }
 0x4b3   : > { %v3427_v1 = vmax.f32 %v2506_v24, 0.0  ;;  %3728 = vmatmul.bf16.gmra.mxu2 %v5785_v53  ;;  %v3460_v2 = vpack.c.bf16 %v3208_v55, %v3206_v6  ;;  %v2891_v29 = vpop.f32.mrf.mxu1 }
 0x4b4   : > { %v2562_v56 = vpop.f32.mrf.mxu0 }
 0x4b5   : > { %4057 = vmatmul.bf16.gmra.mxu3 %v3460_v2  ;;  %v6840_v30 = vpack.c.bf16 %v3427_v1, %v3425_v8  ;;  %v2508_v41 = vpop.f32.mrf.mxu3  ;;  %v2563_v25 = vadd.f32 %v2562_v56, %v6820_v17 }
 0x4b6   : > { %v2179_v40 = vpop.f32.mrf.mxu2  ;;  %2930 = vmatmul.bf16.gmra.mxu1 %v5781_v45 }
 0x4b7   : > { %v2180_v44 = vadd.f32 %v2179_v40, %v5749_v31  ;;  %2601 = vmatmul.bf16.gmra.mxu0 %v5779_v42  ;;  %v2892_v53 = vadd.f32 %v2891_v29, %v2563_v25 }
 0x4b9   : > { %v2509_v46 = vadd.f32 %v2508_v41, %v2180_v44  ;;  %v3210_v32 = vmax.f32 %v2892_v53, 0.0 }
 0x4bb   : > { %v2893_v47 = vpop.f32.mrf.mxu1  ;;  %v3429_v55 = vmax.f32 %v2509_v46, 0.0 }
 0x4bc   : > { %v2564_v43 = vpop.f32.mrf.mxu0 }
 0x4bd   : > { %v2565_v9 = vadd.f32 %v2564_v43, %v6820_v17  ;;  %v2510_v12 = vpop.f32.mrf.mxu3 }
 0x4be   : > { %v2181_v7 = vpop.f32.mrf.mxu2 }
 0x4bf   : > { %v2894_v62 = vadd.f32 %v2893_v47, %v2565_v9  ;;  %v2182_v5 = vadd.f32 %v2181_v7, %v5749_v31 }
 0x4c1   : > { %v3212_v63 = vmax.f32 %v2894_v62, 0.0  ;;  %v2511_v6 = vadd.f32 %v2510_v12, %v2182_v5 }
 0x4c3   : > { %v3431_v42 = vmax.f32 %v2511_v6, 0.0  ;;  %3733 = vmatmul.bf16.gmra.mxu2 %v5803_v35  ;;  %v3462_v45 = vpack.c.bf16 %v3212_v63, %v3210_v32  ;;  %v2896_v8 = vpop.f32.mrf.mxu1 }
 0x4c4   : > { %v2567_v24 = vpop.f32.mrf.mxu0 }
 0x4c5   : > { %4062 = vmatmul.bf16.gmra.mxu3 %v3462_v45  ;;  %v6849_v1 = vpack.c.bf16 %v3431_v42, %v3429_v55  ;;  %v2513_v56 = vpop.f32.mrf.mxu3  ;;  %v2568_v40 = vadd.f32 %v2567_v24, %v6820_v17 }
 0x4c6   : > { %v2184_v2 = vpop.f32.mrf.mxu2  ;;  %2935 = vmatmul.bf16.gmra.mxu1 %v5799_v26 }
 0x4c7   : > { %v2185_v29 = vadd.f32 %v2184_v2, %v5749_v31  ;;  %2606 = vmatmul.bf16.gmra.mxu0 %v5797_v23  ;;  %v2897_v35 = vadd.f32 %v2896_v8, %v2568_v40 }
 0x4c9   : > { %v2514_v41 = vadd.f32 %v2513_v56, %v2185_v29  ;;  %v3214_v7 = vmax.f32 %v2897_v35, 0.0 }
 0x4cb   : > { %v2898_v25 = vpop.f32.mrf.mxu1  ;;  %v3433_v5 = vmax.f32 %v2514_v41, 0.0 }
 0x4cc   : > { %v2569_v44 = vpop.f32.mrf.mxu0 }
 0x4cd   : > { %v2570_v46 = vadd.f32 %v2569_v44, %v6820_v17  ;;  %v2515_v47 = vpop.f32.mrf.mxu3 }
 0x4ce   : > { %v2186_v43 = vpop.f32.mrf.mxu2 }
 0x4cf   : > { %v2899_v53 = vadd.f32 %v2898_v25, %v2570_v46  ;;  %v2187_v9 = vadd.f32 %v2186_v43, %v5749_v31 }
 0x4d1   : > { %v3216_v12 = vmax.f32 %v2899_v53, 0.0  ;;  %v2516_v62 = vadd.f32 %v2515_v47, %v2187_v9 }
 0x4d3   : > { %v3435_v23 = vmax.f32 %v2516_v62, 0.0  ;;  %3738 = vmatmul.bf16.gmra.mxu2 %v5821_v21  ;;  %v3464_v26 = vpack.c.bf16 %v3216_v12, %v3214_v7  ;;  %v2901_v63 = vpop.f32.mrf.mxu1 }
 0x4d4   : > { %v2572_v32 = vpop.f32.mrf.mxu0 }
 0x4d5   : > { %4067 = vmatmul.bf16.gmra.mxu3 %v3464_v26  ;;  %v6858_v6 = vpack.c.bf16 %v3435_v23, %v3433_v5  ;;  %v2518_v42 = vpop.f32.mrf.mxu3  ;;  %v2573_v24 = vadd.f32 %v2572_v32, %v6820_v17 }
 0x4d6   : > { %v2189_v55 = vpop.f32.mrf.mxu2  ;;  %2940 = vmatmul.bf16.gmra.mxu1 %v5817_v13 }
 0x4d7   : > { %v2190_v45 = vadd.f32 %v2189_v55, %v5749_v31  ;;  %2611 = vmatmul.bf16.gmra.mxu0 %v5815_v11  ;;  %v2902_v21 = vadd.f32 %v2901_v63, %v2573_v24 }
 0x4d9   : > { %v2519_v8 = vadd.f32 %v2518_v42, %v2190_v45  ;;  %v3218_v35 = vmax.f32 %v2902_v21, 0.0 }
 0x4db   : > { %v2903_v56 = vpop.f32.mrf.mxu1  ;;  %v3437_v47 = vmax.f32 %v2519_v8, 0.0 }
 0x4dc   : > { %v2574_v2 = vpop.f32.mrf.mxu0 }
 0x4dd   : > { %v2575_v29 = vadd.f32 %v2574_v2, %v6820_v17  ;;  %v2520_v41 = vpop.f32.mrf.mxu3 }
 0x4de   : > { %v2191_v40 = vpop.f32.mrf.mxu2 }
 0x4df   : > { %v2904_v44 = vadd.f32 %v2903_v56, %v2575_v29  ;;  %v2192_v25 = vadd.f32 %v2191_v40, %v5749_v31 }
 0x4e1   : > { %v3220_v46 = vmax.f32 %v2904_v44, 0.0  ;;  %v2521_v43 = vadd.f32 %v2520_v41, %v2192_v25 }
 0x4e3   : > { %v3439_v11 = vmax.f32 %v2521_v43, 0.0  ;;  %3743 = vmatmul.bf16.gmra.mxu2 %v5839_v15  ;;  %v3466_v13 = vpack.c.bf16 %v3220_v46, %v3218_v35  ;;  %v2906_v9 = vpop.f32.mrf.mxu1 }
 0x4e4   : > { %v2577_v53 = vpop.f32.mrf.mxu0 }
 0x4e5   : > { %4072 = vmatmul.bf16.gmra.mxu3 %v3466_v13  ;;  %v6867_v7 = vpack.c.bf16 %v3439_v11, %v3437_v47  ;;  %v2523_v62 = vpop.f32.mrf.mxu3  ;;  %v2578_v23 = vadd.f32 %v2577_v53, %v6820_v17 }
 0x4e6   : > { %v2194_v12 = vpop.f32.mrf.mxu2  ;;  %2945 = vmatmul.bf16.gmra.mxu1 %v5835_v0 }
 0x4e7   : > { %v2195_v5 = vadd.f32 %v2194_v12, %v5749_v31  ;;  %2616 = vmatmul.bf16.gmra.mxu0 %v5833_v61  ;;  %v2907_v15 = vadd.f32 %v2906_v9, %v2578_v23 }
 0x4e9   : > { %v2524_v26 = vadd.f32 %v2523_v62, %v2195_v5  ;;  %v3222_v2 = vmax.f32 %v2907_v15, 0.0 }
 0x4eb   : > { %v2908_v63 = vpop.f32.mrf.mxu1  ;;  %v3441_v29 = vmax.f32 %v2524_v26, 0.0 }
 0x4ec   : > { %v2579_v32 = vpop.f32.mrf.mxu0 }
 0x4ed   : > { %v2580_v55 = vadd.f32 %v2579_v32, %v6820_v17  ;;  %v2525_v45 = vpop.f32.mrf.mxu3 }
 0x4ee   : > { %v2196_v42 = vpop.f32.mrf.mxu2 }
 0x4ef   : > { %v2909_v24 = vadd.f32 %v2908_v63, %v2580_v55  ;;  %v2197_v8 = vadd.f32 %v2196_v42, %v5749_v31 }
 0x4f1   : > { %v3224_v56 = vmax.f32 %v2909_v24, 0.0  ;;  %v2526_v21 = vadd.f32 %v2525_v45, %v2197_v8 }
 0x4f3   : > { %v3443_v61 = vmax.f32 %v2526_v21, 0.0  ;;  %3748 = vmatmul.bf16.gmra.mxu2 %v5872_v33  ;;  %v3468_v0 = vpack.c.bf16 %v3224_v56, %v3222_v2  ;;  %v2911_v41 = vpop.f32.mrf.mxu1  ;;  %v7795_v2 = vld [vmem:[#allocation2_spill] sm:$0xff] }
 0x4f4   : > { %v2582_v40 = vpop.f32.mrf.mxu0 }
 0x4f5   : > { %4077 = vmatmul.bf16.gmra.mxu3 %v3468_v0  ;;  %v6876_v44 = vpack.c.bf16 %v3443_v61, %v3441_v29  ;;  %v2528_v35 = vpop.f32.mrf.mxu3  ;;  %v2583_v43 = vadd.f32 %v2582_v40, %v6820_v17 }
 0x4f6   : > { %v2199_v25 = vpop.f32.mrf.mxu2  ;;  %2950 = vmatmul.bf16.gmra.mxu1 %v5865_v14 }
 0x4f7   : > { %v2200_v46 = vadd.f32 %v2199_v25, %v5749_v31  ;;  %2621 = vmatmul.bf16.gmra.mxu0 %v5863_v10  ;;  %v2912_v33 = vadd.f32 %v2911_v41, %v2583_v43 }
 0x4f9   : > { %v2529_v47 = vadd.f32 %v2528_v35, %v2200_v46  ;;  %v3226_v23 = vmax.f32 %v2912_v33, 0.0 }
 0x4fb   : > { %v2913_v13 = vpop.f32.mrf.mxu1  ;;  %v3445_v63 = vmax.f32 %v2529_v47, 0.0 }
 0x4fc   : > { %v2584_v11 = vpop.f32.mrf.mxu0 }
 0x4fd   : > { %v2585_v53 = vadd.f32 %v2584_v11, %v6820_v17  ;;  %v2530_v12 = vpop.f32.mrf.mxu3 }
 0x4fe   : > { %v2201_v9 = vpop.f32.mrf.mxu2 }
 0x4ff   : > { %v2914_v62 = vadd.f32 %v2913_v13, %v2585_v53  ;;  %v2202_v5 = vadd.f32 %v2201_v9, %v5749_v31  ;;  %v7796_v13 = vld [vmem:[#allocation5_spill] sm:$0xff] }
 0x501   : > { %v3228_v26 = vmax.f32 %v2914_v62, 0.0  ;;  %v2531_v32 = vadd.f32 %v2530_v12, %v2202_v5 }
 0x503   : > { %v3447_v10 = vmax.f32 %v2531_v32, 0.0  ;;  %3753 = vmatmul.bf16.gmra.mxu2 %v5893_v22  ;;  %v3470_v14 = vpack.c.bf16 %v3228_v26, %v3226_v23  ;;  %v2916_v55 = vpop.f32.mrf.mxu1  ;;  %v7797_v26 = vld [vmem:[#allocation3_spill] sm:$0xff]  ;;  %v7798_v32 = vld [vmem:[#allocation4_spill] sm:$0xff] }
 0x504   : > { %v2587_v15 = vpop.f32.mrf.mxu0 }
 0x505   : > { %4082 = vmatmul.bf16.gmra.mxu3 %v3470_v14  ;;  %v6885_v42 = vpack.c.bf16 %v3447_v10, %v3445_v63  ;;  %v2533_v24 = vpop.f32.mrf.mxu3  ;;  %v2588_v56 = vadd.f32 %v2587_v15, %v6820_v17 }
 0x506   : > { %v2204_v45 = vpop.f32.mrf.mxu2  ;;  %2955 = vmatmul.bf16.gmra.mxu1 %v7795_v2 }
 0x507   : > { %v2205_v8 = vadd.f32 %v2204_v45, %v5749_v31  ;;  %2626 = vmatmul.bf16.gmra.mxu0 %v5887_v20  ;;  %v2917_v22 = vadd.f32 %v2916_v55, %v2588_v56 }
 0x509   : > { %v2534_v21 = vadd.f32 %v2533_v24, %v2205_v8  ;;  %v3230_v46 = vmax.f32 %v2917_v22, 0.0 }
 0x50b   : > { %v2918_v61 = vpop.f32.mrf.mxu1  ;;  %v3449_v11 = vmax.f32 %v2534_v21, 0.0 }
 0x50c   : > { %v2589_v29 = vpop.f32.mrf.mxu0 }
 0x50d   : > { %v2590_v0 = vadd.f32 %v2589_v29, %v6820_v17  ;;  %v2535_v41 = vpop.f32.mrf.mxu3 }
 0x50e   : > { %v2206_v40 = vpop.f32.mrf.mxu2 }
 0x50f   : > { %v2919_v25 = vadd.f32 %v2918_v61, %v2590_v0  ;;  %v2207_v35 = vadd.f32 %v2206_v40, %v5749_v31  ;;  %v7799_v40 = vld [vmem:[#allocation8_spill] sm:$0xff] }
 0x511   : > { %v3232_v43 = vmax.f32 %v2919_v25, 0.0  ;;  %v2536_v47 = vadd.f32 %v2535_v41, %v2207_v35  ;;  %v6906_v25 = vld [vmem:[%s7582_s4 + $0x2] ss:$0 sm:$0xff] }
 0x513   : > { %v3451_v20 = vmax.f32 %v2536_v47, 0.0  ;;  %3758 = vmatmul.bf16.gmra.mxu2 %v7796_v13  ;;  %v3472_v33 = vpack.c.bf16 %v3232_v43, %v3230_v46  ;;  %v2921_v9 = vpop.f32.mrf.mxu1 }
 0x514   : > { %v2592_v53 = vpop.f32.mrf.mxu0 }
 0x515   : > { %4087 = vmatmul.bf16.gmra.mxu3 %v3472_v33  ;;  %v6894_v12 = vpack.c.bf16 %v3451_v20, %v3449_v11  ;;  %v2538_v5 = vpop.f32.mrf.mxu3  ;;  %v2593_v63 = vadd.f32 %v2592_v53, %v6820_v17  ;;  %v7800_v11 = vld [vmem:[#allocation6_spill] sm:$0xff]  ;;  %v7801_v20 = vld [vmem:[#allocation7_spill] sm:$0xff] }
 0x516   : > { %v2209_v62 = vpop.f32.mrf.mxu2  ;;  %2960 = vmatmul.bf16.gmra.mxu1 %v7798_v32 }
 0x517   : > { %v2210_v23 = vadd.f32 %v2209_v62, %v5749_v31  ;;  %2631 = vmatmul.bf16.gmra.mxu0 %v7797_v26  ;;  %v2922_v55 = vadd.f32 %v2921_v9, %v2593_v63 }
 0x519   : > { %v2539_v10 = vadd.f32 %v2538_v5, %v2210_v23  ;;  %v3234_v21 = vmax.f32 %v2922_v55, 0.0 }
 0x51b   : > { %v2923_v15 = vpop.f32.mrf.mxu1  ;;  %v3453_v22 = vmax.f32 %v2539_v10, 0.0 }
 0x51c   : > { %v2594_v14 = vpop.f32.mrf.mxu0 }
 0x51d   : > { %v2595_v45 = vadd.f32 %v2594_v14, %v6820_v17  ;;  %v2540_v56 = vpop.f32.mrf.mxu3 }
 0x51e   : > { %v2211_v24 = vpop.f32.mrf.mxu2 }
 0x51f   : > { %v2924_v8 = vadd.f32 %v2923_v15, %v2595_v45  ;;  %v2212_v2 = vadd.f32 %v2211_v24, %v5749_v31  ;;  %v7802_v24 = vld [vmem:[#allocation11_spill] sm:$0xff] }
 0x521   : > { %v3236_v29 = vmax.f32 %v2924_v8, 0.0  ;;  %v2541_v61 = vadd.f32 %v2540_v56, %v2212_v2 }
 0x523   : > { %v3455_v0 = vmax.f32 %v2541_v61, 0.0  ;;  %3763 = vmatmul.bf16.gmra.mxu2 %v7799_v40  ;;  %v3474_v41 = vpack.c.bf16 %v3236_v29, %v3234_v21  ;;  %v2926_v46 = vpop.f32.mrf.mxu1  ;;  %v7803_v61 = vld [vmem:[#allocation9_spill] sm:$0xff] }
 0x524   : > { %v2597_v35 = vpop.f32.mrf.mxu0 }
 0x525   : > { %4092 = vmatmul.bf16.gmra.mxu3 %v3474_v41  ;;  %v6908_v43 = vpack.c.bf16 %v3455_v0, %v3453_v22  ;;  %v2598_v33 = vadd.f32 %v2597_v35, %v6820_v17  ;;  %v7804_v22 = vld [vmem:[#allocation10_spill] sm:$0xff] }
 0x526   : > { %v3724_v31 = vpop.f32.mrf.mxu2  ;;  %2965 = vmatmul.bf16.gmra.mxu1 %v7801_v20 }
 0x527   : > { %v3725_v47 = vadd.f32 %v6906_v25, %v3724_v31  ;;  %2636 = vmatmul.bf16.gmra.mxu0 %v7800_v11  ;;  %v2927_v5 = vadd.f32 %v2926_v46, %v2598_v33 }
 0x528   : > { %v4053_v13 = vpop.f32.mrf.mxu3 }
 0x529   : > { %v4054_v53 = vadd.f32 %v4053_v13, %v3725_v47  ;;  %v3238_v15 = vmax.f32 %v2927_v5, 0.0 }
 0x52b   : > { %5095 = vtanh.f32 %v4054_v53  ;;  %v2928_v62 = vpop.f32.mrf.mxu1 }
 0x52c   : > { %v2599_v9 = vpop.f32.mrf.mxu0 }
 0x52d   : > { %v2600_v23 = vadd.f32 %v2599_v9, %v6820_v17 }
 0x52e   : > { %v3726_v26 = vpop.f32.mrf.mxu2 }
 0x52f   : > { %v2929_v32 = vadd.f32 %v2928_v62, %v2600_v23  ;;  %v3727_v63 = vadd.f32 %v6906_v25, %v3726_v26  ;;  %v7805_v26 = vld [vmem:[#allocation14_spill] sm:$0xff] }
 0x530   : > { %v4055_v10 = vpop.f32.mrf.mxu3 }
 0x531   : > { %v5096_v14 = vpop.eup %5095  ;;  %v3240_v55 = vmax.f32 %v2929_v32, 0.0  ;;  %v4056_v45 = vadd.f32 %v4055_v10, %v3727_v63 }
 0x532   : > { %4502 = vst.msk [vmem:[%s6920_s15] sm:$0xff] %vm4501_vm1, %v5096_v14 }
 0x533   : > { %5097 = vtanh.f32 %v4056_v45  ;;  %3768 = vmatmul.bf16.gmra.mxu2 %v7802_v24  ;;  %v3476_v8 = vpack.c.bf16 %v3240_v55, %v3238_v15  ;;  %v2931_v56 = vpop.f32.mrf.mxu1  ;;  %v7806_v55 = vld [vmem:[#allocation12_spill] sm:$0xff]  ;;  %v7807_v45 = vld [vmem:[#allocation13_spill] sm:$0xff] }
 0x534   : > { %v2602_v2 = vpop.f32.mrf.mxu0 }
 0x535   : > { %4097 = vmatmul.bf16.gmra.mxu3 %v3476_v8  ;;  %v2603_v41 = vadd.f32 %v2602_v2, %v6820_v17 }
 0x536   : > { %v3729_v21 = vpop.f32.mrf.mxu2  ;;  %2970 = vmatmul.bf16.gmra.mxu1 %v7804_v22 }
 0x537   : > { %v3730_v29 = vadd.f32 %v6906_v25, %v3729_v21  ;;  %2641 = vmatmul.bf16.gmra.mxu0 %v7803_v61  ;;  %v2932_v47 = vadd.f32 %v2931_v56, %v2603_v41 }
 0x538   : > { %v4058_v0 = vpop.f32.mrf.mxu3 }
 0x539   : > { %v5098_v40 = vpop.eup %5097  ;;  %v4059_v35 = vadd.f32 %v4058_v0, %v3730_v29  ;;  %v3242_v62 = vmax.f32 %v2932_v47, 0.0 }
 0x53a   : > { %4503 = vst.msk [vmem:[%s6920_s15 + $0x8] sm:$0xff] %vm4501_vm1, %v5098_v40 }
 0x53b   : > { %5099 = vtanh.f32 %v4059_v35  ;;  %v2933_v31 = vpop.f32.mrf.mxu1 }
 0x53c   : > { %v2604_v46 = vpop.f32.mrf.mxu0 }
 0x53d   : > { %v2605_v11 = vadd.f32 %v2604_v46, %v6820_v17 }
 0x53e   : > { %v3731_v20 = vpop.f32.mrf.mxu2 }
 0x53f   : > { %v2934_v13 = vadd.f32 %v2933_v31, %v2605_v11  ;;  %v3732_v33 = vadd.f32 %v6906_v25, %v3731_v20  ;;  %v7808_v20 = vld [vmem:[#allocation17_spill] sm:$0xff] }
 0x540   : > { %v4060_v53 = vpop.f32.mrf.mxu3 }
 0x541   : > { %v5100_v9 = vpop.eup %5099  ;;  %v3244_v5 = vmax.f32 %v2934_v13, 0.0  ;;  %v4061_v23 = vadd.f32 %v4060_v53, %v3732_v33 }
 0x542   : > { %4504 = vst.msk [vmem:[%s6920_s15 + $0x10] sm:$0xff] %vm4501_vm1, %v5100_v9 }
 0x543   : > { %5101 = vtanh.f32 %v4061_v23  ;;  %3773 = vmatmul.bf16.gmra.mxu2 %v7805_v26  ;;  %v3478_v32 = vpack.c.bf16 %v3244_v5, %v3242_v62  ;;  %v2936_v10 = vpop.f32.mrf.mxu1  ;;  %v7809_v5 = vld [vmem:[#allocation15_spill] sm:$0xff]  ;;  %v7810_v23 = vld [vmem:[#allocation16_spill] sm:$0xff] }
 0x544   : > { %v2607_v63 = vpop.f32.mrf.mxu0 }
 0x545   : > { %4102 = vmatmul.bf16.gmra.mxu3 %v3478_v32  ;;  %v2608_v2 = vadd.f32 %v2607_v63, %v6820_v17 }
 0x546   : > { %v3734_v14 = vpop.f32.mrf.mxu2  ;;  %2975 = vmatmul.bf16.gmra.mxu1 %v7807_v45 }
 0x547   : > { %v3735_v15 = vadd.f32 %v6906_v25, %v3734_v14  ;;  %2646 = vmatmul.bf16.gmra.mxu0 %v7806_v55  ;;  %v2937_v61 = vadd.f32 %v2936_v10, %v2608_v2 }
 0x548   : > { %v4063_v24 = vpop.f32.mrf.mxu3 }
 0x549   : > { %v5102_v8 = vpop.eup %5101  ;;  %v4064_v56 = vadd.f32 %v4063_v24, %v3735_v15  ;;  %v3246_v31 = vmax.f32 %v2937_v61, 0.0 }
 0x54a   : > { %4505 = vst.msk [vmem:[%s6920_s15 + $0x18] sm:$0xff] %vm4501_vm1, %v5102_v8 }
 0x54b   : > { %5103 = vtanh.f32 %v4064_v56  ;;  %v2938_v29 = vpop.f32.mrf.mxu1 }
 0x54c   : > { %v2609_v21 = vpop.f32.mrf.mxu0 }
 0x54d   : > { %v2610_v22 = vadd.f32 %v2609_v21, %v6820_v17 }
 0x54e   : > { %v3736_v0 = vpop.f32.mrf.mxu2 }
 0x54f   : > { %v2939_v40 = vadd.f32 %v2938_v29, %v2610_v22  ;;  %v3737_v41 = vadd.f32 %v6906_v25, %v3736_v0  ;;  %v7811_v0 = vld [vmem:[#allocation20_spill] sm:$0xff] }
 0x550   : > { %v4065_v35 = vpop.f32.mrf.mxu3 }
 0x551   : > { %v5104_v46 = vpop.eup %5103  ;;  %v3248_v47 = vmax.f32 %v2939_v40, 0.0  ;;  %v4066_v11 = vadd.f32 %v4065_v35, %v3737_v41 }
 0x552   : > { %4506 = vst.msk [vmem:[%s6920_s15 + $0x20] sm:$0xff] %vm4501_vm1, %v5104_v46 }
 0x553   : > { %5105 = vtanh.f32 %v4066_v11  ;;  %3778 = vmatmul.bf16.gmra.mxu2 %v7808_v20  ;;  %v3480_v13 = vpack.c.bf16 %v3248_v47, %v3246_v31  ;;  %v2941_v53 = vpop.f32.mrf.mxu1  ;;  %v7812_v47 = vld [vmem:[#allocation18_spill] sm:$0xff]  ;;  %v7813_v11 = vld [vmem:[#allocation19_spill] sm:$0xff] }
 0x554   : > { %v2612_v33 = vpop.f32.mrf.mxu0 }
 0x555   : > { %4107 = vmatmul.bf16.gmra.mxu3 %v3480_v13  ;;  %v2613_v63 = vadd.f32 %v2612_v33, %v6820_v17 }
 0x556   : > { %v3739_v9 = vpop.f32.mrf.mxu2  ;;  %2980 = vmatmul.bf16.gmra.mxu1 %v7810_v23 }
 0x557   : > { %v3740_v62 = vadd.f32 %v6906_v25, %v3739_v9  ;;  %2651 = vmatmul.bf16.gmra.mxu0 %v7809_v5  ;;  %v2942_v55 = vadd.f32 %v2941_v53, %v2613_v63 }
 0x558   : > { %v4068_v26 = vpop.f32.mrf.mxu3 }
 0x559   : > { %v5106_v32 = vpop.eup %5105  ;;  %v4069_v10 = vadd.f32 %v4068_v26, %v3740_v62  ;;  %v3250_v29 = vmax.f32 %v2942_v55, 0.0 }
 0x55a   : > { %4507 = vst.msk [vmem:[%s6920_s15 + $0x28] sm:$0xff] %vm4501_vm1, %v5106_v32 }
 0x55b   : > { %5107 = vtanh.f32 %v4069_v10  ;;  %v2943_v15 = vpop.f32.mrf.mxu1 }
 0x55c   : > { %v2614_v14 = vpop.f32.mrf.mxu0 }
 0x55d   : > { %v2615_v45 = vadd.f32 %v2614_v14, %v6820_v17 }
 0x55e   : > { %v3741_v24 = vpop.f32.mrf.mxu2 }
 0x55f   : > { %v2944_v8 = vadd.f32 %v2943_v15, %v2615_v45  ;;  %v3742_v2 = vadd.f32 %v6906_v25, %v3741_v24  ;;  %v7814_v24 = vld [vmem:[#allocation23_spill] sm:$0xff] }
 0x560   : > { %v4070_v56 = vpop.f32.mrf.mxu3 }
 0x561   : > { %v5108_v21 = vpop.eup %5107  ;;  %v3252_v61 = vmax.f32 %v2944_v8, 0.0  ;;  %v4071_v22 = vadd.f32 %v4070_v56, %v3742_v2 }
 0x562   : > { %4508 = vst.msk [vmem:[%s6920_s15 + $0x30] sm:$0xff] %vm4501_vm1, %v5108_v21 }
 0x563   : > { %5109 = vtanh.f32 %v4071_v22  ;;  %3783 = vmatmul.bf16.gmra.mxu2 %v7811_v0  ;;  %v3482_v40 = vpack.c.bf16 %v3252_v61, %v3250_v29  ;;  %v2946_v35 = vpop.f32.mrf.mxu1  ;;  %v7815_v61 = vld [vmem:[#allocation21_spill] sm:$0xff]  ;;  %v7816_v22 = vld [vmem:[#allocation22_spill] sm:$0xff] }
 0x564   : > { %v2617_v41 = vpop.f32.mrf.mxu0 }
 0x565   : > { %4112 = vmatmul.bf16.gmra.mxu3 %v3482_v40  ;;  %v2618_v33 = vadd.f32 %v2617_v41, %v6820_v17 }
 0x566   : > { %v3744_v46 = vpop.f32.mrf.mxu2  ;;  %2985 = vmatmul.bf16.gmra.mxu1 %v7813_v11 }
 0x567   : > { %v3745_v31 = vadd.f32 %v6906_v25, %v3744_v46  ;;  %2656 = vmatmul.bf16.gmra.mxu0 %v7812_v47  ;;  %v2947_v5 = vadd.f32 %v2946_v35, %v2618_v33 }
 0x568   : > { %v4073_v20 = vpop.f32.mrf.mxu3 }
 0x569   : > { %v5110_v13 = vpop.eup %5109  ;;  %v4074_v53 = vadd.f32 %v4073_v20, %v3745_v31  ;;  %v3254_v15 = vmax.f32 %v2947_v5, 0.0 }
 0x56a   : > { %4509 = vst.msk [vmem:[%s6920_s15 + $0x38] sm:$0xff] %vm4501_vm1, %v5110_v13 }
 0x56b   : > { %5111 = vtanh.f32 %v4074_v53  ;;  %v2948_v62 = vpop.f32.mrf.mxu1 }
 0x56c   : > { %v2619_v9 = vpop.f32.mrf.mxu0 }
 0x56d   : > { %v2620_v23 = vadd.f32 %v2619_v9, %v6820_v17 }
 0x56e   : > { %v3746_v26 = vpop.f32.mrf.mxu2 }
 0x56f   : > { %v2949_v32 = vadd.f32 %v2948_v62, %v2620_v23  ;;  %v3747_v63 = vadd.f32 %v6906_v25, %v3746_v26  ;;  %v7817_v26 = vld [vmem:[#allocation26_spill] sm:$0xff] }
 0x570   : > { %v4075_v10 = vpop.f32.mrf.mxu3 }
 0x571   : > { %v5112_v14 = vpop.eup %5111  ;;  %v3256_v55 = vmax.f32 %v2949_v32, 0.0  ;;  %v4076_v45 = vadd.f32 %v4075_v10, %v3747_v63 }
 0x572   : > { %4510 = vst.msk [vmem:[%s6920_s15 + $0x40] sm:$0xff] %vm4501_vm1, %v5112_v14 }
 0x573   : > { %5113 = vtanh.f32 %v4076_v45  ;;  %3788 = vmatmul.bf16.gmra.mxu2 %v7814_v24  ;;  %v3484_v8 = vpack.c.bf16 %v3256_v55, %v3254_v15  ;;  %v2951_v56 = vpop.f32.mrf.mxu1  ;;  %v7818_v55 = vld [vmem:[#allocation24_spill] sm:$0xff]  ;;  %v7819_v45 = vld [vmem:[#allocation25_spill] sm:$0xff] }
 0x574   : > { %v2622_v2 = vpop.f32.mrf.mxu0 }
 0x575   : > { %4117 = vmatmul.bf16.gmra.mxu3 %v3484_v8  ;;  %v2623_v41 = vadd.f32 %v2622_v2, %v6820_v17 }
 0x576   : > { %v3749_v21 = vpop.f32.mrf.mxu2  ;;  %2990 = vmatmul.bf16.gmra.mxu1 %v7816_v22 }
 0x577   : > { %v3750_v29 = vadd.f32 %v6906_v25, %v3749_v21  ;;  %2661 = vmatmul.bf16.gmra.mxu0 %v7815_v61  ;;  %v2952_v47 = vadd.f32 %v2951_v56, %v2623_v41 }
 0x578   : > { %v4078_v0 = vpop.f32.mrf.mxu3 }
 0x579   : > { %v5114_v40 = vpop.eup %5113  ;;  %v4079_v35 = vadd.f32 %v4078_v0, %v3750_v29  ;;  %v3258_v62 = vmax.f32 %v2952_v47, 0.0 }
 0x57a   : > { %4511 = vst.msk [vmem:[%s6920_s15 + $0x48] sm:$0xff] %vm4501_vm1, %v5114_v40 }
 0x57b   : > { %5115 = vtanh.f32 %v4079_v35  ;;  %v2953_v31 = vpop.f32.mrf.mxu1 }
 0x57c   : > { %v2624_v46 = vpop.f32.mrf.mxu0 }
 0x57d   : > { %v2625_v11 = vadd.f32 %v2624_v46, %v6820_v17 }
 0x57e   : > { %v3751_v20 = vpop.f32.mrf.mxu2 }
 0x57f   : > { %v2954_v13 = vadd.f32 %v2953_v31, %v2625_v11  ;;  %v3752_v33 = vadd.f32 %v6906_v25, %v3751_v20  ;;  %v7820_v20 = vld [vmem:[#allocation29_spill] sm:$0xff] }
 0x580   : > { %v4080_v53 = vpop.f32.mrf.mxu3 }
 0x581   : > { %v5116_v9 = vpop.eup %5115  ;;  %v3260_v5 = vmax.f32 %v2954_v13, 0.0  ;;  %v4081_v23 = vadd.f32 %v4080_v53, %v3752_v33 }
 0x582   : > { %4512 = vst.msk [vmem:[%s6920_s15 + $0x50] sm:$0xff] %vm4501_vm1, %v5116_v9 }
 0x583   : > { %5117 = vtanh.f32 %v4081_v23  ;;  %3793 = vmatmul.bf16.gmra.mxu2 %v7817_v26  ;;  %v3486_v32 = vpack.c.bf16 %v3260_v5, %v3258_v62  ;;  %v2956_v10 = vpop.f32.mrf.mxu1  ;;  %v7821_v5 = vld [vmem:[#allocation27_spill] sm:$0xff]  ;;  %v7822_v23 = vld [vmem:[#allocation28_spill] sm:$0xff] }
 0x584   : > { %v2627_v63 = vpop.f32.mrf.mxu0 }
 0x585   : > { %4122 = vmatmul.bf16.gmra.mxu3 %v3486_v32  ;;  %v2628_v2 = vadd.f32 %v2627_v63, %v6820_v17 }
 0x586   : > { %v3754_v14 = vpop.f32.mrf.mxu2  ;;  %2995 = vmatmul.bf16.gmra.mxu1 %v7819_v45 }
 0x587   : > { %v3755_v15 = vadd.f32 %v6906_v25, %v3754_v14  ;;  %2666 = vmatmul.bf16.gmra.mxu0 %v7818_v55  ;;  %v2957_v61 = vadd.f32 %v2956_v10, %v2628_v2 }
 0x588   : > { %v4083_v24 = vpop.f32.mrf.mxu3 }
 0x589   : > { %v5118_v8 = vpop.eup %5117  ;;  %v4084_v56 = vadd.f32 %v4083_v24, %v3755_v15  ;;  %v3262_v31 = vmax.f32 %v2957_v61, 0.0 }
 0x58a   : > { %4513 = vst.msk [vmem:[%s6920_s15 + $0x58] sm:$0xff] %vm4501_vm1, %v5118_v8 }
 0x58b   : > { %5119 = vtanh.f32 %v4084_v56  ;;  %v2958_v29 = vpop.f32.mrf.mxu1 }
 0x58c   : > { %v2629_v21 = vpop.f32.mrf.mxu0 }
 0x58d   : > { %v2630_v22 = vadd.f32 %v2629_v21, %v6820_v17 }
 0x58e   : > { %v3756_v0 = vpop.f32.mrf.mxu2 }
 0x58f   : > { %v2959_v40 = vadd.f32 %v2958_v29, %v2630_v22  ;;  %v3757_v41 = vadd.f32 %v6906_v25, %v3756_v0  ;;  %v7823_v0 = vld [vmem:[#allocation32_spill] sm:$0xff] }
 0x590   : > { %v4085_v35 = vpop.f32.mrf.mxu3 }
 0x591   : > { %v5120_v46 = vpop.eup %5119  ;;  %v3264_v47 = vmax.f32 %v2959_v40, 0.0  ;;  %v4086_v11 = vadd.f32 %v4085_v35, %v3757_v41 }
 0x592   : > { %4514 = vst.msk [vmem:[%s6920_s15 + $0x60] sm:$0xff] %vm4501_vm1, %v5120_v46 }
 0x593   : > { %5121 = vtanh.f32 %v4086_v11  ;;  %3798 = vmatmul.bf16.gmra.mxu2 %v7820_v20  ;;  %v3488_v13 = vpack.c.bf16 %v3264_v47, %v3262_v31  ;;  %v2961_v53 = vpop.f32.mrf.mxu1  ;;  %v7824_v47 = vld [vmem:[#allocation30_spill] sm:$0xff]  ;;  %v7825_v11 = vld [vmem:[#allocation31_spill] sm:$0xff] }
 0x594   : > { %v2632_v33 = vpop.f32.mrf.mxu0 }
 0x595   : > { %4127 = vmatmul.bf16.gmra.mxu3 %v3488_v13  ;;  %v2633_v63 = vadd.f32 %v2632_v33, %v6820_v17 }
 0x596   : > { %v3759_v9 = vpop.f32.mrf.mxu2  ;;  %3000 = vmatmul.bf16.gmra.mxu1 %v7822_v23 }
 0x597   : > { %v3760_v62 = vadd.f32 %v6906_v25, %v3759_v9  ;;  %2671 = vmatmul.bf16.gmra.mxu0 %v7821_v5  ;;  %v2962_v55 = vadd.f32 %v2961_v53, %v2633_v63 }
 0x598   : > { %v4088_v26 = vpop.f32.mrf.mxu3 }
 0x599   : > { %v5122_v32 = vpop.eup %5121  ;;  %v4089_v10 = vadd.f32 %v4088_v26, %v3760_v62  ;;  %v3266_v29 = vmax.f32 %v2962_v55, 0.0 }
 0x59a   : > { %4515 = vst.msk [vmem:[%s6920_s15 + $0x68] sm:$0xff] %vm4501_vm1, %v5122_v32 }
 0x59b   : > { %5123 = vtanh.f32 %v4089_v10  ;;  %v2963_v15 = vpop.f32.mrf.mxu1 }
 0x59c   : > { %v2634_v14 = vpop.f32.mrf.mxu0 }
 0x59d   : > { %v2635_v45 = vadd.f32 %v2634_v14, %v6820_v17 }
 0x59e   : > { %v3761_v24 = vpop.f32.mrf.mxu2 }
 0x59f   : > { %v2964_v8 = vadd.f32 %v2963_v15, %v2635_v45  ;;  %v3762_v2 = vadd.f32 %v6906_v25, %v3761_v24  ;;  %v7826_v24 = vld [vmem:[#allocation35_spill] sm:$0xff] }
 0x5a0   : > { %v4090_v56 = vpop.f32.mrf.mxu3 }
 0x5a1   : > { %v5124_v21 = vpop.eup %5123  ;;  %v3268_v61 = vmax.f32 %v2964_v8, 0.0  ;;  %v4091_v22 = vadd.f32 %v4090_v56, %v3762_v2 }
 0x5a2   : > { %4516 = vst.msk [vmem:[%s6920_s15 + $0x70] sm:$0xff] %vm4501_vm1, %v5124_v21 }
 0x5a3   : > { %5125 = vtanh.f32 %v4091_v22  ;;  %3803 = vmatmul.bf16.gmra.mxu2 %v7823_v0  ;;  %v3490_v40 = vpack.c.bf16 %v3268_v61, %v3266_v29  ;;  %v2966_v35 = vpop.f32.mrf.mxu1  ;;  %v7827_v61 = vld [vmem:[#allocation33_spill] sm:$0xff]  ;;  %v7828_v22 = vld [vmem:[#allocation34_spill] sm:$0xff] }
 0x5a4   : > { %v2637_v41 = vpop.f32.mrf.mxu0 }
 0x5a5   : > { %4132 = vmatmul.bf16.gmra.mxu3 %v3490_v40  ;;  %v2638_v33 = vadd.f32 %v2637_v41, %v6820_v17 }
 0x5a6   : > { %v3764_v46 = vpop.f32.mrf.mxu2  ;;  %3005 = vmatmul.bf16.gmra.mxu1 %v7825_v11 }
 0x5a7   : > { %v3765_v31 = vadd.f32 %v6906_v25, %v3764_v46  ;;  %2676 = vmatmul.bf16.gmra.mxu0 %v7824_v47  ;;  %v2967_v5 = vadd.f32 %v2966_v35, %v2638_v33 }
 0x5a8   : > { %v4093_v20 = vpop.f32.mrf.mxu3 }
 0x5a9   : > { %v5126_v13 = vpop.eup %5125  ;;  %v4094_v53 = vadd.f32 %v4093_v20, %v3765_v31  ;;  %v3270_v15 = vmax.f32 %v2967_v5, 0.0 }
 0x5aa   : > { %4517 = vst.msk [vmem:[%s6920_s15 + $0x78] sm:$0xff] %vm4501_vm1, %v5126_v13 }
 0x5ab   : > { %5127 = vtanh.f32 %v4094_v53  ;;  %v2968_v62 = vpop.f32.mrf.mxu1 }
 0x5ac   : > { %v2639_v9 = vpop.f32.mrf.mxu0 }
 0x5ad   : > { %v2640_v23 = vadd.f32 %v2639_v9, %v6820_v17 }
 0x5ae   : > { %v3766_v26 = vpop.f32.mrf.mxu2 }
 0x5af   : > { %v2969_v32 = vadd.f32 %v2968_v62, %v2640_v23  ;;  %v3767_v63 = vadd.f32 %v6906_v25, %v3766_v26  ;;  %v7829_v26 = vld [vmem:[#allocation38_spill] sm:$0xff] }
 0x5b0   : > { %v4095_v10 = vpop.f32.mrf.mxu3 }
 0x5b1   : > { %v5128_v14 = vpop.eup %5127  ;;  %v3272_v55 = vmax.f32 %v2969_v32, 0.0  ;;  %v4096_v45 = vadd.f32 %v4095_v10, %v3767_v63 }
 0x5b2   : > { %4518 = vst.msk [vmem:[%s6920_s15 + $0x80] sm:$0xff] %vm4501_vm1, %v5128_v14 }
 0x5b3   : > { %5129 = vtanh.f32 %v4096_v45  ;;  %3808 = vmatmul.bf16.gmra.mxu2 %v7826_v24  ;;  %v3492_v8 = vpack.c.bf16 %v3272_v55, %v3270_v15  ;;  %v2971_v56 = vpop.f32.mrf.mxu1  ;;  %v7830_v55 = vld [vmem:[#allocation36_spill] sm:$0xff]  ;;  %v7831_v45 = vld [vmem:[#allocation37_spill] sm:$0xff] }
 0x5b4   : > { %v2642_v2 = vpop.f32.mrf.mxu0 }
 0x5b5   : > { %4137 = vmatmul.bf16.gmra.mxu3 %v3492_v8  ;;  %v2643_v41 = vadd.f32 %v2642_v2, %v6820_v17 }
 0x5b6   : > { %v3769_v21 = vpop.f32.mrf.mxu2  ;;  %3010 = vmatmul.bf16.gmra.mxu1 %v7828_v22 }
 0x5b7   : > { %v3770_v29 = vadd.f32 %v6906_v25, %v3769_v21  ;;  %2681 = vmatmul.bf16.gmra.mxu0 %v7827_v61  ;;  %v2972_v47 = vadd.f32 %v2971_v56, %v2643_v41 }
 0x5b8   : > { %v4098_v0 = vpop.f32.mrf.mxu3 }
 0x5b9   : > { %v5130_v40 = vpop.eup %5129  ;;  %v4099_v35 = vadd.f32 %v4098_v0, %v3770_v29  ;;  %v3274_v62 = vmax.f32 %v2972_v47, 0.0 }
 0x5ba   : > { %4519 = vst.msk [vmem:[%s6920_s15 + $0x88] sm:$0xff] %vm4501_vm1, %v5130_v40 }
 0x5bb   : > { %5131 = vtanh.f32 %v4099_v35  ;;  %v2973_v31 = vpop.f32.mrf.mxu1 }
 0x5bc   : > { %v2644_v46 = vpop.f32.mrf.mxu0 }
 0x5bd   : > { %v2645_v11 = vadd.f32 %v2644_v46, %v6820_v17 }
 0x5be   : > { %v3771_v20 = vpop.f32.mrf.mxu2 }
 0x5bf   : > { %v2974_v13 = vadd.f32 %v2973_v31, %v2645_v11  ;;  %v3772_v33 = vadd.f32 %v6906_v25, %v3771_v20  ;;  %v7832_v20 = vld [vmem:[#allocation41_spill] sm:$0xff] }
 0x5c0   : > { %v4100_v53 = vpop.f32.mrf.mxu3 }
 0x5c1   : > { %v5132_v9 = vpop.eup %5131  ;;  %v3276_v5 = vmax.f32 %v2974_v13, 0.0  ;;  %v4101_v23 = vadd.f32 %v4100_v53, %v3772_v33 }
 0x5c2   : > { %4520 = vst.msk [vmem:[%s6920_s15 + $0x90] sm:$0xff] %vm4501_vm1, %v5132_v9 }
 0x5c3   : > { %5133 = vtanh.f32 %v4101_v23  ;;  %3813 = vmatmul.bf16.gmra.mxu2 %v7829_v26  ;;  %v3494_v32 = vpack.c.bf16 %v3276_v5, %v3274_v62  ;;  %v2976_v10 = vpop.f32.mrf.mxu1  ;;  %v7833_v5 = vld [vmem:[#allocation39_spill] sm:$0xff]  ;;  %v7834_v23 = vld [vmem:[#allocation40_spill] sm:$0xff] }
 0x5c4   : > { %v2647_v63 = vpop.f32.mrf.mxu0 }
 0x5c5   : > { %4142 = vmatmul.bf16.gmra.mxu3 %v3494_v32  ;;  %v2648_v2 = vadd.f32 %v2647_v63, %v6820_v17 }
 0x5c6   : > { %v3774_v14 = vpop.f32.mrf.mxu2  ;;  %3015 = vmatmul.bf16.gmra.mxu1 %v7831_v45 }
 0x5c7   : > { %v3775_v15 = vadd.f32 %v6906_v25, %v3774_v14  ;;  %2686 = vmatmul.bf16.gmra.mxu0 %v7830_v55  ;;  %v2977_v61 = vadd.f32 %v2976_v10, %v2648_v2 }
 0x5c8   : > { %v4103_v24 = vpop.f32.mrf.mxu3 }
 0x5c9   : > { %v5134_v8 = vpop.eup %5133  ;;  %v4104_v56 = vadd.f32 %v4103_v24, %v3775_v15  ;;  %v3278_v31 = vmax.f32 %v2977_v61, 0.0 }
 0x5ca   : > { %4521 = vst.msk [vmem:[%s6920_s15 + $0x98] sm:$0xff] %vm4501_vm1, %v5134_v8 }
 0x5cb   : > { %5135 = vtanh.f32 %v4104_v56  ;;  %v2978_v29 = vpop.f32.mrf.mxu1 }
 0x5cc   : > { %v2649_v21 = vpop.f32.mrf.mxu0 }
 0x5cd   : > { %v2650_v22 = vadd.f32 %v2649_v21, %v6820_v17 }
 0x5ce   : > { %v3776_v0 = vpop.f32.mrf.mxu2 }
 0x5cf   : > { %v2979_v40 = vadd.f32 %v2978_v29, %v2650_v22  ;;  %v3777_v41 = vadd.f32 %v6906_v25, %v3776_v0  ;;  %v7835_v0 = vld [vmem:[#allocation44_spill] sm:$0xff] }
 0x5d0   : > { %v4105_v35 = vpop.f32.mrf.mxu3 }
 0x5d1   : > { %v5136_v46 = vpop.eup %5135  ;;  %v3280_v47 = vmax.f32 %v2979_v40, 0.0  ;;  %v4106_v11 = vadd.f32 %v4105_v35, %v3777_v41 }
 0x5d2   : > { %4522 = vst.msk [vmem:[%s6920_s15 + $0xa0] sm:$0xff] %vm4501_vm1, %v5136_v46 }
 0x5d3   : > { %5137 = vtanh.f32 %v4106_v11  ;;  %3818 = vmatmul.bf16.gmra.mxu2 %v7832_v20  ;;  %v3496_v13 = vpack.c.bf16 %v3280_v47, %v3278_v31  ;;  %v2981_v53 = vpop.f32.mrf.mxu1  ;;  %v7836_v47 = vld [vmem:[#allocation42_spill] sm:$0xff]  ;;  %v7837_v11 = vld [vmem:[#allocation43_spill] sm:$0xff] }
 0x5d4   : > { %v2652_v33 = vpop.f32.mrf.mxu0 }
 0x5d5   : > { %4147 = vmatmul.bf16.gmra.mxu3 %v3496_v13  ;;  %v2653_v63 = vadd.f32 %v2652_v33, %v6820_v17 }
 0x5d6   : > { %v3779_v9 = vpop.f32.mrf.mxu2  ;;  %3020 = vmatmul.bf16.gmra.mxu1 %v7834_v23 }
 0x5d7   : > { %v3780_v62 = vadd.f32 %v6906_v25, %v3779_v9  ;;  %2691 = vmatmul.bf16.gmra.mxu0 %v7833_v5  ;;  %v2982_v55 = vadd.f32 %v2981_v53, %v2653_v63 }
 0x5d8   : > { %v4108_v26 = vpop.f32.mrf.mxu3 }
 0x5d9   : > { %v5138_v32 = vpop.eup %5137  ;;  %v4109_v10 = vadd.f32 %v4108_v26, %v3780_v62  ;;  %v3282_v29 = vmax.f32 %v2982_v55, 0.0 }
 0x5da   : > { %4523 = vst.msk [vmem:[%s6920_s15 + $0xa8] sm:$0xff] %vm4501_vm1, %v5138_v32 }
 0x5db   : > { %5139 = vtanh.f32 %v4109_v10  ;;  %v2983_v15 = vpop.f32.mrf.mxu1 }
 0x5dc   : > { %v2654_v14 = vpop.f32.mrf.mxu0 }
 0x5dd   : > { %v2655_v45 = vadd.f32 %v2654_v14, %v6820_v17 }
 0x5de   : > { %v3781_v24 = vpop.f32.mrf.mxu2 }
 0x5df   : > { %v2984_v8 = vadd.f32 %v2983_v15, %v2655_v45  ;;  %v3782_v2 = vadd.f32 %v6906_v25, %v3781_v24  ;;  %v7838_v24 = vld [vmem:[#allocation47_spill] sm:$0xff] }
 0x5e0   : > { %v4110_v56 = vpop.f32.mrf.mxu3 }
 0x5e1   : > { %v5140_v21 = vpop.eup %5139  ;;  %v3284_v61 = vmax.f32 %v2984_v8, 0.0  ;;  %v4111_v22 = vadd.f32 %v4110_v56, %v3782_v2 }
 0x5e2   : > { %4524 = vst.msk [vmem:[%s6920_s15 + $0xb0] sm:$0xff] %vm4501_vm1, %v5140_v21 }
 0x5e3   : > { %5141 = vtanh.f32 %v4111_v22  ;;  %3823 = vmatmul.bf16.gmra.mxu2 %v7835_v0  ;;  %v3498_v40 = vpack.c.bf16 %v3284_v61, %v3282_v29  ;;  %v2986_v35 = vpop.f32.mrf.mxu1  ;;  %v7839_v61 = vld [vmem:[#allocation45_spill] sm:$0xff]  ;;  %v7840_v22 = vld [vmem:[#allocation46_spill] sm:$0xff] }
 0x5e4   : > { %v2657_v41 = vpop.f32.mrf.mxu0 }
 0x5e5   : > { %4152 = vmatmul.bf16.gmra.mxu3 %v3498_v40  ;;  %v2658_v33 = vadd.f32 %v2657_v41, %v6820_v17 }
 0x5e6   : > { %v3784_v46 = vpop.f32.mrf.mxu2  ;;  %3025 = vmatmul.bf16.gmra.mxu1 %v7837_v11 }
 0x5e7   : > { %v3785_v31 = vadd.f32 %v6906_v25, %v3784_v46  ;;  %2696 = vmatmul.bf16.gmra.mxu0 %v7836_v47  ;;  %v2987_v5 = vadd.f32 %v2986_v35, %v2658_v33 }
 0x5e8   : > { %v4113_v20 = vpop.f32.mrf.mxu3 }
 0x5e9   : > { %v5142_v13 = vpop.eup %5141  ;;  %v4114_v53 = vadd.f32 %v4113_v20, %v3785_v31  ;;  %v3286_v15 = vmax.f32 %v2987_v5, 0.0 }
 0x5ea   : > { %4525 = vst.msk [vmem:[%s6920_s15 + $0xb8] sm:$0xff] %vm4501_vm1, %v5142_v13 }
 0x5eb   : > { %5143 = vtanh.f32 %v4114_v53  ;;  %v2988_v62 = vpop.f32.mrf.mxu1 }
 0x5ec   : > { %v2659_v9 = vpop.f32.mrf.mxu0 }
 0x5ed   : > { %v2660_v23 = vadd.f32 %v2659_v9, %v6820_v17 }
 0x5ee   : > { %v3786_v26 = vpop.f32.mrf.mxu2 }
 0x5ef   : > { %v2989_v32 = vadd.f32 %v2988_v62, %v2660_v23  ;;  %v3787_v63 = vadd.f32 %v6906_v25, %v3786_v26  ;;  %v7841_v26 = vld [vmem:[#allocation50_spill] sm:$0xff] }
 0x5f0   : > { %v4115_v10 = vpop.f32.mrf.mxu3 }
 0x5f1   : > { %v5144_v14 = vpop.eup %5143  ;;  %v3288_v55 = vmax.f32 %v2989_v32, 0.0  ;;  %v4116_v45 = vadd.f32 %v4115_v10, %v3787_v63 }
 0x5f2   : > { %4526 = vst.msk [vmem:[%s6920_s15 + $0xc0] sm:$0xff] %vm4501_vm1, %v5144_v14 }
 0x5f3   : > { %5145 = vtanh.f32 %v4116_v45  ;;  %3828 = vmatmul.bf16.gmra.mxu2 %v7838_v24  ;;  %v3500_v8 = vpack.c.bf16 %v3288_v55, %v3286_v15  ;;  %v2991_v56 = vpop.f32.mrf.mxu1  ;;  %v7842_v55 = vld [vmem:[#allocation48_spill] sm:$0xff]  ;;  %v7843_v45 = vld [vmem:[#allocation49_spill] sm:$0xff] }
 0x5f4   : > { %v2662_v2 = vpop.f32.mrf.mxu0 }
 0x5f5   : > { %4157 = vmatmul.bf16.gmra.mxu3 %v3500_v8  ;;  %v2663_v41 = vadd.f32 %v2662_v2, %v6820_v17 }
 0x5f6   : > { %v3789_v21 = vpop.f32.mrf.mxu2  ;;  %3030 = vmatmul.bf16.gmra.mxu1 %v7840_v22 }
 0x5f7   : > { %v3790_v29 = vadd.f32 %v6906_v25, %v3789_v21  ;;  %2701 = vmatmul.bf16.gmra.mxu0 %v7839_v61  ;;  %v2992_v47 = vadd.f32 %v2991_v56, %v2663_v41 }
 0x5f8   : > { %v4118_v0 = vpop.f32.mrf.mxu3 }
 0x5f9   : > { %v5146_v40 = vpop.eup %5145  ;;  %v4119_v35 = vadd.f32 %v4118_v0, %v3790_v29  ;;  %v3290_v62 = vmax.f32 %v2992_v47, 0.0 }
 0x5fa   : > { %4527 = vst.msk [vmem:[%s6920_s15 + $0xc8] sm:$0xff] %vm4501_vm1, %v5146_v40 }
 0x5fb   : > { %5147 = vtanh.f32 %v4119_v35  ;;  %v2993_v31 = vpop.f32.mrf.mxu1 }
 0x5fc   : > { %v2664_v46 = vpop.f32.mrf.mxu0 }
 0x5fd   : > { %v2665_v11 = vadd.f32 %v2664_v46, %v6820_v17 }
 0x5fe   : > { %v3791_v20 = vpop.f32.mrf.mxu2 }
 0x5ff   : > { %v2994_v13 = vadd.f32 %v2993_v31, %v2665_v11  ;;  %v3792_v33 = vadd.f32 %v6906_v25, %v3791_v20  ;;  %v7844_v20 = vld [vmem:[#allocation53_spill] sm:$0xff] }
 0x600   : > { %v4120_v53 = vpop.f32.mrf.mxu3 }
 0x601   : > { %v5148_v9 = vpop.eup %5147  ;;  %v3292_v5 = vmax.f32 %v2994_v13, 0.0  ;;  %v4121_v23 = vadd.f32 %v4120_v53, %v3792_v33 }
 0x602   : > { %4528 = vst.msk [vmem:[%s6920_s15 + $0xd0] sm:$0xff] %vm4501_vm1, %v5148_v9 }
 0x603   : > { %5149 = vtanh.f32 %v4121_v23  ;;  %3833 = vmatmul.bf16.gmra.mxu2 %v7841_v26  ;;  %v3502_v32 = vpack.c.bf16 %v3292_v5, %v3290_v62  ;;  %v2996_v10 = vpop.f32.mrf.mxu1  ;;  %v7845_v5 = vld [vmem:[#allocation51_spill] sm:$0xff]  ;;  %v7846_v23 = vld [vmem:[#allocation52_spill] sm:$0xff] }
 0x604   : > { %v2667_v63 = vpop.f32.mrf.mxu0 }
 0x605   : > { %4162 = vmatmul.bf16.gmra.mxu3 %v3502_v32  ;;  %v2668_v2 = vadd.f32 %v2667_v63, %v6820_v17 }
 0x606   : > { %v3794_v14 = vpop.f32.mrf.mxu2  ;;  %3035 = vmatmul.bf16.gmra.mxu1 %v7843_v45 }
 0x607   : > { %v3795_v15 = vadd.f32 %v6906_v25, %v3794_v14  ;;  %2706 = vmatmul.bf16.gmra.mxu0 %v7842_v55  ;;  %v2997_v61 = vadd.f32 %v2996_v10, %v2668_v2 }
 0x608   : > { %v4123_v24 = vpop.f32.mrf.mxu3 }
 0x609   : > { %v5150_v8 = vpop.eup %5149  ;;  %v4124_v56 = vadd.f32 %v4123_v24, %v3795_v15  ;;  %v3294_v31 = vmax.f32 %v2997_v61, 0.0 }
 0x60a   : > { %4529 = vst.msk [vmem:[%s6920_s15 + $0xd8] sm:$0xff] %vm4501_vm1, %v5150_v8 }
 0x60b   : > { %5151 = vtanh.f32 %v4124_v56  ;;  %v2998_v29 = vpop.f32.mrf.mxu1 }
 0x60c   : > { %v2669_v21 = vpop.f32.mrf.mxu0 }
 0x60d   : > { %v2670_v22 = vadd.f32 %v2669_v21, %v6820_v17 }
 0x60e   : > { %v3796_v0 = vpop.f32.mrf.mxu2 }
 0x60f   : > { %v2999_v40 = vadd.f32 %v2998_v29, %v2670_v22  ;;  %v3797_v41 = vadd.f32 %v6906_v25, %v3796_v0  ;;  %v7847_v0 = vld [vmem:[#allocation56_spill] sm:$0xff] }
 0x610   : > { %v4125_v35 = vpop.f32.mrf.mxu3 }
 0x611   : > { %v5152_v46 = vpop.eup %5151  ;;  %v3296_v47 = vmax.f32 %v2999_v40, 0.0  ;;  %v4126_v11 = vadd.f32 %v4125_v35, %v3797_v41 }
 0x612   : > { %4530 = vst.msk [vmem:[%s6920_s15 + $0xe0] sm:$0xff] %vm4501_vm1, %v5152_v46 }
 0x613   : > { %5153 = vtanh.f32 %v4126_v11  ;;  %3838 = vmatmul.bf16.gmra.mxu2 %v7844_v20  ;;  %v3504_v13 = vpack.c.bf16 %v3296_v47, %v3294_v31  ;;  %v3001_v53 = vpop.f32.mrf.mxu1  ;;  %v7848_v47 = vld [vmem:[#allocation54_spill] sm:$0xff]  ;;  %v7849_v11 = vld [vmem:[#allocation55_spill] sm:$0xff] }
 0x614   : > { %v2672_v33 = vpop.f32.mrf.mxu0 }
 0x615   : > { %4167 = vmatmul.bf16.gmra.mxu3 %v3504_v13  ;;  %v2673_v63 = vadd.f32 %v2672_v33, %v6820_v17 }
 0x616   : > { %v3799_v9 = vpop.f32.mrf.mxu2  ;;  %3040 = vmatmul.bf16.gmra.mxu1 %v7846_v23 }
 0x617   : > { %v3800_v62 = vadd.f32 %v6906_v25, %v3799_v9  ;;  %2711 = vmatmul.bf16.gmra.mxu0 %v7845_v5  ;;  %v3002_v55 = vadd.f32 %v3001_v53, %v2673_v63 }
 0x618   : > { %v4128_v26 = vpop.f32.mrf.mxu3 }
 0x619   : > { %v5154_v32 = vpop.eup %5153  ;;  %v4129_v10 = vadd.f32 %v4128_v26, %v3800_v62  ;;  %v3298_v29 = vmax.f32 %v3002_v55, 0.0 }
 0x61a   : > { %4531 = vst.msk [vmem:[%s6920_s15 + $0xe8] sm:$0xff] %vm4501_vm1, %v5154_v32 }
 0x61b   : > { %5155 = vtanh.f32 %v4129_v10  ;;  %v3003_v15 = vpop.f32.mrf.mxu1 }
 0x61c   : > { %v2674_v14 = vpop.f32.mrf.mxu0 }
 0x61d   : > { %v2675_v45 = vadd.f32 %v2674_v14, %v6820_v17 }
 0x61e   : > { %v3801_v24 = vpop.f32.mrf.mxu2 }
 0x61f   : > { %v3004_v8 = vadd.f32 %v3003_v15, %v2675_v45  ;;  %v3802_v2 = vadd.f32 %v6906_v25, %v3801_v24  ;;  %v7850_v24 = vld [vmem:[#allocation59_spill] sm:$0xff] }
 0x620   : > { %v4130_v56 = vpop.f32.mrf.mxu3 }
 0x621   : > { %v5156_v21 = vpop.eup %5155  ;;  %v3300_v61 = vmax.f32 %v3004_v8, 0.0  ;;  %v4131_v22 = vadd.f32 %v4130_v56, %v3802_v2 }
 0x622   : > { %4532 = vst.msk [vmem:[%s6920_s15 + $0xf0] sm:$0xff] %vm4501_vm1, %v5156_v21 }
 0x623   : > { %5157 = vtanh.f32 %v4131_v22  ;;  %3843 = vmatmul.bf16.gmra.mxu2 %v7847_v0  ;;  %v3506_v40 = vpack.c.bf16 %v3300_v61, %v3298_v29  ;;  %v3006_v35 = vpop.f32.mrf.mxu1  ;;  %v7851_v61 = vld [vmem:[#allocation57_spill] sm:$0xff]  ;;  %v7852_v22 = vld [vmem:[#allocation58_spill] sm:$0xff] }
 0x624   : > { %v2677_v41 = vpop.f32.mrf.mxu0 }
 0x625   : > { %4172 = vmatmul.bf16.gmra.mxu3 %v3506_v40  ;;  %v2678_v33 = vadd.f32 %v2677_v41, %v6820_v17 }
 0x626   : > { %v3804_v46 = vpop.f32.mrf.mxu2  ;;  %3045 = vmatmul.bf16.gmra.mxu1 %v7849_v11 }
 0x627   : > { %v3805_v31 = vadd.f32 %v6906_v25, %v3804_v46  ;;  %2716 = vmatmul.bf16.gmra.mxu0 %v7848_v47  ;;  %v3007_v5 = vadd.f32 %v3006_v35, %v2678_v33 }
 0x628   : > { %v4133_v20 = vpop.f32.mrf.mxu3 }
 0x629   : > { %v5158_v13 = vpop.eup %5157  ;;  %v4134_v53 = vadd.f32 %v4133_v20, %v3805_v31  ;;  %v3302_v15 = vmax.f32 %v3007_v5, 0.0 }
 0x62a   : > { %4533 = vst.msk [vmem:[%s6920_s15 + $0xf8] sm:$0xff] %vm4501_vm1, %v5158_v13  ;;  %v7112_v13 = vld [vmem:[%s7582_s4 + $0x2] ss:$0 sm:$0xff] }
 0x62b   : > { %5159 = vtanh.f32 %v4134_v53  ;;  %v3008_v62 = vpop.f32.mrf.mxu1 }
 0x62c   : > { %v2679_v9 = vpop.f32.mrf.mxu0 }
 0x62d   : > { %v2680_v23 = vadd.f32 %v2679_v9, %v6820_v17 }
 0x62e   : > { %v3806_v26 = vpop.f32.mrf.mxu2 }
 0x62f   : > { %v3009_v32 = vadd.f32 %v3008_v62, %v2680_v23  ;;  %v3807_v63 = vadd.f32 %v6906_v25, %v3806_v26  ;;  %v7853_v26 = vld [vmem:[#allocation62_spill] sm:$0xff] }
 0x630   : > { %v4135_v10 = vpop.f32.mrf.mxu3 }
 0x631   : > { %v5160_v14 = vpop.eup %5159  ;;  %v3304_v55 = vmax.f32 %v3009_v32, 0.0  ;;  %v4136_v45 = vadd.f32 %v4135_v10, %v3807_v63 }
 0x632   : > { %4534 = vst.msk [vmem:[%s6920_s15 + $0x100] sm:$0xff] %vm4501_vm1, %v5160_v14 }
 0x633   : > { %5161 = vtanh.f32 %v4136_v45  ;;  %3848 = vmatmul.bf16.gmra.mxu2 %v7850_v24  ;;  %v3508_v8 = vpack.c.bf16 %v3304_v55, %v3302_v15  ;;  %v3011_v56 = vpop.f32.mrf.mxu1  ;;  %v7854_v55 = vld [vmem:[#allocation60_spill] sm:$0xff]  ;;  %v7855_v45 = vld [vmem:[#allocation61_spill] sm:$0xff] }
 0x634   : > { %v2682_v2 = vpop.f32.mrf.mxu0 }
 0x635   : > { %4177 = vmatmul.bf16.gmra.mxu3 %v3508_v8  ;;  %v2683_v41 = vadd.f32 %v2682_v2, %v6820_v17 }
 0x636   : > { %v3809_v21 = vpop.f32.mrf.mxu2  ;;  %3050 = vmatmul.bf16.gmra.mxu1 %v7852_v22 }
 0x637   : > { %v3810_v29 = vadd.f32 %v6906_v25, %v3809_v21  ;;  %2721 = vmatmul.bf16.gmra.mxu0 %v7851_v61  ;;  %v3012_v47 = vadd.f32 %v3011_v56, %v2683_v41 }
 0x638   : > { %v4138_v0 = vpop.f32.mrf.mxu3 }
 0x639   : > { %v5162_v40 = vpop.eup %5161  ;;  %v4139_v35 = vadd.f32 %v4138_v0, %v3810_v29  ;;  %v3306_v62 = vmax.f32 %v3012_v47, 0.0 }
 0x63a   : > { %4535 = vst.msk [vmem:[%s6920_s15 + $0x108] sm:$0xff] %vm4501_vm1, %v5162_v40 }
 0x63b   : > { %5163 = vtanh.f32 %v4139_v35  ;;  %v3013_v31 = vpop.f32.mrf.mxu1 }
 0x63c   : > { %v2684_v46 = vpop.f32.mrf.mxu0 }
 0x63d   : > { %v2685_v11 = vadd.f32 %v2684_v46, %v6820_v17 }
 0x63e   : > { %v3811_v20 = vpop.f32.mrf.mxu2 }
 0x63f   : > { %v3014_v25 = vadd.f32 %v3013_v31, %v2685_v11  ;;  %v3812_v33 = vadd.f32 %v7112_v13, %v3811_v20  ;;  %v7856_v20 = vld [vmem:[#allocation65_spill] sm:$0xff] }
 0x640   : > { %v4140_v53 = vpop.f32.mrf.mxu3 }
 0x641   : > { %v5164_v9 = vpop.eup %5163  ;;  %v3308_v5 = vmax.f32 %v3014_v25, 0.0  ;;  %v4141_v23 = vadd.f32 %v4140_v53, %v3812_v33 }
 0x642   : > { %4536 = vst.msk [vmem:[%s6920_s15 + $0x110] sm:$0xff] %vm4501_vm1, %v5164_v9 }
 0x643   : > { %5165 = vtanh.f32 %v4141_v23  ;;  %3853 = vmatmul.bf16.gmra.mxu2 %v7853_v26  ;;  %v3510_v32 = vpack.c.bf16 %v3308_v5, %v3306_v62  ;;  %v3016_v10 = vpop.f32.mrf.mxu1  ;;  %v7857_v5 = vld [vmem:[#allocation63_spill] sm:$0xff]  ;;  %v7858_v23 = vld [vmem:[#allocation64_spill] sm:$0xff] }
 0x644   : > { %v2687_v63 = vpop.f32.mrf.mxu0 }
 0x645   : > { %4182 = vmatmul.bf16.gmra.mxu3 %v3510_v32  ;;  %v2688_v2 = vadd.f32 %v2687_v63, %v6820_v17 }
 0x646   : > { %v3814_v14 = vpop.f32.mrf.mxu2  ;;  %3055 = vmatmul.bf16.gmra.mxu1 %v7855_v45 }
 0x647   : > { %v3815_v15 = vadd.f32 %v7112_v13, %v3814_v14  ;;  %2726 = vmatmul.bf16.gmra.mxu0 %v7854_v55  ;;  %v3017_v61 = vadd.f32 %v3016_v10, %v2688_v2 }
 0x648   : > { %v4143_v24 = vpop.f32.mrf.mxu3 }
 0x649   : > { %v5166_v8 = vpop.eup %5165  ;;  %v4144_v56 = vadd.f32 %v4143_v24, %v3815_v15  ;;  %v3310_v31 = vmax.f32 %v3017_v61, 0.0 }
 0x64a   : > { %4537 = vst.msk [vmem:[%s6920_s15 + $0x118] sm:$0xff] %vm4501_vm1, %v5166_v8 }
 0x64b   : > { %5167 = vtanh.f32 %v4144_v56  ;;  %v3018_v29 = vpop.f32.mrf.mxu1 }
 0x64c   : > { %v2689_v21 = vpop.f32.mrf.mxu0 }
 0x64d   : > { %v2690_v22 = vadd.f32 %v2689_v21, %v6820_v17 }
 0x64e   : > { %v3816_v0 = vpop.f32.mrf.mxu2 }
 0x64f   : > { %v3019_v40 = vadd.f32 %v3018_v29, %v2690_v22  ;;  %v3817_v41 = vadd.f32 %v7112_v13, %v3816_v0  ;;  %v7859_v0 = vld [vmem:[#allocation68_spill] sm:$0xff] }
 0x650   : > { %v4145_v35 = vpop.f32.mrf.mxu3 }
 0x651   : > { %v5168_v46 = vpop.eup %5167  ;;  %v3312_v47 = vmax.f32 %v3019_v40, 0.0  ;;  %v4146_v11 = vadd.f32 %v4145_v35, %v3817_v41 }
 0x652   : > { %4538 = vst.msk [vmem:[%s6920_s15 + $0x120] sm:$0xff] %vm4501_vm1, %v5168_v46 }
 0x653   : > { %5169 = vtanh.f32 %v4146_v11  ;;  %3858 = vmatmul.bf16.gmra.mxu2 %v7856_v20  ;;  %v3512_v25 = vpack.c.bf16 %v3312_v47, %v3310_v31  ;;  %v3021_v53 = vpop.f32.mrf.mxu1  ;;  %v7860_v47 = vld [vmem:[#allocation66_spill] sm:$0xff]  ;;  %v7861_v11 = vld [vmem:[#allocation67_spill] sm:$0xff] }
 0x654   : > { %v2692_v33 = vpop.f32.mrf.mxu0 }
 0x655   : > { %4187 = vmatmul.bf16.gmra.mxu3 %v3512_v25  ;;  %v2693_v63 = vadd.f32 %v2692_v33, %v6820_v17 }
 0x656   : > { %v3819_v9 = vpop.f32.mrf.mxu2  ;;  %3060 = vmatmul.bf16.gmra.mxu1 %v7858_v23 }
 0x657   : > { %v3820_v62 = vadd.f32 %v7112_v13, %v3819_v9  ;;  %2731 = vmatmul.bf16.gmra.mxu0 %v7857_v5  ;;  %v3022_v55 = vadd.f32 %v3021_v53, %v2693_v63 }
 0x658   : > { %v4148_v26 = vpop.f32.mrf.mxu3 }
 0x659   : > { %v5170_v32 = vpop.eup %5169  ;;  %v4149_v10 = vadd.f32 %v4148_v26, %v3820_v62  ;;  %v3314_v29 = vmax.f32 %v3022_v55, 0.0 }
 0x65a   : > { %4539 = vst.msk [vmem:[%s6920_s15 + $0x128] sm:$0xff] %vm4501_vm1, %v5170_v32 }
 0x65b   : > { %5171 = vtanh.f32 %v4149_v10  ;;  %v3023_v15 = vpop.f32.mrf.mxu1 }
 0x65c   : > { %v2694_v14 = vpop.f32.mrf.mxu0 }
 0x65d   : > { %v2695_v45 = vadd.f32 %v2694_v14, %v6820_v17 }
 0x65e   : > { %v3821_v24 = vpop.f32.mrf.mxu2 }
 0x65f   : > { %v3024_v8 = vadd.f32 %v3023_v15, %v2695_v45  ;;  %v3822_v2 = vadd.f32 %v7112_v13, %v3821_v24  ;;  %v7862_v24 = vld [vmem:[#allocation71_spill] sm:$0xff] }
 0x660   : > { %v4150_v56 = vpop.f32.mrf.mxu3 }
 0x661   : > { %v5172_v21 = vpop.eup %5171  ;;  %v3316_v61 = vmax.f32 %v3024_v8, 0.0  ;;  %v4151_v22 = vadd.f32 %v4150_v56, %v3822_v2 }
 0x662   : > { %4540 = vst.msk [vmem:[%s6920_s15 + $0x130] sm:$0xff] %vm4501_vm1, %v5172_v21 }
 0x663   : > { %5173 = vtanh.f32 %v4151_v22  ;;  %3863 = vmatmul.bf16.gmra.mxu2 %v7859_v0  ;;  %v3514_v40 = vpack.c.bf16 %v3316_v61, %v3314_v29  ;;  %v3026_v35 = vpop.f32.mrf.mxu1  ;;  %v7863_v61 = vld [vmem:[#allocation69_spill] sm:$0xff]  ;;  %v7864_v22 = vld [vmem:[#allocation70_spill] sm:$0xff] }
 0x664   : > { %v2697_v41 = vpop.f32.mrf.mxu0 }
 0x665   : > { %4192 = vmatmul.bf16.gmra.mxu3 %v3514_v40  ;;  %v2698_v33 = vadd.f32 %v2697_v41, %v6820_v17 }
 0x666   : > { %v3824_v46 = vpop.f32.mrf.mxu2  ;;  %3065 = vmatmul.bf16.gmra.mxu1 %v7861_v11 }
 0x667   : > { %v3825_v31 = vadd.f32 %v7112_v13, %v3824_v46  ;;  %2736 = vmatmul.bf16.gmra.mxu0 %v7860_v47  ;;  %v3027_v5 = vadd.f32 %v3026_v35, %v2698_v33 }
 0x668   : > { %v4153_v20 = vpop.f32.mrf.mxu3 }
 0x669   : > { %v5174_v25 = vpop.eup %5173  ;;  %v4154_v53 = vadd.f32 %v4153_v20, %v3825_v31  ;;  %v3318_v15 = vmax.f32 %v3027_v5, 0.0 }
 0x66a   : > { %4541 = vst.msk [vmem:[%s6920_s15 + $0x138] sm:$0xff] %vm4501_vm1, %v5174_v25 }
 0x66b   : > { %5175 = vtanh.f32 %v4154_v53  ;;  %v3028_v62 = vpop.f32.mrf.mxu1 }
 0x66c   : > { %v2699_v9 = vpop.f32.mrf.mxu0 }
 0x66d   : > { %v2700_v23 = vadd.f32 %v2699_v9, %v6820_v17 }
 0x66e   : > { %v3826_v26 = vpop.f32.mrf.mxu2 }
 0x66f   : > { %v3029_v32 = vadd.f32 %v3028_v62, %v2700_v23  ;;  %v3827_v63 = vadd.f32 %v7112_v13, %v3826_v26  ;;  %v7865_v26 = vld [vmem:[#allocation74_spill] sm:$0xff] }
 0x670   : > { %v4155_v10 = vpop.f32.mrf.mxu3 }
 0x671   : > { %v5176_v14 = vpop.eup %5175  ;;  %v3320_v55 = vmax.f32 %v3029_v32, 0.0  ;;  %v4156_v45 = vadd.f32 %v4155_v10, %v3827_v63 }
 0x672   : > { %4542 = vst.msk [vmem:[%s6920_s15 + $0x140] sm:$0xff] %vm4501_vm1, %v5176_v14 }
 0x673   : > { %5177 = vtanh.f32 %v4156_v45  ;;  %3868 = vmatmul.bf16.gmra.mxu2 %v7862_v24  ;;  %v3516_v8 = vpack.c.bf16 %v3320_v55, %v3318_v15  ;;  %v3031_v56 = vpop.f32.mrf.mxu1  ;;  %v7866_v55 = vld [vmem:[#allocation72_spill] sm:$0xff]  ;;  %v7867_v45 = vld [vmem:[#allocation73_spill] sm:$0xff] }
 0x674   : > { %v2702_v2 = vpop.f32.mrf.mxu0 }
 0x675   : > { %4197 = vmatmul.bf16.gmra.mxu3 %v3516_v8  ;;  %v2703_v41 = vadd.f32 %v2702_v2, %v6820_v17 }
 0x676   : > { %v3829_v21 = vpop.f32.mrf.mxu2  ;;  %3070 = vmatmul.bf16.gmra.mxu1 %v7864_v22 }
 0x677   : > { %v3830_v29 = vadd.f32 %v7112_v13, %v3829_v21  ;;  %2741 = vmatmul.bf16.gmra.mxu0 %v7863_v61  ;;  %v3032_v47 = vadd.f32 %v3031_v56, %v2703_v41 }
 0x678   : > { %v4158_v0 = vpop.f32.mrf.mxu3 }
 0x679   : > { %v5178_v40 = vpop.eup %5177  ;;  %v4159_v35 = vadd.f32 %v4158_v0, %v3830_v29  ;;  %v3322_v62 = vmax.f32 %v3032_v47, 0.0 }
 0x67a   : > { %4543 = vst.msk [vmem:[%s6920_s15 + $0x148] sm:$0xff] %vm4501_vm1, %v5178_v40 }
 0x67b   : > { %5179 = vtanh.f32 %v4159_v35  ;;  %v3033_v31 = vpop.f32.mrf.mxu1 }
 0x67c   : > { %v2704_v46 = vpop.f32.mrf.mxu0 }
 0x67d   : > { %v2705_v11 = vadd.f32 %v2704_v46, %v6820_v17 }
 0x67e   : > { %v3831_v20 = vpop.f32.mrf.mxu2 }
 0x67f   : > { %v3034_v25 = vadd.f32 %v3033_v31, %v2705_v11  ;;  %v3832_v33 = vadd.f32 %v7112_v13, %v3831_v20  ;;  %v7868_v20 = vld [vmem:[#allocation77_spill] sm:$0xff] }
 0x680   : > { %v4160_v53 = vpop.f32.mrf.mxu3 }
 0x681   : > { %v5180_v9 = vpop.eup %5179  ;;  %v3324_v5 = vmax.f32 %v3034_v25, 0.0  ;;  %v4161_v23 = vadd.f32 %v4160_v53, %v3832_v33 }
 0x682   : > { %4544 = vst.msk [vmem:[%s6920_s15 + $0x150] sm:$0xff] %vm4501_vm1, %v5180_v9 }
 0x683   : > { %5181 = vtanh.f32 %v4161_v23  ;;  %3873 = vmatmul.bf16.gmra.mxu2 %v7865_v26  ;;  %v3518_v32 = vpack.c.bf16 %v3324_v5, %v3322_v62  ;;  %v3036_v10 = vpop.f32.mrf.mxu1  ;;  %v7869_v5 = vld [vmem:[#allocation75_spill] sm:$0xff]  ;;  %v7870_v23 = vld [vmem:[#allocation76_spill] sm:$0xff] }
 0x684   : > { %v2707_v63 = vpop.f32.mrf.mxu0 }
 0x685   : > { %4202 = vmatmul.bf16.gmra.mxu3 %v3518_v32  ;;  %v2708_v2 = vadd.f32 %v2707_v63, %v6820_v17 }
 0x686   : > { %v3834_v14 = vpop.f32.mrf.mxu2  ;;  %3075 = vmatmul.bf16.gmra.mxu1 %v7867_v45 }
 0x687   : > { %v3835_v15 = vadd.f32 %v7112_v13, %v3834_v14  ;;  %2746 = vmatmul.bf16.gmra.mxu0 %v7866_v55  ;;  %v3037_v61 = vadd.f32 %v3036_v10, %v2708_v2 }
 0x688   : > { %v4163_v24 = vpop.f32.mrf.mxu3 }
 0x689   : > { %v5182_v8 = vpop.eup %5181  ;;  %v4164_v56 = vadd.f32 %v4163_v24, %v3835_v15  ;;  %v3326_v31 = vmax.f32 %v3037_v61, 0.0 }
 0x68a   : > { %4545 = vst.msk [vmem:[%s6920_s15 + $0x158] sm:$0xff] %vm4501_vm1, %v5182_v8 }
 0x68b   : > { %5183 = vtanh.f32 %v4164_v56  ;;  %v3038_v29 = vpop.f32.mrf.mxu1 }
 0x68c   : > { %v2709_v21 = vpop.f32.mrf.mxu0 }
 0x68d   : > { %v2710_v22 = vadd.f32 %v2709_v21, %v6820_v17 }
 0x68e   : > { %v3836_v0 = vpop.f32.mrf.mxu2 }
 0x68f   : > { %v3039_v40 = vadd.f32 %v3038_v29, %v2710_v22  ;;  %v3837_v41 = vadd.f32 %v7112_v13, %v3836_v0  ;;  %v7871_v0 = vld [vmem:[#allocation80_spill] sm:$0xff] }
 0x690   : > { %v4165_v35 = vpop.f32.mrf.mxu3 }
 0x691   : > { %v5184_v46 = vpop.eup %5183  ;;  %v3328_v47 = vmax.f32 %v3039_v40, 0.0  ;;  %v4166_v11 = vadd.f32 %v4165_v35, %v3837_v41 }
 0x692   : > { %4546 = vst.msk [vmem:[%s6920_s15 + $0x160] sm:$0xff] %vm4501_vm1, %v5184_v46 }
 0x693   : > { %5185 = vtanh.f32 %v4166_v11  ;;  %3878 = vmatmul.bf16.gmra.mxu2 %v7868_v20  ;;  %v3520_v25 = vpack.c.bf16 %v3328_v47, %v3326_v31  ;;  %v3041_v53 = vpop.f32.mrf.mxu1  ;;  %v7872_v47 = vld [vmem:[#allocation78_spill] sm:$0xff]  ;;  %v7873_v11 = vld [vmem:[#allocation79_spill] sm:$0xff] }
 0x694   : > { %v2712_v33 = vpop.f32.mrf.mxu0 }
 0x695   : > { %4207 = vmatmul.bf16.gmra.mxu3 %v3520_v25  ;;  %v2713_v63 = vadd.f32 %v2712_v33, %v6820_v17 }
 0x696   : > { %v3839_v9 = vpop.f32.mrf.mxu2  ;;  %3080 = vmatmul.bf16.gmra.mxu1 %v7870_v23 }
 0x697   : > { %v3840_v62 = vadd.f32 %v7112_v13, %v3839_v9  ;;  %2751 = vmatmul.bf16.gmra.mxu0 %v7869_v5  ;;  %v3042_v55 = vadd.f32 %v3041_v53, %v2713_v63 }
 0x698   : > { %v4168_v26 = vpop.f32.mrf.mxu3 }
 0x699   : > { %v5186_v32 = vpop.eup %5185  ;;  %v4169_v10 = vadd.f32 %v4168_v26, %v3840_v62  ;;  %v3330_v29 = vmax.f32 %v3042_v55, 0.0 }
 0x69a   : > { %4547 = vst.msk [vmem:[%s6920_s15 + $0x168] sm:$0xff] %vm4501_vm1, %v5186_v32 }
 0x69b   : > { %5187 = vtanh.f32 %v4169_v10  ;;  %v3043_v15 = vpop.f32.mrf.mxu1 }
 0x69c   : > { %v2714_v14 = vpop.f32.mrf.mxu0 }
 0x69d   : > { %v2715_v45 = vadd.f32 %v2714_v14, %v6820_v17 }
 0x69e   : > { %v3841_v24 = vpop.f32.mrf.mxu2 }
 0x69f   : > { %v3044_v8 = vadd.f32 %v3043_v15, %v2715_v45  ;;  %v3842_v2 = vadd.f32 %v7112_v13, %v3841_v24  ;;  %v7874_v24 = vld [vmem:[#allocation83_spill] sm:$0xff] }
 0x6a0   : > { %v4170_v56 = vpop.f32.mrf.mxu3 }
 0x6a1   : > { %v5188_v21 = vpop.eup %5187  ;;  %v3332_v61 = vmax.f32 %v3044_v8, 0.0  ;;  %v4171_v22 = vadd.f32 %v4170_v56, %v3842_v2 }
 0x6a2   : > { %4548 = vst.msk [vmem:[%s6920_s15 + $0x170] sm:$0xff] %vm4501_vm1, %v5188_v21 }
 0x6a3   : > { %5189 = vtanh.f32 %v4171_v22  ;;  %3883 = vmatmul.bf16.gmra.mxu2 %v7871_v0  ;;  %v3522_v40 = vpack.c.bf16 %v3332_v61, %v3330_v29  ;;  %v3046_v35 = vpop.f32.mrf.mxu1  ;;  %v7875_v61 = vld [vmem:[#allocation81_spill] sm:$0xff]  ;;  %v7876_v22 = vld [vmem:[#allocation82_spill] sm:$0xff] }
 0x6a4   : > { %v2717_v41 = vpop.f32.mrf.mxu0 }
 0x6a5   : > { %4212 = vmatmul.bf16.gmra.mxu3 %v3522_v40  ;;  %v2718_v33 = vadd.f32 %v2717_v41, %v6820_v17 }
 0x6a6   : > { %v3844_v46 = vpop.f32.mrf.mxu2  ;;  %3085 = vmatmul.bf16.gmra.mxu1 %v7873_v11 }
 0x6a7   : > { %v3845_v31 = vadd.f32 %v7112_v13, %v3844_v46  ;;  %2756 = vmatmul.bf16.gmra.mxu0 %v7872_v47  ;;  %v3047_v5 = vadd.f32 %v3046_v35, %v2718_v33 }
 0x6a8   : > { %v4173_v20 = vpop.f32.mrf.mxu3 }
 0x6a9   : > { %v5190_v25 = vpop.eup %5189  ;;  %v4174_v53 = vadd.f32 %v4173_v20, %v3845_v31  ;;  %v3334_v15 = vmax.f32 %v3047_v5, 0.0 }
 0x6aa   : > { %4549 = vst.msk [vmem:[%s6920_s15 + $0x178] sm:$0xff] %vm4501_vm1, %v5190_v25 }
 0x6ab   : > { %5191 = vtanh.f32 %v4174_v53  ;;  %v3048_v62 = vpop.f32.mrf.mxu1 }
 0x6ac   : > { %v2719_v9 = vpop.f32.mrf.mxu0 }
 0x6ad   : > { %v2720_v23 = vadd.f32 %v2719_v9, %v6820_v17 }
 0x6ae   : > { %v3846_v26 = vpop.f32.mrf.mxu2 }
 0x6af   : > { %v3049_v32 = vadd.f32 %v3048_v62, %v2720_v23  ;;  %v3847_v63 = vadd.f32 %v7112_v13, %v3846_v26  ;;  %v7877_v26 = vld [vmem:[#allocation86_spill] sm:$0xff] }
 0x6b0   : > { %v4175_v10 = vpop.f32.mrf.mxu3 }
 0x6b1   : > { %v5192_v14 = vpop.eup %5191  ;;  %v3336_v55 = vmax.f32 %v3049_v32, 0.0  ;;  %v4176_v45 = vadd.f32 %v4175_v10, %v3847_v63 }
 0x6b2   : > { %4550 = vst.msk [vmem:[%s6920_s15 + $0x180] sm:$0xff] %vm4501_vm1, %v5192_v14 }
 0x6b3   : > { %5193 = vtanh.f32 %v4176_v45  ;;  %3888 = vmatmul.bf16.gmra.mxu2 %v7874_v24  ;;  %v3524_v8 = vpack.c.bf16 %v3336_v55, %v3334_v15  ;;  %v3051_v56 = vpop.f32.mrf.mxu1  ;;  %v7878_v55 = vld [vmem:[#allocation84_spill] sm:$0xff]  ;;  %v7879_v45 = vld [vmem:[#allocation85_spill] sm:$0xff] }
 0x6b4   : > { %v2722_v2 = vpop.f32.mrf.mxu0 }
 0x6b5   : > { %4217 = vmatmul.bf16.gmra.mxu3 %v3524_v8  ;;  %v2723_v41 = vadd.f32 %v2722_v2, %v6820_v17 }
 0x6b6   : > { %v3849_v21 = vpop.f32.mrf.mxu2  ;;  %3090 = vmatmul.bf16.gmra.mxu1 %v7876_v22 }
 0x6b7   : > { %v3850_v29 = vadd.f32 %v7112_v13, %v3849_v21  ;;  %2761 = vmatmul.bf16.gmra.mxu0 %v7875_v61  ;;  %v3052_v47 = vadd.f32 %v3051_v56, %v2723_v41 }
 0x6b8   : > { %v4178_v0 = vpop.f32.mrf.mxu3 }
 0x6b9   : > { %v5194_v40 = vpop.eup %5193  ;;  %v4179_v35 = vadd.f32 %v4178_v0, %v3850_v29  ;;  %v3338_v62 = vmax.f32 %v3052_v47, 0.0 }
 0x6ba   : > { %4551 = vst.msk [vmem:[%s6920_s15 + $0x188] sm:$0xff] %vm4501_vm1, %v5194_v40 }
 0x6bb   : > { %5195 = vtanh.f32 %v4179_v35  ;;  %v3053_v31 = vpop.f32.mrf.mxu1 }
 0x6bc   : > { %v2724_v46 = vpop.f32.mrf.mxu0 }
 0x6bd   : > { %v2725_v11 = vadd.f32 %v2724_v46, %v6820_v17 }
 0x6be   : > { %v3851_v20 = vpop.f32.mrf.mxu2 }
 0x6bf   : > { %v3054_v25 = vadd.f32 %v3053_v31, %v2725_v11  ;;  %v3852_v33 = vadd.f32 %v7112_v13, %v3851_v20  ;;  %v7880_v20 = vld [vmem:[#allocation89_spill] sm:$0xff] }
 0x6c0   : > { %v4180_v53 = vpop.f32.mrf.mxu3 }
 0x6c1   : > { %v5196_v9 = vpop.eup %5195  ;;  %v3340_v5 = vmax.f32 %v3054_v25, 0.0  ;;  %v4181_v23 = vadd.f32 %v4180_v53, %v3852_v33 }
 0x6c2   : > { %4552 = vst.msk [vmem:[%s6920_s15 + $0x190] sm:$0xff] %vm4501_vm1, %v5196_v9 }
 0x6c3   : > { %5197 = vtanh.f32 %v4181_v23  ;;  %3893 = vmatmul.bf16.gmra.mxu2 %v7877_v26  ;;  %v3526_v32 = vpack.c.bf16 %v3340_v5, %v3338_v62  ;;  %v3056_v10 = vpop.f32.mrf.mxu1  ;;  %v7881_v5 = vld [vmem:[#allocation87_spill] sm:$0xff]  ;;  %v7882_v23 = vld [vmem:[#allocation88_spill] sm:$0xff] }
 0x6c4   : > { %v2727_v63 = vpop.f32.mrf.mxu0 }
 0x6c5   : > { %4222 = vmatmul.bf16.gmra.mxu3 %v3526_v32  ;;  %v2728_v2 = vadd.f32 %v2727_v63, %v6820_v17 }
 0x6c6   : > { %v3854_v14 = vpop.f32.mrf.mxu2  ;;  %3095 = vmatmul.bf16.gmra.mxu1 %v7879_v45 }
 0x6c7   : > { %v3855_v15 = vadd.f32 %v7112_v13, %v3854_v14  ;;  %2766 = vmatmul.bf16.gmra.mxu0 %v7878_v55  ;;  %v3057_v61 = vadd.f32 %v3056_v10, %v2728_v2 }
 0x6c8   : > { %v4183_v24 = vpop.f32.mrf.mxu3 }
 0x6c9   : > { %v5198_v8 = vpop.eup %5197  ;;  %v4184_v56 = vadd.f32 %v4183_v24, %v3855_v15  ;;  %v3342_v31 = vmax.f32 %v3057_v61, 0.0 }
 0x6ca   : > { %4553 = vst.msk [vmem:[%s6920_s15 + $0x198] sm:$0xff] %vm4501_vm1, %v5198_v8 }
 0x6cb   : > { %5199 = vtanh.f32 %v4184_v56  ;;  %v3058_v29 = vpop.f32.mrf.mxu1 }
 0x6cc   : > { %v2729_v21 = vpop.f32.mrf.mxu0 }
 0x6cd   : > { %v2730_v22 = vadd.f32 %v2729_v21, %v6820_v17 }
 0x6ce   : > { %v3856_v0 = vpop.f32.mrf.mxu2 }
 0x6cf   : > { %v3059_v40 = vadd.f32 %v3058_v29, %v2730_v22  ;;  %v3857_v41 = vadd.f32 %v7112_v13, %v3856_v0  ;;  %v7883_v0 = vld [vmem:[#allocation92_spill] sm:$0xff] }
 0x6d0   : > { %v4185_v35 = vpop.f32.mrf.mxu3 }
 0x6d1   : > { %v5200_v46 = vpop.eup %5199  ;;  %v3344_v47 = vmax.f32 %v3059_v40, 0.0  ;;  %v4186_v11 = vadd.f32 %v4185_v35, %v3857_v41 }
 0x6d2   : > { %4554 = vst.msk [vmem:[%s6920_s15 + $0x1a0] sm:$0xff] %vm4501_vm1, %v5200_v46 }
 0x6d3   : > { %5201 = vtanh.f32 %v4186_v11  ;;  %3898 = vmatmul.bf16.gmra.mxu2 %v7880_v20  ;;  %v3528_v25 = vpack.c.bf16 %v3344_v47, %v3342_v31  ;;  %v3061_v53 = vpop.f32.mrf.mxu1  ;;  %v7884_v47 = vld [vmem:[#allocation90_spill] sm:$0xff]  ;;  %v7885_v11 = vld [vmem:[#allocation91_spill] sm:$0xff] }
 0x6d4   : > { %v2732_v33 = vpop.f32.mrf.mxu0 }
 0x6d5   : > { %4227 = vmatmul.bf16.gmra.mxu3 %v3528_v25  ;;  %v2733_v63 = vadd.f32 %v2732_v33, %v6820_v17 }
 0x6d6   : > { %v3859_v9 = vpop.f32.mrf.mxu2  ;;  %3100 = vmatmul.bf16.gmra.mxu1 %v7882_v23 }
 0x6d7   : > { %v3860_v62 = vadd.f32 %v7112_v13, %v3859_v9  ;;  %2771 = vmatmul.bf16.gmra.mxu0 %v7881_v5  ;;  %v3062_v55 = vadd.f32 %v3061_v53, %v2733_v63 }
 0x6d8   : > { %v4188_v26 = vpop.f32.mrf.mxu3 }
 0x6d9   : > { %v5202_v32 = vpop.eup %5201  ;;  %v4189_v10 = vadd.f32 %v4188_v26, %v3860_v62  ;;  %v3346_v29 = vmax.f32 %v3062_v55, 0.0 }
 0x6da   : > { %4555 = vst.msk [vmem:[%s6920_s15 + $0x1a8] sm:$0xff] %vm4501_vm1, %v5202_v32 }
 0x6db   : > { %5203 = vtanh.f32 %v4189_v10  ;;  %v3063_v15 = vpop.f32.mrf.mxu1 }
 0x6dc   : > { %v2734_v14 = vpop.f32.mrf.mxu0 }
 0x6dd   : > { %v2735_v45 = vadd.f32 %v2734_v14, %v6820_v17 }
 0x6de   : > { %v3861_v24 = vpop.f32.mrf.mxu2 }
 0x6df   : > { %v3064_v8 = vadd.f32 %v3063_v15, %v2735_v45  ;;  %v3862_v2 = vadd.f32 %v7112_v13, %v3861_v24 }
 0x6e0   : > { %v4190_v56 = vpop.f32.mrf.mxu3 }
 0x6e1   : > { %v5204_v21 = vpop.eup %5203  ;;  %v3348_v61 = vmax.f32 %v3064_v8, 0.0  ;;  %v4191_v22 = vadd.f32 %v4190_v56, %v3862_v2 }
 0x6e2   : > { %4556 = vst.msk [vmem:[%s6920_s15 + $0x1b0] sm:$0xff] %vm4501_vm1, %v5204_v21 }
 0x6e3   : > { %5205 = vtanh.f32 %v4191_v22  ;;  %3903 = vmatmul.bf16.gmra.mxu2 %v7883_v0  ;;  %v3530_v40 = vpack.c.bf16 %v3348_v61, %v3346_v29  ;;  %v3066_v35 = vpop.f32.mrf.mxu1  ;;  %v7886_v29 = vld [vmem:[#allocation93_spill] sm:$0xff] }
 0x6e4   : > { %v2737_v41 = vpop.f32.mrf.mxu0 }
 0x6e5   : > { %4232 = vmatmul.bf16.gmra.mxu3 %v3530_v40  ;;  %v2738_v33 = vadd.f32 %v2737_v41, %v6820_v17 }
 0x6e6   : > { %v3864_v46 = vpop.f32.mrf.mxu2  ;;  %3105 = vmatmul.bf16.gmra.mxu1 %v7885_v11 }
 0x6e7   : > { %v3865_v31 = vadd.f32 %v7112_v13, %v3864_v46  ;;  %2776 = vmatmul.bf16.gmra.mxu0 %v7884_v47  ;;  %v3067_v5 = vadd.f32 %v3066_v35, %v2738_v33 }
 0x6e8   : > { %v4193_v20 = vpop.f32.mrf.mxu3 }
 0x6e9   : > { %v5206_v25 = vpop.eup %5205  ;;  %v4194_v53 = vadd.f32 %v4193_v20, %v3865_v31  ;;  %v3350_v15 = vmax.f32 %v3067_v5, 0.0 }
 0x6ea   : > { %4557 = vst.msk [vmem:[%s6920_s15 + $0x1b8] sm:$0xff] %vm4501_vm1, %v5206_v25 }
 0x6eb   : > { %5207 = vtanh.f32 %v4194_v53  ;;  %v3068_v62 = vpop.f32.mrf.mxu1 }
 0x6ec   : > { %v2739_v9 = vpop.f32.mrf.mxu0 }
 0x6ed   : > { %v2740_v23 = vadd.f32 %v2739_v9, %v6820_v17  ;;  %v7887_v9 = vld [vmem:[#allocation96_spill] sm:$0xff] }
 0x6ee   : > { %v3866_v26 = vpop.f32.mrf.mxu2 }
 0x6ef   : > { %v3069_v32 = vadd.f32 %v3068_v62, %v2740_v23  ;;  %v3867_v63 = vadd.f32 %v7112_v13, %v3866_v26 }
 0x6f0   : > { %v4195_v10 = vpop.f32.mrf.mxu3 }
 0x6f1   : > { %v5208_v14 = vpop.eup %5207  ;;  %v3352_v55 = vmax.f32 %v3069_v32, 0.0  ;;  %v4196_v45 = vadd.f32 %v4195_v10, %v3867_v63  ;;  %v7888_v63 = vld [vmem:[#allocation94_spill] sm:$0xff]  ;;  %v7889_v10 = vld [vmem:[#allocation95_spill] sm:$0xff] }
 0x6f2   : > { %4558 = vst.msk [vmem:[%s6920_s15 + $0x1c0] sm:$0xff] %vm4501_vm1, %v5208_v14 }
 0x6f3   : > { %5209 = vtanh.f32 %v4196_v45  ;;  %3908 = vmatmul.bf16.gmra.mxu2 %v6520_v38  ;;  %v3532_v24 = vpack.c.bf16 %v3352_v55, %v3350_v15  ;;  %v3071_v2 = vpop.f32.mrf.mxu1 }
 0x6f4   : > { %v2742_v8 = vpop.f32.mrf.mxu0 }
 0x6f5   : > { %4237 = vmatmul.bf16.gmra.mxu3 %v3532_v24  ;;  %v2743_v0 = vadd.f32 %v2742_v8, %v6820_v17 }
 0x6f6   : > { %v3869_v56 = vpop.f32.mrf.mxu2  ;;  %3110 = vmatmul.bf16.gmra.mxu1 %v7886_v29 }
 0x6f7   : > { %v3870_v21 = vadd.f32 %v7112_v13, %v3869_v56  ;;  %2781 = vmatmul.bf16.gmra.mxu0 %v6511_v52  ;;  %v3072_v35 = vadd.f32 %v3071_v2, %v2743_v0 }
 0x6f8   : > { %v4198_v61 = vpop.f32.mrf.mxu3 }
 0x6f9   : > { %v5210_v22 = vpop.eup %5209  ;;  %v4199_v40 = vadd.f32 %v4198_v61, %v3870_v21  ;;  %v3354_v25 = vmax.f32 %v3072_v35, 0.0  ;;  %v7890_v35 = vld [vmem:[#allocation99_spill] sm:$0xff] }
 0x6fa   : > { %4559 = vst.msk [vmem:[%s6920_s15 + $0x1c8] sm:$0xff] %vm4501_vm1, %v5210_v22 }
 0x6fb   : > { %5211 = vtanh.f32 %v4199_v40  ;;  %v3073_v41 = vpop.f32.mrf.mxu1 }
 0x6fc   : > { %v2744_v38 = vpop.f32.mrf.mxu0 }
 0x6fd   : > { %v2745_v46 = vadd.f32 %v2744_v38, %v6820_v17 }
 0x6fe   : > { %v3871_v31 = vpop.f32.mrf.mxu2 }
 0x6ff   : > { %v3074_v47 = vadd.f32 %v3073_v41, %v2745_v46  ;;  %v3872_v52 = vadd.f32 %v7112_v13, %v3871_v31 }
 0x700   : > { %v4200_v11 = vpop.f32.mrf.mxu3 }
 0x701   : > { %v5212_v20 = vpop.eup %5211  ;;  %v3356_v33 = vmax.f32 %v3074_v47, 0.0  ;;  %v4201_v53 = vadd.f32 %v4200_v11, %v3872_v52 }
 0x702   : > { %4560 = vst.msk [vmem:[%s6920_s15 + $0x1d0] sm:$0xff] %vm4501_vm1, %v5212_v20  ;;  %v7891_v20 = vld [vmem:[#allocation97_spill] sm:$0xff] }
 0x703   : > { %5213 = vtanh.f32 %v4201_v53  ;;  %3913 = vmatmul.bf16.gmra.mxu2 %v7887_v9  ;;  %v3534_v62 = vpack.c.bf16 %v3356_v33, %v3354_v25  ;;  %v3076_v23 = vpop.f32.mrf.mxu1  ;;  %v7892_v25 = vld [vmem:[#allocation98_spill] sm:$0xff] }
 0x704   : > { %v2747_v5 = vpop.f32.mrf.mxu0 }
 0x705   : > { %4242 = vmatmul.bf16.gmra.mxu3 %v3534_v62  ;;  %v2748_v55 = vadd.f32 %v2747_v5, %v6820_v17 }
 0x706   : > { %v3874_v26 = vpop.f32.mrf.mxu2  ;;  %3115 = vmatmul.bf16.gmra.mxu1 %v7889_v10 }
 0x707   : > { %v3875_v32 = vadd.f32 %v7112_v13, %v3874_v26  ;;  %2786 = vmatmul.bf16.gmra.mxu0 %v7888_v63  ;;  %v3077_v2 = vadd.f32 %v3076_v23, %v2748_v55 }
 0x708   : > { %v4203_v14 = vpop.f32.mrf.mxu3 }
 0x709   : > { %v5214_v15 = vpop.eup %5213  ;;  %v4204_v45 = vadd.f32 %v4203_v14, %v3875_v32  ;;  %v3358_v40 = vmax.f32 %v3077_v2, 0.0  ;;  %v7893_v2 = vld [vmem:[#allocation102_spill] sm:$0xff] }
 0x70a   : > { %4561 = vst.msk [vmem:[%s6920_s15 + $0x1d8] sm:$0xff] %vm4501_vm1, %v5214_v15 }
 0x70b   : > { %5215 = vtanh.f32 %v4204_v45  ;;  %v3078_v8 = vpop.f32.mrf.mxu1 }
 0x70c   : > { %v2749_v24 = vpop.f32.mrf.mxu0 }
 0x70d   : > { %v2750_v56 = vadd.f32 %v2749_v24, %v6820_v17 }
 0x70e   : > { %v3876_v21 = vpop.f32.mrf.mxu2 }
 0x70f   : > { %v3079_v29 = vadd.f32 %v3078_v8, %v2750_v56  ;;  %v3877_v61 = vadd.f32 %v7112_v13, %v3876_v21 }
 0x710   : > { %v4205_v22 = vpop.f32.mrf.mxu3 }
 0x711   : > { %v5216_v0 = vpop.eup %5215  ;;  %v3360_v38 = vmax.f32 %v3079_v29, 0.0  ;;  %v4206_v41 = vadd.f32 %v4205_v22, %v3877_v61 }
 0x712   : > { %4562 = vst.msk [vmem:[%s6920_s15 + $0x1e0] sm:$0xff] %vm4501_vm1, %v5216_v0  ;;  %v7894_v0 = vld [vmem:[#allocation100_spill] sm:$0xff] }
 0x713   : > { %5217 = vtanh.f32 %v4206_v41  ;;  %3918 = vmatmul.bf16.gmra.mxu2 %v7890_v35  ;;  %v3536_v46 = vpack.c.bf16 %v3360_v38, %v3358_v40  ;;  %v3081_v47 = vpop.f32.mrf.mxu1  ;;  %v7895_v40 = vld [vmem:[#allocation101_spill] sm:$0xff] }
 0x714   : > { %v2752_v31 = vpop.f32.mrf.mxu0 }
 0x715   : > { %4247 = vmatmul.bf16.gmra.mxu3 %v3536_v46  ;;  %v2753_v9 = vadd.f32 %v2752_v31, %v6820_v17 }
 0x716   : > { %v3879_v52 = vpop.f32.mrf.mxu2  ;;  %3120 = vmatmul.bf16.gmra.mxu1 %v7892_v25 }
 0x717   : > { %v3880_v11 = vadd.f32 %v7112_v13, %v3879_v52  ;;  %2791 = vmatmul.bf16.gmra.mxu0 %v7891_v20  ;;  %v3082_v26 = vadd.f32 %v3081_v47, %v2753_v9 }
 0x718   : > { %v4208_v33 = vpop.f32.mrf.mxu3 }
 0x719   : > { %v5218_v53 = vpop.eup %5217  ;;  %v4209_v62 = vadd.f32 %v4208_v33, %v3880_v11  ;;  %v3362_v45 = vmax.f32 %v3082_v26, 0.0  ;;  %v7896_v26 = vld [vmem:[#allocation105_spill] sm:$0xff] }
 0x71a   : > { %4563 = vst.msk [vmem:[%s6920_s15 + $0x1e8] sm:$0xff] %vm4501_vm1, %v5218_v53 }
 0x71b   : > { %5219 = vtanh.f32 %v4209_v62  ;;  %v3083_v23 = vpop.f32.mrf.mxu1 }
 0x71c   : > { %v2754_v5 = vpop.f32.mrf.mxu0 }
 0x71d   : > { %v2755_v32 = vadd.f32 %v2754_v5, %v6820_v17 }
 0x71e   : > { %v3881_v63 = vpop.f32.mrf.mxu2 }
 0x71f   : > { %v3084_v10 = vadd.f32 %v3083_v23, %v2755_v32  ;;  %v3882_v14 = vadd.f32 %v7112_v13, %v3881_v63 }
 0x720   : > { %v4210_v15 = vpop.f32.mrf.mxu3 }
 0x721   : > { %v5220_v55 = vpop.eup %5219  ;;  %v3364_v24 = vmax.f32 %v3084_v10, 0.0  ;;  %v4211_v8 = vadd.f32 %v4210_v15, %v3882_v14 }
 0x722   : > { %4564 = vst.msk [vmem:[%s6920_s15 + $0x1f0] sm:$0xff] %vm4501_vm1, %v5220_v55  ;;  %v7897_v55 = vld [vmem:[#allocation103_spill] sm:$0xff] }
 0x723   : > { %5221 = vtanh.f32 %v4211_v8  ;;  %3923 = vmatmul.bf16.gmra.mxu2 %v7893_v2  ;;  %v3538_v56 = vpack.c.bf16 %v3364_v24, %v3362_v45  ;;  %v3086_v29 = vpop.f32.mrf.mxu1  ;;  %v7898_v45 = vld [vmem:[#allocation104_spill] sm:$0xff] }
 0x724   : > { %v2757_v21 = vpop.f32.mrf.mxu0 }
 0x725   : > { %4252 = vmatmul.bf16.gmra.mxu3 %v3538_v56  ;;  %v2758_v35 = vadd.f32 %v2757_v21, %v6820_v17 }
 0x726   : > { %v3884_v61 = vpop.f32.mrf.mxu2  ;;  %3125 = vmatmul.bf16.gmra.mxu1 %v7895_v40 }
 0x727   : > { %v3885_v22 = vadd.f32 %v7112_v13, %v3884_v61  ;;  %2796 = vmatmul.bf16.gmra.mxu0 %v7894_v0  ;;  %v3087_v52 = vadd.f32 %v3086_v29, %v2758_v35 }
 0x728   : > { %v4213_v38 = vpop.f32.mrf.mxu3 }
 0x729   : > { %v5222_v41 = vpop.eup %5221  ;;  %v4214_v46 = vadd.f32 %v4213_v38, %v3885_v22  ;;  %v3366_v62 = vmax.f32 %v3087_v52, 0.0  ;;  %v7899_v52 = vld [vmem:[#allocation108_spill] sm:$0xff] }
 0x72a   : > { %4565 = vst.msk [vmem:[%s6920_s15 + $0x1f8] sm:$0xff] %vm4501_vm1, %v5222_v41 }
 0x72b   : > { %5223 = vtanh.f32 %v4214_v46  ;;  %v3088_v47 = vpop.f32.mrf.mxu1 }
 0x72c   : > { %v2759_v31 = vpop.f32.mrf.mxu0 }
 0x72d   : > { %v2760_v11 = vadd.f32 %v2759_v31, %v6820_v17 }
 0x72e   : > { %v3886_v20 = vpop.f32.mrf.mxu2 }
 0x72f   : > { %v3089_v25 = vadd.f32 %v3088_v47, %v2760_v11  ;;  %v3887_v33 = vadd.f32 %v7112_v13, %v3886_v20 }
 0x730   : > { %v4215_v53 = vpop.f32.mrf.mxu3 }
 0x731   : > { %v5224_v9 = vpop.eup %5223  ;;  %v3368_v5 = vmax.f32 %v3089_v25, 0.0  ;;  %v4216_v23 = vadd.f32 %v4215_v53, %v3887_v33 }
 0x732   : > { %4566 = vst.msk [vmem:[%s6920_s15 + $0x200] sm:$0xff] %vm4501_vm1, %v5224_v9  ;;  %v7900_v9 = vld [vmem:[#allocation106_spill] sm:$0xff] }
 0x733   : > { %5225 = vtanh.f32 %v4216_v23  ;;  %3928 = vmatmul.bf16.gmra.mxu2 %v7896_v26  ;;  %v3540_v32 = vpack.c.bf16 %v3368_v5, %v3366_v62  ;;  %v3091_v10 = vpop.f32.mrf.mxu1  ;;  %v7901_v62 = vld [vmem:[#allocation107_spill] sm:$0xff] }
 0x734   : > { %v2762_v63 = vpop.f32.mrf.mxu0 }
 0x735   : > { %4257 = vmatmul.bf16.gmra.mxu3 %v3540_v32  ;;  %v2763_v2 = vadd.f32 %v2762_v63, %v6820_v17 }
 0x736   : > { %v3889_v14 = vpop.f32.mrf.mxu2  ;;  %3130 = vmatmul.bf16.gmra.mxu1 %v7898_v45 }
 0x737   : > { %v3890_v15 = vadd.f32 %v7112_v13, %v3889_v14  ;;  %2801 = vmatmul.bf16.gmra.mxu0 %v7897_v55  ;;  %v3092_v61 = vadd.f32 %v3091_v10, %v2763_v2 }
 0x738   : > { %v4218_v24 = vpop.f32.mrf.mxu3 }
 0x739   : > { %v5226_v8 = vpop.eup %5225  ;;  %v4219_v56 = vadd.f32 %v4218_v24, %v3890_v15  ;;  %v3370_v46 = vmax.f32 %v3092_v61, 0.0  ;;  %v7902_v61 = vld [vmem:[#allocation111_spill] sm:$0xff] }
 0x73a   : > { %4567 = vst.msk [vmem:[%s6920_s15 + $0x208] sm:$0xff] %vm4501_vm1, %v5226_v8 }
 0x73b   : > { %5227 = vtanh.f32 %v4219_v56  ;;  %v3093_v29 = vpop.f32.mrf.mxu1 }
 0x73c   : > { %v2764_v21 = vpop.f32.mrf.mxu0 }
 0x73d   : > { %v2765_v22 = vadd.f32 %v2764_v21, %v6820_v17 }
 0x73e   : > { %v3891_v0 = vpop.f32.mrf.mxu2 }
 0x73f   : > { %v3094_v40 = vadd.f32 %v3093_v29, %v2765_v22  ;;  %v3892_v38 = vadd.f32 %v7112_v13, %v3891_v0 }
 0x740   : > { %v4220_v41 = vpop.f32.mrf.mxu3 }
 0x741   : > { %v5228_v35 = vpop.eup %5227  ;;  %v3372_v31 = vmax.f32 %v3094_v40, 0.0  ;;  %v4221_v47 = vadd.f32 %v4220_v41, %v3892_v38 }
 0x742   : > { %4568 = vst.msk [vmem:[%s6920_s15 + $0x210] sm:$0xff] %vm4501_vm1, %v5228_v35  ;;  %v7903_v35 = vld [vmem:[#allocation109_spill] sm:$0xff] }
 0x743   : > { %5229 = vtanh.f32 %v4221_v47  ;;  %3933 = vmatmul.bf16.gmra.mxu2 %v7899_v52  ;;  %v3542_v11 = vpack.c.bf16 %v3372_v31, %v3370_v46  ;;  %v3096_v25 = vpop.f32.mrf.mxu1  ;;  %v7904_v46 = vld [vmem:[#allocation110_spill] sm:$0xff] }
 0x744   : > { %v2767_v20 = vpop.f32.mrf.mxu0 }
 0x745   : > { %4262 = vmatmul.bf16.gmra.mxu3 %v3542_v11  ;;  %v2768_v26 = vadd.f32 %v2767_v20, %v6820_v17 }
 0x746   : > { %v3894_v33 = vpop.f32.mrf.mxu2  ;;  %3135 = vmatmul.bf16.gmra.mxu1 %v7901_v62  ;;  %v7315_v62 = vld [vmem:[%s7582_s4 + $0x2] ss:$0 sm:$0xff] }
 0x747   : > { %v3895_v53 = vadd.f32 %v7112_v13, %v3894_v33  ;;  %2806 = vmatmul.bf16.gmra.mxu0 %v7900_v9  ;;  %v3097_v14 = vadd.f32 %v3096_v25, %v2768_v26 }
 0x748   : > { %v4223_v5 = vpop.f32.mrf.mxu3 }
 0x749   : > { %v5230_v23 = vpop.eup %5229  ;;  %v4224_v32 = vadd.f32 %v4223_v5, %v3895_v53  ;;  %v3374_v56 = vmax.f32 %v3097_v14, 0.0  ;;  %v7905_v14 = vld [vmem:[#allocation114_spill] sm:$0xff] }
 0x74a   : > { %4569 = vst.msk [vmem:[%s6920_s15 + $0x218] sm:$0xff] %vm4501_vm1, %v5230_v23 }
 0x74b   : > { %5231 = vtanh.f32 %v4224_v32  ;;  %v3098_v10 = vpop.f32.mrf.mxu1 }
 0x74c   : > { %v2769_v63 = vpop.f32.mrf.mxu0 }
 0x74d   : > { %v2770_v15 = vadd.f32 %v2769_v63, %v6820_v17 }
 0x74e   : > { %v3896_v55 = vpop.f32.mrf.mxu2 }
 0x74f   : > { %v3099_v45 = vadd.f32 %v3098_v10, %v2770_v15  ;;  %v3897_v24 = vadd.f32 %v7112_v13, %v3896_v55 }
 0x750   : > { %v4225_v8 = vpop.f32.mrf.mxu3 }
 0x751   : > { %v5232_v2 = vpop.eup %5231  ;;  %v3376_v21 = vmax.f32 %v3099_v45, 0.0  ;;  %v4226_v29 = vadd.f32 %v4225_v8, %v3897_v24 }
 0x752   : > { %4570 = vst.msk [vmem:[%s6920_s15 + $0x220] sm:$0xff] %vm4501_vm1, %v5232_v2  ;;  %v7906_v2 = vld [vmem:[#allocation112_spill] sm:$0xff] }
 0x753   : > { %5233 = vtanh.f32 %v4226_v29  ;;  %3938 = vmatmul.bf16.gmra.mxu2 %v7902_v61  ;;  %v3544_v22 = vpack.c.bf16 %v3376_v21, %v3374_v56  ;;  %v3101_v40 = vpop.f32.mrf.mxu1  ;;  %v7907_v56 = vld [vmem:[#allocation113_spill] sm:$0xff] }
 0x754   : > { %v2772_v0 = vpop.f32.mrf.mxu0 }
 0x755   : > { %4267 = vmatmul.bf16.gmra.mxu3 %v3544_v22  ;;  %v2773_v52 = vadd.f32 %v2772_v0, %v6820_v17 }
 0x756   : > { %v3899_v38 = vpop.f32.mrf.mxu2  ;;  %3140 = vmatmul.bf16.gmra.mxu1 %v7904_v46 }
 0x757   : > { %v3900_v41 = vadd.f32 %v7112_v13, %v3899_v38  ;;  %2811 = vmatmul.bf16.gmra.mxu0 %v7903_v35  ;;  %v3102_v33 = vadd.f32 %v3101_v40, %v2773_v52 }
 0x758   : > { %v4228_v31 = vpop.f32.mrf.mxu3 }
 0x759   : > { %v5234_v47 = vpop.eup %5233  ;;  %v4229_v11 = vadd.f32 %v4228_v31, %v3900_v41  ;;  %v3378_v32 = vmax.f32 %v3102_v33, 0.0 }
 0x75a   : > { %4571 = vst.msk [vmem:[%s6920_s15 + $0x228] sm:$0xff] %vm4501_vm1, %v5234_v47 }
 0x75b   : > { %5235 = vtanh.f32 %v4229_v11  ;;  %v3103_v25 = vpop.f32.mrf.mxu1 }
 0x75c   : > { %v2774_v20 = vpop.f32.mrf.mxu0 }
 0x75d   : > { %v2775_v53 = vadd.f32 %v2774_v20, %v6820_v17 }
 0x75e   : > { %v3901_v9 = vpop.f32.mrf.mxu2 }
 0x75f   : > { %v3104_v13 = vadd.f32 %v3103_v25, %v2775_v53  ;;  %v3902_v5 = vadd.f32 %v7315_v62, %v3901_v9 }
 0x760   : > { %v4230_v23 = vpop.f32.mrf.mxu3 }
 0x761   : > { %v5236_v26 = vpop.eup %5235  ;;  %v3380_v63 = vmax.f32 %v3104_v13, 0.0  ;;  %v4231_v10 = vadd.f32 %v4230_v23, %v3902_v5  ;;  %v7908_v23 = vld [vmem:[#allocation115_spill] sm:$0xff] }
 0x762   : > { %4572 = vst.msk [vmem:[%s6920_s15 + $0x230] sm:$0xff] %vm4501_vm1, %v5236_v26 }
 0x763   : > { %5237 = vtanh.f32 %v4231_v10  ;;  %3943 = vmatmul.bf16.gmra.mxu2 %v7905_v14  ;;  %v3546_v15 = vpack.c.bf16 %v3380_v63, %v3378_v32  ;;  %v3106_v45 = vpop.f32.mrf.mxu1 }
 0x764   : > { %v2777_v55 = vpop.f32.mrf.mxu0 }
 0x765   : > { %4272 = vmatmul.bf16.gmra.mxu3 %v3546_v15  ;;  %v2778_v61 = vadd.f32 %v2777_v55, %v6820_v17 }
 0x766   : > { %v3904_v24 = vpop.f32.mrf.mxu2  ;;  %3145 = vmatmul.bf16.gmra.mxu1 %v7907_v56 }
 0x767   : > { %v3905_v8 = vadd.f32 %v7315_v62, %v3904_v24  ;;  %2816 = vmatmul.bf16.gmra.mxu0 %v7906_v2  ;;  %v3107_v38 = vadd.f32 %v3106_v45, %v2778_v61 }
 0x768   : > { %v4233_v21 = vpop.f32.mrf.mxu3 }
 0x769   : > { %v5238_v29 = vpop.eup %5237  ;;  %v4234_v22 = vadd.f32 %v4233_v21, %v3905_v8  ;;  %v3382_v11 = vmax.f32 %v3107_v38, 0.0 }
 0x76a   : > { %4573 = vst.msk [vmem:[%s6920_s15 + $0x238] sm:$0xff] %vm4501_vm1, %v5238_v29 }
 0x76b   : > { %5239 = vtanh.f32 %v4234_v22  ;;  %v3108_v40 = vpop.f32.mrf.mxu1 }
 0x76c   : > { %v2779_v0 = vpop.f32.mrf.mxu0 }
 0x76d   : > { %v2780_v41 = vadd.f32 %v2779_v0, %v6820_v17 }
 0x76e   : > { %v3906_v35 = vpop.f32.mrf.mxu2 }
 0x76f   : > { %v3109_v46 = vadd.f32 %v3108_v40, %v2780_v41  ;;  %v3907_v31 = vadd.f32 %v7315_v62, %v3906_v35  ;;  %v7909_v41 = vld [vmem:[#allocation116_spill] sm:$0xff] }
 0x770   : > { %v4235_v47 = vpop.f32.mrf.mxu3 }
 0x771   : > { %v5240_v52 = vpop.eup %5239  ;;  %v3384_v20 = vmax.f32 %v3109_v46, 0.0  ;;  %v4236_v25 = vadd.f32 %v4235_v47, %v3907_v31 }
 0x772   : > { %4574 = vst.msk [vmem:[%s6920_s15 + $0x240] sm:$0xff] %vm4501_vm1, %v5240_v52 }
 0x773   : > { %5241 = vtanh.f32 %v4236_v25  ;;  %3948 = vmatmul.bf16.gmra.mxu2 %v6670_v51  ;;  %v3548_v33 = vpack.c.bf16 %v3384_v20, %v3382_v11  ;;  %v3111_v9 = vpop.f32.mrf.mxu1 }
 0x774   : > { %v2782_v53 = vpop.f32.mrf.mxu0 }
 0x775   : > { %4277 = vmatmul.bf16.gmra.mxu3 %v3548_v33  ;;  %v2783_v63 = vadd.f32 %v2782_v53, %v6820_v17 }
 0x776   : > { %v3909_v13 = vpop.f32.mrf.mxu2  ;;  %3150 = vmatmul.bf16.gmra.mxu1 %v7908_v23 }
 0x777   : > { %v3910_v5 = vadd.f32 %v7315_v62, %v3909_v13  ;;  %2821 = vmatmul.bf16.gmra.mxu0 %v6661_v34  ;;  %v3112_v15 = vadd.f32 %v3111_v9, %v2783_v63 }
 0x778   : > { %v4238_v26 = vpop.f32.mrf.mxu3 }
 0x779   : > { %v5242_v32 = vpop.eup %5241  ;;  %v4239_v10 = vadd.f32 %v4238_v26, %v3910_v5  ;;  %v3386_v56 = vmax.f32 %v3112_v15, 0.0 }
 0x77a   : > { %4575 = vst.msk [vmem:[%s6920_s15 + $0x248] sm:$0xff] %vm4501_vm1, %v5242_v32 }
 0x77b   : > { %5243 = vtanh.f32 %v4239_v10  ;;  %v3113_v14 = vpop.f32.mrf.mxu1 }
 0x77c   : > { %v2784_v51 = vpop.f32.mrf.mxu0 }
 0x77d   : > { %v2785_v55 = vadd.f32 %v2784_v51, %v6820_v17 }
 0x77e   : > { %v3911_v45 = vpop.f32.mrf.mxu2 }
 0x77f   : > { %v3114_v24 = vadd.f32 %v3113_v14, %v2785_v55  ;;  %v3912_v34 = vadd.f32 %v7315_v62, %v3911_v45  ;;  %v7910_v14 = vld [vmem:[#allocation117_spill] sm:$0xff] }
 0x780   : > { %v4240_v8 = vpop.f32.mrf.mxu3 }
 0x781   : > { %v5244_v2 = vpop.eup %5243  ;;  %v3388_v21 = vmax.f32 %v3114_v24, 0.0  ;;  %v4241_v29 = vadd.f32 %v4240_v8, %v3912_v34 }
 0x782   : > { %4576 = vst.msk [vmem:[%s6920_s15 + $0x250] sm:$0xff] %vm4501_vm1, %v5244_v2 }
 0x783   : > { %5245 = vtanh.f32 %v4241_v29  ;;  %3953 = vmatmul.bf16.gmra.mxu2 %v6689_v49  ;;  %v3550_v61 = vpack.c.bf16 %v3388_v21, %v3386_v56  ;;  %v3116_v0 = vpop.f32.mrf.mxu1 }
 0x784   : > { %v2787_v22 = vpop.f32.mrf.mxu0 }
 0x785   : > { %4282 = vmatmul.bf16.gmra.mxu3 %v3550_v61  ;;  %v2788_v31 = vadd.f32 %v2787_v22, %v6820_v17 }
 0x786   : > { %v3914_v40 = vpop.f32.mrf.mxu2  ;;  %3155 = vmatmul.bf16.gmra.mxu1 %v7909_v41 }
 0x787   : > { %v3915_v38 = vadd.f32 %v7315_v62, %v3914_v40  ;;  %2826 = vmatmul.bf16.gmra.mxu0 %v6683_v3  ;;  %v3117_v11 = vadd.f32 %v3116_v0, %v2788_v31 }
 0x788   : > { %v4243_v35 = vpop.f32.mrf.mxu3 }
 0x789   : > { %v5246_v46 = vpop.eup %5245  ;;  %v4244_v47 = vadd.f32 %v4243_v35, %v3915_v38  ;;  %v3390_v13 = vmax.f32 %v3117_v11, 0.0 }
 0x78a   : > { %4577 = vst.msk [vmem:[%s6920_s15 + $0x258] sm:$0xff] %vm4501_vm1, %v5246_v46 }
 0x78b   : > { %5247 = vtanh.f32 %v4244_v47  ;;  %v3118_v52 = vpop.f32.mrf.mxu1  ;;  %v7911_v47 = vld [vmem:[#allocation118_spill] sm:$0xff] }
 0x78c   : > { %v2789_v49 = vpop.f32.mrf.mxu0 }
 0x78d   : > { %v2790_v20 = vadd.f32 %v2789_v49, %v6820_v17 }
 0x78e   : > { %v3916_v25 = vpop.f32.mrf.mxu2 }
 0x78f   : > { %v3119_v33 = vadd.f32 %v3118_v52, %v2790_v20  ;;  %v3917_v3 = vadd.f32 %v7315_v62, %v3916_v25 }
 0x790   : > { %v4245_v53 = vpop.f32.mrf.mxu3 }
 0x791   : > { %v5248_v9 = vpop.eup %5247  ;;  %v3392_v5 = vmax.f32 %v3119_v33, 0.0  ;;  %v4246_v23 = vadd.f32 %v4245_v53, %v3917_v3 }
 0x792   : > { %4578 = vst.msk [vmem:[%s6920_s15 + $0x260] sm:$0xff] %vm4501_vm1, %v5248_v9 }
 0x793   : > { %5249 = vtanh.f32 %v4246_v23  ;;  %3958 = vmatmul.bf16.gmra.mxu2 %v6705_v36  ;;  %v3552_v26 = vpack.c.bf16 %v3392_v5, %v3390_v13  ;;  %v3121_v63 = vpop.f32.mrf.mxu1 }
 0x794   : > { %v2792_v32 = vpop.f32.mrf.mxu0 }
 0x795   : > { %4287 = vmatmul.bf16.gmra.mxu3 %v3552_v26  ;;  %v2793_v45 = vadd.f32 %v2792_v32, %v6820_v17 }
 0x796   : > { %v3919_v10 = vpop.f32.mrf.mxu2  ;;  %3160 = vmatmul.bf16.gmra.mxu1 %v7910_v14 }
 0x797   : > { %v3920_v51 = vadd.f32 %v7315_v62, %v3919_v10  ;;  %2831 = vmatmul.bf16.gmra.mxu0 %v6699_v28  ;;  %v3122_v8 = vadd.f32 %v3121_v63, %v2793_v45 }
 0x798   : > { %v4248_v15 = vpop.f32.mrf.mxu3 }
 0x799   : > { %v5250_v55 = vpop.eup %5249  ;;  %v4249_v24 = vadd.f32 %v4248_v15, %v3920_v51  ;;  %v3394_v22 = vmax.f32 %v3122_v8, 0.0 }
 0x79a   : > { %4579 = vst.msk [vmem:[%s6920_s15 + $0x268] sm:$0xff] %vm4501_vm1, %v5250_v55  ;;  %v7912_v55 = vld [vmem:[#allocation119_spill] sm:$0xff] }
 0x79b   : > { %5251 = vtanh.f32 %v4249_v24  ;;  %v3123_v34 = vpop.f32.mrf.mxu1 }
 0x79c   : > { %v2794_v36 = vpop.f32.mrf.mxu0 }
 0x79d   : > { %v2795_v2 = vadd.f32 %v2794_v36, %v6820_v17 }
 0x79e   : > { %v3921_v56 = vpop.f32.mrf.mxu2 }
 0x79f   : > { %v3124_v21 = vadd.f32 %v3123_v34, %v2795_v2  ;;  %v3922_v28 = vadd.f32 %v7315_v62, %v3921_v56 }
 0x7a0   : > { %v4250_v29 = vpop.f32.mrf.mxu3 }
 0x7a1   : > { %v5252_v61 = vpop.eup %5251  ;;  %v3396_v0 = vmax.f32 %v3124_v21, 0.0  ;;  %v4251_v40 = vadd.f32 %v4250_v29, %v3922_v28 }
 0x7a2   : > { %4580 = vst.msk [vmem:[%s6920_s15 + $0x270] sm:$0xff] %vm4501_vm1, %v5252_v61 }
 0x7a3   : > { %5253 = vtanh.f32 %v4251_v40  ;;  %3963 = vmatmul.bf16.gmra.mxu2 %v6721_v27  ;;  %v3554_v38 = vpack.c.bf16 %v3396_v0, %v3394_v22  ;;  %v3126_v35 = vpop.f32.mrf.mxu1 }
 0x7a4   : > { %v2797_v41 = vpop.f32.mrf.mxu0 }
 0x7a5   : > { %4292 = vmatmul.bf16.gmra.mxu3 %v3554_v38  ;;  %v2798_v11 = vadd.f32 %v2797_v41, %v6820_v17 }
 0x7a6   : > { %v3924_v46 = vpop.f32.mrf.mxu2  ;;  %3165 = vmatmul.bf16.gmra.mxu1 %v7911_v47  ;;  %v7913_v47 = vld [vmem:[#allocation120_spill] sm:$0xff] }
 0x7a7   : > { %v3925_v31 = vadd.f32 %v7315_v62, %v3924_v46  ;;  %2836 = vmatmul.bf16.gmra.mxu0 %v6715_v57  ;;  %v3127_v33 = vadd.f32 %v3126_v35, %v2798_v11 }
 0x7a8   : > { %v4253_v49 = vpop.f32.mrf.mxu3 }
 0x7a9   : > { %v5254_v52 = vpop.eup %5253  ;;  %v4254_v20 = vadd.f32 %v4253_v49, %v3925_v31  ;;  %v3398_v23 = vmax.f32 %v3127_v33, 0.0 }
 0x7aa   : > { %4581 = vst.msk [vmem:[%s6920_s15 + $0x278] sm:$0xff] %vm4501_vm1, %v5254_v52 }
 0x7ab   : > { %5255 = vtanh.f32 %v4254_v20  ;;  %v3128_v25 = vpop.f32.mrf.mxu1 }
 0x7ac   : > { %v2799_v27 = vpop.f32.mrf.mxu0 }
 0x7ad   : > { %v2800_v3 = vadd.f32 %v2799_v27, %v6820_v17 }
 0x7ae   : > { %v3926_v53 = vpop.f32.mrf.mxu2 }
 0x7af   : > { %v3129_v9 = vadd.f32 %v3128_v25, %v2800_v3  ;;  %v3927_v57 = vadd.f32 %v7315_v62, %v3926_v53 }
 0x7b0   : > { %v4255_v13 = vpop.f32.mrf.mxu3 }
 0x7b1   : > { %v5256_v5 = vpop.eup %5255  ;;  %v3400_v26 = vmax.f32 %v3129_v9, 0.0  ;;  %v4256_v32 = vadd.f32 %v4255_v13, %v3927_v57 }
 0x7b2   : > { %4582 = vst.msk [vmem:[%s6920_s15 + $0x280] sm:$0xff] %vm4501_vm1, %v5256_v5 }
 0x7b3   : > { %5257 = vtanh.f32 %v4256_v32  ;;  %3968 = vmatmul.bf16.gmra.mxu2 %v6737_v59  ;;  %v3556_v63 = vpack.c.bf16 %v3400_v26, %v3398_v23  ;;  %v3131_v51 = vpop.f32.mrf.mxu1 }
 0x7b4   : > { %v2802_v10 = vpop.f32.mrf.mxu0 }
 0x7b5   : > { %4297 = vmatmul.bf16.gmra.mxu3 %v3556_v63  ;;  %v2803_v36 = vadd.f32 %v2802_v10, %v6820_v17 }
 0x7b6   : > { %v3929_v14 = vpop.f32.mrf.mxu2  ;;  %3170 = vmatmul.bf16.gmra.mxu1 %v7912_v55 }
 0x7b7   : > { %v3930_v15 = vadd.f32 %v7315_v62, %v3929_v14  ;;  %2841 = vmatmul.bf16.gmra.mxu0 %v6731_v16  ;;  %v3132_v2 = vadd.f32 %v3131_v51, %v2803_v36  ;;  %v7914_v14 = vld [vmem:[#allocation121_spill] sm:$0xff] }
 0x7b8   : > { %v4258_v45 = vpop.f32.mrf.mxu3 }
 0x7b9   : > { %v5258_v24 = vpop.eup %5257  ;;  %v4259_v34 = vadd.f32 %v4258_v45, %v3930_v15  ;;  %v3402_v22 = vmax.f32 %v3132_v2, 0.0 }
 0x7ba   : > { %4583 = vst.msk [vmem:[%s6920_s15 + $0x288] sm:$0xff] %vm4501_vm1, %v5258_v24 }
 0x7bb   : > { %5259 = vtanh.f32 %v4259_v34  ;;  %v3133_v8 = vpop.f32.mrf.mxu1 }
 0x7bc   : > { %v2804_v59 = vpop.f32.mrf.mxu0 }
 0x7bd   : > { %v2805_v56 = vadd.f32 %v2804_v59, %v6820_v17 }
 0x7be   : > { %v3931_v21 = vpop.f32.mrf.mxu2 }
 0x7bf   : > { %v3134_v28 = vadd.f32 %v3133_v8, %v2805_v56  ;;  %v3932_v16 = vadd.f32 %v7315_v62, %v3931_v21 }
 0x7c0   : > { %v4260_v29 = vpop.f32.mrf.mxu3 }
 0x7c1   : > { %v5260_v61 = vpop.eup %5259  ;;  %v3404_v0 = vmax.f32 %v3134_v28, 0.0  ;;  %v4261_v40 = vadd.f32 %v4260_v29, %v3932_v16 }
 0x7c2   : > { %4584 = vst.msk [vmem:[%s6920_s15 + $0x290] sm:$0xff] %vm4501_vm1, %v5260_v61 }
 0x7c3   : > { %5261 = vtanh.f32 %v4261_v40  ;;  %3973 = vmatmul.bf16.gmra.mxu2 %v6753_v50  ;;  %v3558_v38 = vpack.c.bf16 %v3404_v0, %v3402_v22  ;;  %v3136_v35 = vpop.f32.mrf.mxu1 }
 0x7c4   : > { %v2807_v41 = vpop.f32.mrf.mxu0 }
 0x7c5   : > { %4302 = vmatmul.bf16.gmra.mxu3 %v3558_v38  ;;  %v2808_v11 = vadd.f32 %v2807_v41, %v6820_v17  ;;  %v7915_v41 = vld [vmem:[#allocation122_spill] sm:$0xff] }
 0x7c6   : > { %v3934_v46 = vpop.f32.mrf.mxu2  ;;  %3175 = vmatmul.bf16.gmra.mxu1 %v7913_v47 }
 0x7c7   : > { %v3935_v31 = vadd.f32 %v7315_v62, %v3934_v46  ;;  %2846 = vmatmul.bf16.gmra.mxu0 %v6747_v39  ;;  %v3137_v25 = vadd.f32 %v3136_v35, %v2808_v11 }
 0x7c8   : > { %v4263_v49 = vpop.f32.mrf.mxu3 }
 0x7c9   : > { %v5262_v52 = vpop.eup %5261  ;;  %v4264_v20 = vadd.f32 %v4263_v49, %v3935_v31  ;;  %v3406_v13 = vmax.f32 %v3137_v25, 0.0 }
 0x7ca   : > { %4585 = vst.msk [vmem:[%s6920_s15 + $0x298] sm:$0xff] %vm4501_vm1, %v5262_v52 }
 0x7cb   : > { %5263 = vtanh.f32 %v4264_v20  ;;  %v3138_v27 = vpop.f32.mrf.mxu1 }
 0x7cc   : > { %v2809_v50 = vpop.f32.mrf.mxu0 }
 0x7cd   : > { %v2810_v33 = vadd.f32 %v2809_v50, %v6820_v17 }
 0x7ce   : > { %v3936_v3 = vpop.f32.mrf.mxu2 }
 0x7cf   : > { %v3139_v53 = vadd.f32 %v3138_v27, %v2810_v33  ;;  %v3937_v39 = vadd.f32 %v7315_v62, %v3936_v3 }
 0x7d0   : > { %v4265_v9 = vpop.f32.mrf.mxu3 }
 0x7d1   : > { %v5264_v57 = vpop.eup %5263  ;;  %v3408_v5 = vmax.f32 %v3139_v53, 0.0  ;;  %v4266_v23 = vadd.f32 %v4265_v9, %v3937_v39 }
 0x7d2   : > { %4586 = vst.msk [vmem:[%s6920_s15 + $0x2a0] sm:$0xff] %vm4501_vm1, %v5264_v57 }
 0x7d3   : > { %5265 = vtanh.f32 %v4266_v23  ;;  %3978 = vmatmul.bf16.gmra.mxu2 %v6769_v37  ;;  %v3560_v26 = vpack.c.bf16 %v3408_v5, %v3406_v13  ;;  %v3141_v63 = vpop.f32.mrf.mxu1  ;;  %v7916_v23 = vld [vmem:[#allocation123_spill] sm:$0xff] }
 0x7d4   : > { %v2812_v32 = vpop.f32.mrf.mxu0 }
 0x7d5   : > { %4307 = vmatmul.bf16.gmra.mxu3 %v3560_v26  ;;  %v2813_v45 = vadd.f32 %v2812_v32, %v6820_v17 }
 0x7d6   : > { %v3939_v10 = vpop.f32.mrf.mxu2  ;;  %3180 = vmatmul.bf16.gmra.mxu1 %v7914_v14 }
 0x7d7   : > { %v3940_v51 = vadd.f32 %v7315_v62, %v3939_v10  ;;  %2851 = vmatmul.bf16.gmra.mxu0 %v6763_v19  ;;  %v3142_v34 = vadd.f32 %v3141_v63, %v2813_v45 }
 0x7d8   : > { %v4268_v15 = vpop.f32.mrf.mxu3 }
 0x7d9   : > { %v5266_v55 = vpop.eup %5265  ;;  %v4269_v24 = vadd.f32 %v4268_v15, %v3940_v51  ;;  %v3410_v28 = vmax.f32 %v3142_v34, 0.0 }
 0x7da   : > { %4587 = vst.msk [vmem:[%s6920_s15 + $0x2a8] sm:$0xff] %vm4501_vm1, %v5266_v55 }
 0x7db   : > { %5267 = vtanh.f32 %v4269_v24  ;;  %v3143_v36 = vpop.f32.mrf.mxu1 }
 0x7dc   : > { %v2814_v37 = vpop.f32.mrf.mxu0 }
 0x7dd   : > { %v2815_v59 = vadd.f32 %v2814_v37, %v6820_v17 }
 0x7de   : > { %v3941_v8 = vpop.f32.mrf.mxu2 }
 0x7df   : > { %v3144_v2 = vadd.f32 %v3143_v36, %v2815_v59  ;;  %v3942_v19 = vadd.f32 %v7315_v62, %v3941_v8 }
 0x7e0   : > { %v4270_v56 = vpop.f32.mrf.mxu3 }
 0x7e1   : > { %v5268_v21 = vpop.eup %5267  ;;  %v3412_v16 = vmax.f32 %v3144_v2, 0.0  ;;  %v4271_v29 = vadd.f32 %v4270_v56, %v3942_v19 }
 0x7e2   : > { %4588 = vst.msk [vmem:[%s6920_s15 + $0x2b0] sm:$0xff] %vm4501_vm1, %v5268_v21 }
 0x7e3   : > { %v3562_v61 = vpack.c.bf16 %v3412_v16, %v3410_v28  ;;  %5269 = vtanh.f32 %v4271_v29  ;;  %3983 = vmatmul.bf16.gmra.mxu2 %v6785_v60  ;;  %v3146_v0 = vpop.f32.mrf.mxu1  ;;  %v7917_v28 = vld [vmem:[#allocation124_spill] sm:$0xff]  ;;  %v7918_v16 = vld [vmem:[#allocation125_spill] sm:$0xff] }
 0x7e4   : > { %v2817_v22 = vpop.f32.mrf.mxu0 }
 0x7e5   : > { %4312 = vmatmul.bf16.gmra.mxu3 %v3562_v61  ;;  %v2818_v31 = vadd.f32 %v2817_v22, %v6820_v17 }
 0x7e6   : > { %v3944_v40 = vpop.f32.mrf.mxu2  ;;  %3185 = vmatmul.bf16.gmra.mxu1 %v7915_v41 }
 0x7e7   : > { %v3945_v38 = vadd.f32 %v7315_v62, %v3944_v40  ;;  %2856 = vmatmul.bf16.gmra.mxu0 %v6779_v48  ;;  %v3147_v52 = vadd.f32 %v3146_v0, %v2818_v31 }
 0x7e8   : > { %v4273_v35 = vpop.f32.mrf.mxu3 }
 0x7e9   : > { %v5270_v46 = vpop.eup %5269  ;;  %v4274_v47 = vadd.f32 %v4273_v35, %v3945_v38  ;;  %v3414_v33 = vmax.f32 %v3147_v52, 0.0 }
 0x7ea   : > { %4589 = vst.msk [vmem:[%s6920_s15 + $0x2b8] sm:$0xff] %vm4501_vm1, %v5270_v46 }
 0x7eb   : > { %5271 = vtanh.f32 %v4274_v47  ;;  %v3148_v49 = vpop.f32.mrf.mxu1 }
 0x7ec   : > { %v2819_v60 = vpop.f32.mrf.mxu0 }
 0x7ed   : > { %v2820_v11 = vadd.f32 %v2819_v60, %v6820_v17 }
 0x7ee   : > { %v3946_v20 = vpop.f32.mrf.mxu2 }
 0x7ef   : > { %v3149_v50 = vadd.f32 %v3148_v49, %v2820_v11  ;;  %v3947_v48 = vadd.f32 %v7315_v62, %v3946_v20 }
 0x7f0   : > { %v4275_v27 = vpop.f32.mrf.mxu3 }
 0x7f1   : > { %v5272_v25 = vpop.eup %5271  ;;  %v3416_v3 = vmax.f32 %v3149_v50, 0.0  ;;  %v4276_v53 = vadd.f32 %v4275_v27, %v3947_v48 }
 0x7f2   : > { %4590 = vst.msk [vmem:[%s6920_s15 + $0x2c0] sm:$0xff] %vm4501_vm1, %v5272_v25 }
 0x7f3   : > { %v3564_v39 = vpack.c.bf16 %v3416_v3, %v3414_v33  ;;  %5273 = vtanh.f32 %v4276_v53  ;;  %3988 = vmatmul.bf16.gmra.mxu2 %v6801_v4  ;;  %v3151_v57 = vpop.f32.mrf.mxu1 }
 0x7f4   : > { %v2822_v9 = vpop.f32.mrf.mxu0 }
 0x7f5   : > { %4317 = vmatmul.bf16.gmra.mxu3 %v3564_v39  ;;  %v2823_v63 = vadd.f32 %v2822_v9, %v6820_v17 }
 0x7f6   : > { %v3949_v13 = vpop.f32.mrf.mxu2  ;;  %3190 = vmatmul.bf16.gmra.mxu1 %v7916_v23 }
 0x7f7   : > { %v3950_v5 = vadd.f32 %v7315_v62, %v3949_v13  ;;  %2861 = vmatmul.bf16.gmra.mxu0 %v6795_v58  ;;  %v3152_v14 = vadd.f32 %v3151_v57, %v2823_v63 }
 0x7f8   : > { %v4278_v26 = vpop.f32.mrf.mxu3 }
 0x7f9   : > { %v5274_v32 = vpop.eup %5273  ;;  %v4279_v10 = vadd.f32 %v4278_v26, %v3950_v5  ;;  %v3418_v36 = vmax.f32 %v3152_v14, 0.0 }
 0x7fa   : > { %4591 = vst.msk [vmem:[%s6920_s15 + $0x2c8] sm:$0xff] %vm4501_vm1, %v5274_v32 }
 0x7fb   : > { %5275 = vtanh.f32 %v4279_v10  ;;  %v3153_v51 = vpop.f32.mrf.mxu1 }
 0x7fc   : > { %v2824_v4 = vpop.f32.mrf.mxu0 }
 0x7fd   : > { %v2825_v15 = vadd.f32 %v2824_v4, %v6820_v17 }
 0x7fe   : > { %v3951_v55 = vpop.f32.mrf.mxu2 }
 0x7ff   : > { %v3154_v45 = vadd.f32 %v3153_v51, %v2825_v15  ;;  %v3952_v58 = vadd.f32 %v7315_v62, %v3951_v55 }
 0x800   : > { %v4280_v24 = vpop.f32.mrf.mxu3 }
 0x801   : > { %v5276_v37 = vpop.eup %5275  ;;  %v3420_v34 = vmax.f32 %v3154_v45, 0.0  ;;  %v4281_v59 = vadd.f32 %v4280_v24, %v3952_v58 }
 0x802   : > { %4592 = vst.msk [vmem:[%s6920_s15 + $0x2d0] sm:$0xff] %vm4501_vm1, %v5276_v37 }
 0x803   : > { %v3566_v8 = vpack.c.bf16 %v3420_v34, %v3418_v36  ;;  %5277 = vtanh.f32 %v4281_v59  ;;  %3993 = vmatmul.bf16.gmra.mxu2 %v6822_v18  ;;  %v3156_v19 = vpop.f32.mrf.mxu1 }
 0x804   : > { %v2827_v2 = vpop.f32.mrf.mxu0 }
 0x805   : > { %4322 = vmatmul.bf16.gmra.mxu3 %v3566_v8  ;;  %v2828_v22 = vadd.f32 %v2827_v2, %v6820_v17 }
 0x806   : > { %v3954_v56 = vpop.f32.mrf.mxu2  ;;  %3195 = vmatmul.bf16.gmra.mxu1 %v7918_v16 }
 0x807   : > { %v3955_v21 = vadd.f32 %v7315_v62, %v3954_v56  ;;  %2866 = vmatmul.bf16.gmra.mxu0 %v7917_v28  ;;  %v3157_v38 = vadd.f32 %v3156_v19, %v2828_v22 }
 0x808   : > { %v4283_v29 = vpop.f32.mrf.mxu3 }
 0x809   : > { %v5278_v61 = vpop.eup %5277  ;;  %v4284_v0 = vadd.f32 %v4283_v29, %v3955_v21  ;;  %v3422_v49 = vmax.f32 %v3157_v38, 0.0 }
 0x80a   : > { %4593 = vst.msk [vmem:[%s6920_s15 + $0x2d8] sm:$0xff] %vm4501_vm1, %v5278_v61 }
 0x80b   : > { %5279 = vtanh.f32 %v4284_v0  ;;  %v3158_v40 = vpop.f32.mrf.mxu1 }
 0x80c   : > { %v2829_v18 = vpop.f32.mrf.mxu0 }
 0x80d   : > { %v2830_v41 = vadd.f32 %v2829_v18, %v6820_v17 }
 0x80e   : > { %v3956_v35 = vpop.f32.mrf.mxu2 }
 0x80f   : > { %v3159_v46 = vadd.f32 %v3158_v40, %v2830_v41  ;;  %v3957_v31 = vadd.f32 %v7315_v62, %v3956_v35 }
 0x810   : > { %v4285_v47 = vpop.f32.mrf.mxu3 }
 0x811   : > { %v5280_v60 = vpop.eup %5279  ;;  %v3424_v52 = vmax.f32 %v3159_v46, 0.0  ;;  %v4286_v11 = vadd.f32 %v4285_v47, %v3957_v31 }
 0x812   : > { %4594 = vst.msk [vmem:[%s6920_s15 + $0x2e0] sm:$0xff] %vm4501_vm1, %v5280_v60 }
 0x813   : > { %v3568_v20 = vpack.c.bf16 %v3424_v52, %v3422_v49  ;;  %5281 = vtanh.f32 %v4286_v11  ;;  %3998 = vmatmul.bf16.gmra.mxu2 %v6831_v54  ;;  %v3161_v48 = vpop.f32.mrf.mxu1 }
 0x814   : > { %v2832_v50 = vpop.f32.mrf.mxu0 }
 0x815   : > { %4327 = vmatmul.bf16.gmra.mxu3 %v3568_v20  ;;  %v2833_v53 = vadd.f32 %v2832_v50, %v6820_v17 }
 0x816   : > { %v3959_v27 = vpop.f32.mrf.mxu2 }
 0x817   : > { %v3960_v25 = vadd.f32 %v7315_v62, %v3959_v27  ;;  %v3162_v13 = vadd.f32 %v3161_v48, %v2833_v53 }
 0x818   : > { %v4288_v33 = vpop.f32.mrf.mxu3 }
 0x819   : > { %v5282_v3 = vpop.eup %5281  ;;  %v4289_v39 = vadd.f32 %v4288_v33, %v3960_v25  ;;  %v3426_v10 = vmax.f32 %v3162_v13, 0.0 }
 0x81a   : > { %4595 = vst.msk [vmem:[%s6920_s15 + $0x2e8] sm:$0xff] %vm4501_vm1, %v5282_v3 }
 0x81b   : > { %5283 = vtanh.f32 %v4289_v39  ;;  %v3163_v57 = vpop.f32.mrf.mxu1 }
 0x81c   : > { %v2834_v9 = vpop.f32.mrf.mxu0 }
 0x81d   : > { %v2835_v54 = vadd.f32 %v2834_v9, %v6820_v17 }
 0x81e   : > { %v3961_v5 = vpop.f32.mrf.mxu2 }
 0x81f   : > { %v3164_v23 = vadd.f32 %v3163_v57, %v2835_v54  ;;  %v3962_v26 = vadd.f32 %v7315_v62, %v3961_v5 }
 0x820   : > { %v4290_v32 = vpop.f32.mrf.mxu3 }
 0x821   : > { %v5284_v63 = vpop.eup %5283  ;;  %v3428_v4 = vmax.f32 %v3164_v23, 0.0  ;;  %v4291_v51 = vadd.f32 %v4290_v32, %v3962_v26 }
 0x822   : > { %4596 = vst.msk [vmem:[%s6920_s15 + $0x2f0] sm:$0xff] %vm4501_vm1, %v5284_v63 }
 0x823   : > { %v3570_v14 = vpack.c.bf16 %v3428_v4, %v3426_v10  ;;  %5285 = vtanh.f32 %v4291_v51  ;;  %4003 = vmatmul.bf16.gmra.mxu2 %v6840_v30  ;;  %v3166_v55 = vpop.f32.mrf.mxu1 }
 0x824   : > { %v2837_v15 = vpop.f32.mrf.mxu0 }
 0x825   : > { %4332 = vmatmul.bf16.gmra.mxu3 %v3570_v14  ;;  %v2838_v36 = vadd.f32 %v2837_v15, %v6820_v17 }
 0x826   : > { %v3964_v45 = vpop.f32.mrf.mxu2 }
 0x827   : > { %v3965_v58 = vadd.f32 %v7315_v62, %v3964_v45  ;;  %v3167_v2 = vadd.f32 %v3166_v55, %v2838_v36 }
 0x828   : > { %v4293_v24 = vpop.f32.mrf.mxu3 }
 0x829   : > { %v5286_v37 = vpop.eup %5285  ;;  %v4294_v34 = vadd.f32 %v4293_v24, %v3965_v58  ;;  %v3430_v29 = vmax.f32 %v3167_v2, 0.0 }
 0x82a   : > { %4597 = vst.msk [vmem:[%s6920_s15 + $0x2f8] sm:$0xff] %vm4501_vm1, %v5286_v37 }
 0x82b   : > { %5287 = vtanh.f32 %v4294_v34  ;;  %v3168_v8 = vpop.f32.mrf.mxu1 }
 0x82c   : > { %v2839_v59 = vpop.f32.mrf.mxu0 }
 0x82d   : > { %v2840_v30 = vadd.f32 %v2839_v59, %v6820_v17 }
 0x82e   : > { %v3966_v19 = vpop.f32.mrf.mxu2 }
 0x82f   : > { %v3169_v56 = vadd.f32 %v3168_v8, %v2840_v30  ;;  %v3967_v21 = vadd.f32 %v7315_v62, %v3966_v19 }
 0x830   : > { %v4295_v28 = vpop.f32.mrf.mxu3 }
 0x831   : > { %v5288_v16 = vpop.eup %5287  ;;  %v3432_v61 = vmax.f32 %v3169_v56, 0.0  ;;  %v4296_v22 = vadd.f32 %v4295_v28, %v3967_v21 }
 0x832   : > { %4598 = vst.msk [vmem:[%s6920_s15 + $0x300] sm:$0xff] %vm4501_vm1, %v5288_v16 }
 0x833   : > { %v3572_v0 = vpack.c.bf16 %v3432_v61, %v3430_v29  ;;  %5289 = vtanh.f32 %v4296_v22  ;;  %4008 = vmatmul.bf16.gmra.mxu2 %v6849_v1  ;;  %v3171_v40 = vpop.f32.mrf.mxu1 }
 0x834   : > { %v2842_v18 = vpop.f32.mrf.mxu0 }
 0x835   : > { %4337 = vmatmul.bf16.gmra.mxu3 %v3572_v0  ;;  %v2843_v31 = vadd.f32 %v2842_v18, %v6820_v17 }
 0x836   : > { %v3969_v38 = vpop.f32.mrf.mxu2 }
 0x837   : > { %v3970_v41 = vadd.f32 %v7315_v62, %v3969_v38  ;;  %v3172_v52 = vadd.f32 %v3171_v40, %v2843_v31 }
 0x838   : > { %v4298_v35 = vpop.f32.mrf.mxu3 }
 0x839   : > { %v5290_v46 = vpop.eup %5289  ;;  %v4299_v47 = vadd.f32 %v4298_v35, %v3970_v41  ;;  %v3434_v25 = vmax.f32 %v3172_v52, 0.0 }
 0x83a   : > { %4599 = vst.msk [vmem:[%s6920_s15 + $0x308] sm:$0xff] %vm4501_vm1, %v5290_v46 }
 0x83b   : > { %5291 = vtanh.f32 %v4299_v47  ;;  %v3173_v49 = vpop.f32.mrf.mxu1 }
 0x83c   : > { %v2844_v60 = vpop.f32.mrf.mxu0 }
 0x83d   : > { %v2845_v1 = vadd.f32 %v2844_v60, %v6820_v17 }
 0x83e   : > { %v3971_v11 = vpop.f32.mrf.mxu2 }
 0x83f   : > { %v3174_v20 = vadd.f32 %v3173_v49, %v2845_v1  ;;  %v3972_v50 = vadd.f32 %v7315_v62, %v3971_v11 }
 0x840   : > { %v4300_v48 = vpop.f32.mrf.mxu3 }
 0x841   : > { %v5292_v27 = vpop.eup %5291  ;;  %v3436_v33 = vmax.f32 %v3174_v20, 0.0  ;;  %v4301_v3 = vadd.f32 %v4300_v48, %v3972_v50 }
 0x842   : > { %4600 = vst.msk [vmem:[%s6920_s15 + $0x310] sm:$0xff] %vm4501_vm1, %v5292_v27 }
 0x843   : > { %v3574_v53 = vpack.c.bf16 %v3436_v33, %v3434_v25  ;;  %5293 = vtanh.f32 %v4301_v3  ;;  %4013 = vmatmul.bf16.gmra.mxu2 %v6858_v6  ;;  %v3176_v9 = vpop.f32.mrf.mxu1 }
 0x844   : > { %v2847_v39 = vpop.f32.mrf.mxu0 }
 0x845   : > { %4342 = vmatmul.bf16.gmra.mxu3 %v3574_v53  ;;  %v2848_v23 = vadd.f32 %v2847_v39, %v6820_v17 }
 0x846   : > { %v3974_v57 = vpop.f32.mrf.mxu2 }
 0x847   : > { %v3975_v13 = vadd.f32 %v7315_v62, %v3974_v57  ;;  %v3177_v10 = vadd.f32 %v3176_v9, %v2848_v23 }
 0x848   : > { %v4303_v54 = vpop.f32.mrf.mxu3 }
 0x849   : > { %v5294_v5 = vpop.eup %5293  ;;  %v4304_v26 = vadd.f32 %v4303_v54, %v3975_v13  ;;  %v3438_v45 = vmax.f32 %v3177_v10, 0.0 }
 0x84a   : > { %4601 = vst.msk [vmem:[%s6920_s15 + $0x318] sm:$0xff] %vm4501_vm1, %v5294_v5 }
 0x84b   : > { %5295 = vtanh.f32 %v4304_v26  ;;  %v3178_v63 = vpop.f32.mrf.mxu1 }
 0x84c   : > { %v2849_v32 = vpop.f32.mrf.mxu0 }
 0x84d   : > { %v2850_v6 = vadd.f32 %v2849_v32, %v6820_v17 }
 0x84e   : > { %v3976_v4 = vpop.f32.mrf.mxu2 }
 0x84f   : > { %v3179_v51 = vadd.f32 %v3178_v63, %v2850_v6  ;;  %v3977_v14 = vadd.f32 %v7315_v62, %v3976_v4 }
 0x850   : > { %v4305_v15 = vpop.f32.mrf.mxu3 }
 0x851   : > { %v5296_v55 = vpop.eup %5295  ;;  %v3440_v58 = vmax.f32 %v3179_v51, 0.0  ;;  %v4306_v24 = vadd.f32 %v4305_v15, %v3977_v14 }
 0x852   : > { %4602 = vst.msk [vmem:[%s6920_s15 + $0x320] sm:$0xff] %vm4501_vm1, %v5296_v55 }
 0x853   : > { %v3576_v37 = vpack.c.bf16 %v3440_v58, %v3438_v45  ;;  %5297 = vtanh.f32 %v4306_v24  ;;  %4018 = vmatmul.bf16.gmra.mxu2 %v6867_v7  ;;  %v3181_v34 = vpop.f32.mrf.mxu1 }
 0x854   : > { %v2852_v36 = vpop.f32.mrf.mxu0 }
 0x855   : > { %4347 = vmatmul.bf16.gmra.mxu3 %v3576_v37  ;;  %v2853_v19 = vadd.f32 %v2852_v36, %v6820_v17 }
 0x856   : > { %v3979_v59 = vpop.f32.mrf.mxu2 }
 0x857   : > { %v3980_v8 = vadd.f32 %v7315_v62, %v3979_v59  ;;  %v3182_v16 = vadd.f32 %v3181_v34, %v2853_v19 }
 0x858   : > { %v4308_v2 = vpop.f32.mrf.mxu3 }
 0x859   : > { %v5298_v30 = vpop.eup %5297  ;;  %v4309_v56 = vadd.f32 %v4308_v2, %v3980_v8  ;;  %v3442_v40 = vmax.f32 %v3182_v16, 0.0 }
 0x85a   : > { %4603 = vst.msk [vmem:[%s6920_s15 + $0x328] sm:$0xff] %vm4501_vm1, %v5298_v30 }
 0x85b   : > { %5299 = vtanh.f32 %v4309_v56  ;;  %v3183_v28 = vpop.f32.mrf.mxu1 }
 0x85c   : > { %v2854_v21 = vpop.f32.mrf.mxu0 }
 0x85d   : > { %v2855_v7 = vadd.f32 %v2854_v21, %v6820_v17 }
 0x85e   : > { %v3981_v29 = vpop.f32.mrf.mxu2 }
 0x85f   : > { %v3184_v61 = vadd.f32 %v3183_v28, %v2855_v7  ;;  %v3982_v22 = vadd.f32 %v7315_v62, %v3981_v29 }
 0x860   : > { %v4310_v0 = vpop.f32.mrf.mxu3 }
 0x861   : > { %v5300_v18 = vpop.eup %5299  ;;  %v3444_v38 = vmax.f32 %v3184_v61, 0.0  ;;  %v4311_v41 = vadd.f32 %v4310_v0, %v3982_v22 }
 0x862   : > { %4604 = vst.msk [vmem:[%s6920_s15 + $0x330] sm:$0xff] %vm4501_vm1, %v5300_v18 }
 0x863   : > { %v3578_v35 = vpack.c.bf16 %v3444_v38, %v3442_v40  ;;  %5301 = vtanh.f32 %v4311_v41  ;;  %4023 = vmatmul.bf16.gmra.mxu2 %v6876_v44  ;;  %v3186_v31 = vpop.f32.mrf.mxu1 }
 0x864   : > { %v2857_v46 = vpop.f32.mrf.mxu0 }
 0x865   : > { %4352 = vmatmul.bf16.gmra.mxu3 %v3578_v35  ;;  %v2858_v1 = vadd.f32 %v2857_v46, %v6820_v17 }
 0x866   : > { %v3984_v47 = vpop.f32.mrf.mxu2 }
 0x867   : > { %v3985_v60 = vadd.f32 %v7315_v62, %v3984_v47  ;;  %v3187_v48 = vadd.f32 %v3186_v31, %v2858_v1 }
 0x868   : > { %v4313_v49 = vpop.f32.mrf.mxu3 }
 0x869   : > { %v5302_v52 = vpop.eup %5301  ;;  %v4314_v11 = vadd.f32 %v4313_v49, %v3985_v60  ;;  %v3446_v39 = vmax.f32 %v3187_v48, 0.0 }
 0x86a   : > { %4605 = vst.msk [vmem:[%s6920_s15 + $0x338] sm:$0xff] %vm4501_vm1, %v5302_v52 }
 0x86b   : > { %5303 = vtanh.f32 %v4314_v11  ;;  %v3188_v50 = vpop.f32.mrf.mxu1 }
 0x86c   : > { %v2859_v20 = vpop.f32.mrf.mxu0 }
 0x86d   : > { %v2860_v44 = vadd.f32 %v2859_v20, %v6820_v17 }
 0x86e   : > { %v3986_v27 = vpop.f32.mrf.mxu2 }
 0x86f   : > { %v3189_v25 = vadd.f32 %v3188_v50, %v2860_v44  ;;  %v3987_v33 = vadd.f32 %v7315_v62, %v3986_v27 }
 0x870   : > { %v4315_v3 = vpop.f32.mrf.mxu3 }
 0x871   : > { %v5304_v53 = vpop.eup %5303  ;;  %v3448_v9 = vmax.f32 %v3189_v25, 0.0  ;;  %v4316_v57 = vadd.f32 %v4315_v3, %v3987_v33 }
 0x872   : > { %4606 = vst.msk [vmem:[%s6920_s15 + $0x340] sm:$0xff] %vm4501_vm1, %v5304_v53 }
 0x873   : > { %v3580_v13 = vpack.c.bf16 %v3448_v9, %v3446_v39  ;;  %5305 = vtanh.f32 %v4316_v57  ;;  %4028 = vmatmul.bf16.gmra.mxu2 %v6885_v42  ;;  %v3191_v5 = vpop.f32.mrf.mxu1 }
 0x874   : > { %v2862_v54 = vpop.f32.mrf.mxu0 }
 0x875   : > { %4357 = vmatmul.bf16.gmra.mxu3 %v3580_v13  ;;  %v2863_v10 = vadd.f32 %v2862_v54, %v6820_v17 }
 0x876   : > { %v3989_v23 = vpop.f32.mrf.mxu2 }
 0x877   : > { %v3990_v26 = vadd.f32 %v7315_v62, %v3989_v23  ;;  %v3192_v14 = vadd.f32 %v3191_v5, %v2863_v10 }
 0x878   : > { %v4318_v32 = vpop.f32.mrf.mxu3 }
 0x879   : > { %v5306_v63 = vpop.eup %5305  ;;  %v4319_v6 = vadd.f32 %v4318_v32, %v3990_v26  ;;  %v3450_v37 = vmax.f32 %v3192_v14, 0.0 }
 0x87a   : > { %4607 = vst.msk [vmem:[%s6920_s15 + $0x348] sm:$0xff] %vm4501_vm1, %v5306_v63 }
 0x87b   : > { %5307 = vtanh.f32 %v4319_v6  ;;  %v3193_v51 = vpop.f32.mrf.mxu1 }
 0x87c   : > { %v2864_v4 = vpop.f32.mrf.mxu0 }
 0x87d   : > { %v2865_v42 = vadd.f32 %v2864_v4, %v6820_v17 }
 0x87e   : > { %v3991_v15 = vpop.f32.mrf.mxu2 }
 0x87f   : > { %v3194_v55 = vadd.f32 %v3193_v51, %v2865_v42  ;;  %v3992_v45 = vadd.f32 %v7315_v62, %v3991_v15  ;;  %v7508_v62 = vld [vmem:[%s7582_s4 + $0x2] ss:$0 sm:$0xff] }
 0x880   : > { %v4320_v58 = vpop.f32.mrf.mxu3 }
 0x881   : > { %v5308_v24 = vpop.eup %5307  ;;  %v3452_v36 = vmax.f32 %v3194_v55, 0.0  ;;  %v4321_v34 = vadd.f32 %v4320_v58, %v3992_v45 }
 0x882   : > { %4608 = vst.msk [vmem:[%s6920_s15 + $0x350] sm:$0xff] %vm4501_vm1, %v5308_v24 }
 0x883   : > { %v3582_v59 = vpack.c.bf16 %v3452_v36, %v3450_v37  ;;  %5309 = vtanh.f32 %v4321_v34  ;;  %4033 = vmatmul.bf16.gmra.mxu2 %v6894_v12  ;;  %v3196_v2 = vpop.f32.mrf.mxu1 }
 0x884   : > { %v2867_v8 = vpop.f32.mrf.mxu0 }
 0x885   : > { %4362 = vmatmul.bf16.gmra.mxu3 %v3582_v59  ;;  %v2868_v28 = vadd.f32 %v2867_v8, %v6820_v17 }
 0x886   : > { %v3994_v30 = vpop.f32.mrf.mxu2 }
 0x887   : > { %v3995_v19 = vadd.f32 %v7508_v62, %v3994_v30  ;;  %v3197_v7 = vadd.f32 %v3196_v2, %v2868_v28 }
 0x888   : > { %v4323_v56 = vpop.f32.mrf.mxu3 }
 0x889   : > { %v5310_v21 = vpop.eup %5309  ;;  %v4324_v16 = vadd.f32 %v4323_v56, %v3995_v19  ;;  %v3454_v41 = vmax.f32 %v3197_v7, 0.0 }
 0x88a   : > { %4609 = vst.msk [vmem:[%s6920_s15 + $0x358] sm:$0xff] %vm4501_vm1, %v5310_v21 }
 0x88b   : > { %5311 = vtanh.f32 %v4324_v16  ;;  %v3198_v61 = vpop.f32.mrf.mxu1 }
 0x88c   : > { %v2869_v12 = vpop.f32.mrf.mxu0 }
 0x88d   : > { %v2870_v29 = vadd.f32 %v2869_v12, %v6820_v17 }
 0x88e   : > { %v3996_v22 = vpop.f32.mrf.mxu2 }
 0x88f   : > { %v3199_v0 = vadd.f32 %v3198_v61, %v2870_v29  ;;  %v3997_v18 = vadd.f32 %v7508_v62, %v3996_v22 }
 0x890   : > { %v4325_v40 = vpop.f32.mrf.mxu3 }
 0x891   : > { %v5312_v38 = vpop.eup %5311  ;;  %v3456_v35 = vmax.f32 %v3199_v0, 0.0  ;;  %v4326_v46 = vadd.f32 %v4325_v40, %v3997_v18 }
 0x892   : > { %4610 = vst.msk [vmem:[%s6920_s15 + $0x360] sm:$0xff] %vm4501_vm1, %v5312_v38 }
 0x893   : > { %v3584_v31 = vpack.c.bf16 %v3456_v35, %v3454_v41  ;;  %5313 = vtanh.f32 %v4326_v46  ;;  %4038 = vmatmul.bf16.gmra.mxu2 %v6908_v43 }
 0x895   : > { %4367 = vmatmul.bf16.gmra.mxu3 %v3584_v31 }
 0x896   : > { %v3999_v17 = vpop.f32.mrf.mxu2 }
 0x897   : > { %v4000_v47 = vadd.f32 %v7508_v62, %v3999_v17 }
 0x898   : > { %v4328_v60 = vpop.f32.mrf.mxu3 }
 0x899   : > { %v5314_v49 = vpop.eup %5313  ;;  %v4329_v52 = vadd.f32 %v4328_v60, %v4000_v47 }
 0x89a   : > { %4611 = vst.msk [vmem:[%s6920_s15 + $0x368] sm:$0xff] %vm4501_vm1, %v5314_v49 }
 0x89b   : > { %5315 = vtanh.f32 %v4329_v52 }
 0x89e   : > { %v4001_v1 = vpop.f32.mrf.mxu2 }
 0x89f   : > { %v4002_v11 = vadd.f32 %v7508_v62, %v4001_v1 }
 0x8a0   : > { %v4330_v20 = vpop.f32.mrf.mxu3 }
 0x8a1   : > { %v5316_v50 = vpop.eup %5315  ;;  %v4331_v48 = vadd.f32 %v4330_v20, %v4002_v11 }
 0x8a2   : > { %4612 = vst.msk [vmem:[%s6920_s15 + $0x370] sm:$0xff] %vm4501_vm1, %v5316_v50 }
 0x8a3   : > { %5317 = vtanh.f32 %v4331_v48 }
 0x8a6   : > { %v4004_v43 = vpop.f32.mrf.mxu2 }
 0x8a7   : > { %v4005_v44 = vadd.f32 %v7508_v62, %v4004_v43 }
 0x8a8   : > { %v4333_v27 = vpop.f32.mrf.mxu3 }
 0x8a9   : > { %v5318_v25 = vpop.eup %5317  ;;  %v4334_v33 = vadd.f32 %v4333_v27, %v4005_v44 }
 0x8aa   : > { %4613 = vst.msk [vmem:[%s6920_s15 + $0x378] sm:$0xff] %vm4501_vm1, %v5318_v25 }
 0x8ab   : > { %5319 = vtanh.f32 %v4334_v33 }
 0x8ae   : > { %v4006_v3 = vpop.f32.mrf.mxu2 }
 0x8af   : > { %v4007_v53 = vadd.f32 %v7508_v62, %v4006_v3 }
 0x8b0   : > { %v4335_v39 = vpop.f32.mrf.mxu3 }
 0x8b1   : > { %v5320_v9 = vpop.eup %5319  ;;  %v4336_v57 = vadd.f32 %v4335_v39, %v4007_v53 }
 0x8b2   : > { %4614 = vst.msk [vmem:[%s6920_s15 + $0x380] sm:$0xff] %vm4501_vm1, %v5320_v9 }
 0x8b3   : > { %5321 = vtanh.f32 %v4336_v57 }
 0x8b6   : > { %v4009_v13 = vpop.f32.mrf.mxu2 }
 0x8b7   : > { %v4010_v54 = vadd.f32 %v7508_v62, %v4009_v13 }
 0x8b8   : > { %v4338_v5 = vpop.f32.mrf.mxu3 }
 0x8b9   : > { %v5322_v23 = vpop.eup %5321  ;;  %v4339_v26 = vadd.f32 %v4338_v5, %v4010_v54 }
 0x8ba   : > { %4615 = vst.msk [vmem:[%s6920_s15 + $0x388] sm:$0xff] %vm4501_vm1, %v5322_v23 }
 0x8bb   : > { %5323 = vtanh.f32 %v4339_v26 }
 0x8be   : > { %v4011_v32 = vpop.f32.mrf.mxu2 }
 0x8bf   : > { %v4012_v63 = vadd.f32 %v7508_v62, %v4011_v32 }
 0x8c0   : > { %v4340_v10 = vpop.f32.mrf.mxu3 }
 0x8c1   : > { %v5324_v6 = vpop.eup %5323  ;;  %v4341_v4 = vadd.f32 %v4340_v10, %v4012_v63 }
 0x8c2   : > { %4616 = vst.msk [vmem:[%s6920_s15 + $0x390] sm:$0xff] %vm4501_vm1, %v5324_v6 }
 0x8c3   : > { %5325 = vtanh.f32 %v4341_v4 }
 0x8c6   : > { %v4014_v51 = vpop.f32.mrf.mxu2 }
 0x8c7   : > { %v4015_v14 = vadd.f32 %v7508_v62, %v4014_v51 }
 0x8c8   : > { %v4343_v42 = vpop.f32.mrf.mxu3 }
 0x8c9   : > { %v5326_v15 = vpop.eup %5325  ;;  %v4344_v55 = vadd.f32 %v4343_v42, %v4015_v14 }
 0x8ca   : > { %4617 = vst.msk [vmem:[%s6920_s15 + $0x398] sm:$0xff] %vm4501_vm1, %v5326_v15 }
 0x8cb   : > { %5327 = vtanh.f32 %v4344_v55 }
 0x8ce   : > { %v4016_v45 = vpop.f32.mrf.mxu2 }
 0x8cf   : > { %v4017_v58 = vadd.f32 %v7508_v62, %v4016_v45 }
 0x8d0   : > { %v4345_v24 = vpop.f32.mrf.mxu3 }
 0x8d1   : > { %v5328_v37 = vpop.eup %5327  ;;  %v4346_v36 = vadd.f32 %v4345_v24, %v4017_v58 }
 0x8d2   : > { %4618 = vst.msk [vmem:[%s6920_s15 + $0x3a0] sm:$0xff] %vm4501_vm1, %v5328_v37 }
 0x8d3   : > { %5329 = vtanh.f32 %v4346_v36 }
 0x8d6   : > { %v4019_v34 = vpop.f32.mrf.mxu2 }
 0x8d7   : > { %v4020_v59 = vadd.f32 %v7508_v62, %v4019_v34 }
 0x8d8   : > { %v4348_v8 = vpop.f32.mrf.mxu3 }
 0x8d9   : > { %v5330_v2 = vpop.eup %5329  ;;  %v4349_v30 = vadd.f32 %v4348_v8, %v4020_v59 }
 0x8da   : > { %4619 = vst.msk [vmem:[%s6920_s15 + $0x3a8] sm:$0xff] %vm4501_vm1, %v5330_v2 }
 0x8db   : > { %5331 = vtanh.f32 %v4349_v30 }
 0x8de   : > { %v4021_v19 = vpop.f32.mrf.mxu2 }
 0x8df   : > { %v4022_v56 = vadd.f32 %v7508_v62, %v4021_v19 }
 0x8e0   : > { %v4350_v21 = vpop.f32.mrf.mxu3 }
 0x8e1   : > { %v5332_v28 = vpop.eup %5331  ;;  %v4351_v16 = vadd.f32 %v4350_v21, %v4022_v56 }
 0x8e2   : > { %4620 = vst.msk [vmem:[%s6920_s15 + $0x3b0] sm:$0xff] %vm4501_vm1, %v5332_v28 }
 0x8e3   : > { %5333 = vtanh.f32 %v4351_v16 }
 0x8e6   : > { %v4024_v12 = vpop.f32.mrf.mxu2 }
 0x8e7   : > { %v4025_v7 = vadd.f32 %v7508_v62, %v4024_v12 }
 0x8e8   : > { %v4353_v29 = vpop.f32.mrf.mxu3 }
 0x8e9   : > { %v5334_v61 = vpop.eup %5333  ;;  %v4354_v22 = vadd.f32 %v4353_v29, %v4025_v7 }
 0x8ea   : > { %4621 = vst.msk [vmem:[%s6920_s15 + $0x3b8] sm:$0xff] %vm4501_vm1, %v5334_v61 }
 0x8eb   : > { %5335 = vtanh.f32 %v4354_v22 }
 0x8ee   : > { %v4026_v0 = vpop.f32.mrf.mxu2 }
 0x8ef   : > { %v4027_v18 = vadd.f32 %v7508_v62, %v4026_v0 }
 0x8f0   : > { %v4355_v40 = vpop.f32.mrf.mxu3 }
 0x8f1   : > { %v5336_v38 = vpop.eup %5335  ;;  %v4356_v41 = vadd.f32 %v4355_v40, %v4027_v18 }
 0x8f2   : > { %4622 = vst.msk [vmem:[%s6920_s15 + $0x3c0] sm:$0xff] %vm4501_vm1, %v5336_v38 }
 0x8f3   : > { %5337 = vtanh.f32 %v4356_v41 }
 0x8f6   : > { %v4029_v35 = vpop.f32.mrf.mxu2 }
 0x8f7   : > { %v4030_v46 = vadd.f32 %v7508_v62, %v4029_v35 }
 0x8f8   : > { %v4358_v31 = vpop.f32.mrf.mxu3 }
 0x8f9   : > { %v5338_v17 = vpop.eup %5337  ;;  %v4359_v47 = vadd.f32 %v4358_v31, %v4030_v46 }
 0x8fa   : > { %4623 = vst.msk [vmem:[%s6920_s15 + $0x3c8] sm:$0xff] %vm4501_vm1, %v5338_v17 }
 0x8fb   : > { %5339 = vtanh.f32 %v4359_v47 }
 0x8fe   : > { %v4031_v60 = vpop.f32.mrf.mxu2 }
 0x8ff   : > { %v4032_v49 = vadd.f32 %v7508_v62, %v4031_v60 }
 0x900   : > { %v4360_v52 = vpop.f32.mrf.mxu3 }
 0x901   : > { %v5340_v1 = vpop.eup %5339  ;;  %v4361_v11 = vadd.f32 %v4360_v52, %v4032_v49 }
 0x902   : > { %4624 = vst.msk [vmem:[%s6920_s15 + $0x3d0] sm:$0xff] %vm4501_vm1, %v5340_v1 }
 0x903   : > { %5341 = vtanh.f32 %v4361_v11 }
 0x906   : > { %v4034_v20 = vpop.f32.mrf.mxu2 }
 0x907   : > { %v4035_v50 = vadd.f32 %v7508_v62, %v4034_v20 }
 0x908   : > { %v4363_v48 = vpop.f32.mrf.mxu3 }
 0x909   : > { %v5342_v43 = vpop.eup %5341  ;;  %v4364_v44 = vadd.f32 %v4363_v48, %v4035_v50 }
 0x90a   : > { %4625 = vst.msk [vmem:[%s6920_s15 + $0x3d8] sm:$0xff] %vm4501_vm1, %v5342_v43 }
 0x90b   : > { %5343 = vtanh.f32 %v4364_v44 }
 0x90e   : > { %v4036_v27 = vpop.f32.mrf.mxu2 }
 0x90f   : > { %v4037_v25 = vadd.f32 %v7508_v62, %v4036_v27 }
 0x910   : > { %v4365_v33 = vpop.f32.mrf.mxu3 }
 0x911   : > { %v5344_v3 = vpop.eup %5343  ;;  %v4366_v53 = vadd.f32 %v4365_v33, %v4037_v25 }
 0x912   : > { %4626 = vst.msk [vmem:[%s6920_s15 + $0x3e0] sm:$0xff] %vm4501_vm1, %v5344_v3 }
 0x913   : > { %5345 = vtanh.f32 %v4366_v53 }
 0x916   : > { %v4039_v39 = vpop.f32.mrf.mxu2 }
 0x917   : > { %v4040_v9 = vadd.f32 %v7508_v62, %v4039_v39 }
 0x918   : > { %v4368_v57 = vpop.f32.mrf.mxu3 }
 0x919   : > { %v5346_v13 = vpop.eup %5345  ;;  %v4369_v54 = vadd.f32 %v4368_v57, %v4040_v9 }
 0x91a   : > { %4627 = vst.msk [vmem:[%s6920_s15 + $0x3e8] sm:$0xff] %vm4501_vm1, %v5346_v13 }
 0x91b   : > { %5347 = vtanh.f32 %v4369_v54 }
 0x91e   : > { %v4041_v5 = vpop.f32.mrf.mxu2 }
 0x91f   : > { %v4042_v23 = vadd.f32 %v7508_v62, %v4041_v5 }
 0x920   : > { %v4370_v26 = vpop.f32.mrf.mxu3 }
 0x921   : > { %v5348_v32 = vpop.eup %5347  ;;  %v4371_v63 = vadd.f32 %v4370_v26, %v4042_v23 }
 0x922   : > { %4628 = vst.msk [vmem:[%s6920_s15 + $0x3f0] sm:$0xff] %vm4501_vm1, %v5348_v32 }
 0x923   : > { %5349 = vtanh.f32 %v4371_v63 }
 0x929   : > { %v5350_v10 = vpop.eup %5349 }
 0x92a   : > { %4629 = vst.msk [vmem:[%s6920_s15 + $0x3f8] sm:$0xff] %vm4501_vm1, %v5350_v10 }
 0x92b PF: > { %s15_s18 = sadd.s32 1, %s5361_s18  }
 0x92c   : > { %p12_p4 = scmp.ge.s32.totalorder %s15_s18, 4  }
 0x92e   :  { %14 = sbr.rel (!%p12_p4) target bundleno = 1 (0x1), region = 71 }

</bundles_post_ra>
